<compile_context>
chip_gen: v7x
topology: tpu7x:2x2x1
jax: 0.10.0
libtpu: 0.0.40
codegen_flags: <defaults>
</compile_context>

<pallas_src>
import math

import jax
import jax.numpy as jnp
from jax.experimental import pallas as pl
from jax.experimental.pallas import tpu as pltpu


# Canonical parameter-slab ordering (shared by packer, wrapper and kernel).
SLAB_ORDER = ("w_qkv", "w_ff", "w_red", "w_emb", "w_out", "w_mm", "w_wca",
              "b_dff", "b_qkv", "b_m")

# Row order of the (16, 1, d_ff) bias/LayerNorm slab.
B_DFF_ROWS = ("emb1_b", "bo1", "ln1_1g", "ln1_1b", "bf1_1", "bf2_1", "ln2_1g", "ln2_1b",
              "emb2_b", "bo2", "ln1_2g", "ln1_2b", "bf1_2", "bf2_2", "ln2_2g", "ln2_2b")
B_DFF_IDX = {n: i for i, n in enumerate(B_DFF_ROWS)}


# ----------------------------------------------------------------------------
# Shared per-source math (used by both the Pallas kernel and the jnp reference)
# ----------------------------------------------------------------------------
def _forward_one_source(xs_raw, ms, pos, slabs, dims, *, approx=False):
    """xs_raw, ms: (NT, M) with NT = tb*L; pos: (L, d_ff); slabs: dict of packed params."""
    tb, L, M, d_ff, H, dk = dims
    NT = tb * L
    Hdk = H * dk
    f32, bf16 = jnp.float32, jnp.bfloat16

    w_qkv, w_ff, w_red, w_emb, w_out, w_mm, w_wca, b_dff, b_qkv, b_m = (
        slabs[k] for k in SLAB_ORDER)

    def brow(name):                     # (1, d_ff) bias / LN row
        return b_dff[B_DFF_IDX[name]]

    def mm(a, w):
        # bf16 operands, f32 accumulation (MXU-native path on v6e/v7x).
        return jnp.dot(a.astype(bf16), w, preferred_element_type=f32)

    if approx:
        recip = lambda v: pl.reciprocal(v, approx=True)   # EUP slot, off the VALU
    else:
        recip = lambda v: 1.0 / v                         # exact jnp reference path

    inv_sqrt_dk = 1.0 / math.sqrt(dk)

    def layernorm(x, g, b):
        mu = jnp.mean(x, axis=-1, keepdims=True)
        xc = x - mu
        var = jnp.mean(xc * xc, axis=-1, keepdims=True)
        return xc * jax.lax.rsqrt(var + 1e-6) * g + b

    def softmax_last(s):
        s = s - jnp.max(s, axis=-1, keepdims=True)
        e = jnp.exp(s)
        return e * recip(jnp.sum(e, axis=-1, keepdims=True))

    def add_pos(h):                     # broadcast positional table (no materialized copy)
        return (h.reshape(tb, L, d_ff) + pos[None, :, :]).reshape(NT, d_ff)

    def encoder_layer(h, li):           # li in {0, 1}
        hn = layernorm(h, brow(f"ln1_{li + 1}g"), brow(f"ln1_{li + 1}b"))
        qkv = mm(hn, w_qkv[li]) + b_qkv[li]                 # fused Q|K|V, (NT, 3*Hdk)

        # Stack heads along the cheap leading batch axis -> one batched attention.
        def heads(part):
            base = part * Hdk
            return [qkv[:, base + hh * dk: base + (hh + 1) * dk].reshape(tb, L, dk)
                    for hh in range(H)]
        q = jnp.concatenate(heads(0), axis=0)               # (H*tb, L, dk)
        k = jnp.concatenate(heads(1), axis=0)
        v = jnp.concatenate(heads(2), axis=0)

        sc = jnp.einsum('bqd,bkd->bqk', q.astype(bf16), k.astype(bf16),
                        preferred_element_type=f32) * inv_sqrt_dk
        probs = softmax_last(sc)                             # one softmax, (H*tb, L, L)
        ctx = jnp.einsum('bqk,bkd->bqd', probs.astype(bf16), v.astype(bf16),
                         preferred_element_type=f32)         # (H*tb, L, dk)

        # Per-head output projection, accumulated (no lane-concat relayout).
        attn_out = None
        for hh in range(H):
            c = ctx[hh * tb:(hh + 1) * tb].reshape(NT, dk)
            o = mm(c, w_out[li, hh])                         # (NT, d_ff)
            attn_out = o if attn_out is None else attn_out + o
        h = h + attn_out + brow(f"bo{li + 1}")

        hn2 = layernorm(h, brow(f"ln2_{li + 1}g"), brow(f"ln2_{li + 1}b"))
        f = jnp.maximum(mm(hn2, w_ff[2 * li]) + brow(f"bf1_{li + 1}"), 0.0)
        h = h + mm(f, w_ff[2 * li + 1]) + brow(f"bf2_{li + 1}")

        # Head-averaged attention map (tb, L, L) via leading-dim slices (no 4-D reduce).
        a = probs[0:tb]
        for hh in range(1, H):
            a = a + probs[hh * tb:(hh + 1) * tb]
        return h, a * (1.0 / H)

    xs = jnp.where(ms == 0.0, 0.0, xs_raw)                  # masked_fill(mask == 0, 0)
    ms_bf = ms.astype(bf16)                                  # reused MXU operand: cast once

    # ----- first DMSA block -----
    h = mm(xs, w_emb[0]) + mm(ms_bf, w_emb[1]) + brow("emb1_b")
    h = add_pos(h)
    h1, _ = encoder_layer(h, 0)
    x_tilde_1 = mm(h1, w_red[0]) + b_m[0]                    # reduce_dim_z
    x_prime = ms * xs + (1.0 - ms) * x_tilde_1

    # ----- second DMSA block -----
    h = mm(x_prime, w_emb[2]) + mm(ms_bf, w_emb[3]) + brow("emb2_b")
    h = add_pos(h)
    h2, attn = encoder_layer(h, 1)
    x_tilde_2 = mm(jnp.maximum(mm(h2, w_red[1]) + b_m[1], 0.0), w_mm[0]) + b_m[2]

    # ----- attention-weighted combination (split matmuls, no lane concat) -----
    attn_flat = attn.reshape(NT, L)
    z = mm(ms_bf, w_mm[1]) + mm(attn_flat, w_wca) + b_m[3]
    cw = recip(1.0 + jnp.exp(-z))                            # sigmoid
    x_tilde_3 = (1.0 - cw) * x_tilde_2 + cw * x_tilde_1
    return ms * xs + (1.0 - ms) * x_tilde_3                  # (NT, M)


# ----------------------------------------------------------------------------
# Pallas kernel + wrapper
# ----------------------------------------------------------------------------
def make_kernel(dims_tile):
    n_slabs = len(SLAB_ORDER)

    def kernel(x_ref, m_ref, pos_ref, *rest):
        slab_refs = rest[:n_slabs]
        out_ref = rest[n_slabs]
        slabs = {name: ref[...] for name, ref in zip(SLAB_ORDER, slab_refs)}
        xc = _forward_one_source(x_ref[0], m_ref[0], pos_ref[...], slabs,
                                 dims_tile, approx=True)     # (NT, M)
        # Lane-dense store: (M, NT) with NT a 128-multiple -> unmasked vst + dense DMA.
        out_ref[0, 0] = jnp.transpose(xc)
    return kernel


def _const_index(ndim):
    return lambda s, b: (0,) * ndim


def build_imputation(dims, S, tb=None, vmem_limit_bytes=None):
    """dims = (B, L, M, d_ff, H, dk); tb = batch tile (divides B).

    Per-generation guidance (from the perf review):
      v5e : pick tb so NT = tb*L >= 128 (MXU rows 128-granular).
      v6e : pick tb so NT >= 256 and raise vmem_limit_bytes toward ~64-100 MiB.
      v7x : roughly halve the v6e tb (64 MiB VMEM) and keep vmem_limit_bytes < ~28 MiB/TC.
    """
    B, L, M, d_ff, H, dk = dims
    if tb is None:
        tb = min(B, max(1, -(-256 // L)))
        while B % tb:
            tb -= 1
    assert B % tb == 0
    NT = tb * L
    N = B * L
    assert NT % 8 == 0, "NT = tb*L must be a sublane multiple"
    dims_tile = (tb, L, M, d_ff, H, dk)
    kernel = make_kernel(dims_tile)

    def run(x, mask, pos, params):
        # x, mask: (B, L, M, S) float32 -> per-source slabs (S, N, M)
        xs = jnp.transpose(x, (3, 0, 1, 2)).reshape(S, N, M)
        ms = jnp.transpose(mask, (3, 0, 1, 2)).reshape(S, N, M)
        slab_list = [params[n] for n in SLAB_ORDER]

        src_spec = pl.BlockSpec((1, NT, M), lambda s, b: (s, b, 0))
        pos_spec = pl.BlockSpec((L, d_ff), lambda s, b: (0, 0))
        const_specs = [pl.BlockSpec(a.shape, _const_index(a.ndim)) for a in slab_list]
        out_spec = pl.BlockSpec((1, 1, M, NT), lambda s, b: (s, b, 0, 0))

        cp_kwargs = dict(dimension_semantics=("parallel", "parallel"))
        if vmem_limit_bytes is not None:
            cp_kwargs["vmem_limit_bytes"] = vmem_limit_bytes

        out_t = pl.pallas_call(
            kernel,
            out_shape=jax.ShapeDtypeStruct((S, B // tb, M, NT), jnp.float32),
            grid=(S, B // tb),
            in_specs=[src_spec, src_spec, pos_spec] + const_specs,
            out_specs=out_spec,
            compiler_params=pltpu.CompilerParams(**cp_kwargs),
        )(xs, ms, pos, *slab_list)

        # (S, B//tb, M, NT) -> (B, L, M, S)   (lane-dense kernel output un-permuted here)
        out = out_t.reshape(S, B // tb, M, tb, L)
        out = jnp.transpose(out, (1, 3, 4, 2, 0)).reshape(B, L, M, S)
        # TODO(synk): fusion_layers ('WithoutFusion') treated as identity.
        return out

    return run


# ----------------------------------------------------------------------------
# Deterministic parameter slabs + positional table
# ----------------------------------------------------------------------------
def make_params(key, dims):
    """Returns 10 packed slabs keyed by SLAB_ORDER.  Pieces of identical shape are
    stacked along a NEW LEADING dim, so unpacking is a leading-dim integer index."""
    B, L, M, d_ff, H, dk = dims
    QKV = 3 * H * dk
    f32, bf16 = jnp.float32, jnp.bfloat16
    keys = iter(jax.random.split(key, 64))

    def W(shape):
        return jax.random.normal(next(keys), shape, f32) * (1.0 / math.sqrt(shape[0]))

    def brow(width):
        return 0.1 * jax.random.normal(next(keys), (1, width), f32)

    def lng():
        return 1.0 + 0.1 * jax.random.normal(next(keys), (1, d_ff), f32)

    wqkv = [W((d_ff, QKV)) for _ in range(2)]
    wff = [W((d_ff, d_ff)) for _ in range(4)]        # wf1_1, wf2_1, wf1_2, wf2_2
    wred = [W((d_ff, M)) for _ in range(2)]          # wz, wbeta
    wemb = [W((M, d_ff)) for _ in range(4)]          # emb1_wx, emb1_wm, emb2_wx, emb2_wm
    wout = [jnp.stack([W((dk, d_ff)) for _ in range(H)], axis=0) for _ in range(2)]
    wmm = [W((M, M)) for _ in range(2)]              # wgamma, wwc_mask
    wwca = W((L, M))                                 # wwc_attn

    bdff_rows = {
        "emb1_b": brow(d_ff), "bo1": brow(d_ff), "ln1_1g": lng(), "ln1_1b": brow(d_ff),
        "bf1_1": brow(d_ff), "bf2_1": brow(d_ff), "ln2_1g": lng(), "ln2_1b": brow(d_ff),
        "emb2_b": brow(d_ff), "bo2": brow(d_ff), "ln1_2g": lng(), "ln1_2b": brow(d_ff),
        "bf1_2": brow(d_ff), "bf2_2": brow(d_ff), "ln2_2g": lng(), "ln2_2b": brow(d_ff),
    }
    b_dff = jnp.stack([bdff_rows[n] for n in B_DFF_ROWS], axis=0)    # (16, 1, d_ff)
    b_qkv = jnp.stack([brow(QKV) for _ in range(2)], axis=0)         # (2, 1, QKV)
    b_m = jnp.stack([brow(M) for _ in range(4)], axis=0)             # bz, bbeta, bgamma, bwc

    return {
        "w_qkv": jnp.stack(wqkv, axis=0).astype(bf16),   # (2, d_ff, 3*H*dk)
        "w_ff": jnp.stack(wff, axis=0).astype(bf16),     # (4, d_ff, d_ff)
        "w_red": jnp.stack(wred, axis=0).astype(bf16),   # (2, d_ff, M)
        "w_emb": jnp.stack(wemb, axis=0).astype(bf16),   # (4, M, d_ff)
        "w_out": jnp.stack(wout, axis=0).astype(bf16),   # (2, H, dk, d_ff)
        "w_mm": jnp.stack(wmm, axis=0).astype(bf16),     # (2, M, M)
        "w_wca": wwca.astype(bf16),                      # (L, M)
        "b_dff": b_dff, "b_qkv": b_qkv, "b_m": b_m,      # f32 biases / LN params
    }


def make_pos_table(L, d_ff):
    position = jnp.arange(L, dtype=jnp.float32)[:, None]
    dim_idx = jnp.arange(d_ff)
    div = jnp.power(10000.0, (2.0 * (dim_idx // 2)) / d_ff).astype(jnp.float32)
    angles = position / div[None, :]
    return jnp.where(dim_idx[None, :] % 2 == 0,
                     jnp.sin(angles), jnp.cos(angles)).astype(jnp.float32)


# ----------------------------------------------------------------------------
# Pure-jnp reference (same math, exact divides) for validation
# ----------------------------------------------------------------------------
def reference(x, mask, pos, slabs, dims):
    B, L, M, d_ff, H, dk = dims
    S = x.shape[-1]
    outs = []
    for s in range(S):
        xs = x[..., s].reshape(B * L, M)
        ms = mask[..., s].reshape(B * L, M)
        outs.append(_forward_one_source(xs, ms, pos, slabs, (B, L, M, d_ff, H, dk),
                                        approx=False).reshape(B, L, M))
    return jnp.stack(outs, axis=-1)


# ----------------------------------------------------------------------------
if __name__ == "__main__":
    # small config: seq_len=8, c_out=4, 2 sources, d_ff=32, n_heads=2, d_lower=8
    B, L, M, S = 32, 8, 4, 2
    d_ff, H, dk = 32, 2, 8           # dk = d_lower (per-head key/value dim)
    dims = (B, L, M, d_ff, H, dk)
    tb = 16                          # NT = tb*L = 128 rows/step, grid = (S, B//tb) = (2, 2)

    key = jax.random.PRNGKey(0)
    kx, km, kp = jax.random.split(key, 3)
    x_enc = jax.random.normal(kx, (B, L, M, S), jnp.float32)
    mask = (jax.random.uniform(km, (B, L, M, S)) > 0.3).astype(jnp.float32)

    params = make_params(kp, dims)
    pos = make_pos_table(L, d_ff)

    run = jax.jit(build_imputation(dims, S, tb=tb))
    out = jax.block_until_ready(run(x_enc, mask, pos, params))
    assert out.shape == (B, L, M, S)

    ref = jax.block_until_ready(reference(x_enc, mask, pos, params, dims))
    # Loose-ish tolerance: kernel uses approx EUP reciprocal for softmax/sigmoid;
    # reference uses exact divides.  Both use bf16 MXU operands with f32 accum.
    if not bool(jnp.allclose(out, ref, rtol=5e-2, atol=5e-2)):
        err = float(jnp.max(jnp.abs(out - ref)))
        raise RuntimeError(f"Pallas kernel output mismatch (max abs err {err})")
    print("KERNEL_OK")
</pallas_src>

<mosaic_0001>
module attributes {stable_mosaic.version = 11 : i64} {
  func.func @kernel(%arg0: i32, %arg1: i32, %arg2: memref<1x128x4xf32, #tpu.memory_space<vmem>>, %arg3: memref<1x128x4xf32, #tpu.memory_space<vmem>>, %arg4: memref<8x32xf32, #tpu.memory_space<vmem>>, %arg5: memref<2x32x48xbf16, #tpu.memory_space<vmem>>, %arg6: memref<4x32x32xbf16, #tpu.memory_space<vmem>>, %arg7: memref<2x32x4xbf16, #tpu.memory_space<vmem>>, %arg8: memref<4x4x32xbf16, #tpu.memory_space<vmem>>, %arg9: memref<2x2x8x32xbf16, #tpu.memory_space<vmem>>, %arg10: memref<2x4x4xbf16, #tpu.memory_space<vmem>>, %arg11: memref<8x4xbf16, #tpu.memory_space<vmem>>, %arg12: memref<16x1x32xf32, #tpu.memory_space<vmem>>, %arg13: memref<2x1x48xf32, #tpu.memory_space<vmem>>, %arg14: memref<4x1x4xf32, #tpu.memory_space<vmem>>, %arg15: memref<1x1x4x128xf32, #tpu.memory_space<vmem>>) attributes {dimension_semantics = [#tpu.dimension_semantics<parallel>, #tpu.dimension_semantics<parallel>], iteration_bounds = array<i64: 2, 2>, scalar_prefetch = 0 : i64, scratch_operands = 0 : i64, tpu.core_type = #tpu.core_type<tc>, window_params = [{transform_indices = @transform_0, window_bounds = array<i64: 1, 128, 4>}, {transform_indices = @transform_1, window_bounds = array<i64: 1, 128, 4>}, {pipeline_mode = #tpu.pipeline_mode<synchronous>, transform_indices = @transform_2, window_bounds = array<i64: 8, 32>}, {pipeline_mode = #tpu.pipeline_mode<synchronous>, transform_indices = @transform_3, window_bounds = array<i64: 2, 32, 48>}, {pipeline_mode = #tpu.pipeline_mode<synchronous>, transform_indices = @transform_4, window_bounds = array<i64: 4, 32, 32>}, {pipeline_mode = #tpu.pipeline_mode<synchronous>, transform_indices = @transform_5, window_bounds = array<i64: 2, 32, 4>}, {pipeline_mode = #tpu.pipeline_mode<synchronous>, transform_indices = @transform_6, window_bounds = array<i64: 4, 4, 32>}, {pipeline_mode = #tpu.pipeline_mode<synchronous>, transform_indices = @transform_7, window_bounds = array<i64: 2, 2, 8, 32>}, {pipeline_mode = #tpu.pipeline_mode<synchronous>, transform_indices = @transform_8, window_bounds = array<i64: 2, 4, 4>}, {pipeline_mode = #tpu.pipeline_mode<synchronous>, transform_indices = @transform_9, window_bounds = array<i64: 8, 4>}, {pipeline_mode = #tpu.pipeline_mode<synchronous>, transform_indices = @transform_10, window_bounds = array<i64: 16, 1, 32>}, {pipeline_mode = #tpu.pipeline_mode<synchronous>, transform_indices = @transform_11, window_bounds = array<i64: 2, 1, 48>}, {pipeline_mode = #tpu.pipeline_mode<synchronous>, transform_indices = @transform_12, window_bounds = array<i64: 4, 1, 4>}, {transform_indices = @transform_13, window_bounds = array<i64: 1, 1, 4, 128>}]} {
    %c0 = arith.constant 0 : index
    %c0_0 = arith.constant 0 : index
    %c0_1 = arith.constant 0 : index
    %0 = vector.load %arg5[%c0, %c0_0, %c0_1] : memref<2x32x48xbf16, #tpu.memory_space<vmem>>, vector<2x32x48xbf16>
    %c0_2 = arith.constant 0 : index
    %c0_3 = arith.constant 0 : index
    %c0_4 = arith.constant 0 : index
    %1 = vector.load %arg6[%c0_2, %c0_3, %c0_4] : memref<4x32x32xbf16, #tpu.memory_space<vmem>>, vector<4x32x32xbf16>
    %c0_5 = arith.constant 0 : index
    %c0_6 = arith.constant 0 : index
    %c0_7 = arith.constant 0 : index
    %2 = vector.load %arg7[%c0_5, %c0_6, %c0_7] : memref<2x32x4xbf16, #tpu.memory_space<vmem>>, vector<2x32x4xbf16>
    %c0_8 = arith.constant 0 : index
    %c0_9 = arith.constant 0 : index
    %c0_10 = arith.constant 0 : index
    %3 = vector.load %arg8[%c0_8, %c0_9, %c0_10] : memref<4x4x32xbf16, #tpu.memory_space<vmem>>, vector<4x4x32xbf16>
    %c0_11 = arith.constant 0 : index
    %c0_12 = arith.constant 0 : index
    %c0_13 = arith.constant 0 : index
    %c0_14 = arith.constant 0 : index
    %4 = vector.load %arg9[%c0_11, %c0_12, %c0_13, %c0_14] : memref<2x2x8x32xbf16, #tpu.memory_space<vmem>>, vector<2x2x8x32xbf16>
    %c0_15 = arith.constant 0 : index
    %c0_16 = arith.constant 0 : index
    %c0_17 = arith.constant 0 : index
    %5 = vector.load %arg10[%c0_15, %c0_16, %c0_17] : memref<2x4x4xbf16, #tpu.memory_space<vmem>>, vector<2x4x4xbf16>
    %c0_18 = arith.constant 0 : index
    %c0_19 = arith.constant 0 : index
    %6 = vector.load %arg11[%c0_18, %c0_19] : memref<8x4xbf16, #tpu.memory_space<vmem>>, vector<8x4xbf16>
    %c0_20 = arith.constant 0 : index
    %c0_21 = arith.constant 0 : index
    %c0_22 = arith.constant 0 : index
    %7 = vector.load %arg12[%c0_20, %c0_21, %c0_22] : memref<16x1x32xf32, #tpu.memory_space<vmem>>, vector<16x1x32xf32>
    %c0_23 = arith.constant 0 : index
    %c0_24 = arith.constant 0 : index
    %c0_25 = arith.constant 0 : index
    %8 = vector.load %arg13[%c0_23, %c0_24, %c0_25] : memref<2x1x48xf32, #tpu.memory_space<vmem>>, vector<2x1x48xf32>
    %c0_26 = arith.constant 0 : index
    %c0_27 = arith.constant 0 : index
    %c0_28 = arith.constant 0 : index
    %9 = vector.load %arg14[%c0_26, %c0_27, %c0_28] : memref<4x1x4xf32, #tpu.memory_space<vmem>>, vector<4x1x4xf32>
    %c0_29 = arith.constant 0 : index
    %c0_30 = arith.constant 0 : index
    %c0_31 = arith.constant 0 : index
    %10 = vector.load %arg2[%c0_29, %c0_30, %c0_31] : memref<1x128x4xf32, #tpu.memory_space<vmem>>, vector<1x128x4xf32>
    %11 = vector.shape_cast %10 : vector<1x128x4xf32> to vector<128x4xf32>
    %c0_32 = arith.constant 0 : index
    %c0_33 = arith.constant 0 : index
    %c0_34 = arith.constant 0 : index
    %12 = vector.load %arg3[%c0_32, %c0_33, %c0_34] : memref<1x128x4xf32, #tpu.memory_space<vmem>>, vector<1x128x4xf32>
    %13 = vector.shape_cast %12 : vector<1x128x4xf32> to vector<128x4xf32>
    %c0_35 = arith.constant 0 : index
    %c0_36 = arith.constant 0 : index
    %14 = vector.load %arg4[%c0_35, %c0_36] : memref<8x32xf32, #tpu.memory_space<vmem>>, vector<8x32xf32>
    %cst = arith.constant 0.000000e+00 : f32
    %15 = vector.broadcast %cst : f32 to vector<128x4xf32>
    %16 = arith.cmpf oeq, %13, %15 : vector<128x4xf32>
    %cst_37 = arith.constant 0.000000e+00 : f32
    %17 = vector.broadcast %cst_37 : f32 to vector<128x4xf32>
    %18 = arith.select %16, %17, %11 : vector<128x4xi1>, vector<128x4xf32>
    %19 = arith.truncf %13 : vector<128x4xf32> to vector<128x4xbf16>
    %20 = vector.extract_strided_slice %3 {offsets = [0, 0, 0], sizes = [1, 4, 32], strides = [1, 1, 1]} : vector<4x4x32xbf16> to vector<1x4x32xbf16>
    %21 = vector.shape_cast %20 : vector<1x4x32xbf16> to vector<4x32xbf16>
    %22 = arith.truncf %18 : vector<128x4xf32> to vector<128x4xbf16>
    %cst_38 = arith.constant dense<0.000000e+00> : vector<128x32xf32>
    %23 = tpu.matmul %22, %21, %cst_38 {dimension_numbers = #tpu.dot_dimension_numbers<[1], [0], [0], [1], [0, 0, 1, 1], [], []>} : vector<128x4xbf16>, vector<4x32xbf16>, vector<128x32xf32> -> vector<128x32xf32>
    %24 = vector.extract_strided_slice %3 {offsets = [1, 0, 0], sizes = [1, 4, 32], strides = [1, 1, 1]} : vector<4x4x32xbf16> to vector<1x4x32xbf16>
    %25 = vector.shape_cast %24 : vector<1x4x32xbf16> to vector<4x32xbf16>
    %cst_39 = arith.constant dense<0.000000e+00> : vector<128x32xf32>
    %26 = tpu.matmul %19, %25, %cst_39 {dimension_numbers = #tpu.dot_dimension_numbers<[1], [0], [0], [1], [0, 0, 1, 1], [], []>} : vector<128x4xbf16>, vector<4x32xbf16>, vector<128x32xf32> -> vector<128x32xf32>
    %27 = arith.addf %23, %26 : vector<128x32xf32>
    %28 = vector.extract_strided_slice %7 {offsets = [0, 0, 0], sizes = [1, 1, 32], strides = [1, 1, 1]} : vector<16x1x32xf32> to vector<1x1x32xf32>
    %29 = vector.shape_cast %28 : vector<1x1x32xf32> to vector<1x32xf32>
    %30 = vector.broadcast %29 : vector<1x32xf32> to vector<128x32xf32>
    %31 = arith.addf %27, %30 : vector<128x32xf32>
    %32 = vector.shape_cast %31 : vector<128x32xf32> to vector<16x8x32xf32>
    %33 = vector.shape_cast %14 : vector<8x32xf32> to vector<1x8x32xf32>
    %34 = vector.broadcast %33 : vector<1x8x32xf32> to vector<16x8x32xf32>
    %35 = arith.addf %32, %34 : vector<16x8x32xf32>
    %36 = vector.shape_cast %35 : vector<16x8x32xf32> to vector<128x32xf32>
    %37 = vector.extract_strided_slice %7 {offsets = [2, 0, 0], sizes = [1, 1, 32], strides = [1, 1, 1]} : vector<16x1x32xf32> to vector<1x1x32xf32>
    %38 = vector.shape_cast %37 : vector<1x1x32xf32> to vector<1x32xf32>
    %39 = vector.extract_strided_slice %7 {offsets = [3, 0, 0], sizes = [1, 1, 32], strides = [1, 1, 1]} : vector<16x1x32xf32> to vector<1x1x32xf32>
    %40 = vector.shape_cast %39 : vector<1x1x32xf32> to vector<1x32xf32>
    %cst_40 = arith.constant dense<0.000000e+00> : vector<128xf32>
    %41 = vector.multi_reduction <add>, %36, %cst_40 [1] : vector<128x32xf32> to vector<128xf32>
    %42 = vector.shape_cast %41 : vector<128xf32> to vector<128x1xf32>
    %cst_41 = arith.constant 3.200000e+01 : f32
    %43 = vector.broadcast %cst_41 : f32 to vector<128x1xf32>
    %44 = arith.divf %42, %43 : vector<128x1xf32>
    %45 = vector.broadcast %44 : vector<128x1xf32> to vector<128x32xf32>
    %46 = arith.subf %36, %45 : vector<128x32xf32>
    %47 = arith.mulf %46, %46 : vector<128x32xf32>
    %cst_42 = arith.constant dense<0.000000e+00> : vector<128xf32>
    %48 = vector.multi_reduction <add>, %47, %cst_42 [1] : vector<128x32xf32> to vector<128xf32>
    %49 = vector.shape_cast %48 : vector<128xf32> to vector<128x1xf32>
    %cst_43 = arith.constant 3.200000e+01 : f32
    %50 = vector.broadcast %cst_43 : f32 to vector<128x1xf32>
    %51 = arith.divf %49, %50 : vector<128x1xf32>
    %cst_44 = arith.constant 9.99999997E-7 : f32
    %52 = vector.broadcast %cst_44 : f32 to vector<128x1xf32>
    %53 = arith.addf %51, %52 : vector<128x1xf32>
    %54 = math.rsqrt %53 : vector<128x1xf32>
    %55 = vector.broadcast %54 : vector<128x1xf32> to vector<128x32xf32>
    %56 = arith.mulf %46, %55 : vector<128x32xf32>
    %57 = vector.broadcast %38 : vector<1x32xf32> to vector<128x32xf32>
    %58 = arith.mulf %56, %57 : vector<128x32xf32>
    %59 = vector.broadcast %40 : vector<1x32xf32> to vector<128x32xf32>
    %60 = arith.addf %58, %59 : vector<128x32xf32>
    %61 = vector.extract_strided_slice %0 {offsets = [0, 0, 0], sizes = [1, 32, 48], strides = [1, 1, 1]} : vector<2x32x48xbf16> to vector<1x32x48xbf16>
    %62 = vector.shape_cast %61 : vector<1x32x48xbf16> to vector<32x48xbf16>
    %63 = arith.truncf %60 : vector<128x32xf32> to vector<128x32xbf16>
    %cst_45 = arith.constant dense<0.000000e+00> : vector<128x48xf32>
    %64 = tpu.matmul %63, %62, %cst_45 {dimension_numbers = #tpu.dot_dimension_numbers<[1], [0], [0], [1], [0, 0, 1, 1], [], []>} : vector<128x32xbf16>, vector<32x48xbf16>, vector<128x48xf32> -> vector<128x48xf32>
    %65 = vector.extract_strided_slice %8 {offsets = [0, 0, 0], sizes = [1, 1, 48], strides = [1, 1, 1]} : vector<2x1x48xf32> to vector<1x1x48xf32>
    %66 = vector.shape_cast %65 : vector<1x1x48xf32> to vector<1x48xf32>
    %67 = vector.broadcast %66 : vector<1x48xf32> to vector<128x48xf32>
    %68 = arith.addf %64, %67 : vector<128x48xf32>
    %69 = vector.extract_strided_slice %68 {offsets = [0, 0], sizes = [128, 8], strides = [1, 1]} : vector<128x48xf32> to vector<128x8xf32>
    %70 = vector.shape_cast %69 : vector<128x8xf32> to vector<16x8x8xf32>
    %71 = vector.extract_strided_slice %68 {offsets = [0, 8], sizes = [128, 8], strides = [1, 1]} : vector<128x48xf32> to vector<128x8xf32>
    %72 = vector.shape_cast %71 : vector<128x8xf32> to vector<16x8x8xf32>
    %73 = tpu.concatenate %70, %72 in 0 : vector<16x8x8xf32>, vector<16x8x8xf32> -> vector<32x8x8xf32>
    %74 = vector.extract_strided_slice %68 {offsets = [0, 16], sizes = [128, 8], strides = [1, 1]} : vector<128x48xf32> to vector<128x8xf32>
    %75 = vector.shape_cast %74 : vector<128x8xf32> to vector<16x8x8xf32>
    %76 = vector.extract_strided_slice %68 {offsets = [0, 24], sizes = [128, 8], strides = [1, 1]} : vector<128x48xf32> to vector<128x8xf32>
    %77 = vector.shape_cast %76 : vector<128x8xf32> to vector<16x8x8xf32>
    %78 = tpu.concatenate %75, %77 in 0 : vector<16x8x8xf32>, vector<16x8x8xf32> -> vector<32x8x8xf32>
    %79 = vector.extract_strided_slice %68 {offsets = [0, 32], sizes = [128, 8], strides = [1, 1]} : vector<128x48xf32> to vector<128x8xf32>
    %80 = vector.shape_cast %79 : vector<128x8xf32> to vector<16x8x8xf32>
    %81 = vector.extract_strided_slice %68 {offsets = [0, 40], sizes = [128, 8], strides = [1, 1]} : vector<128x48xf32> to vector<128x8xf32>
    %82 = vector.shape_cast %81 : vector<128x8xf32> to vector<16x8x8xf32>
    %83 = tpu.concatenate %80, %82 in 0 : vector<16x8x8xf32>, vector<16x8x8xf32> -> vector<32x8x8xf32>
    %84 = arith.truncf %73 : vector<32x8x8xf32> to vector<32x8x8xbf16>
    %85 = arith.truncf %78 : vector<32x8x8xf32> to vector<32x8x8xbf16>
    "tpu.trace_start"() <{level = 10 : i32, message = "bqd,bkd->bqk"}> : () -> ()
    %cst_46 = arith.constant dense<0.000000e+00> : vector<32x8x8xf32>
    %86 = tpu.matmul %84, %85, %cst_46 {dimension_numbers = #tpu.dot_dimension_numbers<[2], [2], [1], [1], [0, 0, 0, 1, 1, 1], [0], [0]>} : vector<32x8x8xbf16>, vector<32x8x8xbf16>, vector<32x8x8xf32> -> vector<32x8x8xf32>
    "tpu.trace_stop"() : () -> ()
    %cst_47 = arith.constant 0.353553385 : f32
    %87 = vector.broadcast %cst_47 : f32 to vector<32x8x8xf32>
    %88 = arith.mulf %86, %87 : vector<32x8x8xf32>
    %cst_48 = arith.constant dense<0xFF800000> : vector<32x8xf32>
    %89 = vector.multi_reduction <maximumf>, %88, %cst_48 [2] : vector<32x8x8xf32> to vector<32x8xf32>
    %90 = vector.shape_cast %89 : vector<32x8xf32> to vector<32x8x1xf32>
    %91 = vector.broadcast %90 : vector<32x8x1xf32> to vector<32x8x8xf32>
    %92 = arith.subf %88, %91 : vector<32x8x8xf32>
    %93 = math.exp %92 : vector<32x8x8xf32>
    %cst_49 = arith.constant dense<0.000000e+00> : vector<32x8xf32>
    %94 = vector.multi_reduction <add>, %93, %cst_49 [2] : vector<32x8x8xf32> to vector<32x8xf32>
    %95 = vector.shape_cast %94 : vector<32x8xf32> to vector<32x8x1xf32>
    %96 = tpu.reciprocal %95 {approx = true} : vector<32x8x1xf32> -> vector<32x8x1xf32>
    %97 = vector.broadcast %96 : vector<32x8x1xf32> to vector<32x8x8xf32>
    %98 = arith.mulf %93, %97 : vector<32x8x8xf32>
    %99 = arith.truncf %98 : vector<32x8x8xf32> to vector<32x8x8xbf16>
    %100 = arith.truncf %83 : vector<32x8x8xf32> to vector<32x8x8xbf16>
    "tpu.trace_start"() <{level = 10 : i32, message = "bqk,bkd->bqd"}> : () -> ()
    %cst_50 = arith.constant dense<0.000000e+00> : vector<32x8x8xf32>
    %101 = tpu.matmul %99, %100, %cst_50 {dimension_numbers = #tpu.dot_dimension_numbers<[2], [1], [1], [2], [0, 0, 0, 1, 1, 2], [0], [0]>} : vector<32x8x8xbf16>, vector<32x8x8xbf16>, vector<32x8x8xf32> -> vector<32x8x8xf32>
    "tpu.trace_stop"() : () -> ()
    %102 = vector.extract_strided_slice %101 {offsets = [0, 0, 0], sizes = [16, 8, 8], strides = [1, 1, 1]} : vector<32x8x8xf32> to vector<16x8x8xf32>
    %103 = vector.shape_cast %102 : vector<16x8x8xf32> to vector<128x8xf32>
    %104 = vector.extract_strided_slice %4 {offsets = [0, 0, 0, 0], sizes = [1, 1, 8, 32], strides = [1, 1, 1, 1]} : vector<2x2x8x32xbf16> to vector<1x1x8x32xbf16>
    %105 = vector.shape_cast %104 : vector<1x1x8x32xbf16> to vector<8x32xbf16>
    %106 = arith.truncf %103 : vector<128x8xf32> to vector<128x8xbf16>
    %cst_51 = arith.constant dense<0.000000e+00> : vector<128x32xf32>
    %107 = tpu.matmul %106, %105, %cst_51 {dimension_numbers = #tpu.dot_dimension_numbers<[1], [0], [0], [1], [0, 0, 1, 1], [], []>} : vector<128x8xbf16>, vector<8x32xbf16>, vector<128x32xf32> -> vector<128x32xf32>
    %108 = vector.extract_strided_slice %101 {offsets = [16, 0, 0], sizes = [16, 8, 8], strides = [1, 1, 1]} : vector<32x8x8xf32> to vector<16x8x8xf32>
    %109 = vector.shape_cast %108 : vector<16x8x8xf32> to vector<128x8xf32>
    %110 = vector.extract_strided_slice %4 {offsets = [0, 1, 0, 0], sizes = [1, 1, 8, 32], strides = [1, 1, 1, 1]} : vector<2x2x8x32xbf16> to vector<1x1x8x32xbf16>
    %111 = vector.shape_cast %110 : vector<1x1x8x32xbf16> to vector<8x32xbf16>
    %112 = arith.truncf %109 : vector<128x8xf32> to vector<128x8xbf16>
    %cst_52 = arith.constant dense<0.000000e+00> : vector<128x32xf32>
    %113 = tpu.matmul %112, %111, %cst_52 {dimension_numbers = #tpu.dot_dimension_numbers<[1], [0], [0], [1], [0, 0, 1, 1], [], []>} : vector<128x8xbf16>, vector<8x32xbf16>, vector<128x32xf32> -> vector<128x32xf32>
    %114 = arith.addf %107, %113 : vector<128x32xf32>
    %115 = arith.addf %36, %114 : vector<128x32xf32>
    %116 = vector.extract_strided_slice %7 {offsets = [1, 0, 0], sizes = [1, 1, 32], strides = [1, 1, 1]} : vector<16x1x32xf32> to vector<1x1x32xf32>
    %117 = vector.shape_cast %116 : vector<1x1x32xf32> to vector<1x32xf32>
    %118 = vector.broadcast %117 : vector<1x32xf32> to vector<128x32xf32>
    %119 = arith.addf %115, %118 : vector<128x32xf32>
    %120 = vector.extract_strided_slice %7 {offsets = [6, 0, 0], sizes = [1, 1, 32], strides = [1, 1, 1]} : vector<16x1x32xf32> to vector<1x1x32xf32>
    %121 = vector.shape_cast %120 : vector<1x1x32xf32> to vector<1x32xf32>
    %122 = vector.extract_strided_slice %7 {offsets = [7, 0, 0], sizes = [1, 1, 32], strides = [1, 1, 1]} : vector<16x1x32xf32> to vector<1x1x32xf32>
    %123 = vector.shape_cast %122 : vector<1x1x32xf32> to vector<1x32xf32>
    %cst_53 = arith.constant dense<0.000000e+00> : vector<128xf32>
    %124 = vector.multi_reduction <add>, %119, %cst_53 [1] : vector<128x32xf32> to vector<128xf32>
    %125 = vector.shape_cast %124 : vector<128xf32> to vector<128x1xf32>
    %cst_54 = arith.constant 3.200000e+01 : f32
    %126 = vector.broadcast %cst_54 : f32 to vector<128x1xf32>
    %127 = arith.divf %125, %126 : vector<128x1xf32>
    %128 = vector.broadcast %127 : vector<128x1xf32> to vector<128x32xf32>
    %129 = arith.subf %119, %128 : vector<128x32xf32>
    %130 = arith.mulf %129, %129 : vector<128x32xf32>
    %cst_55 = arith.constant dense<0.000000e+00> : vector<128xf32>
    %131 = vector.multi_reduction <add>, %130, %cst_55 [1] : vector<128x32xf32> to vector<128xf32>
    %132 = vector.shape_cast %131 : vector<128xf32> to vector<128x1xf32>
    %cst_56 = arith.constant 3.200000e+01 : f32
    %133 = vector.broadcast %cst_56 : f32 to vector<128x1xf32>
    %134 = arith.divf %132, %133 : vector<128x1xf32>
    %cst_57 = arith.constant 9.99999997E-7 : f32
    %135 = vector.broadcast %cst_57 : f32 to vector<128x1xf32>
    %136 = arith.addf %134, %135 : vector<128x1xf32>
    %137 = math.rsqrt %136 : vector<128x1xf32>
    %138 = vector.broadcast %137 : vector<128x1xf32> to vector<128x32xf32>
    %139 = arith.mulf %129, %138 : vector<128x32xf32>
    %140 = vector.broadcast %121 : vector<1x32xf32> to vector<128x32xf32>
    %141 = arith.mulf %139, %140 : vector<128x32xf32>
    %142 = vector.broadcast %123 : vector<1x32xf32> to vector<128x32xf32>
    %143 = arith.addf %141, %142 : vector<128x32xf32>
    %144 = vector.extract_strided_slice %1 {offsets = [0, 0, 0], sizes = [1, 32, 32], strides = [1, 1, 1]} : vector<4x32x32xbf16> to vector<1x32x32xbf16>
    %145 = vector.shape_cast %144 : vector<1x32x32xbf16> to vector<32x32xbf16>
    %146 = arith.truncf %143 : vector<128x32xf32> to vector<128x32xbf16>
    %cst_58 = arith.constant dense<0.000000e+00> : vector<128x32xf32>
    %147 = tpu.matmul %146, %145, %cst_58 {dimension_numbers = #tpu.dot_dimension_numbers<[1], [0], [0], [1], [0, 0, 1, 1], [], []>} : vector<128x32xbf16>, vector<32x32xbf16>, vector<128x32xf32> -> vector<128x32xf32>
    %148 = vector.extract_strided_slice %7 {offsets = [4, 0, 0], sizes = [1, 1, 32], strides = [1, 1, 1]} : vector<16x1x32xf32> to vector<1x1x32xf32>
    %149 = vector.shape_cast %148 : vector<1x1x32xf32> to vector<1x32xf32>
    %150 = vector.broadcast %149 : vector<1x32xf32> to vector<128x32xf32>
    %151 = arith.addf %147, %150 : vector<128x32xf32>
    %cst_59 = arith.constant 0.000000e+00 : f32
    %152 = vector.broadcast %cst_59 : f32 to vector<128x32xf32>
    %153 = arith.maximumf %151, %152 : vector<128x32xf32>
    %154 = vector.extract_strided_slice %1 {offsets = [1, 0, 0], sizes = [1, 32, 32], strides = [1, 1, 1]} : vector<4x32x32xbf16> to vector<1x32x32xbf16>
    %155 = vector.shape_cast %154 : vector<1x32x32xbf16> to vector<32x32xbf16>
    %156 = arith.truncf %153 : vector<128x32xf32> to vector<128x32xbf16>
    %cst_60 = arith.constant dense<0.000000e+00> : vector<128x32xf32>
    %157 = tpu.matmul %156, %155, %cst_60 {dimension_numbers = #tpu.dot_dimension_numbers<[1], [0], [0], [1], [0, 0, 1, 1], [], []>} : vector<128x32xbf16>, vector<32x32xbf16>, vector<128x32xf32> -> vector<128x32xf32>
    %158 = arith.addf %119, %157 : vector<128x32xf32>
    %159 = vector.extract_strided_slice %7 {offsets = [5, 0, 0], sizes = [1, 1, 32], strides = [1, 1, 1]} : vector<16x1x32xf32> to vector<1x1x32xf32>
    %160 = vector.shape_cast %159 : vector<1x1x32xf32> to vector<1x32xf32>
    %161 = vector.broadcast %160 : vector<1x32xf32> to vector<128x32xf32>
    %162 = arith.addf %158, %161 : vector<128x32xf32>
    %163 = vector.extract_strided_slice %2 {offsets = [0, 0, 0], sizes = [1, 32, 4], strides = [1, 1, 1]} : vector<2x32x4xbf16> to vector<1x32x4xbf16>
    %164 = vector.shape_cast %163 : vector<1x32x4xbf16> to vector<32x4xbf16>
    %165 = arith.truncf %162 : vector<128x32xf32> to vector<128x32xbf16>
    %cst_61 = arith.constant dense<0.000000e+00> : vector<128x4xf32>
    %166 = tpu.matmul %165, %164, %cst_61 {dimension_numbers = #tpu.dot_dimension_numbers<[1], [0], [0], [1], [0, 0, 1, 1], [], []>} : vector<128x32xbf16>, vector<32x4xbf16>, vector<128x4xf32> -> vector<128x4xf32>
    %167 = vector.extract_strided_slice %9 {offsets = [0, 0, 0], sizes = [1, 1, 4], strides = [1, 1, 1]} : vector<4x1x4xf32> to vector<1x1x4xf32>
    %168 = vector.shape_cast %167 : vector<1x1x4xf32> to vector<1x4xf32>
    %169 = vector.broadcast %168 : vector<1x4xf32> to vector<128x4xf32>
    %170 = arith.addf %166, %169 : vector<128x4xf32>
    %171 = arith.mulf %13, %18 : vector<128x4xf32>
    %cst_62 = arith.constant 1.000000e+00 : f32
    %172 = vector.broadcast %cst_62 : f32 to vector<128x4xf32>
    %173 = arith.subf %172, %13 : vector<128x4xf32>
    %174 = arith.mulf %173, %170 : vector<128x4xf32>
    %175 = arith.addf %171, %174 : vector<128x4xf32>
    %176 = vector.extract_strided_slice %3 {offsets = [2, 0, 0], sizes = [1, 4, 32], strides = [1, 1, 1]} : vector<4x4x32xbf16> to vector<1x4x32xbf16>
    %177 = vector.shape_cast %176 : vector<1x4x32xbf16> to vector<4x32xbf16>
    %178 = arith.truncf %175 : vector<128x4xf32> to vector<128x4xbf16>
    %cst_63 = arith.constant dense<0.000000e+00> : vector<128x32xf32>
    %179 = tpu.matmul %178, %177, %cst_63 {dimension_numbers = #tpu.dot_dimension_numbers<[1], [0], [0], [1], [0, 0, 1, 1], [], []>} : vector<128x4xbf16>, vector<4x32xbf16>, vector<128x32xf32> -> vector<128x32xf32>
    %180 = vector.extract_strided_slice %3 {offsets = [3, 0, 0], sizes = [1, 4, 32], strides = [1, 1, 1]} : vector<4x4x32xbf16> to vector<1x4x32xbf16>
    %181 = vector.shape_cast %180 : vector<1x4x32xbf16> to vector<4x32xbf16>
    %cst_64 = arith.constant dense<0.000000e+00> : vector<128x32xf32>
    %182 = tpu.matmul %19, %181, %cst_64 {dimension_numbers = #tpu.dot_dimension_numbers<[1], [0], [0], [1], [0, 0, 1, 1], [], []>} : vector<128x4xbf16>, vector<4x32xbf16>, vector<128x32xf32> -> vector<128x32xf32>
    %183 = arith.addf %179, %182 : vector<128x32xf32>
    %184 = vector.extract_strided_slice %7 {offsets = [8, 0, 0], sizes = [1, 1, 32], strides = [1, 1, 1]} : vector<16x1x32xf32> to vector<1x1x32xf32>
    %185 = vector.shape_cast %184 : vector<1x1x32xf32> to vector<1x32xf32>
    %186 = vector.broadcast %185 : vector<1x32xf32> to vector<128x32xf32>
    %187 = arith.addf %183, %186 : vector<128x32xf32>
    %188 = vector.shape_cast %187 : vector<128x32xf32> to vector<16x8x32xf32>
    %189 = vector.shape_cast %14 : vector<8x32xf32> to vector<1x8x32xf32>
    %190 = vector.broadcast %189 : vector<1x8x32xf32> to vector<16x8x32xf32>
    %191 = arith.addf %188, %190 : vector<16x8x32xf32>
    %192 = vector.shape_cast %191 : vector<16x8x32xf32> to vector<128x32xf32>
    %193 = vector.extract_strided_slice %7 {offsets = [10, 0, 0], sizes = [1, 1, 32], strides = [1, 1, 1]} : vector<16x1x32xf32> to vector<1x1x32xf32>
    %194 = vector.shape_cast %193 : vector<1x1x32xf32> to vector<1x32xf32>
    %195 = vector.extract_strided_slice %7 {offsets = [11, 0, 0], sizes = [1, 1, 32], strides = [1, 1, 1]} : vector<16x1x32xf32> to vector<1x1x32xf32>
    %196 = vector.shape_cast %195 : vector<1x1x32xf32> to vector<1x32xf32>
    %cst_65 = arith.constant dense<0.000000e+00> : vector<128xf32>
    %197 = vector.multi_reduction <add>, %192, %cst_65 [1] : vector<128x32xf32> to vector<128xf32>
    %198 = vector.shape_cast %197 : vector<128xf32> to vector<128x1xf32>
    %cst_66 = arith.constant 3.200000e+01 : f32
    %199 = vector.broadcast %cst_66 : f32 to vector<128x1xf32>
    %200 = arith.divf %198, %199 : vector<128x1xf32>
    %201 = vector.broadcast %200 : vector<128x1xf32> to vector<128x32xf32>
    %202 = arith.subf %192, %201 : vector<128x32xf32>
    %203 = arith.mulf %202, %202 : vector<128x32xf32>
    %cst_67 = arith.constant dense<0.000000e+00> : vector<128xf32>
    %204 = vector.multi_reduction <add>, %203, %cst_67 [1] : vector<128x32xf32> to vector<128xf32>
    %205 = vector.shape_cast %204 : vector<128xf32> to vector<128x1xf32>
    %cst_68 = arith.constant 3.200000e+01 : f32
    %206 = vector.broadcast %cst_68 : f32 to vector<128x1xf32>
    %207 = arith.divf %205, %206 : vector<128x1xf32>
    %cst_69 = arith.constant 9.99999997E-7 : f32
    %208 = vector.broadcast %cst_69 : f32 to vector<128x1xf32>
    %209 = arith.addf %207, %208 : vector<128x1xf32>
    %210 = math.rsqrt %209 : vector<128x1xf32>
    %211 = vector.broadcast %210 : vector<128x1xf32> to vector<128x32xf32>
    %212 = arith.mulf %202, %211 : vector<128x32xf32>
    %213 = vector.broadcast %194 : vector<1x32xf32> to vector<128x32xf32>
    %214 = arith.mulf %212, %213 : vector<128x32xf32>
    %215 = vector.broadcast %196 : vector<1x32xf32> to vector<128x32xf32>
    %216 = arith.addf %214, %215 : vector<128x32xf32>
    %217 = vector.extract_strided_slice %0 {offsets = [1, 0, 0], sizes = [1, 32, 48], strides = [1, 1, 1]} : vector<2x32x48xbf16> to vector<1x32x48xbf16>
    %218 = vector.shape_cast %217 : vector<1x32x48xbf16> to vector<32x48xbf16>
    %219 = arith.truncf %216 : vector<128x32xf32> to vector<128x32xbf16>
    %cst_70 = arith.constant dense<0.000000e+00> : vector<128x48xf32>
    %220 = tpu.matmul %219, %218, %cst_70 {dimension_numbers = #tpu.dot_dimension_numbers<[1], [0], [0], [1], [0, 0, 1, 1], [], []>} : vector<128x32xbf16>, vector<32x48xbf16>, vector<128x48xf32> -> vector<128x48xf32>
    %221 = vector.extract_strided_slice %8 {offsets = [1, 0, 0], sizes = [1, 1, 48], strides = [1, 1, 1]} : vector<2x1x48xf32> to vector<1x1x48xf32>
    %222 = vector.shape_cast %221 : vector<1x1x48xf32> to vector<1x48xf32>
    %223 = vector.broadcast %222 : vector<1x48xf32> to vector<128x48xf32>
    %224 = arith.addf %220, %223 : vector<128x48xf32>
    %225 = vector.extract_strided_slice %224 {offsets = [0, 0], sizes = [128, 8], strides = [1, 1]} : vector<128x48xf32> to vector<128x8xf32>
    %226 = vector.shape_cast %225 : vector<128x8xf32> to vector<16x8x8xf32>
    %227 = vector.extract_strided_slice %224 {offsets = [0, 8], sizes = [128, 8], strides = [1, 1]} : vector<128x48xf32> to vector<128x8xf32>
    %228 = vector.shape_cast %227 : vector<128x8xf32> to vector<16x8x8xf32>
    %229 = tpu.concatenate %226, %228 in 0 : vector<16x8x8xf32>, vector<16x8x8xf32> -> vector<32x8x8xf32>
    %230 = vector.extract_strided_slice %224 {offsets = [0, 16], sizes = [128, 8], strides = [1, 1]} : vector<128x48xf32> to vector<128x8xf32>
    %231 = vector.shape_cast %230 : vector<128x8xf32> to vector<16x8x8xf32>
    %232 = vector.extract_strided_slice %224 {offsets = [0, 24], sizes = [128, 8], strides = [1, 1]} : vector<128x48xf32> to vector<128x8xf32>
    %233 = vector.shape_cast %232 : vector<128x8xf32> to vector<16x8x8xf32>
    %234 = tpu.concatenate %231, %233 in 0 : vector<16x8x8xf32>, vector<16x8x8xf32> -> vector<32x8x8xf32>
    %235 = vector.extract_strided_slice %224 {offsets = [0, 32], sizes = [128, 8], strides = [1, 1]} : vector<128x48xf32> to vector<128x8xf32>
    %236 = vector.shape_cast %235 : vector<128x8xf32> to vector<16x8x8xf32>
    %237 = vector.extract_strided_slice %224 {offsets = [0, 40], sizes = [128, 8], strides = [1, 1]} : vector<128x48xf32> to vector<128x8xf32>
    %238 = vector.shape_cast %237 : vector<128x8xf32> to vector<16x8x8xf32>
    %239 = tpu.concatenate %236, %238 in 0 : vector<16x8x8xf32>, vector<16x8x8xf32> -> vector<32x8x8xf32>
    %240 = arith.truncf %229 : vector<32x8x8xf32> to vector<32x8x8xbf16>
    %241 = arith.truncf %234 : vector<32x8x8xf32> to vector<32x8x8xbf16>
    "tpu.trace_start"() <{level = 10 : i32, message = "bqd,bkd->bqk"}> : () -> ()
    %cst_71 = arith.constant dense<0.000000e+00> : vector<32x8x8xf32>
    %242 = tpu.matmul %240, %241, %cst_71 {dimension_numbers = #tpu.dot_dimension_numbers<[2], [2], [1], [1], [0, 0, 0, 1, 1, 1], [0], [0]>} : vector<32x8x8xbf16>, vector<32x8x8xbf16>, vector<32x8x8xf32> -> vector<32x8x8xf32>
    "tpu.trace_stop"() : () -> ()
    %cst_72 = arith.constant 0.353553385 : f32
    %243 = vector.broadcast %cst_72 : f32 to vector<32x8x8xf32>
    %244 = arith.mulf %242, %243 : vector<32x8x8xf32>
    %cst_73 = arith.constant dense<0xFF800000> : vector<32x8xf32>
    %245 = vector.multi_reduction <maximumf>, %244, %cst_73 [2] : vector<32x8x8xf32> to vector<32x8xf32>
    %246 = vector.shape_cast %245 : vector<32x8xf32> to vector<32x8x1xf32>
    %247 = vector.broadcast %246 : vector<32x8x1xf32> to vector<32x8x8xf32>
    %248 = arith.subf %244, %247 : vector<32x8x8xf32>
    %249 = math.exp %248 : vector<32x8x8xf32>
    %cst_74 = arith.constant dense<0.000000e+00> : vector<32x8xf32>
    %250 = vector.multi_reduction <add>, %249, %cst_74 [2] : vector<32x8x8xf32> to vector<32x8xf32>
    %251 = vector.shape_cast %250 : vector<32x8xf32> to vector<32x8x1xf32>
    %252 = tpu.reciprocal %251 {approx = true} : vector<32x8x1xf32> -> vector<32x8x1xf32>
    %253 = vector.broadcast %252 : vector<32x8x1xf32> to vector<32x8x8xf32>
    %254 = arith.mulf %249, %253 : vector<32x8x8xf32>
    %255 = arith.truncf %254 : vector<32x8x8xf32> to vector<32x8x8xbf16>
    %256 = arith.truncf %239 : vector<32x8x8xf32> to vector<32x8x8xbf16>
    "tpu.trace_start"() <{level = 10 : i32, message = "bqk,bkd->bqd"}> : () -> ()
    %cst_75 = arith.constant dense<0.000000e+00> : vector<32x8x8xf32>
    %257 = tpu.matmul %255, %256, %cst_75 {dimension_numbers = #tpu.dot_dimension_numbers<[2], [1], [1], [2], [0, 0, 0, 1, 1, 2], [0], [0]>} : vector<32x8x8xbf16>, vector<32x8x8xbf16>, vector<32x8x8xf32> -> vector<32x8x8xf32>
    "tpu.trace_stop"() : () -> ()
    %258 = vector.extract_strided_slice %257 {offsets = [0, 0, 0], sizes = [16, 8, 8], strides = [1, 1, 1]} : vector<32x8x8xf32> to vector<16x8x8xf32>
    %259 = vector.shape_cast %258 : vector<16x8x8xf32> to vector<128x8xf32>
    %260 = vector.extract_strided_slice %4 {offsets = [1, 0, 0, 0], sizes = [1, 1, 8, 32], strides = [1, 1, 1, 1]} : vector<2x2x8x32xbf16> to vector<1x1x8x32xbf16>
    %261 = vector.shape_cast %260 : vector<1x1x8x32xbf16> to vector<8x32xbf16>
    %262 = arith.truncf %259 : vector<128x8xf32> to vector<128x8xbf16>
    %cst_76 = arith.constant dense<0.000000e+00> : vector<128x32xf32>
    %263 = tpu.matmul %262, %261, %cst_76 {dimension_numbers = #tpu.dot_dimension_numbers<[1], [0], [0], [1], [0, 0, 1, 1], [], []>} : vector<128x8xbf16>, vector<8x32xbf16>, vector<128x32xf32> -> vector<128x32xf32>
    %264 = vector.extract_strided_slice %257 {offsets = [16, 0, 0], sizes = [16, 8, 8], strides = [1, 1, 1]} : vector<32x8x8xf32> to vector<16x8x8xf32>
    %265 = vector.shape_cast %264 : vector<16x8x8xf32> to vector<128x8xf32>
    %266 = vector.extract_strided_slice %4 {offsets = [1, 1, 0, 0], sizes = [1, 1, 8, 32], strides = [1, 1, 1, 1]} : vector<2x2x8x32xbf16> to vector<1x1x8x32xbf16>
    %267 = vector.shape_cast %266 : vector<1x1x8x32xbf16> to vector<8x32xbf16>
    %268 = arith.truncf %265 : vector<128x8xf32> to vector<128x8xbf16>
    %cst_77 = arith.constant dense<0.000000e+00> : vector<128x32xf32>
    %269 = tpu.matmul %268, %267, %cst_77 {dimension_numbers = #tpu.dot_dimension_numbers<[1], [0], [0], [1], [0, 0, 1, 1], [], []>} : vector<128x8xbf16>, vector<8x32xbf16>, vector<128x32xf32> -> vector<128x32xf32>
    %270 = arith.addf %263, %269 : vector<128x32xf32>
    %271 = arith.addf %192, %270 : vector<128x32xf32>
    %272 = vector.extract_strided_slice %7 {offsets = [9, 0, 0], sizes = [1, 1, 32], strides = [1, 1, 1]} : vector<16x1x32xf32> to vector<1x1x32xf32>
    %273 = vector.shape_cast %272 : vector<1x1x32xf32> to vector<1x32xf32>
    %274 = vector.broadcast %273 : vector<1x32xf32> to vector<128x32xf32>
    %275 = arith.addf %271, %274 : vector<128x32xf32>
    %276 = vector.extract_strided_slice %7 {offsets = [14, 0, 0], sizes = [1, 1, 32], strides = [1, 1, 1]} : vector<16x1x32xf32> to vector<1x1x32xf32>
    %277 = vector.shape_cast %276 : vector<1x1x32xf32> to vector<1x32xf32>
    %278 = vector.extract_strided_slice %7 {offsets = [15, 0, 0], sizes = [1, 1, 32], strides = [1, 1, 1]} : vector<16x1x32xf32> to vector<1x1x32xf32>
    %279 = vector.shape_cast %278 : vector<1x1x32xf32> to vector<1x32xf32>
    %cst_78 = arith.constant dense<0.000000e+00> : vector<128xf32>
    %280 = vector.multi_reduction <add>, %275, %cst_78 [1] : vector<128x32xf32> to vector<128xf32>
    %281 = vector.shape_cast %280 : vector<128xf32> to vector<128x1xf32>
    %cst_79 = arith.constant 3.200000e+01 : f32
    %282 = vector.broadcast %cst_79 : f32 to vector<128x1xf32>
    %283 = arith.divf %281, %282 : vector<128x1xf32>
    %284 = vector.broadcast %283 : vector<128x1xf32> to vector<128x32xf32>
    %285 = arith.subf %275, %284 : vector<128x32xf32>
    %286 = arith.mulf %285, %285 : vector<128x32xf32>
    %cst_80 = arith.constant dense<0.000000e+00> : vector<128xf32>
    %287 = vector.multi_reduction <add>, %286, %cst_80 [1] : vector<128x32xf32> to vector<128xf32>
    %288 = vector.shape_cast %287 : vector<128xf32> to vector<128x1xf32>
    %cst_81 = arith.constant 3.200000e+01 : f32
    %289 = vector.broadcast %cst_81 : f32 to vector<128x1xf32>
    %290 = arith.divf %288, %289 : vector<128x1xf32>
    %cst_82 = arith.constant 9.99999997E-7 : f32
    %291 = vector.broadcast %cst_82 : f32 to vector<128x1xf32>
    %292 = arith.addf %290, %291 : vector<128x1xf32>
    %293 = math.rsqrt %292 : vector<128x1xf32>
    %294 = vector.broadcast %293 : vector<128x1xf32> to vector<128x32xf32>
    %295 = arith.mulf %285, %294 : vector<128x32xf32>
    %296 = vector.broadcast %277 : vector<1x32xf32> to vector<128x32xf32>
    %297 = arith.mulf %295, %296 : vector<128x32xf32>
    %298 = vector.broadcast %279 : vector<1x32xf32> to vector<128x32xf32>
    %299 = arith.addf %297, %298 : vector<128x32xf32>
    %300 = vector.extract_strided_slice %1 {offsets = [2, 0, 0], sizes = [1, 32, 32], strides = [1, 1, 1]} : vector<4x32x32xbf16> to vector<1x32x32xbf16>
    %301 = vector.shape_cast %300 : vector<1x32x32xbf16> to vector<32x32xbf16>
    %302 = arith.truncf %299 : vector<128x32xf32> to vector<128x32xbf16>
    %cst_83 = arith.constant dense<0.000000e+00> : vector<128x32xf32>
    %303 = tpu.matmul %302, %301, %cst_83 {dimension_numbers = #tpu.dot_dimension_numbers<[1], [0], [0], [1], [0, 0, 1, 1], [], []>} : vector<128x32xbf16>, vector<32x32xbf16>, vector<128x32xf32> -> vector<128x32xf32>
    %304 = vector.extract_strided_slice %7 {offsets = [12, 0, 0], sizes = [1, 1, 32], strides = [1, 1, 1]} : vector<16x1x32xf32> to vector<1x1x32xf32>
    %305 = vector.shape_cast %304 : vector<1x1x32xf32> to vector<1x32xf32>
    %306 = vector.broadcast %305 : vector<1x32xf32> to vector<128x32xf32>
    %307 = arith.addf %303, %306 : vector<128x32xf32>
    %cst_84 = arith.constant 0.000000e+00 : f32
    %308 = vector.broadcast %cst_84 : f32 to vector<128x32xf32>
    %309 = arith.maximumf %307, %308 : vector<128x32xf32>
    %310 = vector.extract_strided_slice %1 {offsets = [3, 0, 0], sizes = [1, 32, 32], strides = [1, 1, 1]} : vector<4x32x32xbf16> to vector<1x32x32xbf16>
    %311 = vector.shape_cast %310 : vector<1x32x32xbf16> to vector<32x32xbf16>
    %312 = arith.truncf %309 : vector<128x32xf32> to vector<128x32xbf16>
    %cst_85 = arith.constant dense<0.000000e+00> : vector<128x32xf32>
    %313 = tpu.matmul %312, %311, %cst_85 {dimension_numbers = #tpu.dot_dimension_numbers<[1], [0], [0], [1], [0, 0, 1, 1], [], []>} : vector<128x32xbf16>, vector<32x32xbf16>, vector<128x32xf32> -> vector<128x32xf32>
    %314 = arith.addf %275, %313 : vector<128x32xf32>
    %315 = vector.extract_strided_slice %7 {offsets = [13, 0, 0], sizes = [1, 1, 32], strides = [1, 1, 1]} : vector<16x1x32xf32> to vector<1x1x32xf32>
    %316 = vector.shape_cast %315 : vector<1x1x32xf32> to vector<1x32xf32>
    %317 = vector.broadcast %316 : vector<1x32xf32> to vector<128x32xf32>
    %318 = arith.addf %314, %317 : vector<128x32xf32>
    %319 = vector.extract_strided_slice %254 {offsets = [0, 0, 0], sizes = [16, 8, 8], strides = [1, 1, 1]} : vector<32x8x8xf32> to vector<16x8x8xf32>
    %320 = vector.extract_strided_slice %254 {offsets = [16, 0, 0], sizes = [16, 8, 8], strides = [1, 1, 1]} : vector<32x8x8xf32> to vector<16x8x8xf32>
    %321 = arith.addf %319, %320 : vector<16x8x8xf32>
    %cst_86 = arith.constant 5.000000e-01 : f32
    %322 = vector.broadcast %cst_86 : f32 to vector<16x8x8xf32>
    %323 = arith.mulf %321, %322 : vector<16x8x8xf32>
    %324 = vector.extract_strided_slice %2 {offsets = [1, 0, 0], sizes = [1, 32, 4], strides = [1, 1, 1]} : vector<2x32x4xbf16> to vector<1x32x4xbf16>
    %325 = vector.shape_cast %324 : vector<1x32x4xbf16> to vector<32x4xbf16>
    %326 = arith.truncf %318 : vector<128x32xf32> to vector<128x32xbf16>
    %cst_87 = arith.constant dense<0.000000e+00> : vector<128x4xf32>
    %327 = tpu.matmul %326, %325, %cst_87 {dimension_numbers = #tpu.dot_dimension_numbers<[1], [0], [0], [1], [0, 0, 1, 1], [], []>} : vector<128x32xbf16>, vector<32x4xbf16>, vector<128x4xf32> -> vector<128x4xf32>
    %328 = vector.extract_strided_slice %9 {offsets = [1, 0, 0], sizes = [1, 1, 4], strides = [1, 1, 1]} : vector<4x1x4xf32> to vector<1x1x4xf32>
    %329 = vector.shape_cast %328 : vector<1x1x4xf32> to vector<1x4xf32>
    %330 = vector.broadcast %329 : vector<1x4xf32> to vector<128x4xf32>
    %331 = arith.addf %327, %330 : vector<128x4xf32>
    %cst_88 = arith.constant 0.000000e+00 : f32
    %332 = vector.broadcast %cst_88 : f32 to vector<128x4xf32>
    %333 = arith.maximumf %331, %332 : vector<128x4xf32>
    %334 = vector.extract_strided_slice %5 {offsets = [0, 0, 0], sizes = [1, 4, 4], strides = [1, 1, 1]} : vector<2x4x4xbf16> to vector<1x4x4xbf16>
    %335 = vector.shape_cast %334 : vector<1x4x4xbf16> to vector<4x4xbf16>
    %336 = arith.truncf %333 : vector<128x4xf32> to vector<128x4xbf16>
    %cst_89 = arith.constant dense<0.000000e+00> : vector<128x4xf32>
    %337 = tpu.matmul %336, %335, %cst_89 {dimension_numbers = #tpu.dot_dimension_numbers<[1], [0], [0], [1], [0, 0, 1, 1], [], []>} : vector<128x4xbf16>, vector<4x4xbf16>, vector<128x4xf32> -> vector<128x4xf32>
    %338 = vector.extract_strided_slice %9 {offsets = [2, 0, 0], sizes = [1, 1, 4], strides = [1, 1, 1]} : vector<4x1x4xf32> to vector<1x1x4xf32>
    %339 = vector.shape_cast %338 : vector<1x1x4xf32> to vector<1x4xf32>
    %340 = vector.broadcast %339 : vector<1x4xf32> to vector<128x4xf32>
    %341 = arith.addf %337, %340 : vector<128x4xf32>
    %342 = vector.shape_cast %323 : vector<16x8x8xf32> to vector<128x8xf32>
    %343 = vector.extract_strided_slice %5 {offsets = [1, 0, 0], sizes = [1, 4, 4], strides = [1, 1, 1]} : vector<2x4x4xbf16> to vector<1x4x4xbf16>
    %344 = vector.shape_cast %343 : vector<1x4x4xbf16> to vector<4x4xbf16>
    %cst_90 = arith.constant dense<0.000000e+00> : vector<128x4xf32>
    %345 = tpu.matmul %19, %344, %cst_90 {dimension_numbers = #tpu.dot_dimension_numbers<[1], [0], [0], [1], [0, 0, 1, 1], [], []>} : vector<128x4xbf16>, vector<4x4xbf16>, vector<128x4xf32> -> vector<128x4xf32>
    %346 = arith.truncf %342 : vector<128x8xf32> to vector<128x8xbf16>
    %cst_91 = arith.constant dense<0.000000e+00> : vector<128x4xf32>
    %347 = tpu.matmul %346, %6, %cst_91 {dimension_numbers = #tpu.dot_dimension_numbers<[1], [0], [0], [1], [0, 0, 1, 1], [], []>} : vector<128x8xbf16>, vector<8x4xbf16>, vector<128x4xf32> -> vector<128x4xf32>
    %348 = arith.addf %345, %347 : vector<128x4xf32>
    %349 = vector.extract_strided_slice %9 {offsets = [3, 0, 0], sizes = [1, 1, 4], strides = [1, 1, 1]} : vector<4x1x4xf32> to vector<1x1x4xf32>
    %350 = vector.shape_cast %349 : vector<1x1x4xf32> to vector<1x4xf32>
    %351 = vector.broadcast %350 : vector<1x4xf32> to vector<128x4xf32>
    %352 = arith.addf %348, %351 : vector<128x4xf32>
    %cst_92 = arith.constant 0.000000e+00 : f32
    %353 = vector.broadcast %cst_92 : f32 to vector<128x4xf32>
    %354 = arith.subf %353, %352 : vector<128x4xf32>
    %355 = math.exp %354 : vector<128x4xf32>
    %cst_93 = arith.constant 1.000000e+00 : f32
    %356 = vector.broadcast %cst_93 : f32 to vector<128x4xf32>
    %357 = arith.addf %356, %355 : vector<128x4xf32>
    %358 = tpu.reciprocal %357 {approx = true} : vector<128x4xf32> -> vector<128x4xf32>
    %cst_94 = arith.constant 1.000000e+00 : f32
    %359 = vector.broadcast %cst_94 : f32 to vector<128x4xf32>
    %360 = arith.subf %359, %358 : vector<128x4xf32>
    %361 = arith.mulf %360, %341 : vector<128x4xf32>
    %362 = arith.mulf %358, %170 : vector<128x4xf32>
    %363 = arith.addf %361, %362 : vector<128x4xf32>
    %364 = arith.mulf %13, %18 : vector<128x4xf32>
    %cst_95 = arith.constant 1.000000e+00 : f32
    %365 = vector.broadcast %cst_95 : f32 to vector<128x4xf32>
    %366 = arith.subf %365, %13 : vector<128x4xf32>
    %367 = arith.mulf %366, %363 : vector<128x4xf32>
    %368 = arith.addf %364, %367 : vector<128x4xf32>
    %369 = tpu.transpose %368, [1, 0] : vector<128x4xf32> -> vector<4x128xf32>
    %c0_96 = arith.constant 0 : index
    %c0_97 = arith.constant 0 : index
    %c0_98 = arith.constant 0 : index
    %c0_99 = arith.constant 0 : index
    %370 = vector.load %arg15[%c0_96, %c0_97, %c0_98, %c0_99] : memref<1x1x4x128xf32, #tpu.memory_space<vmem>>, vector<1x1x4x128xf32>
    %371 = vector.shape_cast %370 : vector<1x1x4x128xf32> to vector<4x128xf32>
    %372 = vector.shape_cast %369 : vector<4x128xf32> to vector<1x1x4x128xf32>
    tpu.vector_store %arg15[%c0_96, %c0_97, %c0_98, %c0_99], %372 {strides = array<i32>} : memref<1x1x4x128xf32, #tpu.memory_space<vmem>>, vector<1x1x4x128xf32>,
    return
  }
  func.func @transform_0(%arg0: i32, %arg1: i32) -> (i32, i32, i32) {
    %c0_i32 = arith.constant 0 : i32
    %c0_i32_0 = arith.constant 0 : i32
    return %arg0, %arg1, %c0_i32 : i32, i32, i32
  }
  func.func @transform_1(%arg0: i32, %arg1: i32) -> (i32, i32, i32) {
    %c0_i32 = arith.constant 0 : i32
    %c0_i32_0 = arith.constant 0 : i32
    return %arg0, %arg1, %c0_i32 : i32, i32, i32
  }
  func.func @transform_2(%arg0: i32, %arg1: i32) -> (i32, i32) {
    %c0_i32 = arith.constant 0 : i32
    %c0_i32_0 = arith.constant 0 : i32
    %c0_i32_1 = arith.constant 0 : i32
    return %c0_i32, %c0_i32_0 : i32, i32
  }
  func.func @transform_3(%arg0: i32, %arg1: i32) -> (i32, i32, i32) {
    %c0_i32 = arith.constant 0 : i32
    %c0_i32_0 = arith.constant 0 : i32
    %c0_i32_1 = arith.constant 0 : i32
    %c0_i32_2 = arith.constant 0 : i32
    return %c0_i32, %c0_i32_0, %c0_i32_1 : i32, i32, i32
  }
  func.func @transform_4(%arg0: i32, %arg1: i32) -> (i32, i32, i32) {
    %c0_i32 = arith.constant 0 : i32
    %c0_i32_0 = arith.constant 0 : i32
    %c0_i32_1 = arith.constant 0 : i32
    %c0_i32_2 = arith.constant 0 : i32
    return %c0_i32, %c0_i32_0, %c0_i32_1 : i32, i32, i32
  }
  func.func @transform_5(%arg0: i32, %arg1: i32) -> (i32, i32, i32) {
    %c0_i32 = arith.constant 0 : i32
    %c0_i32_0 = arith.constant 0 : i32
    %c0_i32_1 = arith.constant 0 : i32
    %c0_i32_2 = arith.constant 0 : i32
    return %c0_i32, %c0_i32_0, %c0_i32_1 : i32, i32, i32
  }
  func.func @transform_6(%arg0: i32, %arg1: i32) -> (i32, i32, i32) {
    %c0_i32 = arith.constant 0 : i32
    %c0_i32_0 = arith.constant 0 : i32
    %c0_i32_1 = arith.constant 0 : i32
    %c0_i32_2 = arith.constant 0 : i32
    return %c0_i32, %c0_i32_0, %c0_i32_1 : i32, i32, i32
  }
  func.func @transform_7(%arg0: i32, %arg1: i32) -> (i32, i32, i32, i32) {
    %c0_i32 = arith.constant 0 : i32
    %c0_i32_0 = arith.constant 0 : i32
    %c0_i32_1 = arith.constant 0 : i32
    %c0_i32_2 = arith.constant 0 : i32
    %c0_i32_3 = arith.constant 0 : i32
    return %c0_i32, %c0_i32_0, %c0_i32_1, %c0_i32_2 : i32, i32, i32, i32
  }
  func.func @transform_8(%arg0: i32, %arg1: i32) -> (i32, i32, i32) {
    %c0_i32 = arith.constant 0 : i32
    %c0_i32_0 = arith.constant 0 : i32
    %c0_i32_1 = arith.constant 0 : i32
    %c0_i32_2 = arith.constant 0 : i32
    return %c0_i32, %c0_i32_0, %c0_i32_1 : i32, i32, i32
  }
  func.func @transform_9(%arg0: i32, %arg1: i32) -> (i32, i32) {
    %c0_i32 = arith.constant 0 : i32
    %c0_i32_0 = arith.constant 0 : i32
    %c0_i32_1 = arith.constant 0 : i32
    return %c0_i32, %c0_i32_0 : i32, i32
  }
  func.func @transform_10(%arg0: i32, %arg1: i32) -> (i32, i32, i32) {
    %c0_i32 = arith.constant 0 : i32
    %c0_i32_0 = arith.constant 0 : i32
    %c0_i32_1 = arith.constant 0 : i32
    %c0_i32_2 = arith.constant 0 : i32
    return %c0_i32, %c0_i32_0, %c0_i32_1 : i32, i32, i32
  }
  func.func @transform_11(%arg0: i32, %arg1: i32) -> (i32, i32, i32) {
    %c0_i32 = arith.constant 0 : i32
    %c0_i32_0 = arith.constant 0 : i32
    %c0_i32_1 = arith.constant 0 : i32
    %c0_i32_2 = arith.constant 0 : i32
    return %c0_i32, %c0_i32_0, %c0_i32_1 : i32, i32, i32
  }
  func.func @transform_12(%arg0: i32, %arg1: i32) -> (i32, i32, i32) {
    %c0_i32 = arith.constant 0 : i32
    %c0_i32_0 = arith.constant 0 : i32
    %c0_i32_1 = arith.constant 0 : i32
    %c0_i32_2 = arith.constant 0 : i32
    return %c0_i32, %c0_i32_0, %c0_i32_1 : i32, i32, i32
  }
  func.func @transform_13(%arg0: i32, %arg1: i32) -> (i32, i32, i32, i32) {
    %c0_i32 = arith.constant 0 : i32
    %c0_i32_0 = arith.constant 0 : i32
    %c0_i32_1 = arith.constant 0 : i32
    return %arg0, %arg1, %c0_i32, %c0_i32_0 : i32, i32, i32, i32
  }
}

</mosaic_0001>

<bundles_post_ra>
// kernel: run.1
= control target key start
LH: loop header
LB: loop body
LE: loop exit
PB: predicated region body
PF: predicated region fallthrough
CT: control target
= control target key end

     0   :  { %s14861_s25 = smov 0   ;;  %s14863_s26 = smov 0   ;;  %s18990_s0 = inlined_call_operand.vmem [shape: f32[2,256,4], index: 0, kind: input, shape index: {}]   ;;  %s18991_s1 = inlined_call_operand.vmem [shape: f32[2,256,4], index: 1, kind: input, shape index: {}]   ;;  %s18992_s2 = inlined_call_operand.vmem [shape: f32[8,32], index: 2, kind: input, shape index: {}]   ;;  %s18993_s3 = inlined_call_operand.vmem [shape: bf16[2,32,48], index: 3, kind: input, shape index: {}]   ;;  %s18994_s4 = inlined_call_operand.vmem [shape: bf16[4,32,32], index: 4, kind: input, shape index: {}]   ;;  %s18995_s5 = inlined_call_operand.vmem [shape: bf16[2,32,4], index: 5, kind: input, shape index: {}]   ;;  %s18996_s6 = inlined_call_operand.vmem [shape: bf16[4,4,32], index: 6, kind: input, shape index: {}]   ;;  %s18997_s7 = inlined_call_operand.vmem [shape: bf16[2,2,8,32], index: 7, kind: input, shape index: {}]   ;;  %s18998_s8 = inlined_call_operand.vmem [shape: bf16[2,4,4], index: 8, kind: input, shape index: {}]   ;;  %s18999_s9 = inlined_call_operand.vmem [shape: bf16[8,4], index: 9, kind: input, shape index: {}]   ;;  %s19000_s10 = inlined_call_operand.vmem [shape: f32[16,1,32], index: 10, kind: input, shape index: {}]   ;;  %s19001_s11 = inlined_call_operand.vmem [shape: f32[2,1,48], index: 11, kind: input, shape index: {}]   ;;  %s19002_s12 = inlined_call_operand.vmem [shape: f32[4,1,4], index: 12, kind: input, shape index: {}]   ;;  %s19003_s13 = inlined_call_operand.vmem [shape: f32[2,2,4,128], index: 13, kind: output, shape index: {}]  }
   0x1   :  { %s14865_s27 = smov 0   ;;  %s14867_s28 = smov 0  }
   0x2   :  { %s14869_s29 = smov 0  }
   0x3 LB: > { %s32_s30 = sadd.s32 1, %s14776_s27  ;;  %s35_s14 = sadd.s32 1, %s14780_s28  ;;  %s14784_s29 = sphi %s14869_s29, %s23_s29   ;;  %s14780_s28 = sphi %s14867_s28, %s19443_s28   ;;  %s14776_s27 = sphi %s14865_s27, %s19442_s27   ;;  %s14772_s26 = sphi %s14863_s26, %s19441_s26   ;;  %s14768_s25 = sphi %s14861_s25, %s19440_s25  }
   0x4   : > { %p33_p0 = scmp.ge.s32.totalorder %s32_s30, 2  ;;  %p12159_p1 = scmp.ge.s32.totalorder %s14784_s29, 1 }
   0x5   : > { %p425_p2 = scmp.lt.s32.totalorder %s14784_s29, 5 }
   0x6   : > { %s19445_s30 = smov (%p33_p0, %s32_s30), 0  ;;  %s19447_s14 = smov (!%p33_p0, %s35_s14), %s14780_s28 }
   0x7   : > { %p426_p3 = pnand %p12159_p1, %p425_p2  ;;  %p37_p4 = scmp.ge.s32.totalorder %s19447_s14, 2 }
   0x9   : > { %s19449_s14 = smov (%p37_p4, %s19447_s14), 0  ;;  %429 = sbr.rel (%p426_p3) target bundleno = 6519 (0x1977), region = 72 }
  0x10   : > { %v547_v0 = vld [vmem:[%s18996_s6 + $0x2] sm:$0x3]  ;;  %vm685_vm0 = vcmask 1041408   ;;  %v546_v1 = vld [vmem:[%s18996_s6] sm:$0x3]  ;;  %s12160_s19 = sshll.u32 %s14768_s25, 4 }
  0x11   : > { %14129 = vmatprep.subr.msk.bf16.mxu1 %vm685_vm0, %v547_v0  ;;  %v687_v2 = vsel %vm685_vm0, %v547_v0, 0  ;;  %14130 = vmatprep.subr.msk.bf16.mxu0 %vm685_vm0, %v546_v1  ;;  %p486_p5 = scmp.lt.s32.totalorder %s14772_s26, 1  ;;  %p488_p6 = scmp.lt.s32.totalorder %s12160_s19, 31  ;;  %v811_v3 = vsel %vm685_vm0, %v546_v1, 0  ;;  %vm660_vm1 = vcmask 31744  }
  0x12   : > { %12924 = vmatpush3.bf16.msra.mxu1 %v687_v2  ;;  %12942 = vmatpush3.bf16.msra.mxu0 %v811_v3  ;;  %s14788_s24 = smov 112   ;;  %s14789_s16 = smov 120  }
  0x13   : > { %s19451_s26 = smov (!%p486_p5, %s14772_s26), 1  ;;  %s19453_s19 = smov (!%p488_p6, %s12160_s19), 31 }
  0x14   : > { %s12161_s20 = sshll.u32 %s19451_s26, 5  ;;  %s14790_s17 = smov 96  }
  0x15   : > { %s491_s21 = sadd.s32 %s12161_s20, %s19453_s19  ;;  %p507_p7 = scmp.lt.s32.totalorder %s14768_s25, 1 }
  0x16   : > { %s12162_s22 = sshll.u32 %s491_s21, 3 }
  0x17   : > { %s14910_s15 = scalar_lea.vmem %s18991_s1, %s12162_s22  ;;  %s14915_s18 = scalar_lea.vmem %s18990_s0, %s12162_s22 }
  0x18   : > { %v595_v4 = vld [vmem:[%s14910_s15] sm:$0xff]  ;;  %v596_v5 = vld [vmem:[%s14910_s15 + $0x8] sm:$0xff]  ;;  %v597_v6 = vld [vmem:[%s14910_s15 + $0x10] sm:$0xff]  ;;  %s19455_s25 = smov (!%p507_p7, %s14768_s25), 1 }
  0x19   : > { %v14920_v7 = vpack.c.bf16 %v596_v5, %v595_v4  ;;  %v598_v8 = vld [vmem:[%s14910_s15 + $0x18] sm:$0xff]  ;;  %v579_v9 = vld [vmem:[%s14915_s18] sm:$0xff]  ;;  %v580_v10 = vld [vmem:[%s14915_s18 + $0x8] sm:$0xff]  ;;  %vm612_vm2 = vcmp.eq.f32.partialorder %v595_v4, 0.0  ;;  %vm613_vm3 = vcmp.eq.f32.partialorder %v596_v5, 0.0  ;;  %vm614_vm4 = vcmp.eq.f32.partialorder %v597_v6, 0.0 }
  0x1a   : > { %v14925_v11 = vpack.c.bf16 %v598_v8, %v597_v6  ;;  %v14927_v12 = vsel %vm612_vm2, 0.0, %v579_v9  ;;  %v14929_v13 = vsel %vm613_vm3, 0.0, %v580_v10  ;;  %v581_v14 = vld [vmem:[%s14915_s18 + $0x10] sm:$0xff]  ;;  %v582_v15 = vld [vmem:[%s14915_s18 + $0x18] sm:$0xff]  ;;  %vm615_vm5 = vcmp.eq.f32.partialorder %v598_v8, 0.0  ;;  %v599_v16 = vld [vmem:[%s14910_s15 + $0x20] sm:$0xff] }
  0x1b   : > { %19137 = vst [vmem:[#allocation2_spill] sm:$0xff] %v14920_v7  ;;  %19139 = vst [vmem:[#allocation4_spill] sm:$0xff] %v14927_v12  ;;  %12925 = vmatprep.mubr.msk.bf16.mxu1 %vm660_vm1, %v14920_v7  ;;  %v652_v17 = vpack.c.bf16 %v14929_v13, %v14927_v12  ;;  %v14938_v18 = vsel %vm614_vm4, 0.0, %v581_v14  ;;  %v600_v19 = vld [vmem:[%s14910_s15 + $0x28] sm:$0xff]  ;;  %v583_v20 = vld [vmem:[%s14915_s18 + $0x20] sm:$0xff]  ;;  %v14945_v22 = vsel %vm615_vm5, 0.0, %v582_v15 }
  0x1c   : > { %19138 = vst [vmem:[#allocation3_spill] sm:$0xff] %v14925_v11  ;;  %19140 = vst [vmem:[#allocation5_spill] sm:$0xff] %v14929_v13  ;;  %v584_v21 = vld [vmem:[%s14915_s18 + $0x28] sm:$0xff]  ;;  %12926 = vmatmul.mubr.msk.bf16.vlgmr.msra.gmra.mrb[0].mxu1 %vm660_vm1, %v14925_v11  ;;  %v14947_v23 = vpack.c.bf16 %v600_v19, %v599_v16  ;;  %vm616_vm6 = vcmp.eq.f32.partialorder %v599_v16, 0.0  ;;  %vm617_vm7 = vcmp.eq.f32.partialorder %v600_v19, 0.0  ;;  %v601_v24 = vld [vmem:[%s14910_s15 + $0x30] sm:$0xff]  ;;  %v653_v27 = vpack.c.bf16 %v14945_v22, %v14938_v18 }
  0x1d   : > { %19141 = vst [vmem:[#allocation6_spill] sm:$0xff] %v14938_v18  ;;  %19142 = vst [vmem:[#allocation7_spill] sm:$0xff] %v14945_v22  ;;  %v602_v25 = vld [vmem:[%s14910_s15 + $0x38] sm:$0xff]  ;;  %v585_v26 = vld [vmem:[%s14915_s18 + $0x30] sm:$0xff]  ;;  %12943 = vmatprep.mubr.msk.bf16.mxu0 %vm660_vm1, %v652_v17  ;;  %v14955_v28 = vsel %vm616_vm6, 0.0, %v583_v20  ;;  %v14957_v29 = vsel %vm617_vm7, 0.0, %v584_v21 }
  0x1e   : > { %19143 = vst [vmem:[#allocation8_spill] sm:$0xff] %v14947_v23  ;;  %19144 = vst [vmem:[#allocation9_spill] sm:$0xff] %v14955_v28  ;;  %v586_v30 = vld [vmem:[%s14915_s18 + $0x38] sm:$0xff]  ;;  %v603_v31 = vld [vmem:[%s14910_s15 + $0x40] sm:$0xff]  ;;  %12929 = vmatprep.mubr.msk.bf16.mxu1 %vm660_vm1, %v14947_v23  ;;  %v654_v33 = vpack.c.bf16 %v14957_v29, %v14955_v28  ;;  %vm618_vm8 = vcmp.eq.f32.partialorder %v601_v24, 0.0  ;;  %vm619_vm9 = vcmp.eq.f32.partialorder %v602_v25, 0.0  ;;  %12944 = vmatmul.mubr.msk.bf16.vlgmr.msra.gmra.mrb[0].mxu0 %vm660_vm1, %v653_v27 }
  0x1f   : > { %19145 = vst [vmem:[#allocation10_spill] sm:$0xff] %v14957_v29  ;;  %v604_v32 = vld [vmem:[%s14910_s15 + $0x48] sm:$0xff]  ;;  %v587_v34 = vld [vmem:[%s14915_s18 + $0x40] sm:$0xff]  ;;  %v605_v36 = vld [vmem:[%s14910_s15 + $0x50] sm:$0xff]  ;;  %vm620_vm10 = vcmp.eq.f32.partialorder %v603_v31, 0.0  ;;  %v14972_v38 = vpack.c.bf16 %v602_v25, %v601_v24  ;;  %v14974_v39 = vsel %vm618_vm8, 0.0, %v585_v26 }
  0x20   : > { %v588_v35 = vld [vmem:[%s14915_s18 + $0x48] sm:$0xff]  ;;  %vm621_vm11 = vcmp.eq.f32.partialorder %v604_v32, 0.0  ;;  %v606_v37 = vld [vmem:[%s14910_s15 + $0x58] sm:$0xff]  ;;  %12947 = vmatprep.mubr.msk.bf16.mxu0 %vm660_vm1, %v654_v33  ;;  %19147 = vst [vmem:[#allocation12_spill] sm:$0xff] %v14974_v39  ;;  %v14976_v40 = vsel %vm619_vm9, 0.0, %v586_v30  ;;  %v14978_v41 = vpack.c.bf16 %v604_v32, %v603_v31  ;;  %v14980_v42 = vsel %vm620_vm10, 0.0, %v587_v34 }
  0x21   : > { %19146 = vst [vmem:[#allocation11_spill] sm:$0xff] %v14972_v38  ;;  %19148 = vst [vmem:[#allocation13_spill] sm:$0xff] %v14976_v40  ;;  %v14982_v43 = vsel %vm621_vm11, 0.0, %v588_v35  ;;  %v589_v44 = vld [vmem:[%s14915_s18 + $0x50] sm:$0xff]  ;;  %v590_v45 = vld [vmem:[%s14915_s18 + $0x58] sm:$0xff]  ;;  %vm622_vm12 = vcmp.eq.f32.partialorder %v605_v36, 0.0  ;;  %v655_v48 = vpack.c.bf16 %v14976_v40, %v14974_v39  ;;  %v15004_v54 = vpack.c.bf16 %v606_v37, %v605_v36 }
  0x22   : > { %19149 = vst [vmem:[#allocation14_spill] sm:$0xff] %v14978_v41  ;;  %19150 = vst [vmem:[#allocation15_spill] sm:$0xff] %v14980_v42  ;;  %vm623_vm13 = vcmp.eq.f32.partialorder %v606_v37, 0.0  ;;  %v607_v46 = vld [vmem:[%s14910_s15 + $0x60] sm:$0xff]  ;;  %v608_v47 = vld [vmem:[%s14910_s15 + $0x68] sm:$0xff]  ;;  %v656_v49 = vpack.c.bf16 %v14982_v43, %v14980_v42  ;;  %v14994_v50 = vsel %vm622_vm12, 0.0, %v589_v44 }
  0x23   : > { %19151 = vst [vmem:[#allocation16_spill] sm:$0xff] %v14982_v43  ;;  %19152 = vst [vmem:[#allocation17_spill] sm:$0xff] %v14994_v50  ;;  %v14996_v51 = vsel %vm623_vm13, 0.0, %v590_v45  ;;  %v591_v52 = vld [vmem:[%s14915_s18 + $0x60] sm:$0xff]  ;;  %v592_v53 = vld [vmem:[%s14915_s18 + $0x68] sm:$0xff]  ;;  %vm624_vm14 = vcmp.eq.f32.partialorder %v607_v46, 0.0  ;;  %v15006_v55 = vpack.c.bf16 %v608_v47, %v607_v46 }
  0x24   : > { %12930 = vmatmul.mubr.msk.bf16.gmra.mrb[4].mxu1 %vm660_vm1, %v14972_v38  ;;  %19153 = vst [vmem:[#allocation18_spill] sm:$0xff] %v14996_v51  ;;  %vm625_vm15 = vcmp.eq.f32.partialorder %v608_v47, 0.0  ;;  %19154 = vst [vmem:[#allocation19_spill] sm:$0xff] %v15004_v54  ;;  %v15008_v56 = vsel %vm624_vm14, 0.0, %v591_v52  ;;  %v609_v58 = vld [vmem:[%s14910_s15 + $0x70] sm:$0xff]  ;;  %v610_v59 = vld [vmem:[%s14910_s15 + $0x78] sm:$0xff]  ;;  %v657_v60 = vpack.c.bf16 %v14996_v51, %v14994_v50 }
  0x25   : > { %12933 = vmatprep.mubr.msk.bf16.mxu1 %vm660_vm1, %v14978_v41  ;;  %19155 = vst [vmem:[#allocation20_spill] sm:$0xff] %v15006_v55  ;;  %19156 = vst [vmem:[#allocation21_spill] sm:$0xff] %v15008_v56  ;;  %v15010_v57 = vsel %vm625_vm15, 0.0, %v592_v53  ;;  %v593_v62 = vld [vmem:[%s14915_s18 + $0x70] sm:$0xff]  ;;  %v594_v63 = vld [vmem:[%s14915_s18 + $0x78] sm:$0xff]  ;;  %vm626_vm2 = vcmp.eq.f32.partialorder %v609_v58, 0.0  ;;  %v15026_v0 = vpack.c.bf16 %v610_v59, %v609_v58 }
  0x26   : > { %12948 = vmatmul.mubr.msk.bf16.gmra.mrb[4].mxu0 %vm660_vm1, %v655_v48  ;;  %19157 = vst [vmem:[#allocation22_spill] sm:$0xff] %v15010_v57  ;;  %v658_v61 = vpack.c.bf16 %v15010_v57, %v15008_v56  ;;  %vm627_vm3 = vcmp.eq.f32.partialorder %v610_v59, 0.0  ;;  %v15028_v1 = vsel %vm626_vm2, 0.0, %v593_v62  ;;  %v15040_v8 = vld [vmem:[%s19000_s10] ss:$0 sm:$0xff]  ;;  %vm948_vm4 = vcmask 261120  }
  0x27   : > { %12951 = vmatprep.mubr.msk.bf16.mxu0 %vm660_vm1, %v656_v49  ;;  %19158 = vst [vmem:[#allocation23_spill] sm:$0xff] %v15026_v0  ;;  %19159 = vst [vmem:[#allocation24_spill] sm:$0xff] %v15028_v1  ;;  %v15030_v2 = vsel %vm627_vm3, 0.0, %v594_v63  ;;  %v15045_v19 = vld [vmem:[%s18992_s2] sm:$0xff]  ;;  %vm14787_vm5 = vmmov 0   ;;  %vm1448_vm6 = vcmask 64512  }
  0x28   : > { %19160 = vst [vmem:[#allocation25_spill] sm:$0xff] %v15030_v2  ;;  %v659_v3 = vpack.c.bf16 %v15030_v2, %v15028_v1  ;;  %vm3435_vm7 = vcmask 1043456   ;;  %s12166_s18 = sshll.u32 %s19451_s26, 1 }
  0x29   : > { %s510_s19 = sadd.s32 %s12166_s18, %s19455_s25 }
  0x2c   : > { %12934 = vmatmul.mubr.msk.bf16.gmra.mrb[8].mxu1 %vm660_vm1, %v15004_v54 }
  0x2d   : > { %12937 = vmatprep.mubr.msk.bf16.mxu1 %vm660_vm1, %v15006_v55 }
  0x2e   : > { %12952 = vmatmul.mubr.msk.bf16.gmra.mrb[8].mxu0 %vm660_vm1, %v657_v60 }
  0x2f   : > { %12955 = vmatprep.mubr.msk.bf16.mxu0 %vm660_vm1, %v658_v61 }
  0x34   : > { %12938 = vmatmul.mubr.msk.bf16.gmra.mrb[12].mxu1 %vm660_vm1, %v15026_v0 }
  0x36   : > { %12956 = vmatmul.mubr.msk.bf16.gmra.mrb[12].mxu0 %vm660_vm1, %v659_v3 }
  0xef   : > { %v12927_v4 = vpop.f32.mrb[0].mxu1 }
  0xf0   : > { %v723_v5 = vpop.f32.mrb[1].mxu1 }
  0xf1   : > { %v12928_v6 = vpop.f32.mrb[2].mxu1  ;;  %v12945_v9 = vpop.f32.mrb[0].mxu0 }
  0xf2   : > { %v726_v10 = vpop.f32.mrb[3].mxu1  ;;  %v856_v14 = vadd.f32 %v12945_v9, %v12927_v4  ;;  %v847_v15 = vpop.f32.mrb[1].mxu0 }
  0xf3   : > { %v848_v16 = vadd.f32 %v847_v15, %v723_v5  ;;  %v12946_v17 = vpop.f32.mrb[2].mxu0 }
  0xf4   : > { %v918_v20 = vadd.f32 %v15040_v8, %v856_v14  ;;  %v859_v21 = vadd.f32 %v12946_v17, %v12928_v6  ;;  %v850_v24 = vpop.f32.mrb[3].mxu0 }
  0xf5   : > { %v916_v25 = vadd.f32 %v15040_v8, %v848_v16  ;;  %v851_v26 = vadd.f32 %v850_v24, %v726_v10 }
  0xf6   : > { %v919_v27 = vadd.f32 %v15040_v8, %v859_v21  ;;  %v15051_v31 = vadd.f32 %v918_v20, %v15045_v19 }
  0xf7   : > { %v12931_v30 = vpop.f32.mrb[4].mxu1  ;;  %v917_v32 = vadd.f32 %v15040_v8, %v851_v26  ;;  %v15055_v34 = vadd.f32 %v916_v25, %v15045_v19 }
  0xf8   : > { %19161 = vst [vmem:[#allocation26_spill] sm:$0xff] %v15051_v31  ;;  %v739_v33 = vpop.f32.mrb[5].mxu1  ;;  %v955_v35 = vsel %vm948_vm4, %v15051_v31, 0.0  ;;  %v15060_v37 = vadd.f32 %v919_v27, %v15045_v19 }
  0xf9   : > { %19162 = vst [vmem:[#allocation27_spill] sm:$0xff] %v15055_v34  ;;  %v12932_v36 = vpop.f32.mrb[6].mxu1  ;;  %956 = vadd.xlane.f32.xlu1 %v955_v35  ;;  %v12949_v44 = vpop.f32.mrb[4].mxu0  ;;  %v949_v45 = vsel %vm948_vm4, %v15055_v34, 0.0  ;;  %v15065_v47 = vadd.f32 %v917_v32, %v15045_v19 }
  0xfa   : > { %19163 = vst [vmem:[#allocation28_spill] sm:$0xff] %v15060_v37  ;;  %v742_v46 = vpop.f32.mrb[7].mxu1  ;;  %v872_v48 = vadd.f32 %v12949_v44, %v12931_v30  ;;  %v863_v49 = vpop.f32.mrb[5].mxu0  ;;  %950 = vadd.xlane.f32.xlu0 %v949_v45  ;;  %v958_v61 = vsel %vm948_vm4, %v15060_v37, 0.0 }
  0xfb   : > { %19164 = vst [vmem:[#allocation29_spill] sm:$0xff] %v15065_v47  ;;  %v864_v52 = vadd.f32 %v863_v49, %v739_v33  ;;  %v12950_v53 = vpop.f32.mrb[6].mxu0  ;;  %v952_v3 = vsel %vm948_vm4, %v15065_v47, 0.0 }
  0xfc   : > { %v922_v58 = vadd.f32 %v15040_v8, %v872_v48  ;;  %v875_v59 = vadd.f32 %v12950_v53, %v12932_v36  ;;  %v866_v60 = vpop.f32.mrb[7].mxu0 }
  0xfd   : > { %v920_v62 = vadd.f32 %v15040_v8, %v864_v52  ;;  %v867_v63 = vadd.f32 %v866_v60, %v742_v46  ;;  %959 = vadd.xlane.f32.xlu1 %v958_v61 }
  0xfe   : > { %v923_v4 = vadd.f32 %v15040_v8, %v875_v59  ;;  %953 = vadd.xlane.f32.xlu0 %v952_v3  ;;  %v15079_v14 = vadd.f32 %v922_v58, %v15045_v19 }
  0xff   : > { %v12935_v5 = vpop.f32.mrb[8].mxu1  ;;  %v921_v6 = vadd.f32 %v15040_v8, %v867_v63  ;;  %v15076_v10 = vadd.f32 %v920_v62, %v15045_v19 }
 0x100   : > { %v755_v9 = vpop.f32.mrb[9].mxu1  ;;  %19166 = vst [vmem:[#allocation31_spill] sm:$0xff] %v15079_v14  ;;  %v15087_v24 = vadd.f32 %v923_v4, %v15045_v19  ;;  %v967_v33 = vsel %vm948_vm4, %v15079_v14, 0.0 }
 0x101   : > { %19165 = vst [vmem:[#allocation30_spill] sm:$0xff] %v15076_v10  ;;  %v12936_v15 = vpop.f32.mrb[10].mxu1  ;;  %v12953_v16 = vpop.f32.mrb[8].mxu0  ;;  %v961_v17 = vsel %vm948_vm4, %v15076_v10, 0.0  ;;  %v15084_v21 = vadd.f32 %v921_v6, %v15045_v19 }
 0x102   : > { %v758_v20 = vpop.f32.mrb[11].mxu1  ;;  %19168 = vst [vmem:[#allocation33_spill] sm:$0xff] %v15087_v24  ;;  %v888_v25 = vadd.f32 %v12953_v16, %v12935_v5  ;;  %v879_v26 = vpop.f32.mrb[9].mxu0  ;;  %962 = vadd.xlane.f32.xlu0 %v961_v17  ;;  %v970_v48 = vsel %vm948_vm4, %v15087_v24, 0.0 }
 0x103   : > { %19167 = vst [vmem:[#allocation32_spill] sm:$0xff] %v15084_v21  ;;  %v880_v27 = vadd.f32 %v879_v26, %v755_v9  ;;  %v12954_v30 = vpop.f32.mrb[10].mxu0  ;;  %v964_v32 = vsel %vm948_vm4, %v15084_v21, 0.0 }
 0x104   : > { %v926_v35 = vadd.f32 %v15040_v8, %v888_v25  ;;  %v891_v36 = vadd.f32 %v12954_v30, %v12936_v15  ;;  %v882_v44 = vpop.f32.mrb[11].mxu0  ;;  %965 = vadd.xlane.f32.xlu1 %v964_v32 }
 0x105   : > { %v924_v45 = vadd.f32 %v15040_v8, %v880_v27  ;;  %v883_v46 = vadd.f32 %v882_v44, %v758_v20 }
 0x106   : > { %v927_v49 = vadd.f32 %v15040_v8, %v891_v36  ;;  %968 = vadd.xlane.f32.xlu0 %v967_v33  ;;  %v15103_v60 = vadd.f32 %v926_v35, %v15045_v19 }
 0x107   : > { %v12939_v52 = vpop.f32.mrb[12].mxu1  ;;  %v925_v53 = vadd.f32 %v15040_v8, %v883_v46  ;;  %v15100_v59 = vadd.f32 %v924_v45, %v15045_v19 }
 0x108   : > { %v771_v58 = vpop.f32.mrb[13].mxu1  ;;  %19170 = vst [vmem:[#allocation35_spill] sm:$0xff] %v15103_v60  ;;  %971 = vadd.xlane.f32.xlu1 %v970_v48  ;;  %v15111_v5 = vadd.f32 %v927_v49, %v15045_v19  ;;  %v979_v20 = vsel %vm948_vm4, %v15103_v60, 0.0 }
 0x109   : > { %19169 = vst [vmem:[#allocation34_spill] sm:$0xff] %v15100_v59  ;;  %v12940_v61 = vpop.f32.mrb[14].mxu1  ;;  %v12957_v62 = vpop.f32.mrb[12].mxu0  ;;  %v973_v63 = vsel %vm948_vm4, %v15100_v59, 0.0  ;;  %v15108_v4 = vadd.f32 %v925_v53, %v15045_v19 }
 0x10a   : > { %v774_v3 = vpop.f32.mrb[15].mxu1  ;;  %19172 = vst [vmem:[#allocation37_spill] sm:$0xff] %v15111_v5  ;;  %v904_v6 = vadd.f32 %v12957_v62, %v12939_v52  ;;  %v895_v9 = vpop.f32.mrb[13].mxu0  ;;  %974 = vadd.xlane.f32.xlu0 %v973_v63  ;;  %v982_v33 = vsel %vm948_vm4, %v15111_v5, 0.0 }
 0x10b   : > { %19171 = vst [vmem:[#allocation36_spill] sm:$0xff] %v15108_v4  ;;  %v896_v15 = vadd.f32 %v895_v9, %v771_v58  ;;  %v12958_v16 = vpop.f32.mrb[14].mxu0  ;;  %v976_v17 = vsel %vm948_vm4, %v15108_v4, 0.0  ;;  %v14265_v58 = vld [vmem:[%s18993_s3] sm:$0xff]  }
 0x10c   : > { %v930_v25 = vadd.f32 %v15040_v8, %v904_v6  ;;  %v907_v26 = vadd.f32 %v12958_v16, %v12940_v61  ;;  %v898_v27 = vpop.f32.mrb[15].mxu0  ;;  %977 = vadd.xlane.f32.xlu1 %v976_v17  ;;  %12959 = vmatprep.subr.bf16.mxu1 %v14265_v58 }
 0x10d   : > { %v928_v30 = vadd.f32 %v15040_v8, %v896_v15  ;;  %v899_v32 = vadd.f32 %v898_v27, %v774_v3  ;;  %12960 = vmatpush3.bf16.msra.mxu1 %v14265_v58 }
 0x10e   : > { %v931_v35 = vadd.f32 %v15040_v8, %v907_v26  ;;  %980 = vadd.xlane.f32.xlu0 %v979_v20  ;;  %v15127_v45 = vadd.f32 %v930_v25, %v15045_v19 }
 0x10f   : > { %v929_v36 = vadd.f32 %v15040_v8, %v899_v32  ;;  %v15124_v44 = vadd.f32 %v928_v30, %v15045_v19 }
 0x110   : > { %19174 = vst [vmem:[#allocation39_spill] sm:$0xff] %v15127_v45  ;;  %983 = vadd.xlane.f32.xlu1 %v982_v33  ;;  %v15135_v49 = vadd.f32 %v931_v35, %v15045_v19  ;;  %v991_v52 = vsel %vm948_vm4, %v15127_v45, 0.0 }
 0x111   : > { %19173 = vst [vmem:[#allocation38_spill] sm:$0xff] %v15124_v44  ;;  %v985_v46 = vsel %vm948_vm4, %v15124_v44, 0.0  ;;  %v15132_v48 = vadd.f32 %v929_v36, %v15045_v19 }
 0x112   : > { %19176 = vst [vmem:[#allocation41_spill] sm:$0xff] %v15135_v49  ;;  %986 = vadd.xlane.f32.xlu0 %v985_v46  ;;  %v994_v53 = vsel %vm948_vm4, %v15135_v49, 0.0 }
 0x113   : > { %19175 = vst [vmem:[#allocation40_spill] sm:$0xff] %v15132_v48  ;;  %v988_v8 = vsel %vm948_vm4, %v15132_v48, 0.0 }
 0x114   : > { %989 = vadd.xlane.f32.xlu1 %v988_v8 }
 0x116   : > { %992 = vadd.xlane.f32.xlu0 %v991_v52 }
 0x118   : > { %995 = vadd.xlane.f32.xlu1 %v994_v53 }
 0x186   : > { %v957_v19 = vpop.xlane.xlu1 %956 }
 0x187   : > { %v1000_v61 = vmul.f32 0.03125, %v957_v19  ;;  %v951_v62 = vpop.xlane.xlu0 %950 }
 0x188   : > { %v998_v63 = vmul.f32 0.03125, %v951_v62 }
 0x189   : > { %v15147_v3 = vsub.f32 %v15051_v31, %v1000_v61 }
 0x18a   : > { %v15150_v6 = vsub.f32 %v15055_v34, %v998_v63  ;;  %v960_v9 = vpop.xlane.xlu1 %959 }
 0x18b   : > { %v1001_v15 = vmul.f32 0.03125, %v960_v9  ;;  %v954_v16 = vpop.xlane.xlu0 %953  ;;  %v1032_v30 = vmul.f32 %v15147_v3, %v15147_v3 }
 0x18c   : > { %v999_v17 = vmul.f32 0.03125, %v954_v16  ;;  %v1030_v20 = vmul.f32 %v15150_v6, %v15150_v6 }
 0x18d   : > { %v15155_v25 = vsub.f32 %v15060_v37, %v1001_v15  ;;  %v1052_v53 = vsel %vm948_vm4, %v1032_v30, 0.0 }
 0x18e   : > { %v15158_v26 = vsub.f32 %v15065_v47, %v999_v17  ;;  %v1046_v27 = vsel %vm948_vm4, %v1030_v20, 0.0 }
 0x18f   : > { %1047 = vadd.xlane.f32.xlu0 %v1046_v27  ;;  %v963_v32 = vpop.xlane.xlu0 %962  ;;  %v1033_v46 = vmul.f32 %v15155_v25, %v15155_v25 }
 0x190   : > { %v1002_v33 = vmul.f32 0.03125, %v963_v32  ;;  %v1031_v35 = vmul.f32 %v15158_v26, %v15158_v26 }
 0x191   : > { %v966_v36 = vpop.xlane.xlu1 %965  ;;  %v1055_v15 = vsel %vm948_vm4, %v1033_v46, 0.0 }
 0x192   : > { %v15168_v8 = vsub.f32 %v15076_v10, %v1002_v33  ;;  %v1003_v52 = vmul.f32 0.03125, %v966_v36  ;;  %v1049_v58 = vsel %vm948_vm4, %v1031_v35, 0.0 }
 0x193   : > { %1053 = vadd.xlane.f32.xlu0 %v1052_v53  ;;  %1050 = vadd.xlane.f32.xlu1 %v1049_v58  ;;  %v969_v19 = vpop.xlane.xlu0 %968 }
 0x194   : > { %v15173_v61 = vsub.f32 %v15084_v21, %v1003_v52  ;;  %v1004_v62 = vmul.f32 0.03125, %v969_v19  ;;  %v1034_v63 = vmul.f32 %v15168_v8, %v15168_v8 }
 0x195   : > { %v972_v9 = vpop.xlane.xlu1 %971 }
 0x196   : > { %v15179_v16 = vsub.f32 %v15079_v14, %v1004_v62  ;;  %v1005_v17 = vmul.f32 0.03125, %v972_v9  ;;  %v1058_v20 = vsel %vm948_vm4, %v1034_v63, 0.0  ;;  %v1035_v27 = vmul.f32 %v15173_v61, %v15173_v61 }
 0x197   : > { %1056 = vadd.xlane.f32.xlu1 %v1055_v15  ;;  %1059 = vadd.xlane.f32.xlu0 %v1058_v20  ;;  %v975_v30 = vpop.xlane.xlu0 %974 }
 0x198   : > { %v15185_v32 = vsub.f32 %v15087_v24, %v1005_v17  ;;  %v1006_v33 = vmul.f32 0.03125, %v975_v30  ;;  %v1036_v35 = vmul.f32 %v15179_v16, %v15179_v16  ;;  %v1061_v46 = vsel %vm948_vm4, %v1035_v27, 0.0 }
 0x199   : > { %v978_v36 = vpop.xlane.xlu1 %977 }
 0x19a   : > { %v15191_v52 = vsub.f32 %v15100_v59, %v1006_v33  ;;  %v1007_v53 = vmul.f32 0.03125, %v978_v36  ;;  %v1064_v58 = vsel %vm948_vm4, %v1036_v35, 0.0  ;;  %v1037_v19 = vmul.f32 %v15185_v32, %v15185_v32 }
 0x19b   : > { %1062 = vadd.xlane.f32.xlu1 %v1061_v46  ;;  %1065 = vadd.xlane.f32.xlu0 %v1064_v58  ;;  %v981_v62 = vpop.xlane.xlu0 %980 }
 0x19c   : > { %v15197_v63 = vsub.f32 %v15108_v4, %v1007_v53  ;;  %v1008_v9 = vmul.f32 0.03125, %v981_v62  ;;  %v1038_v15 = vmul.f32 %v15191_v52, %v15191_v52  ;;  %v1067_v20 = vsel %vm948_vm4, %v1037_v19, 0.0 }
 0x19d   : > { %v984_v17 = vpop.xlane.xlu1 %983 }
 0x19e   : > { %v15203_v27 = vsub.f32 %v15103_v60, %v1008_v9  ;;  %v1009_v30 = vmul.f32 0.03125, %v984_v17  ;;  %v1070_v33 = vsel %vm948_vm4, %v1038_v15, 0.0  ;;  %v1039_v35 = vmul.f32 %v15197_v63, %v15197_v63 }
 0x19f   : > { %1068 = vadd.xlane.f32.xlu1 %v1067_v20  ;;  %1071 = vadd.xlane.f32.xlu0 %v1070_v33  ;;  %v987_v36 = vpop.xlane.xlu0 %986 }
 0x1a0   : > { %v15209_v46 = vsub.f32 %v15111_v5, %v1009_v30  ;;  %v1010_v53 = vmul.f32 0.03125, %v987_v36  ;;  %v1040_v58 = vmul.f32 %v15203_v27, %v15203_v27  ;;  %v1073_v62 = vsel %vm948_vm4, %v1039_v35, 0.0 }
 0x1a1   : > { %v990_v19 = vpop.xlane.xlu1 %989 }
 0x1a2   : > { %v15215_v9 = vsub.f32 %v15124_v44, %v1010_v53  ;;  %v1011_v15 = vmul.f32 0.03125, %v990_v19  ;;  %v1076_v17 = vsel %vm948_vm4, %v1040_v58, 0.0  ;;  %v1041_v20 = vmul.f32 %v15209_v46, %v15209_v46 }
 0x1a3   : > { %1074 = vadd.xlane.f32.xlu1 %v1073_v62  ;;  %1077 = vadd.xlane.f32.xlu0 %v1076_v17  ;;  %v993_v30 = vpop.xlane.xlu0 %992 }
 0x1a4   : > { %v15221_v33 = vsub.f32 %v15132_v48, %v1011_v15  ;;  %v1012_v36 = vmul.f32 0.03125, %v993_v30  ;;  %v1042_v1 = vmul.f32 %v15215_v9, %v15215_v9  ;;  %v1079_v53 = vsel %vm948_vm4, %v1041_v20, 0.0 }
 0x1a5   : > { %v996_v35 = vpop.xlane.xlu1 %995 }
 0x1a6   : > { %v15227_v19 = vsub.f32 %v15127_v45, %v1012_v36  ;;  %v1013_v58 = vmul.f32 0.03125, %v996_v35  ;;  %v1082_v57 = vsel %vm948_vm4, %v1042_v1, 0.0  ;;  %v1043_v62 = vmul.f32 %v15221_v33, %v15221_v33 }
 0x1a7   : > { %1080 = vadd.xlane.f32.xlu1 %v1079_v53  ;;  %1083 = vadd.xlane.f32.xlu0 %v1082_v57  ;;  %v14266_v57 = vld [vmem:[%s18993_s3 + $0x8] sm:$0xff]  }
 0x1a8   : > { %v15233_v15 = vsub.f32 %v15135_v49, %v1013_v58  ;;  %v1044_v17 = vmul.f32 %v15227_v19, %v15227_v19  ;;  %v1085_v30 = vsel %vm948_vm4, %v1043_v62, 0.0  ;;  %12961 = vmatprep.subr.bf16.mxu1 %v14266_v57 }
 0x1a9   : > { %12962 = vmatpush3.bf16.msra.mxu1 %v14266_v57 }
 0x1aa   : > { %v1088_v20 = vsel %vm948_vm4, %v1044_v17, 0.0  ;;  %v1045_v36 = vmul.f32 %v15233_v15, %v15233_v15 }
 0x1ab   : > { %1086 = vadd.xlane.f32.xlu1 %v1085_v30  ;;  %1089 = vadd.xlane.f32.xlu0 %v1088_v20 }
 0x1ac   : > { %v1091_v1 = vsel %vm948_vm4, %v1045_v36, 0.0 }
 0x1af   : > { %1092 = vadd.xlane.f32.xlu1 %v1091_v1 }
 0x21c   : > { %v1048_v35 = vpop.xlane.xlu0 %1047 }
 0x21d   : > { %v1094_v53 = vmul.f32 0.03125, %v1048_v35 }
 0x21f   : > { %v1110_v58 = vadd.f32 1e-06, %v1094_v53 }
 0x220   : > { %v1051_v62 = vpop.xlane.xlu1 %1050  ;;  %v1054_v56 = vpop.xlane.xlu0 %1053 }
 0x221   : > { %14281 = vrsqrt.f32 %v1110_v58  ;;  %v1095_v17 = vmul.f32 0.03125, %v1051_v62  ;;  %v1096_v2 = vmul.f32 0.03125, %v1054_v56 }
 0x223   : > { %v1111_v50 = vadd.f32 1e-06, %v1095_v17  ;;  %v1112_v30 = vadd.f32 1e-06, %v1096_v2 }
 0x224   : > { %v1057_v20 = vpop.xlane.xlu1 %1056  ;;  %v1060_v43 = vpop.xlane.xlu0 %1059 }
 0x225   : > { %14283 = vrsqrt.f32 %v1111_v50  ;;  %v1097_v36 = vmul.f32 0.03125, %v1057_v20  ;;  %v1098_v1 = vmul.f32 0.03125, %v1060_v43  ;;  %v15249_v43 = vld [vmem:[%s19000_s10 + $0x2] ss:$0 sm:$0xff] }
 0x226   : > { %14285 = vrsqrt.f32 %v1112_v30 }
 0x227   : > { %v1113_v42 = vadd.f32 1e-06, %v1097_v36  ;;  %v1114_v51 = vadd.f32 1e-06, %v1098_v1 }
 0x228   : > { %v1063_v39 = vpop.xlane.xlu1 %1062  ;;  %v1066_v57 = vpop.xlane.xlu0 %1065 }
 0x229   : > { %14287 = vrsqrt.f32 %v1113_v42  ;;  %v1099_v35 = vmul.f32 0.03125, %v1063_v39  ;;  %v1100_v53 = vmul.f32 0.03125, %v1066_v57 }
 0x22a   : > { %14289 = vrsqrt.f32 %v1114_v51 }
 0x22b   : > { %v14282_v29 = vpop.eup %14281  ;;  %v1115_v58 = vadd.f32 1e-06, %v1099_v35  ;;  %v1116_v62 = vadd.f32 1e-06, %v1100_v53 }
 0x22c   : > { %v1069_v56 = vpop.xlane.xlu1 %1068  ;;  %v1072_v17 = vpop.xlane.xlu0 %1071  ;;  %v1142_v2 = vmul.f32 %v14282_v29, %v15150_v6  ;;  %v15256_v29 = vld [vmem:[%s19000_s10 + $0x3] ss:$0 sm:$0xff] }
 0x22d   : > { %14291 = vrsqrt.f32 %v1115_v58  ;;  %v1101_v50 = vmul.f32 0.03125, %v1069_v56  ;;  %v1102_v30 = vmul.f32 0.03125, %v1072_v17 }
 0x22e   : > { %14293 = vrsqrt.f32 %v1116_v62  ;;  %v1164_v35 = vmul.f32 %v15249_v43, %v1142_v2 }
 0x22f   : > { %v14284_v42 = vpop.eup %14283  ;;  %v1117_v39 = vadd.f32 1e-06, %v1101_v50  ;;  %v1118_v20 = vadd.f32 1e-06, %v1102_v30 }
 0x230   : > { %v14286_v51 = vpop.eup %14285  ;;  %v1075_v36 = vpop.xlane.xlu1 %1074  ;;  %v1143_v57 = vmul.f32 %v14284_v42, %v15158_v26  ;;  %v1186_v40 = vadd.f32 %v15256_v29, %v1164_v35 }
 0x231   : > { %v1078_v1 = vpop.xlane.xlu0 %1077  ;;  %v1144_v6 = vmul.f32 %v14286_v51, %v15147_v3  ;;  %14295 = vrsqrt.f32 %v1117_v39  ;;  %v1103_v53 = vmul.f32 0.03125, %v1075_v36 }
 0x232   : > { %v1104_v58 = vmul.f32 0.03125, %v1078_v1  ;;  %14297 = vrsqrt.f32 %v1118_v20  ;;  %v1165_v62 = vmul.f32 %v15249_v43, %v1143_v57 }
 0x233   : > { %v14288_v56 = vpop.eup %14287  ;;  %v1119_v17 = vadd.f32 1e-06, %v1103_v53  ;;  %v1166_v26 = vmul.f32 %v15249_v43, %v1144_v6 }
 0x234   : > { %v1120_v50 = vadd.f32 1e-06, %v1104_v58  ;;  %v14290_v30 = vpop.eup %14289  ;;  %v1145_v2 = vmul.f32 %v14288_v56, %v15155_v25  ;;  %v1081_v42 = vpop.xlane.xlu1 %1080  ;;  %v1187_v3 = vadd.f32 %v15256_v29, %v1165_v62 }
 0x235   : > { %v1084_v28 = vpop.xlane.xlu0 %1083  ;;  %14299 = vrsqrt.f32 %v1119_v17  ;;  %v1105_v39 = vmul.f32 0.03125, %v1081_v42  ;;  %v1146_v1 = vmul.f32 %v14290_v30, %v15168_v8  ;;  %v1188_v25 = vadd.f32 %v15256_v29, %v1166_v26 }
 0x236   : > { %v1106_v51 = vmul.f32 0.03125, %v1084_v28  ;;  %v1167_v20 = vmul.f32 %v15249_v43, %v1145_v2  ;;  %14301 = vrsqrt.f32 %v1120_v50  ;;  %v1202_v36 = vpack.c.bf16 %v1187_v3, %v1186_v40 }
 0x237   : > { %v14292_v57 = vpop.eup %14291  ;;  %v1121_v53 = vadd.f32 1e-06, %v1105_v39  ;;  %v1168_v17 = vmul.f32 %v15249_v43, %v1146_v1 }
 0x238   : > { %v1122_v6 = vadd.f32 1e-06, %v1106_v51  ;;  %v14294_v58 = vpop.eup %14293  ;;  %v1189_v56 = vadd.f32 %v15256_v29, %v1167_v20  ;;  %v1087_v35 = vpop.xlane.xlu1 %1086  ;;  %12963 = vmatprep.mubr.msk.bf16.mxu1 %vm948_vm4, %v1202_v36  ;;  %v1147_v28 = vmul.f32 %v14292_v57, %v15173_v61 }
 0x239   : > { %v1090_v62 = vpop.xlane.xlu0 %1089  ;;  %14303 = vrsqrt.f32 %v1121_v53  ;;  %v1107_v40 = vmul.f32 0.03125, %v1087_v35  ;;  %v1148_v8 = vmul.f32 %v14294_v58, %v15179_v16  ;;  %v1190_v61 = vadd.f32 %v15256_v29, %v1168_v17 }
 0x23a   : > { %v1108_v50 = vmul.f32 0.03125, %v1090_v62  ;;  %14305 = vrsqrt.f32 %v1122_v6  ;;  %v1203_v30 = vpack.c.bf16 %v1189_v56, %v1188_v25  ;;  %v1169_v2 = vmul.f32 %v15249_v43, %v1147_v28 }
 0x23b   : > { %v14296_v26 = vpop.eup %14295  ;;  %v1123_v42 = vadd.f32 1e-06, %v1107_v40  ;;  %v1170_v1 = vmul.f32 %v15249_v43, %v1148_v8 }
 0x23c   : > { %v1124_v3 = vadd.f32 1e-06, %v1108_v50  ;;  %v14298_v39 = vpop.eup %14297  ;;  %v1093_v51 = vpop.xlane.xlu1 %1092  ;;  %12964 = vmatmul.mubr.msk.bf16.vlgmr.msra.gmra.mrb[16].mxu1 %vm948_vm4, %v1203_v30  ;;  %v1191_v20 = vadd.f32 %v15256_v29, %v1169_v2  ;;  %v1149_v36 = vmul.f32 %v14296_v26, %v15185_v32 }
 0x23d   : > { %14307 = vrsqrt.f32 %v1123_v42  ;;  %v1109_v16 = vmul.f32 0.03125, %v1093_v51  ;;  %v1150_v57 = vmul.f32 %v14298_v39, %v15191_v52  ;;  %v1192_v35 = vadd.f32 %v15256_v29, %v1170_v1 }
 0x23e   : > { %14309 = vrsqrt.f32 %v1124_v3  ;;  %v1204_v53 = vpack.c.bf16 %v1191_v20, %v1190_v61  ;;  %v1171_v6 = vmul.f32 %v15249_v43, %v1149_v36 }
 0x23f   : > { %v14300_v58 = vpop.eup %14299  ;;  %v1125_v25 = vadd.f32 1e-06, %v1109_v16  ;;  %v1172_v28 = vmul.f32 %v15249_v43, %v1150_v57 }
 0x240   : > { %v14302_v56 = vpop.eup %14301  ;;  %12967 = vmatprep.mubr.msk.bf16.mxu1 %vm948_vm4, %v1204_v53  ;;  %v1193_v62 = vadd.f32 %v15256_v29, %v1171_v6  ;;  %v1151_v32 = vmul.f32 %v14300_v58, %v15197_v63 }
 0x241   : > { %14311 = vrsqrt.f32 %v1125_v25  ;;  %v1152_v52 = vmul.f32 %v14302_v56, %v15203_v27  ;;  %v1194_v30 = vadd.f32 %v15256_v29, %v1172_v28 }
 0x242   : > { %v1205_v17 = vpack.c.bf16 %v1193_v62, %v1192_v35  ;;  %v1173_v40 = vmul.f32 %v15249_v43, %v1151_v32  ;;  %v19022_v32 = vmov 0.0  }
 0x243   : > { %v14304_v50 = vpop.eup %14303  ;;  %v1174_v63 = vmul.f32 %v15249_v43, %v1152_v52  ;;  %12979 = vmatprep.subr.bf16.mxu1 %v19022_v32  ;;  %13003 = vmatprep.subr.bf16.mxu0 %v19022_v32 }
 0x244   : > { %v14306_v8 = vpop.eup %14305  ;;  %12968 = vmatmul.mubr.msk.bf16.gmra.mrb[20].mxu1 %vm948_vm4, %v1205_v17  ;;  %v1195_v2 = vadd.f32 %v15256_v29, %v1173_v40  ;;  %v1153_v26 = vmul.f32 %v14304_v50, %v15209_v46  ;;  %13005 = vmatprep.mubr.msk.bf16.mxu0 %vm14787_vm5, %v19022_v32 }
 0x245   : > { %v1154_v42 = vmul.f32 %v14306_v8, %v15215_v9  ;;  %v1196_v61 = vadd.f32 %v15256_v29, %v1174_v63 }
 0x246   : > { %v1206_v3 = vpack.c.bf16 %v1195_v2, %v1194_v30  ;;  %v1175_v27 = vmul.f32 %v15249_v43, %v1153_v26 }
 0x247   : > { %v14308_v39 = vpop.eup %14307  ;;  %v1176_v1 = vmul.f32 %v15249_v43, %v1154_v42 }
 0x248   : > { %v14310_v51 = vpop.eup %14309  ;;  %12971 = vmatprep.mubr.msk.bf16.mxu1 %vm948_vm4, %v1206_v3  ;;  %v1197_v20 = vadd.f32 %v15256_v29, %v1175_v27  ;;  %v1155_v36 = vmul.f32 %v14308_v39, %v15221_v33 }
 0x249   : > { %v1156_v46 = vmul.f32 %v14310_v51, %v15227_v19  ;;  %v1198_v53 = vadd.f32 %v15256_v29, %v1176_v1 }
 0x24a   : > { %v1207_v16 = vpack.c.bf16 %v1197_v20, %v1196_v61  ;;  %v1177_v9 = vmul.f32 %v15249_v43, %v1155_v36 }
 0x24b   : > { %v14312_v57 = vpop.eup %14311  ;;  %v1178_v25 = vmul.f32 %v15249_v43, %v1156_v46 }
 0x24c   : > { %12972 = vmatmul.mubr.msk.bf16.gmra.mrb[24].mxu1 %vm948_vm4, %v1207_v16  ;;  %v1199_v6 = vadd.f32 %v15256_v29, %v1177_v9  ;;  %v1157_v58 = vmul.f32 %v14312_v57, %v15233_v15  ;;  %v15316_v15 = vld [vmem:[%s19001_s11] ss:$0 sm:$0xff] }
 0x24d   : > { %v1200_v19 = vadd.f32 %v15256_v29, %v1178_v25 }
 0x24e   : > { %v1208_v56 = vpack.c.bf16 %v1199_v6, %v1198_v53  ;;  %v1179_v33 = vmul.f32 %v15249_v43, %v1157_v58 }
 0x250   : > { %12975 = vmatprep.mubr.msk.bf16.mxu1 %vm948_vm4, %v1208_v56  ;;  %v1201_v35 = vadd.f32 %v15256_v29, %v1179_v33 }
 0x252   : > { %v1209_v62 = vpack.c.bf16 %v1201_v35, %v1200_v19 }
 0x254   : > { %12976 = vmatmul.mubr.msk.bf16.gmra.mrb[28].mxu1 %vm948_vm4, %v1209_v62 }
 0x255   : > { %12981 = vmatprep.mubr.msk.bf16.mxu1 %vm14787_vm5, %v19022_v32 }
 0x30f   : > { %v12965_v43 = vpop.f32.mrb[16].mxu1 }
 0x310   : > { %v1286_v29 = vpop.f32.mrb[17].mxu1  ;;  %v1295_v17 = vadd.f32 %v12965_v43, %v15316_v15 }
 0x311   : > { %v1287_v28 = vadd.f32 %v15316_v15, %v1286_v29  ;;  %v12966_v52 = vpop.f32.mrb[18].mxu1 }
 0x312   : > { %v1298_v40 = vadd.f32 %v12966_v52, %v15316_v15  ;;  %v1289_v50 = vpop.f32.mrb[19].mxu1  ;;  %v15339_v61 = vpack.c.bf16 %v1295_v17, %v1295_v17 }
 0x313   : > { %v1290_v8 = vadd.f32 %v15316_v15, %v1289_v50  ;;  %v15326_v30 = vpack.c.bf16 %v1287_v28, %v1287_v28 }
 0x314   : > { %v14190_v2 = vpack.i.bf16 %v1298_v40, %v1295_v17  ;;  %v15334_v3 = vpack.c.bf16 %v1298_v40, %v1298_v40 }
 0x315   : > { %1446 = vrot.lane.b32.xlu0 %v15326_v30, %s14788_s24  ;;  %v15330_v26 = vpack.c.bf16 %v1290_v8, %v1290_v8  ;;  %v14185_v63 = vpack.i.bf16 %v1290_v8, %v1287_v28 }
 0x317   : > { %1496 = vrot.lane.b32.xlu1 %v15330_v26, %s14788_s24  ;;  %v12969_v42 = vpop.f32.mrb[20].mxu1 }
 0x318   : > { %v1302_v27 = vpop.f32.mrb[21].mxu1  ;;  %v1311_v20 = vadd.f32 %v12969_v42, %v15316_v15 }
 0x319   : > { %v1303_v39 = vadd.f32 %v15316_v15, %v1302_v27  ;;  %1594 = vrot.lane.b32.xlu0 %v15334_v3, %s14788_s24  ;;  %v12970_v51 = vpop.f32.mrb[22].mxu1 }
 0x31a   : > { %v1314_v36 = vadd.f32 %v12970_v51, %v15316_v15  ;;  %v1305_v1 = vpop.f32.mrb[23].mxu1  ;;  %v15369_v8 = vpack.c.bf16 %v1311_v20, %v1311_v20 }
 0x31b   : > { %v1306_v46 = vadd.f32 %v15316_v15, %v1305_v1  ;;  %1545 = vrot.lane.b32.xlu1 %v15339_v61, %s14788_s24  ;;  %v15346_v16 = vpack.c.bf16 %v1303_v39, %v1303_v39 }
 0x31c   : > { %v14200_v9 = vpack.i.bf16 %v1314_v36, %v1311_v20  ;;  %v15357_v62 = vpack.c.bf16 %v1314_v36, %v1314_v36 }
 0x31d   : > { %1643 = vrot.lane.b32.xlu0 %v15346_v16, %s14788_s24  ;;  %v14195_v57 = vpack.i.bf16 %v1306_v46, %v1303_v39  ;;  %v15361_v29 = vpack.c.bf16 %v1306_v46, %v1306_v46 }
 0x31f   : > { %14186 = vrot.lane.b32.xlu1 %v14185_v63, %s14789_s16  ;;  %v12973_v53 = vpop.f32.mrb[24].mxu1 }
 0x320   : > { %v1318_v6 = vpop.f32.mrb[25].mxu1  ;;  %v1327_v25 = vadd.f32 %v12973_v53, %v15316_v15 }
 0x321   : > { %14196 = vrot.lane.b32.xlu0 %v14195_v57, %s14789_s16  ;;  %v12974_v58 = vpop.f32.mrb[26].mxu1  ;;  %v1319_v19 = vadd.f32 %v15316_v15, %v1318_v6 }
 0x322   : > { %v1330_v56 = vadd.f32 %v12974_v58, %v15316_v15  ;;  %v1321_v33 = vpop.f32.mrb[27].mxu1  ;;  %v15391_v46 = vpack.c.bf16 %v1327_v25, %v1327_v25 }
 0x323   : > { %v1322_v35 = vadd.f32 %v15316_v15, %v1321_v33  ;;  %14191 = vrot.lane.b32.xlu1 %v14190_v2, %s14789_s16  ;;  %v15365_v17 = vpack.c.bf16 %v1319_v19, %v1319_v19 }
 0x324   : > { %v14210_v43 = vpack.i.bf16 %v1330_v56, %v1327_v25  ;;  %v15379_v20 = vpack.c.bf16 %v1330_v56, %v1330_v56 }
 0x325   : > { %1790 = vrot.lane.b32.xlu0 %v15357_v62, %s14788_s24  ;;  %v14205_v28 = vpack.i.bf16 %v1322_v35, %v1319_v19  ;;  %v15383_v1 = vpack.c.bf16 %v1322_v35, %v1322_v35 }
 0x327   : > { %1692 = vrot.lane.b32.xlu1 %v15361_v29, %s14788_s24  ;;  %v12977_v52 = vpop.f32.mrb[28].mxu1 }
 0x328   : > { %v1334_v40 = vpop.f32.mrb[29].mxu1  ;;  %v1343_v2 = vadd.f32 %v12977_v52, %v15316_v15 }
 0x329   : > { %1839 = vrot.lane.b32.xlu0 %v15365_v17, %s14788_s24  ;;  %v12978_v50 = vpop.f32.mrb[30].mxu1  ;;  %v1335_v27 = vadd.f32 %v15316_v15, %v1334_v40 }
 0x32a   : > { %v1346_v63 = vadd.f32 %v12978_v50, %v15316_v15  ;;  %v1337_v42 = vpop.f32.mrb[31].mxu1  ;;  %v15405_v53 = vpack.c.bf16 %v1343_v2, %v1343_v2 }
 0x32b   : > { %v1338_v39 = vadd.f32 %v15316_v15, %v1337_v42  ;;  %1741 = vrot.lane.b32.xlu1 %v15369_v8, %s14788_s24  ;;  %v15387_v15 = vpack.c.bf16 %v1335_v27, %v1335_v27 }
 0x32c   : > { %v14220_v51 = vpack.i.bf16 %v1346_v63, %v1343_v2 }
 0x32d   : > { %14206 = vrot.lane.b32.xlu0 %v14205_v28, %s14789_s16  ;;  %v14215_v36 = vpack.i.bf16 %v1338_v39, %v1335_v27  ;;  %v15401_v57 = vpack.c.bf16 %v1338_v39, %v1338_v39 }
 0x32f   : > { %14201 = vrot.lane.b32.xlu1 %v14200_v9, %s14789_s16  ;;  %v15397_v9 = vpack.c.bf16 %v1346_v63, %v1346_v63 }
 0x331   : > { %1986 = vrot.lane.b32.xlu0 %v15379_v20, %s14788_s24 }
 0x333   : > { %1888 = vrot.lane.b32.xlu1 %v15383_v1, %s14788_s24 }
 0x335   : > { %2035 = vrot.lane.b32.xlu0 %v15387_v15, %s14788_s24 }
 0x337   : > { %1937 = vrot.lane.b32.xlu1 %v15391_v46, %s14788_s24 }
 0x339   : > { %14216 = vrot.lane.b32.xlu0 %v14215_v36, %s14789_s16 }
 0x33b   : > { %14211 = vrot.lane.b32.xlu1 %v14210_v43, %s14789_s16 }
 0x33d   : > { %2182 = vrot.lane.b32.xlu0 %v15397_v9, %s14788_s24 }
 0x33f   : > { %2084 = vrot.lane.b32.xlu1 %v15401_v57, %s14788_s24 }
 0x343   : > { %2133 = vrot.lane.b32.xlu1 %v15405_v53, %s14788_s24 }
 0x347   : > { %14221 = vrot.lane.b32.xlu1 %v14220_v51, %s14789_s16 }
 0x387   : > { %v1447_v6 = vpop.permute.xlu0 %1446 }
 0x388   : > { %v1453_v58 = vsel %vm1448_vm6, %v1447_v6, 0 }
 0x389   : > { %v1497_v25 = vpop.permute.xlu1 %1496  ;;  %12980 = vmatpush3.bf16.xpose.msra.mxu1 %v1453_v58 }
 0x38a   : > { %12985 = vmatprep.subr.bf16.mxu1 %v19022_v32  ;;  %v1502_v35 = vsel %vm1448_vm6, %v1497_v25, 0 }
 0x38b   : > { %v1595_v56 = vpop.permute.xlu0 %1594 }
 0x38d   : > { %v1546_v33 = vpop.permute.xlu1 %1545 }
 0x38e   : > { %v1551_v51 = vsel %vm1448_vm6, %v1546_v33, 0 }
 0x38f   : > { %v1644_v19 = vpop.permute.xlu0 %1643 }
 0x390   : > { %v1649_v43 = vsel %vm1448_vm6, %v1644_v19, 0  ;;  %12982 = vmatmul.mubr.msk.bf16.vlgmr.msra.gmra.mrb[32].mxu1 %vm1448_vm6, %v15326_v30 }
 0x391   : > { %v14187_v28 = vpop.permute.xlu1 %14186  ;;  %12986 = vmatpush3.bf16.xpose.msra.mxu1 %v1502_v35  ;;  %13004 = vmatpush3.bf16.xpose.msra.mxu0 %v1649_v43 }
 0x392   : > { %v14189_v52 = vunpack.i.h.bf16 %v14187_v28  ;;  %v14188_v40 = vunpack.i.l.bf16 %v14187_v28  ;;  %12987 = vmatprep.mubr.msk.bf16.mxu1 %vm14787_vm5, %v19022_v32  ;;  %12991 = vmatprep.subr.bf16.mxu1 %v19022_v32 }
 0x393   : > { %v14197_v50 = vpop.permute.xlu0 %14196  ;;  %13015 = vmatprep.subr.bf16.mxu0 %v19022_v32 }
 0x394   : > { %v15420_v2 = vpack.c.bf16 %v14189_v52, %v14189_v52  ;;  %v15422_v63 = vpack.c.bf16 %v14188_v40, %v14188_v40  ;;  %v14199_v6 = vunpack.i.h.bf16 %v14197_v50  ;;  %v14198_v58 = vunpack.i.l.bf16 %v14197_v50 }
 0x395   : > { %v14192_v42 = vpop.permute.xlu1 %14191 }
 0x396   : > { %v14194_v27 = vunpack.i.h.bf16 %v14192_v42  ;;  %v14193_v39 = vunpack.i.l.bf16 %v14192_v42  ;;  %2280 = vrot.lane.b32.xlu1 %v15420_v2, %s14788_s24  ;;  %2231 = vrot.lane.b32.xlu0 %v15422_v63, %s14788_s24  ;;  %v15448_v43 = vpack.c.bf16 %v14199_v6, %v14199_v6  ;;  %v15450_v28 = vpack.c.bf16 %v14198_v58, %v14198_v58 }
 0x397   : > { %v15429_v36 = vpop.permute.xlu0 %1790  ;;  %v1600_v42 = vsel %vm1448_vm6, %v1595_v56, 0 }
 0x398   : > { %12988 = vmatmul.mubr.msk.bf16.vlgmr.msra.gmra.mrb[36].mxu1 %vm1448_vm6, %v15330_v26  ;;  %13006 = vmatmul.mubr.msk.bf16.vlgmr.msra.gmra.mrb[16].mxu0 %vm1448_vm6, %v15346_v16  ;;  %v15435_v25 = vpack.c.bf16 %v14194_v27, %v14194_v27  ;;  %v15437_v19 = vpack.c.bf16 %v14193_v39, %v14193_v39 }
 0x399   : > { %v1693_v35 = vpop.permute.xlu1 %1692  ;;  %12992 = vmatpush3.bf16.xpose.msra.mxu1 %v1551_v51  ;;  %12993 = vmatprep.mubr.msk.bf16.mxu1 %vm14787_vm5, %v19022_v32 }
 0x39a   : > { %2378 = vrot.lane.b32.xlu1 %v15435_v25, %s14788_s24  ;;  %2329 = vrot.lane.b32.xlu0 %v15437_v19, %s14788_s24 }
 0x39b   : > { %v1840_v33 = vpop.permute.xlu0 %1839  ;;  %12997 = vmatprep.subr.bf16.mxu1 %v19022_v32  ;;  %13017 = vmatprep.mubr.msk.bf16.mxu0 %vm14787_vm5, %v19022_v32 }
 0x39c   : > { %v1845_v13 = vsel %vm1448_vm6, %v1840_v33, 0 }
 0x39d   : > { %v1742_v52 = vpop.permute.xlu1 %1741 }
 0x39e   : > { %v1747_v40 = vsel %vm1448_vm6, %v1742_v52, 0  ;;  %2476 = vrot.lane.b32.xlu1 %v15448_v43, %s14788_s24  ;;  %2427 = vrot.lane.b32.xlu0 %v15450_v28, %s14788_s24 }
 0x39f   : > { %13016 = vmatpush3.bf16.xpose.msra.mxu0 %v1747_v40  ;;  %v14207_v50 = vpop.permute.xlu0 %14206 }
 0x3a0   : > { %12994 = vmatmul.mubr.msk.bf16.vlgmr.msra.gmra.mrb[40].mxu1 %vm1448_vm6, %v15339_v61  ;;  %13027 = vmatprep.subr.bf16.mxu0 %v19022_v32  ;;  %v14209_v58 = vunpack.i.h.bf16 %v14207_v50  ;;  %v14208_v40 = vunpack.i.l.bf16 %v14207_v50 }
 0x3a1   : > { %v14202_v27 = vpop.permute.xlu1 %14201  ;;  %12998 = vmatpush3.bf16.xpose.msra.mxu1 %v1600_v42  ;;  %12999 = vmatprep.mubr.msk.bf16.mxu1 %vm14787_vm5, %v19022_v32 }
 0x3a2   : > { %v14204_v39 = vunpack.i.h.bf16 %v14202_v27  ;;  %v14203_v51 = vunpack.i.l.bf16 %v14202_v27  ;;  %13009 = vmatprep.subr.bf16.mxu1 %v19022_v32  ;;  %v1698_v27 = vsel %vm1448_vm6, %v1693_v35, 0  ;;  %v15480_v50 = vpack.c.bf16 %v14209_v58, %v14209_v58 }
 0x3a3   : > { %v15464_v6 = vpop.permute.xlu0 %1986 }
 0x3a4   : > { %v15466_v52 = vpack.c.bf16 %v14204_v39, %v14204_v39  ;;  %v15468_v56 = vpack.c.bf16 %v14203_v51, %v14203_v51  ;;  %v15484_v39 = vpack.c.bf16 %v14208_v40, %v14208_v40 }
 0x3a5   : > { %v1889_v18 = vpop.permute.xlu1 %1888 }
 0x3a6   : > { %13018 = vmatmul.mubr.msk.bf16.vlgmr.msra.gmra.mrb[20].mxu0 %vm1448_vm6, %v15369_v8  ;;  %2574 = vrot.lane.b32.xlu1 %v15466_v52, %s14788_s24 }
 0x3a7   : > { %2525 = vrot.lane.b32.xlu0 %v15468_v56, %s14788_s24  ;;  %13028 = vmatpush3.bf16.xpose.msra.mxu0 %v1845_v13  ;;  %v2036_v42 = vpop.permute.xlu0 %2035 }
 0x3a8   : > { %13000 = vmatmul.mubr.msk.bf16.vlgmr.msra.gmra.mrb[44].mxu1 %vm1448_vm6, %v15334_v3  ;;  %13029 = vmatprep.mubr.msk.bf16.mxu0 %vm14787_vm5, %v19022_v32 }
 0x3a9   : > { %v1938_v33 = vpop.permute.xlu1 %1937  ;;  %13010 = vmatpush3.bf16.xpose.msra.mxu1 %v1698_v27  ;;  %13039 = vmatprep.subr.bf16.mxu0 %v19022_v32  ;;  %v1796_v27 = vsel %vm1448_vm6, %v15429_v36, 0 }
 0x3aa   : > { %2672 = vrot.lane.b32.xlu1 %v15480_v50, %s14788_s24  ;;  %13011 = vmatprep.mubr.msk.bf16.mxu1 %vm14787_vm5, %v19022_v32  ;;  %v1943_v51 = vsel %vm1448_vm6, %v1938_v33, 0 }
 0x3ab   : > { %2623 = vrot.lane.b32.xlu0 %v15484_v39, %s14788_s24  ;;  %13021 = vmatprep.subr.bf16.mxu1 %v19022_v32  ;;  %v14217_v13 = vpop.permute.xlu0 %14216 }
 0x3ac   : > { %v14219_v12 = vunpack.i.h.bf16 %v14217_v13  ;;  %v14218_v33 = vunpack.i.l.bf16 %v14217_v13  ;;  %v2041_v13 = vsel %vm1448_vm6, %v2036_v42, 0 }
 0x3ad   : > { %v14212_v35 = vpop.permute.xlu1 %14211 }
 0x3ae   : > { %v14214_v58 = vunpack.i.h.bf16 %v14212_v35  ;;  %v14213_v40 = vunpack.i.l.bf16 %v14212_v35  ;;  %13030 = vmatmul.mubr.msk.bf16.vlgmr.msra.gmra.mrb[24].mxu0 %vm1448_vm6, %v15365_v17  ;;  %v15515_v36 = vpack.c.bf16 %v14219_v12, %v14219_v12 }
 0x3af   : > { %13040 = vmatpush3.bf16.xpose.msra.mxu0 %v1943_v51  ;;  %13041 = vmatprep.mubr.msk.bf16.mxu0 %vm14787_vm5, %v19022_v32 }
 0x3b0   : > { %13012 = vmatmul.mubr.msk.bf16.vlgmr.msra.gmra.mrb[48].mxu1 %vm1448_vm6, %v15361_v29  ;;  %v15503_v22 = vpack.c.bf16 %v14214_v58, %v14214_v58  ;;  %v15505_v0 = vpack.c.bf16 %v14213_v40, %v14213_v40  ;;  %13051 = vmatprep.subr.bf16.mxu0 %v19022_v32  ;;  %v15517_v58 = vpack.c.bf16 %v14218_v33, %v14218_v33  ;;  %v1894_v40 = vsel %vm1448_vm6, %v1889_v18, 0 }
 0x3b1   : > { %v2085_v35 = vpop.permute.xlu1 %2084  ;;  %13022 = vmatpush3.bf16.xpose.msra.mxu1 %v1796_v27  ;;  %13023 = vmatprep.mubr.msk.bf16.mxu1 %vm14787_vm5, %v19022_v32 }
 0x3b2   : > { %2770 = vrot.lane.b32.xlu1 %v15503_v22, %s14788_s24  ;;  %2721 = vrot.lane.b32.xlu0 %v15505_v0, %s14788_s24 }
 0x3b3   : > { %13033 = vmatprep.subr.bf16.mxu1 %v19022_v32 }
 0x3b5   : > { %v2134_v51 = vpop.permute.xlu1 %2133 }
 0x3b6   : > { %13042 = vmatmul.mubr.msk.bf16.vlgmr.msra.gmra.mrb[28].mxu0 %vm1448_vm6, %v15391_v46  ;;  %2868 = vrot.lane.b32.xlu1 %v15515_v36, %s14788_s24 }
 0x3b7   : > { %2819 = vrot.lane.b32.xlu0 %v15517_v58, %s14788_s24  ;;  %13052 = vmatpush3.bf16.xpose.msra.mxu0 %v2041_v13  ;;  %v2139_v13 = vsel %vm1448_vm6, %v2134_v51, 0 }
 0x3b8   : > { %13024 = vmatmul.mubr.msk.bf16.vlgmr.msra.gmra.mrb[52].mxu1 %vm1448_vm6, %v15357_v62  ;;  %13053 = vmatprep.mubr.msk.bf16.mxu0 %vm14787_vm5, %v19022_v32 }
 0x3b9   : > { %v14222_v12 = vpop.permute.xlu1 %14221  ;;  %13034 = vmatpush3.bf16.xpose.msra.mxu1 %v1894_v40  ;;  %13063 = vmatprep.subr.bf16.mxu0 %v19022_v32  ;;  %v1992_v40 = vsel %vm1448_vm6, %v15464_v6, 0 }
 0x3ba   : > { %v14224_v42 = vunpack.i.h.bf16 %v14222_v12  ;;  %v14223_v27 = vunpack.i.l.bf16 %v14222_v12  ;;  %13035 = vmatprep.mubr.msk.bf16.mxu1 %vm14787_vm5, %v19022_v32  ;;  %13045 = vmatprep.subr.bf16.mxu1 %v19022_v32 }
 0x3bc   : > { %v15535_v33 = vpack.c.bf16 %v14224_v42, %v14224_v42  ;;  %v15537_v18 = vpack.c.bf16 %v14223_v27, %v14223_v27 }
 0x3be   : > { %13054 = vmatmul.mubr.msk.bf16.vlgmr.msra.gmra.mrb[32].mxu0 %vm1448_vm6, %v15387_v15  ;;  %2966 = vrot.lane.b32.xlu1 %v15535_v33, %s14788_s24 }
 0x3bf   : > { %2917 = vrot.lane.b32.xlu0 %v15537_v18, %s14788_s24  ;;  %13064 = vmatpush3.bf16.xpose.msra.mxu0 %v2139_v13 }
 0x3c0   : > { %13036 = vmatmul.mubr.msk.bf16.vlgmr.msra.gmra.mrb[56].mxu1 %vm1448_vm6, %v15383_v1  ;;  %13065 = vmatprep.mubr.msk.bf16.mxu0 %vm14787_vm5, %v19022_v32 }
 0x3c1   : > { %13046 = vmatpush3.bf16.xpose.msra.mxu1 %v1992_v40  ;;  %13047 = vmatprep.mubr.msk.bf16.mxu1 %vm14787_vm5, %v19022_v32 }
 0x3c2   : > { %3479 = vrot.lane.b32.xlu1 %v15330_v26, %s14790_s17  ;;  %13057 = vmatprep.subr.bf16.mxu1 %v19022_v32  ;;  %v2090_v26 = vsel %vm1448_vm6, %v2085_v35, 0 }
 0x3c3   : > { %3430 = vrot.lane.b32.xlu0 %v15326_v30, %s14790_s17  ;;  %13075 = vmatprep.subr.bf16.mxu0 %v19022_v32  ;;  %v2183_v30 = vpop.permute.xlu0 %2182 }
 0x3c6   : > { %13066 = vmatmul.mubr.msk.bf16.vlgmr.msra.gmra.mrb[36].mxu0 %vm1448_vm6, %v15405_v53  ;;  %3575 = vrot.lane.b32.xlu1 %v15334_v3, %s14790_s17  ;;  %v2188_v3 = vsel %vm1448_vm6, %v2183_v30, 0 }
 0x3c7   : > { %3527 = vrot.lane.b32.xlu0 %v15339_v61, %s14790_s17  ;;  %13077 = vmatprep.mubr.msk.bf16.mxu0 %vm14787_vm5, %v19022_v32 }
 0x3c8   : > { %13048 = vmatmul.mubr.msk.bf16.vlgmr.msra.gmra.mrb[60].mxu1 %vm1448_vm6, %v15379_v20 }
 0x3c9   : > { %13058 = vmatpush3.bf16.xpose.msra.mxu1 %v2090_v26  ;;  %13059 = vmatprep.mubr.msk.bf16.mxu1 %vm14787_vm5, %v19022_v32 }
 0x3ca   : > { %3671 = vrot.lane.b32.xlu1 %v15361_v29, %s14790_s17  ;;  %13069 = vmatprep.subr.bf16.mxu1 %v19022_v32 }
 0x3cb   : > { %3623 = vrot.lane.b32.xlu0 %v15346_v16, %s14790_s17 }
 0x3ce   : > { %3767 = vrot.lane.b32.xlu1 %v15357_v62, %s14790_s17 }
 0x3cf   : > { %3719 = vrot.lane.b32.xlu0 %v15369_v8, %s14790_s17 }
 0x3d0   : > { %13060 = vmatmul.mubr.msk.bf16.vlgmr.msra.gmra.mrb[64].mxu1 %vm1448_vm6, %v15401_v57 }
 0x3d1   : > { %13070 = vmatpush3.bf16.xpose.msra.mxu1 %v2188_v3  ;;  %13071 = vmatprep.mubr.msk.bf16.mxu1 %vm14787_vm5, %v19022_v32 }
 0x3d2   : > { %3863 = vrot.lane.b32.xlu1 %v15383_v1, %s14790_s17  ;;  %13081 = vmatprep.subr.bf16.mxu1 %v19022_v32 }
 0x3d3   : > { %3815 = vrot.lane.b32.xlu0 %v15365_v17, %s14790_s17 }
 0x3d6   : > { %3959 = vrot.lane.b32.xlu1 %v15379_v20, %s14790_s17 }
 0x3d7   : > { %3911 = vrot.lane.b32.xlu0 %v15391_v46, %s14790_s17 }
 0x3d8   : > { %13072 = vmatmul.mubr.msk.bf16.vlgmr.msra.gmra.mrb[68].mxu1 %vm1448_vm6, %v15397_v9 }
 0x3d9   : > { %13083 = vmatprep.mubr.msk.bf16.mxu1 %vm14787_vm5, %v19022_v32 }
 0x3da   : > { %4055 = vrot.lane.b32.xlu1 %v15401_v57, %s14790_s17 }
 0x3db   : > { %4007 = vrot.lane.b32.xlu0 %v15387_v15, %s14790_s17 }
 0x3de   : > { %4151 = vrot.lane.b32.xlu1 %v15397_v9, %s14790_s17 }
 0x3df   : > { %4103 = vrot.lane.b32.xlu0 %v15405_v53, %s14790_s17 }
 0x3e2   : > { %4247 = vrot.lane.b32.xlu1 %v15420_v2, %s14790_s17 }
 0x3e3   : > { %4199 = vrot.lane.b32.xlu0 %v15422_v63, %s14790_s17 }
 0x3e6   : > { %4343 = vrot.lane.b32.xlu1 %v15435_v25, %s14790_s17 }
 0x3e7   : > { %4295 = vrot.lane.b32.xlu0 %v15437_v19, %s14790_s17 }
 0x3ea   : > { %4439 = vrot.lane.b32.xlu1 %v15448_v43, %s14790_s17 }
 0x3eb   : > { %4391 = vrot.lane.b32.xlu0 %v15450_v28, %s14790_s17 }
 0x3ee   : > { %4535 = vrot.lane.b32.xlu1 %v15466_v52, %s14790_s17 }
 0x3ef   : > { %4487 = vrot.lane.b32.xlu0 %v15468_v56, %s14790_s17 }
 0x408   : > { %v2281_v61 = vpop.permute.xlu1 %2280  ;;  %v2232_v16 = vpop.permute.xlu0 %2231 }
 0x409   : > { %v2286_v62 = vsel %vm1448_vm6, %v2281_v61, 0  ;;  %v2237_v29 = vsel %vm1448_vm6, %v2232_v16, 0 }
 0x40a   : > { %13076 = vmatpush3.bf16.xpose.msra.mxu0 %v2237_v29  ;;  %13082 = vmatpush3.bf16.xpose.msra.mxu1 %v2286_v62 }
 0x40b   : > { %13087 = vmatprep.subr.bf16.mxu0 %v19022_v32  ;;  %13093 = vmatprep.subr.bf16.mxu1 %v19022_v32 }
 0x40c   : > { %v2379_v17 = vpop.permute.xlu1 %2378  ;;  %v2330_v8 = vpop.permute.xlu0 %2329 }
 0x40d   : > { %v2384_v20 = vsel %vm1448_vm6, %v2379_v17, 0  ;;  %v2335_v1 = vsel %vm1448_vm6, %v2330_v8, 0 }
 0x410   : > { %v2477_v15 = vpop.permute.xlu1 %2476  ;;  %v2428_v46 = vpop.permute.xlu0 %2427 }
 0x411   : > { %13078 = vmatmul.mubr.msk.bf16.vlgmr.msra.gmra.mrb[40].mxu0 %vm1448_vm6, %v15422_v63  ;;  %13084 = vmatmul.mubr.msk.bf16.vlgmr.msra.gmra.mrb[72].mxu1 %vm1448_vm6, %v15420_v2  ;;  %v2482_v9 = vsel %vm1448_vm6, %v2477_v15, 0  ;;  %v2433_v57 = vsel %vm1448_vm6, %v2428_v46, 0 }
 0x412   : > { %13088 = vmatpush3.bf16.xpose.msra.mxu0 %v2335_v1  ;;  %13094 = vmatpush3.bf16.xpose.msra.mxu1 %v2384_v20 }
 0x413   : > { %13089 = vmatprep.mubr.msk.bf16.mxu0 %vm14787_vm5, %v19022_v32  ;;  %13095 = vmatprep.mubr.msk.bf16.mxu1 %vm14787_vm5, %v19022_v32 }
 0x414   : > { %13099 = vmatprep.subr.bf16.mxu0 %v19022_v32  ;;  %13105 = vmatprep.subr.bf16.mxu1 %v19022_v32 }
 0x418   : > { %v2575_v53 = vpop.permute.xlu1 %2574 }
 0x419   : > { %13090 = vmatmul.mubr.msk.bf16.vlgmr.msra.gmra.mrb[44].mxu0 %vm1448_vm6, %v15437_v19  ;;  %13096 = vmatmul.mubr.msk.bf16.vlgmr.msra.gmra.mrb[76].mxu1 %vm1448_vm6, %v15435_v25  ;;  %v2526_v2 = vpop.permute.xlu0 %2525  ;;  %v2580_v63 = vsel %vm1448_vm6, %v2575_v53, 0 }
 0x41a   : > { %13100 = vmatpush3.bf16.xpose.msra.mxu0 %v2433_v57  ;;  %13106 = vmatpush3.bf16.xpose.msra.mxu1 %v2482_v9  ;;  %v2531_v19 = vsel %vm1448_vm6, %v2526_v2, 0 }
 0x41b   : > { %13101 = vmatprep.mubr.msk.bf16.mxu0 %vm14787_vm5, %v19022_v32  ;;  %13107 = vmatprep.mubr.msk.bf16.mxu1 %vm14787_vm5, %v19022_v32 }
 0x41c   : > { %13111 = vmatprep.subr.bf16.mxu0 %v19022_v32  ;;  %13117 = vmatprep.subr.bf16.mxu1 %v19022_v32  ;;  %v2673_v25 = vpop.permute.xlu1 %2672 }
 0x41d   : > { %v2624_v6 = vpop.permute.xlu0 %2623  ;;  %v2678_v35 = vsel %vm1448_vm6, %v2673_v25, 0 }
 0x421   : > { %13102 = vmatmul.mubr.msk.bf16.vlgmr.msra.gmra.mrb[48].mxu0 %vm1448_vm6, %v15450_v28  ;;  %13108 = vmatmul.mubr.msk.bf16.vlgmr.msra.gmra.mrb[80].mxu1 %vm1448_vm6, %v15448_v43  ;;  %v2629_v28 = vsel %vm1448_vm6, %v2624_v6, 0 }
 0x422   : > { %13112 = vmatpush3.bf16.xpose.msra.mxu0 %v2531_v19  ;;  %13118 = vmatpush3.bf16.xpose.msra.mxu1 %v2580_v63 }
 0x423   : > { %13119 = vmatprep.mubr.msk.bf16.mxu1 %vm14787_vm5, %v19022_v32  ;;  %13113 = vmatprep.mubr.msk.bf16.mxu0 %vm14787_vm5, %v19022_v32 }
 0x424   : > { %13123 = vmatprep.subr.bf16.mxu0 %v19022_v32  ;;  %13129 = vmatprep.subr.bf16.mxu1 %v19022_v32  ;;  %v2771_v43 = vpop.permute.xlu1 %2770  ;;  %v2722_v51 = vpop.permute.xlu0 %2721 }
 0x425   : > { %v2776_v12 = vsel %vm1448_vm6, %v2771_v43, 0 }
 0x429   : > { %13114 = vmatmul.mubr.msk.bf16.vlgmr.msra.gmra.mrb[52].mxu0 %vm1448_vm6, %v15468_v56  ;;  %13120 = vmatmul.mubr.msk.bf16.vlgmr.msra.gmra.mrb[84].mxu1 %vm1448_vm6, %v15466_v52  ;;  %v2727_v56 = vsel %vm1448_vm6, %v2722_v51, 0  ;;  %v2869_v52 = vpop.permute.xlu1 %2868  ;;  %v2820_v42 = vpop.permute.xlu0 %2819 }
 0x42a   : > { %13124 = vmatpush3.bf16.xpose.msra.mxu0 %v2629_v28  ;;  %13130 = vmatpush3.bf16.xpose.msra.mxu1 %v2678_v35  ;;  %v2874_v27 = vsel %vm1448_vm6, %v2869_v52, 0  ;;  %v2825_v13 = vsel %vm1448_vm6, %v2820_v42, 0 }
 0x42b   : > { %13131 = vmatprep.mubr.msk.bf16.mxu1 %vm14787_vm5, %v19022_v32  ;;  %13125 = vmatprep.mubr.msk.bf16.mxu0 %vm14787_vm5, %v19022_v32 }
 0x42c   : > { %13135 = vmatprep.subr.bf16.mxu0 %v19022_v32  ;;  %13141 = vmatprep.subr.bf16.mxu1 %v19022_v32 }
 0x430   : > { %v2967_v40 = vpop.permute.xlu1 %2966 }
 0x431   : > { %13126 = vmatmul.mubr.msk.bf16.vlgmr.msra.gmra.mrb[56].mxu0 %vm1448_vm6, %v15484_v39  ;;  %13132 = vmatmul.mubr.msk.bf16.vlgmr.msra.gmra.mrb[88].mxu1 %vm1448_vm6, %v15480_v50  ;;  %v2918_v26 = vpop.permute.xlu0 %2917  ;;  %v2972_v30 = vsel %vm1448_vm6, %v2967_v40, 0 }
 0x432   : > { %13136 = vmatpush3.bf16.xpose.msra.mxu0 %v2727_v56  ;;  %13142 = vmatpush3.bf16.xpose.msra.mxu1 %v2776_v12  ;;  %v2923_v3 = vsel %vm1448_vm6, %v2918_v26, 0 }
 0x433   : > { %13143 = vmatprep.mubr.msk.bf16.mxu1 %vm14787_vm5, %v19022_v32  ;;  %13137 = vmatprep.mubr.msk.bf16.mxu0 %vm14787_vm5, %v19022_v32 }
 0x434   : > { %13147 = vmatprep.subr.bf16.mxu0 %v19022_v32  ;;  %13153 = vmatprep.subr.bf16.mxu1 %v19022_v32  ;;  %v3480_v61 = vpop.permute.xlu1 %3479 }
 0x435   : > { %v3431_v16 = vpop.permute.xlu0 %3430  ;;  %v3485_v62 = vsel %vm3435_vm7, %v3480_v61, 0 }
 0x436   : > { %v3437_v29 = vsel %vm3435_vm7, %v3431_v16, 0 }
 0x439   : > { %13138 = vmatmul.mubr.msk.bf16.vlgmr.msra.gmra.mrb[60].mxu0 %vm1448_vm6, %v15505_v0  ;;  %13144 = vmatmul.mubr.msk.bf16.vlgmr.msra.gmra.mrb[92].mxu1 %vm1448_vm6, %v15503_v22 }
 0x43a   : > { %13148 = vmatpush3.bf16.xpose.msra.mxu0 %v2825_v13  ;;  %13154 = vmatpush3.bf16.xpose.msra.mxu1 %v2874_v27 }
 0x43b   : > { %13155 = vmatprep.mubr.msk.bf16.mxu1 %vm14787_vm5, %v19022_v32  ;;  %13149 = vmatprep.mubr.msk.bf16.mxu0 %vm14787_vm5, %v19022_v32 }
 0x43c   : > { %13159 = vmatprep.subr.bf16.mxu0 %v19022_v32  ;;  %13165 = vmatprep.subr.bf16.mxu1 %v19022_v32 }
 0x441   : > { %13150 = vmatmul.mubr.msk.bf16.vlgmr.msra.gmra.mrb[64].mxu0 %vm1448_vm6, %v15517_v58  ;;  %13156 = vmatmul.mubr.msk.bf16.vlgmr.msra.gmra.mrb[96].mxu1 %vm1448_vm6, %v15515_v36 }
 0x442   : > { %13160 = vmatpush3.bf16.xpose.msra.mxu0 %v2923_v3  ;;  %13166 = vmatpush3.bf16.xpose.msra.mxu1 %v2972_v30 }
 0x443   : > { %13167 = vmatprep.mubr.msk.bf16.mxu1 %vm14787_vm5, %v19022_v32  ;;  %13161 = vmatprep.mubr.msk.bf16.mxu0 %vm14787_vm5, %v19022_v32 }
 0x444   : > { %13171 = vmatprep.subr.bf16.mxu0 %v19022_v32  ;;  %13177 = vmatprep.subr.bf16.mxu1 %v19022_v32 }
 0x449   : > { %13162 = vmatmul.mubr.msk.bf16.vlgmr.msra.gmra.mrb[68].mxu0 %vm1448_vm6, %v15537_v18  ;;  %13168 = vmatmul.mubr.msk.bf16.vlgmr.msra.gmra.mrb[100].mxu1 %vm1448_vm6, %v15535_v33 }
 0x44a   : > { %13172 = vmatpush3.bf16.msra.mxu0 %v3437_v29  ;;  %13178 = vmatpush3.bf16.msra.mxu1 %v3485_v62 }
 0x44b   : > { %13173 = vmatprep.mubr.msk.bf16.mxu0 %vm14787_vm5, %v19022_v32  ;;  %13183 = vmatprep.subr.bf16.mxu0 %v19022_v32 }
 0x44c   : > { %13179 = vmatprep.mubr.msk.bf16.mxu1 %vm14787_vm5, %v19022_v32  ;;  %13189 = vmatprep.subr.bf16.mxu1 %v19022_v32 }
 0x463   : > { %v1489_v17 = vpop.f32.mrb[32].mxu1 }
 0x464   : > { %v12983_v8 = vpop.f32.mrb[33].mxu1  ;;  %v15724_v20 = vmul.f32 0.35355338, %v1489_v17 }
 0x465   : > { %v1492_v1 = vpop.f32.mrb[34].mxu1 }
 0x466   : > { %v12984_v15 = vpop.f32.mrb[35].mxu1  ;;  %v3046_v46 = vsel %vm1448_vm6, %v15724_v20, -inf }
 0x467   : > { %3047 = vmax.xlane.f32.xlu0 %v3046_v46 }
 0x46b   : > { %v1538_v9 = vpop.f32.mrb[36].mxu1  ;;  %v1685_v57 = vpop.f32.mrb[16].mxu0 }
 0x46c   : > { %v15728_v53 = vmul.f32 0.35355338, %v1538_v9  ;;  %v12989_v2 = vpop.f32.mrb[37].mxu1  ;;  %v13007_v63 = vpop.f32.mrb[17].mxu0  ;;  %v15730_v19 = vmul.f32 0.35355338, %v1685_v57 }
 0x46d   : > { %v1541_v25 = vpop.f32.mrb[38].mxu1  ;;  %v1688_v6 = vpop.f32.mrb[18].mxu0 }
 0x46e   : > { %v12990_v35 = vpop.f32.mrb[39].mxu1  ;;  %v13008_v28 = vpop.f32.mrb[19].mxu0  ;;  %v3049_v43 = vsel %vm1448_vm6, %v15728_v53, -inf  ;;  %v3058_v51 = vsel %vm1448_vm6, %v15730_v19, -inf }
 0x46f   : > { %3050 = vmax.xlane.f32.xlu1 %v3049_v43  ;;  %3059 = vmax.xlane.f32.xlu0 %v3058_v51 }
 0x473   : > { %v1587_v12 = vpop.f32.mrb[40].mxu1 }
 0x474   : > { %v15736_v56 = vmul.f32 0.35355338, %v1587_v12  ;;  %v12995_v52 = vpop.f32.mrb[41].mxu1 }
 0x475   : > { %v1590_v42 = vpop.f32.mrb[42].mxu1 }
 0x476   : > { %v12996_v27 = vpop.f32.mrb[43].mxu1  ;;  %v3052_v13 = vsel %vm1448_vm6, %v15736_v56, -inf }
 0x477   : > { %3053 = vmax.xlane.f32.xlu0 %v3052_v13 }
 0x479   : > { %v1783_v40 = vpop.f32.mrb[20].mxu0 }
 0x47a   : > { %v15740_v26 = vmul.f32 0.35355338, %v1783_v40  ;;  %v13019_v30 = vpop.f32.mrb[21].mxu0 }
 0x47b   : > { %v1636_v3 = vpop.f32.mrb[44].mxu1  ;;  %v1786_v61 = vpop.f32.mrb[22].mxu0 }
 0x47c   : > { %v15742_v16 = vmul.f32 0.35355338, %v1636_v3  ;;  %v13001_v62 = vpop.f32.mrb[45].mxu1  ;;  %v13020_v29 = vpop.f32.mrb[23].mxu0  ;;  %v3064_v17 = vsel %vm1448_vm6, %v15740_v26, -inf }
 0x47d   : > { %v1639_v8 = vpop.f32.mrb[46].mxu1  ;;  %3065 = vmax.xlane.f32.xlu0 %v3064_v17 }
 0x47e   : > { %v13002_v1 = vpop.f32.mrb[47].mxu1  ;;  %v3055_v15 = vsel %vm1448_vm6, %v15742_v16, -inf }
 0x481   : > { %v1881_v46 = vpop.f32.mrb[24].mxu0  ;;  %3056 = vmax.xlane.f32.xlu0 %v3055_v15 }
 0x482   : > { %v15748_v9 = vmul.f32 0.35355338, %v1881_v46  ;;  %v13031_v57 = vpop.f32.mrb[25].mxu0 }
 0x483   : > { %v1734_v2 = vpop.f32.mrb[48].mxu1  ;;  %v1884_v63 = vpop.f32.mrb[26].mxu0 }
 0x484   : > { %v15750_v25 = vmul.f32 0.35355338, %v1734_v2  ;;  %v13013_v6 = vpop.f32.mrb[49].mxu1  ;;  %v13032_v35 = vpop.f32.mrb[27].mxu0  ;;  %v3070_v28 = vsel %vm1448_vm6, %v15748_v9, -inf }
 0x485   : > { %v1737_v43 = vpop.f32.mrb[50].mxu1  ;;  %3071 = vmax.xlane.f32.xlu0 %v3070_v28 }
 0x486   : > { %v13014_v51 = vpop.f32.mrb[51].mxu1  ;;  %v3061_v12 = vsel %vm1448_vm6, %v15750_v25, -inf }
 0x487   : > { %3062 = vmax.xlane.f32.xlu1 %v3061_v12 }
 0x489   : > { %v1979_v52 = vpop.f32.mrb[28].mxu0 }
 0x48a   : > { %v15756_v42 = vmul.f32 0.35355338, %v1979_v52  ;;  %v13043_v27 = vpop.f32.mrb[29].mxu0 }
 0x48b   : > { %v1832_v13 = vpop.f32.mrb[52].mxu1  ;;  %v1982_v40 = vpop.f32.mrb[30].mxu0 }
 0x48c   : > { %v15758_v30 = vmul.f32 0.35355338, %v1832_v13  ;;  %v13025_v3 = vpop.f32.mrb[53].mxu1  ;;  %v13044_v61 = vpop.f32.mrb[31].mxu0  ;;  %v3076_v62 = vsel %vm1448_vm6, %v15756_v42, -inf }
 0x48d   : > { %v1835_v29 = vpop.f32.mrb[54].mxu1  ;;  %3077 = vmax.xlane.f32.xlu0 %v3076_v62 }
 0x48e   : > { %v13026_v17 = vpop.f32.mrb[55].mxu1  ;;  %v3067_v8 = vsel %vm1448_vm6, %v15758_v30, -inf }
 0x48f   : > { %3068 = vmax.xlane.f32.xlu1 %v3067_v8 }
 0x491   : > { %v2077_v1 = vpop.f32.mrb[32].mxu0 }
 0x492   : > { %v15764_v15 = vmul.f32 0.35355338, %v2077_v1  ;;  %v13055_v46 = vpop.f32.mrb[33].mxu0 }
 0x493   : > { %v1930_v57 = vpop.f32.mrb[56].mxu1  ;;  %v2080_v2 = vpop.f32.mrb[34].mxu0 }
 0x494   : > { %v15766_v63 = vmul.f32 0.35355338, %v1930_v57  ;;  %v13037_v6 = vpop.f32.mrb[57].mxu1  ;;  %v13056_v35 = vpop.f32.mrb[35].mxu0  ;;  %v3082_v28 = vsel %vm1448_vm6, %v15764_v15, -inf }
 0x495   : > { %v1933_v43 = vpop.f32.mrb[58].mxu1  ;;  %3083 = vmax.xlane.f32.xlu0 %v3082_v28 }
 0x496   : > { %v13038_v51 = vpop.f32.mrb[59].mxu1  ;;  %v3073_v12 = vsel %vm1448_vm6, %v15766_v63, -inf }
 0x497   : > { %3074 = vmax.xlane.f32.xlu1 %v3073_v12 }
 0x499   : > { %v2175_v52 = vpop.f32.mrb[36].mxu0 }
 0x49a   : > { %v15772_v27 = vmul.f32 0.35355338, %v2175_v52  ;;  %v13067_v13 = vpop.f32.mrb[37].mxu0 }
 0x49b   : > { %v2028_v40 = vpop.f32.mrb[60].mxu1  ;;  %v2178_v3 = vpop.f32.mrb[38].mxu0 }
 0x49c   : > { %v15774_v61 = vmul.f32 0.35355338, %v2028_v40  ;;  %v13049_v62 = vpop.f32.mrb[61].mxu1  ;;  %v13068_v29 = vpop.f32.mrb[39].mxu0  ;;  %v3088_v17 = vsel %vm1448_vm6, %v15772_v27, -inf }
 0x49d   : > { %v2031_v8 = vpop.f32.mrb[62].mxu1  ;;  %3089 = vmax.xlane.f32.xlu0 %v3088_v17  ;;  %v15788_v62 = vpop.permute.xlu1 %3575 }
 0x49e   : > { %v13050_v1 = vpop.f32.mrb[63].mxu1  ;;  %v3079_v46 = vsel %vm1448_vm6, %v15774_v61, -inf  ;;  %v15790_v29 = vpop.permute.xlu0 %3527 }
 0x49f   : > { %3080 = vmax.xlane.f32.xlu1 %v3079_v46 }
 0x4a1   : > { %v15792_v17 = vpop.permute.xlu1 %3671 }
 0x4a2   : > { %v15794_v8 = vpop.permute.xlu0 %3623 }
 0x4a3   : > { %v2126_v57 = vpop.f32.mrb[64].mxu1 }
 0x4a4   : > { %v15780_v2 = vmul.f32 0.35355338, %v2126_v57  ;;  %v13061_v6 = vpop.f32.mrb[65].mxu1 }
 0x4a5   : > { %v2129_v35 = vpop.f32.mrb[66].mxu1  ;;  %v15796_v1 = vpop.permute.xlu1 %3767 }
 0x4a6   : > { %v13062_v28 = vpop.f32.mrb[67].mxu1  ;;  %v3085_v43 = vsel %vm1448_vm6, %v15780_v2, -inf  ;;  %v15798_v46 = vpop.permute.xlu0 %3719 }
 0x4a7   : > { %3086 = vmax.xlane.f32.xlu1 %v3085_v43 }
 0x4a9   : > { %v15800_v57 = vpop.permute.xlu1 %3863 }
 0x4aa   : > { %v15802_v6 = vpop.permute.xlu0 %3815 }
 0x4ab   : > { %v2224_v51 = vpop.f32.mrb[68].mxu1 }
 0x4ac   : > { %v15784_v12 = vmul.f32 0.35355338, %v2224_v51  ;;  %v13073_v52 = vpop.f32.mrb[69].mxu1 }
 0x4ad   : > { %v2227_v13 = vpop.f32.mrb[70].mxu1  ;;  %v15804_v35 = vpop.permute.xlu1 %3959 }
 0x4ae   : > { %v13074_v40 = vpop.f32.mrb[71].mxu1  ;;  %v3091_v3 = vsel %vm1448_vm6, %v15784_v12, -inf  ;;  %19177 = vst [vmem:[#allocation42_spill] sm:$0xff] %v15804_v35  ;;  %v15806_v28 = vpop.permute.xlu0 %3911 }
 0x4af   : > { %3092 = vmax.xlane.f32.xlu1 %v3091_v3 }
 0x4b1   : > { %v15808_v43 = vpop.permute.xlu1 %4055 }
 0x4b2   : > { %19178 = vst [vmem:[#allocation43_spill] sm:$0xff] %v15808_v43  ;;  %v15810_v51 = vpop.permute.xlu0 %4007 }
 0x4b5   : > { %v15812_v52 = vpop.permute.xlu1 %4151 }
 0x4b6   : > { %19179 = vst [vmem:[#allocation44_spill] sm:$0xff] %v15812_v52  ;;  %v15814_v13 = vpop.permute.xlu0 %4103 }
 0x4b7   : > { %19180 = vst [vmem:[#allocation45_spill] sm:$0xff] %v15814_v13 }
 0x4b9   : > { %v15816_v40 = vpop.permute.xlu1 %4247 }
 0x4ba   : > { %19181 = vst [vmem:[#allocation46_spill] sm:$0xff] %v15816_v40  ;;  %v15818_v3 = vpop.permute.xlu0 %4199 }
 0x4bb   : > { %19182 = vst [vmem:[#allocation47_spill] sm:$0xff] %v15818_v3 }
 0x4bd   : > { %v15828_v60 = vpop.permute.xlu1 %4343 }
 0x4be   : > { %19183 = vst [vmem:[#allocation48_spill] sm:$0xff] %v15828_v60 }
 0x4e4   : > { %v2273_v32 = vpop.f32.mrb[40].mxu0  ;;  %v2322_v55 = vpop.f32.mrb[72].mxu1 }
 0x4e5   : > { %v15820_v54 = vmul.f32 0.35355338, %v2273_v32  ;;  %v15822_v41 = vmul.f32 0.35355338, %v2322_v55  ;;  %v13079_v38 = vpop.f32.mrb[41].mxu0  ;;  %v13085_v23 = vpop.f32.mrb[73].mxu1 }
 0x4e6   : > { %v2276_v11 = vpop.f32.mrb[42].mxu0  ;;  %v2325_v7 = vpop.f32.mrb[74].mxu1 }
 0x4e7   : > { %v13080_v45 = vpop.f32.mrb[43].mxu0  ;;  %v13086_v48 = vpop.f32.mrb[75].mxu1  ;;  %v3097_v49 = vsel %vm1448_vm6, %v15822_v41, -inf  ;;  %v3094_v44 = vsel %vm1448_vm6, %v15820_v54, -inf }
 0x4e8   : > { %3098 = vmax.xlane.f32.xlu1 %v3097_v49  ;;  %3095 = vmax.xlane.f32.xlu0 %v3094_v44  ;;  %v15830_v32 = vpop.permute.xlu0 %4295 }
 0x4e9   : > { %19184 = vst [vmem:[#allocation49_spill] sm:$0xff] %v15830_v32 }
 0x4ec   : > { %v2371_v55 = vpop.f32.mrb[44].mxu0  ;;  %v2420_v4 = vpop.f32.mrb[76].mxu1 }
 0x4ed   : > { %v15832_v38 = vmul.f32 0.35355338, %v2371_v55  ;;  %v15834_v11 = vmul.f32 0.35355338, %v2420_v4  ;;  %v13091_v7 = vpop.f32.mrb[45].mxu0  ;;  %v13097_v23 = vpop.f32.mrb[77].mxu1 }
 0x4ee   : > { %v2374_v45 = vpop.f32.mrb[46].mxu0  ;;  %v2423_v48 = vpop.f32.mrb[78].mxu1 }
 0x4ef   : > { %v13092_v5 = vpop.f32.mrb[47].mxu0  ;;  %v13098_v59 = vpop.f32.mrb[79].mxu1  ;;  %v3103_v49 = vsel %vm1448_vm6, %v15834_v11, -inf  ;;  %v3100_v44 = vsel %vm1448_vm6, %v15832_v38, -inf }
 0x4f0   : > { %3104 = vmax.xlane.f32.xlu1 %v3103_v49  ;;  %3101 = vmax.xlane.f32.xlu0 %v3100_v44  ;;  %v15840_v14 = vpop.permute.xlu0 %4391  ;;  %v15842_v4 = vpop.permute.xlu1 %4439 }
 0x4f1   : > { %19185 = vst [vmem:[#allocation50_spill] sm:$0xff] %v15840_v14  ;;  %19186 = vst [vmem:[#allocation51_spill] sm:$0xff] %v15842_v4 }
 0x4f4   : > { %v2469_v55 = vpop.f32.mrb[48].mxu0  ;;  %v2518_v21 = vpop.f32.mrb[80].mxu1 }
 0x4f5   : > { %v15844_v7 = vmul.f32 0.35355338, %v2469_v55  ;;  %v15846_v23 = vmul.f32 0.35355338, %v2518_v21  ;;  %v13103_v5 = vpop.f32.mrb[49].mxu0  ;;  %v13109_v59 = vpop.f32.mrb[81].mxu1 }
 0x4f6   : > { %v2472_v45 = vpop.f32.mrb[50].mxu0  ;;  %v2521_v48 = vpop.f32.mrb[82].mxu1 }
 0x4f7   : > { %v13104_v24 = vpop.f32.mrb[51].mxu0  ;;  %v3109_v10 = vsel %vm1448_vm6, %v15846_v23, -inf  ;;  %v3106_v49 = vsel %vm1448_vm6, %v15844_v7, -inf  ;;  %v15852_v44 = vpop.permute.xlu0 %4487 }
 0x4f8   : > { %19187 = vst [vmem:[#allocation52_spill] sm:$0xff] %v15852_v44  ;;  %v13110_v37 = vpop.f32.mrb[83].mxu1  ;;  %3110 = vmax.xlane.f32.xlu1 %v3109_v10  ;;  %3107 = vmax.xlane.f32.xlu0 %v3106_v49  ;;  %v15854_v21 = vpop.permute.xlu1 %4535 }
 0x4f9   : > { %19188 = vst [vmem:[#allocation53_spill] sm:$0xff] %v15854_v21 }
 0x4fb   : > { %v3048_v55 = vpop.xlane.xlu0 %3047 }
 0x4fc   : > { %v2616_v47 = vpop.f32.mrb[84].mxu1  ;;  %v2567_v59 = vpop.f32.mrb[52].mxu0  ;;  %v3142_v34 = vsub.f32 %v15724_v20, %v3048_v55 }
 0x4fd   : > { %v15856_v5 = vmul.f32 0.35355338, %v2616_v47  ;;  %v15858_v45 = vmul.f32 0.35355338, %v2567_v59  ;;  %v13115_v24 = vpop.f32.mrb[53].mxu0  ;;  %v13121_v48 = vpop.f32.mrb[85].mxu1 }
 0x4fe   : > { %v2570_v31 = vpop.f32.mrb[54].mxu0  ;;  %v2619_v4 = vpop.f32.mrb[86].mxu1  ;;  %v3174_v47 = vmul.f32 1.442695, %v3142_v34 }
 0x4ff   : > { %v3115_v37 = vsel %vm1448_vm6, %v15856_v5, -inf  ;;  %v13116_v10 = vpop.f32.mrb[55].mxu0  ;;  %v13122_v49 = vpop.f32.mrb[87].mxu1  ;;  %v3112_v21 = vsel %vm1448_vm6, %v15858_v45, -inf }
 0x500   : > { %3116 = vmax.xlane.f32.xlu1 %v3115_v37  ;;  %3113 = vmax.xlane.f32.xlu0 %v3112_v21  ;;  %v3051_v44 = vpop.xlane.xlu1 %3050  ;;  %v3060_v59 = vpop.xlane.xlu0 %3059  ;;  %14313 = vpow2.f32 %v3174_v47 }
 0x501   : > { %v3143_v4 = vsub.f32 %v15728_v53, %v3051_v44  ;;  %v3146_v37 = vsub.f32 %v15730_v19, %v3060_v59 }
 0x504   : > { %v2665_v60 = vpop.f32.mrb[56].mxu0  ;;  %v2714_v24 = vpop.f32.mrb[88].mxu1 }
 0x505   : > { %v15865_v48 = vmul.f32 0.35355338, %v2714_v24  ;;  %v13127_v20 = vpop.f32.mrb[57].mxu0  ;;  %v15867_v31 = vmul.f32 0.35355338, %v2665_v60  ;;  %v13133_v55 = vpop.f32.mrb[89].mxu1 }
 0x506   : > { %v2668_v10 = vpop.f32.mrb[58].mxu0  ;;  %v2717_v49 = vpop.f32.mrb[90].mxu1  ;;  %v3176_v60 = vmul.f32 1.442695, %v3143_v4  ;;  %v3182_v20 = vmul.f32 1.442695, %v3146_v37 }
 0x507   : > { %v13128_v14 = vpop.f32.mrb[59].mxu0  ;;  %v3121_v34 = vsel %vm1448_vm6, %v15865_v48, -inf  ;;  %v3118_v21 = vsel %vm1448_vm6, %v15867_v31, -inf  ;;  %v13134_v24 = vpop.f32.mrb[91].mxu1 }
 0x508   : > { %3122 = vmax.xlane.f32.xlu1 %v3121_v34  ;;  %3119 = vmax.xlane.f32.xlu0 %v3118_v21  ;;  %v3054_v40 = vpop.xlane.xlu0 %3053  ;;  %14315 = vpow2.f32 %v3176_v60 }
 0x509   : > { %14317 = vpow2.f32 %v3182_v20  ;;  %v3144_v49 = vsub.f32 %v15736_v56, %v3054_v40 }
 0x50a   : > { %v15884_v21 = vpop.eup %14313 }
 0x50b   : > { %v3178_v60 = vmul.f32 1.442695, %v3144_v49 }
 0x50c   : > { %v2763_v53 = vpop.f32.mrb[60].mxu0  ;;  %v2812_v44 = vpop.f32.mrb[92].mxu1 }
 0x50d   : > { %v15875_v55 = vmul.f32 0.35355338, %v2812_v44  ;;  %v13139_v47 = vpop.f32.mrb[61].mxu0  ;;  %v13145_v19 = vpop.f32.mrb[93].mxu1  ;;  %v15877_v10 = vmul.f32 0.35355338, %v2763_v53  ;;  %14319 = vpow2.f32 %v3178_v60 }
 0x50e   : > { %v2766_v14 = vpop.f32.mrb[62].mxu0  ;;  %v2815_v59 = vpop.f32.mrb[94].mxu1  ;;  %v3238_v53 = vsel %vm1448_vm6, %v15884_v21, 0.0 }
 0x50f   : > { %v13140_v24 = vpop.f32.mrb[63].mxu0  ;;  %v3127_v4 = vsel %vm1448_vm6, %v15875_v55, -inf  ;;  %v13146_v37 = vpop.f32.mrb[95].mxu1  ;;  %v3124_v34 = vsel %vm1448_vm6, %v15877_v10, -inf }
 0x510   : > { %3128 = vmax.xlane.f32.xlu1 %v3127_v4  ;;  %3125 = vmax.xlane.f32.xlu0 %v3124_v34 }
 0x512   : > { %v15894_v49 = vpop.eup %14315 }
 0x514   : > { %v2910_v44 = vpop.f32.mrb[96].mxu1  ;;  %v2861_v56 = vpop.f32.mrb[64].mxu0  ;;  %3239 = vadd.xlane.f32.xlu0 %v3238_v53  ;;  %v3241_v53 = vsel %vm1448_vm6, %v15894_v49, 0.0 }
 0x515   : > { %v15888_v20 = vmul.f32 0.35355338, %v2910_v44  ;;  %v13157_v40 = vpop.f32.mrb[97].mxu1  ;;  %v13151_v47 = vpop.f32.mrb[65].mxu0  ;;  %v15890_v14 = vmul.f32 0.35355338, %v2861_v56 }
 0x516   : > { %v2913_v19 = vpop.f32.mrb[98].mxu1  ;;  %v2864_v59 = vpop.f32.mrb[66].mxu0 }
 0x517   : > { %v13158_v24 = vpop.f32.mrb[99].mxu1  ;;  %v3133_v4 = vsel %vm1448_vm6, %v15888_v20, -inf  ;;  %v13152_v37 = vpop.f32.mrb[67].mxu0  ;;  %v3130_v34 = vsel %vm1448_vm6, %v15890_v14, -inf }
 0x518   : > { %3134 = vmax.xlane.f32.xlu1 %v3133_v4  ;;  %v15898_v44 = vpop.eup %14317  ;;  %3131 = vmax.xlane.f32.xlu0 %v3130_v34 }
 0x519   : > { %v3250_v60 = vsel %vm1448_vm6, %v15898_v44, 0.0  ;;  %v15912_v43 = vpop.eup %14319 }
 0x51c   : > { %v3008_v56 = vpop.f32.mrb[100].mxu1  ;;  %3242 = vadd.xlane.f32.xlu1 %v3241_v53  ;;  %v2959_v47 = vpop.f32.mrb[68].mxu0  ;;  %3251 = vadd.xlane.f32.xlu0 %v3250_v60 }
 0x51d   : > { %v15904_v40 = vmul.f32 0.35355338, %v3008_v56  ;;  %v13169_v19 = vpop.f32.mrb[101].mxu1  ;;  %v13163_v59 = vpop.f32.mrb[69].mxu0  ;;  %v15906_v4 = vmul.f32 0.35355338, %v2959_v47 }
 0x51e   : > { %v3011_v24 = vpop.f32.mrb[102].mxu1  ;;  %v2962_v37 = vpop.f32.mrb[70].mxu0  ;;  %v3244_v56 = vsel %vm1448_vm6, %v15912_v43, 0.0 }
 0x51f   : > { %v13170_v32 = vpop.f32.mrb[103].mxu1  ;;  %v3139_v34 = vsel %vm1448_vm6, %v15904_v40, -inf  ;;  %v13164_v52 = vpop.f32.mrb[71].mxu0  ;;  %v3136_v53 = vsel %vm1448_vm6, %v15906_v4, -inf }
 0x520   : > { %3137 = vmax.xlane.f32.xlu1 %v3136_v53  ;;  %3140 = vmax.xlane.f32.xlu0 %v3139_v34  ;;  %v3066_v32 = vpop.xlane.xlu0 %3065  ;;  %v3063_v52 = vpop.xlane.xlu1 %3062 }
 0x521   : > { %v3148_v19 = vsub.f32 %v15740_v26, %v3066_v32 }
 0x524   : > { %3245 = vadd.xlane.f32.xlu0 %v3244_v56  ;;  %v3057_v60 = vpop.xlane.xlu0 %3056  ;;  %v3069_v47 = vpop.xlane.xlu1 %3068  ;;  %v3147_v56 = vsub.f32 %v15750_v25, %v3063_v52 }
 0x525   : > { %v3145_v37 = vsub.f32 %v15742_v16, %v3057_v60 }
 0x526   : > { %v3184_v13 = vmul.f32 1.442695, %v3147_v56 }
 0x527   : > { %v3180_v53 = vmul.f32 1.442695, %v3145_v37 }
 0x528   : > { %v3072_v59 = vpop.xlane.xlu0 %3071  ;;  %v3075_v24 = vpop.xlane.xlu1 %3074 }
 0x529   : > { %v3150_v34 = vsub.f32 %v15748_v9, %v3072_v59 }
 0x52c   : > { %v3078_v3 = vpop.xlane.xlu0 %3077 }
 0x52d   : > { %v3152_v26 = vsub.f32 %v15756_v42, %v3078_v3 }
 0x52f   : > { %v3194_v9 = vmul.f32 1.442695, %v3152_v26 }
 0x530   : > { %v3084_v59 = vpop.xlane.xlu0 %3083 }
 0x531   : > { %4631 = vrot.lane.b32.xlu1 %v15480_v50, %s14790_s17  ;;  %v3186_v50 = vmul.f32 1.442695, %v3148_v19  ;;  %v3149_v19 = vsub.f32 %v15758_v30, %v3069_v47  ;;  %v3154_v42 = vsub.f32 %v15764_v15, %v3084_v59 }
 0x533   : > { %14321 = vpow2.f32 %v3186_v50  ;;  %v3188_v37 = vmul.f32 1.442695, %v3149_v19  ;;  %v3198_v30 = vmul.f32 1.442695, %v3154_v42 }
 0x534   : > { %14323 = vpow2.f32 %v3180_v53  ;;  %v3090_v47 = vpop.xlane.xlu0 %3089 }
 0x535   : > { %4679 = vrot.lane.b32.xlu1 %v15505_v0, %s14790_s17  ;;  %v3081_v0 = vpop.xlane.xlu1 %3080  ;;  %v3156_v56 = vsub.f32 %v15772_v27, %v3090_v47 }
 0x537   : > { %v3202_v26 = vmul.f32 1.442695, %v3156_v56 }
 0x539   : > { %4727 = vrot.lane.b32.xlu1 %v15503_v22, %s14790_s17  ;;  %v3190_v22 = vmul.f32 1.442695, %v3150_v34  ;;  %v3087_v35 = vpop.xlane.xlu1 %3086 }
 0x53a   : > { %4583 = vrot.lane.b32.xlu0 %v15484_v39, %s14790_s17  ;;  %v3153_v39 = vsub.f32 %v15774_v61, %v3081_v0  ;;  %v3155_v16 = vsub.f32 %v15780_v2, %v3087_v35 }
 0x53b   : > { %14325 = vpow2.f32 %v3190_v22 }
 0x53c   : > { %v3196_v32 = vmul.f32 1.442695, %v3153_v39  ;;  %14327 = vpow2.f32 %v3184_v13  ;;  %v3200_v25 = vmul.f32 1.442695, %v3155_v16 }
 0x53d   : > { %v3093_v60 = vpop.xlane.xlu1 %3092  ;;  %v15933_v61 = vpop.eup %14321 }
 0x53e   : > { %14329 = vpow2.f32 %v3196_v32  ;;  %v3157_v52 = vsub.f32 %v15784_v12, %v3093_v60  ;;  %v15936_v50 = vpop.eup %14323  ;;  %v3256_v2 = vsel %vm1448_vm6, %v15933_v61, 0.0  ;;  %v3151_v12 = vsub.f32 %v15766_v63, %v3075_v24 }
 0x53f   : > { %14331 = vpow2.f32 %v3194_v9  ;;  %v3247_v15 = vsel %vm1448_vm6, %v15936_v50, 0.0 }
 0x540   : > { %14333 = vpow2.f32 %v3200_v25  ;;  %v3204_v3 = vmul.f32 1.442695, %v3157_v52  ;;  %v3192_v53 = vmul.f32 1.442695, %v3151_v12 }
 0x541   : > { %14335 = vpow2.f32 %v3188_v37 }
 0x542   : > { %14337 = vpow2.f32 %v3204_v3 }
 0x543   : > { %14339 = vpow2.f32 %v3198_v30 }
 0x544   : > { %14341 = vpow2.f32 %v3192_v53 }
 0x545   : > { %v15940_v35 = vpop.eup %14325  ;;  %14343 = vpow2.f32 %v3202_v26 }
 0x546   : > { %v15943_v13 = vpop.eup %14327  ;;  %v3262_v34 = vsel %vm1448_vm6, %v15940_v35, 0.0 }
 0x547   : > { %v3253_v63 = vsel %vm1448_vm6, %v15943_v13, 0.0 }
 0x548   : > { %v15949_v0 = vpop.eup %14329 }
 0x549   : > { %v15952_v22 = vpop.eup %14331  ;;  %v3271_v24 = vsel %vm1448_vm6, %v15949_v0, 0.0 }
 0x54a   : > { %v15958_v39 = vpop.eup %14333  ;;  %v3268_v27 = vsel %vm1448_vm6, %v15952_v22, 0.0 }
 0x54b   : > { %v15960_v32 = vpop.eup %14335  ;;  %v3277_v16 = vsel %vm1448_vm6, %v15958_v39, 0.0 }
 0x54c   : > { %v15966_v60 = vpop.eup %14337  ;;  %v3259_v19 = vsel %vm1448_vm6, %v15960_v32, 0.0 }
 0x54d   : > { %v3283_v9 = vsel %vm1448_vm6, %v15966_v60, 0.0  ;;  %v15972_v25 = vpop.eup %14339 }
 0x54e   : > { %v3274_v52 = vsel %vm1448_vm6, %v15972_v25, 0.0  ;;  %v15976_v59 = vpop.eup %14341 }
 0x54f   : > { %v3265_v37 = vsel %vm1448_vm6, %v15976_v59, 0.0  ;;  %v15980_v42 = vpop.eup %14343 }
 0x559   : > { %3257 = vadd.xlane.f32.xlu0 %v3256_v2  ;;  %v3280_v2 = vsel %vm1448_vm6, %v15980_v42, 0.0 }
 0x55d   : > { %3248 = vadd.xlane.f32.xlu1 %v3247_v15  ;;  %3263 = vadd.xlane.f32.xlu0 %v3262_v34 }
 0x561   : > { %3254 = vadd.xlane.f32.xlu1 %v3253_v63  ;;  %3272 = vadd.xlane.f32.xlu0 %v3271_v24 }
 0x565   : > { %3278 = vadd.xlane.f32.xlu0 %v3277_v16  ;;  %3269 = vadd.xlane.f32.xlu1 %v3268_v27 }
 0x569   : > { %3284 = vadd.xlane.f32.xlu0 %v3283_v9  ;;  %3260 = vadd.xlane.f32.xlu1 %v3259_v19 }
 0x56d   : > { %3275 = vadd.xlane.f32.xlu1 %v3274_v52 }
 0x571   : > { %3266 = vadd.xlane.f32.xlu1 %v3265_v37 }
 0x575   : > { %v3099_v3 = vpop.xlane.xlu1 %3098  ;;  %v3096_v30 = vpop.xlane.xlu0 %3095  ;;  %3281 = vadd.xlane.f32.xlu1 %v3280_v2 }
 0x576   : > { %v3159_v12 = vsub.f32 %v15822_v41, %v3099_v3  ;;  %v3158_v47 = vsub.f32 %v15820_v54, %v3096_v30 }
 0x578   : > { %v3208_v15 = vmul.f32 1.442695, %v3159_v12  ;;  %v3206_v34 = vmul.f32 1.442695, %v3158_v47 }
 0x57a   : > { %14345 = vpow2.f32 %v3208_v15 }
 0x57b   : > { %14347 = vpow2.f32 %v3206_v34 }
 0x57d   : > { %v3105_v53 = vpop.xlane.xlu1 %3104  ;;  %v3102_v56 = vpop.xlane.xlu0 %3101 }
 0x57e   : > { %v3161_v63 = vsub.f32 %v15834_v11, %v3105_v53  ;;  %v3160_v24 = vsub.f32 %v15832_v38, %v3102_v56 }
 0x580   : > { %v3212_v26 = vmul.f32 1.442695, %v3161_v63  ;;  %v3210_v16 = vmul.f32 1.442695, %v3160_v24 }
 0x582   : > { %14349 = vpow2.f32 %v3212_v26 }
 0x583   : > { %14351 = vpow2.f32 %v3210_v16 }
 0x584   : > { %v15988_v27 = vpop.eup %14345 }
 0x585   : > { %v15990_v41 = vpop.eup %14347  ;;  %v3111_v9 = vpop.xlane.xlu1 %3110  ;;  %v3289_v19 = vsel %vm1448_vm6, %v15988_v27, 0.0 }
 0x586   : > { %v3108_v54 = vpop.xlane.xlu0 %3107  ;;  %v3163_v52 = vsub.f32 %v15846_v23, %v3111_v9  ;;  %3290 = vadd.xlane.f32.xlu0 %v3289_v19  ;;  %v3286_v38 = vsel %vm1448_vm6, %v15990_v41, 0.0 }
 0x587   : > { %v3162_v37 = vsub.f32 %v15844_v7, %v3108_v54  ;;  %3287 = vadd.xlane.f32.xlu1 %v3286_v38 }
 0x588   : > { %v3216_v11 = vmul.f32 1.442695, %v3163_v52 }
 0x589   : > { %v3214_v3 = vmul.f32 1.442695, %v3162_v37 }
 0x58a   : > { %14353 = vpow2.f32 %v3216_v11 }
 0x58b   : > { %14355 = vpow2.f32 %v3214_v3 }
 0x58c   : > { %v15998_v2 = vpop.eup %14349 }
 0x58d   : > { %v16000_v30 = vpop.eup %14351  ;;  %v3117_v12 = vpop.xlane.xlu1 %3116  ;;  %v3295_v47 = vsel %vm1448_vm6, %v15998_v2, 0.0 }
 0x58e   : > { %v3165_v23 = vsub.f32 %v15856_v5, %v3117_v12  ;;  %v3114_v7 = vpop.xlane.xlu0 %3113  ;;  %3296 = vadd.xlane.f32.xlu0 %v3295_v47  ;;  %v3292_v15 = vsel %vm1448_vm6, %v16000_v30, 0.0 }
 0x58f   : > { %v3164_v34 = vsub.f32 %v15858_v45, %v3114_v7  ;;  %3293 = vadd.xlane.f32.xlu1 %v3292_v15 }
 0x590   : > { %v3220_v53 = vmul.f32 1.442695, %v3165_v23 }
 0x591   : > { %v3218_v56 = vmul.f32 1.442695, %v3164_v34 }
 0x592   : > { %14357 = vpow2.f32 %v3220_v53 }
 0x593   : > { %14359 = vpow2.f32 %v3218_v56 }
 0x594   : > { %v16008_v63 = vpop.eup %14353 }
 0x595   : > { %v16010_v24 = vpop.eup %14355  ;;  %v3123_v26 = vpop.xlane.xlu1 %3122  ;;  %v3301_v5 = vsel %vm1448_vm6, %v16008_v63, 0.0 }
 0x596   : > { %v3120_v16 = vpop.xlane.xlu0 %3119  ;;  %v3167_v9 = vsub.f32 %v15865_v48, %v3123_v26  ;;  %3302 = vadd.xlane.f32.xlu0 %v3301_v5  ;;  %v3298_v45 = vsel %vm1448_vm6, %v16010_v24, 0.0 }
 0x597   : > { %v3166_v54 = vsub.f32 %v15867_v31, %v3120_v16  ;;  %3299 = vadd.xlane.f32.xlu1 %v3298_v45 }
 0x598   : > { %v3224_v19 = vmul.f32 1.442695, %v3167_v9 }
 0x599   : > { %v3222_v52 = vmul.f32 1.442695, %v3166_v54 }
 0x59a   : > { %14361 = vpow2.f32 %v3224_v19 }
 0x59b   : > { %14363 = vpow2.f32 %v3222_v52 }
 0x59c   : > { %v16018_v37 = vpop.eup %14357 }
 0x59d   : > { %v16020_v38 = vpop.eup %14359  ;;  %v3129_v11 = vpop.xlane.xlu1 %3128  ;;  %v3307_v3 = vsel %vm1448_vm6, %v16018_v37, 0.0 }
 0x59e   : > { %v3169_v48 = vsub.f32 %v15875_v55, %v3129_v11  ;;  %v3126_v31 = vpop.xlane.xlu0 %3125  ;;  %3308 = vadd.xlane.f32.xlu0 %v3307_v3  ;;  %v3304_v12 = vsel %vm1448_vm6, %v16020_v38, 0.0 }
 0x59f   : > { %v3168_v47 = vsub.f32 %v15877_v10, %v3126_v31  ;;  %3305 = vadd.xlane.f32.xlu1 %v3304_v12  ;;  %v3533_v12 = vsel %vm3435_vm7, %v15790_v29, 0 }
 0x5a0   : > { %v3228_v23 = vmul.f32 1.442695, %v3169_v48 }
 0x5a1   : > { %v3226_v7 = vmul.f32 1.442695, %v3168_v47  ;;  %v19189_v47 = vmov 0.0  }
 0x5a2   : > { %14365 = vpow2.f32 %v3228_v23  ;;  %v3240_v15 = vpop.xlane.xlu0 %3239 }
 0x5a3   : > { %14367 = vpow2.f32 %v3226_v7 }
 0x5a4   : > { %v16028_v34 = vpop.eup %14361  ;;  %14369 = vrcp.f32 %v3240_v15 }
 0x5a5   : > { %v16030_v53 = vpop.eup %14363  ;;  %v3135_v56 = vpop.xlane.xlu1 %3134  ;;  %v3313_v55 = vsel %vm1448_vm6, %v16028_v34, 0.0 }
 0x5a6   : > { %v3132_v26 = vpop.xlane.xlu0 %3131  ;;  %3314 = vadd.xlane.f32.xlu0 %v3313_v55  ;;  %v3310_v10 = vsel %vm1448_vm6, %v16030_v53, 0.0 }
 0x5a7   : > { %3311 = vadd.xlane.f32.xlu1 %v3310_v10 }
 0x5a9   : > { %v3243_v16 = vpop.xlane.xlu1 %3242 }
 0x5aa   : > { %v3252_v5 = vpop.xlane.xlu0 %3251  ;;  %14371 = vrcp.f32 %v3243_v16  ;;  %v3629_v16 = vsel %vm3435_vm7, %v15794_v8, 0  ;;  %v3171_v8 = vsub.f32 %v15888_v20, %v3135_v56 }
 0x5ac   : > { %v16036_v9 = vpop.eup %14365 }
 0x5ad   : > { %v16038_v54 = vpop.eup %14367  ;;  %v3319_v45 = vsel %vm1448_vm6, %v16036_v9, 0.0 }
 0x5ae   : > { %v14370_v19 = vpop.eup %14369  ;;  %v3141_v52 = vpop.xlane.xlu0 %3140  ;;  %3320 = vadd.xlane.f32.xlu0 %v3319_v45  ;;  %v3316_v11 = vsel %vm1448_vm6, %v16038_v54, 0.0  ;;  %v3232_v45 = vmul.f32 1.442695, %v3171_v8  ;;  %v3821_v8 = vsel %vm3435_vm7, %v15802_v6, 0  ;;  %v3677_v6 = vsel %vm3435_vm7, %v15792_v17, 0 }
 0x5af   : > { %3317 = vadd.xlane.f32.xlu1 %v3316_v11  ;;  %v3366_v3 = vmul.f32 %v14370_v19, %v15884_v21  ;;  %v3581_v21 = vsel %vm3435_vm7, %v15788_v62, 0  ;;  %v3917_v17 = vsel %vm3435_vm7, %v15806_v28, 0 }
 0x5b1   : > { %v3398_v48 = vpack.c.bf16 %v3366_v3, %v3366_v3 }
 0x5b2   : > { %v3246_v31 = vpop.xlane.xlu0 %3245 }
 0x5b3   : > { %13174 = vmatmul.mubr.msk.bf16.vlgmr.msra.gmra.mrb[72].mxu0 %vm1448_vm6, %v3398_v48  ;;  %14373 = vrcp.f32 %v3246_v31 }
 0x5b4   : > { %13184 = vmatpush3.bf16.msra.mxu0 %v3533_v12  ;;  %13185 = vmatprep.mubr.msk.bf16.mxu0 %vm14787_vm5, %v19189_v47  ;;  %v14372_v23 = vpop.eup %14371  ;;  %14375 = vrcp.f32 %v3252_v5  ;;  %v3138_v5 = vpop.xlane.xlu1 %3137 }
 0x5b5   : > { %13195 = vmatprep.subr.bf16.mxu0 %v19189_v47  ;;  %v3367_v7 = vmul.f32 %v14372_v23, %v15894_v49  ;;  %v3172_v11 = vsub.f32 %v15906_v4, %v3138_v5  ;;  %14377 = vpow2.f32 %v3232_v45 }
 0x5b6   : > { %v16092_v4 = vpop.permute.xlu0 %4583 }
 0x5b7   : > { %v3399_v15 = vpack.c.bf16 %v3367_v7, %v3367_v7  ;;  %v3234_v3 = vmul.f32 1.442695, %v3172_v11 }
 0x5b8   : > { %v16080_v20 = vpop.permute.xlu1 %4631 }
 0x5b9   : > { %13180 = vmatmul.mubr.msk.bf16.vlgmr.msra.gmra.mrb[104].mxu1 %vm1448_vm6, %v3399_v15 }
 0x5ba   : > { %13190 = vmatpush3.bf16.msra.mxu1 %v3581_v21  ;;  %13191 = vmatprep.mubr.msk.bf16.mxu1 %vm14787_vm5, %v19189_v47 }
 0x5bb   : > { %13201 = vmatprep.subr.bf16.mxu1 %v19189_v47 }
 0x5bd   : > { %v14374_v29 = vpop.eup %14373 }
 0x5be   : > { %v3368_v55 = vmul.f32 %v14374_v29, %v15912_v43  ;;  %v14376_v10 = vpop.eup %14375  ;;  %v3725_v43 = vsel %vm3435_vm7, %v15798_v46, 0 }
 0x5bf   : > { %v16082_v56 = vpop.eup %14377 }
 0x5c0   : > { %4823 = vrot.lane.b32.xlu1 %v15515_v36, %s14790_s17  ;;  %v3400_v49 = vpack.c.bf16 %v3368_v55, %v3368_v55  ;;  %v3370_v36 = vmul.f32 %v14376_v10, %v15898_v44  ;;  %v3173_v44 = vsub.f32 %v15904_v40, %v3141_v52  ;;  %v3325_v40 = vsel %vm1448_vm6, %v16082_v56, 0.0 }
 0x5c2   : > { %13186 = vmatmul.mubr.msk.bf16.vlgmr.msra.gmra.mrb[76].mxu0 %vm1448_vm6, %v3400_v49  ;;  %v3402_v62 = vpack.c.bf16 %v3370_v36, %v3370_v36  ;;  %v3236_v46 = vmul.f32 1.442695, %v3173_v44 }
 0x5c3   : > { %13196 = vmatpush3.bf16.msra.mxu0 %v3629_v16  ;;  %13197 = vmatprep.mubr.msk.bf16.mxu0 %vm14787_vm5, %v19189_v47 }
 0x5c4   : > { %4775 = vrot.lane.b32.xlu0 %v15517_v58, %s14790_s17  ;;  %13207 = vmatprep.subr.bf16.mxu0 %v19189_v47  ;;  %v3170_v58 = vsub.f32 %v15890_v14, %v3132_v26  ;;  %v16086_v26 = vpop.permute.xlu1 %4679 }
 0x5c6   : > { %v3230_v19 = vmul.f32 1.442695, %v3170_v58 }
 0x5c8   : > { %14379 = vpow2.f32 %v3230_v19  ;;  %v16100_v23 = vpop.permute.xlu1 %4727 }
 0x5c9   : > { %14381 = vpow2.f32 %v3236_v46 }
 0x5ca   : > { %13198 = vmatmul.mubr.msk.bf16.vlgmr.msra.gmra.mrb[80].mxu0 %vm1448_vm6, %v3402_v62  ;;  %14383 = vpow2.f32 %v3234_v3 }
 0x5cb   : > { %13208 = vmatpush3.bf16.msra.mxu0 %v3725_v43  ;;  %13209 = vmatprep.mubr.msk.bf16.mxu0 %vm14787_vm5, %v19189_v47 }
 0x5cc   : > { %13219 = vmatprep.subr.bf16.mxu0 %v19189_v47 }
 0x5d2   : > { %v16084_v14 = vpop.eup %14379 }
 0x5d3   : > { %v16090_v52 = vpop.eup %14381  ;;  %v3322_v48 = vsel %vm1448_vm6, %v16084_v14, 0.0 }
 0x5d4   : > { %v16096_v31 = vpop.eup %14383  ;;  %v3331_v12 = vsel %vm1448_vm6, %v16090_v52, 0.0 }
 0x5d5   : > { %v3328_v15 = vsel %vm1448_vm6, %v16096_v31, 0.0 }
 0x5e3   : > { %3326 = vadd.xlane.f32.xlu0 %v3325_v40 }
 0x5e4   : > { %3323 = vadd.xlane.f32.xlu1 %v3322_v48 }
 0x5e6   : > { %v3258_v7 = vpop.xlane.xlu0 %3257 }
 0x5e7   : > { %3332 = vadd.xlane.f32.xlu0 %v3331_v12  ;;  %14385 = vrcp.f32 %v3258_v7 }
 0x5e8   : > { %3329 = vadd.xlane.f32.xlu1 %v3328_v15 }
 0x5ea   : > { %v3249_v21 = vpop.xlane.xlu1 %3248  ;;  %v3264_v29 = vpop.xlane.xlu0 %3263 }
 0x5eb   : > { %14387 = vrcp.f32 %v3249_v21 }
 0x5ec   : > { %14389 = vrcp.f32 %v3264_v29 }
 0x5ee   : > { %v3255_v55 = vpop.xlane.xlu1 %3254  ;;  %v3273_v40 = vpop.xlane.xlu0 %3272 }
 0x5ef   : > { %14391 = vrcp.f32 %v3255_v55 }
 0x5f1   : > { %v14386_v49 = vpop.eup %14385 }
 0x5f2   : > { %v3270_v10 = vpop.xlane.xlu1 %3269  ;;  %v3372_v16 = vmul.f32 %v14386_v49, %v15933_v61 }
 0x5f3   : > { %14393 = vrcp.f32 %v3270_v10  ;;  %v19190_v10 = vld [vmem:[#allocation45_spill] sm:$0xff] }
 0x5f4   : > { %v3404_v36 = vpack.c.bf16 %v3372_v16, %v3372_v16 }
 0x5f5   : > { %v14388_v62 = vpop.eup %14387 }
 0x5f6   : > { %v14390_v43 = vpop.eup %14389  ;;  %v3261_v58 = vpop.xlane.xlu1 %3260  ;;  %13210 = vmatmul.mubr.msk.bf16.vlgmr.msra.gmra.mrb[84].mxu0 %vm1448_vm6, %v3404_v36  ;;  %v3369_v5 = vmul.f32 %v14388_v62, %v15936_v50  ;;  %v19191_v62 = vld [vmem:[#allocation42_spill] sm:$0xff] }
 0x5f7   : > { %14395 = vrcp.f32 %v3261_v58  ;;  %13220 = vmatpush3.bf16.msra.mxu0 %v3821_v8  ;;  %13221 = vmatprep.mubr.msk.bf16.mxu0 %vm14787_vm5, %v19189_v47  ;;  %v3374_v45 = vmul.f32 %v14390_v43, %v15940_v35 }
 0x5f8   : > { %v3401_v61 = vpack.c.bf16 %v3369_v5, %v3369_v5  ;;  %13231 = vmatprep.subr.bf16.mxu0 %v19189_v47 }
 0x5f9   : > { %4919 = vrot.lane.b32.xlu1 %v15535_v33, %s14790_s17  ;;  %v14392_v44 = vpop.eup %14391  ;;  %v3406_v33 = vpack.c.bf16 %v3374_v45, %v3374_v45 }
 0x5fa   : > { %13192 = vmatmul.mubr.msk.bf16.vlgmr.msra.gmra.mrb[108].mxu1 %vm1448_vm6, %v3401_v61  ;;  %v3276_v50 = vpop.xlane.xlu1 %3275  ;;  %v3371_v35 = vmul.f32 %v14392_v44, %v15943_v13  ;;  %v3773_v13 = vsel %vm3435_vm7, %v15796_v1, 0  ;;  %v19192_v61 = vld [vmem:[#allocation47_spill] sm:$0xff] }
 0x5fb   : > { %13202 = vmatpush3.bf16.msra.mxu1 %v3677_v6  ;;  %14397 = vrcp.f32 %v3276_v50  ;;  %13203 = vmatprep.mubr.msk.bf16.mxu1 %vm14787_vm5, %v19189_v47  ;;  %v19193_v6 = vld [vmem:[#allocation43_spill] sm:$0xff] }
 0x5fc   : > { %13213 = vmatprep.subr.bf16.mxu1 %v19189_v47  ;;  %v3403_v46 = vpack.c.bf16 %v3371_v35, %v3371_v35  ;;  %v4061_v50 = vsel %vm3435_vm7, %v19193_v6, 0 }
 0x5fd   : > { %4871 = vrot.lane.b32.xlu0 %v15537_v18, %s14790_s17  ;;  %v14394_v19 = vpop.eup %14393 }
 0x5fe   : > { %v3267_v11 = vpop.xlane.xlu1 %3266  ;;  %13222 = vmatmul.mubr.msk.bf16.vlgmr.msra.gmra.mrb[88].mxu0 %vm1448_vm6, %v3406_v33  ;;  %v3376_v18 = vmul.f32 %v14394_v19, %v15952_v22  ;;  %v4013_v22 = vsel %vm3435_vm7, %v15810_v51, 0  ;;  %v3279_v51 = vpop.xlane.xlu0 %3278 }
 0x5ff   : > { %14399 = vrcp.f32 %v3267_v11  ;;  %13232 = vmatpush3.bf16.msra.mxu0 %v3917_v17  ;;  %13233 = vmatprep.mubr.msk.bf16.mxu0 %vm14787_vm5, %v19189_v47 }
 0x600   : > { %13243 = vmatprep.subr.bf16.mxu0 %v19189_v47  ;;  %v3408_v48 = vpack.c.bf16 %v3376_v18, %v3376_v18 }
 0x601   : > { %v14396_v3 = vpop.eup %14395 }
 0x602   : > { %13204 = vmatmul.mubr.msk.bf16.vlgmr.msra.gmra.mrb[112].mxu1 %vm1448_vm6, %v3403_v46  ;;  %v3282_v28 = vpop.xlane.xlu1 %3281  ;;  %v3373_v12 = vmul.f32 %v14396_v3, %v15960_v32  ;;  %v3869_v32 = vsel %vm3435_vm7, %v15800_v57, 0  ;;  %v3285_v8 = vpop.xlane.xlu0 %3284  ;;  %v19194_v3 = vld [vmem:[#allocation44_spill] sm:$0xff] }
 0x603   : > { %13214 = vmatpush3.bf16.msra.mxu1 %v3773_v13  ;;  %14401 = vrcp.f32 %v3282_v28  ;;  %13215 = vmatprep.mubr.msk.bf16.mxu1 %vm14787_vm5, %v19189_v47  ;;  %v4157_v13 = vsel %vm3435_vm7, %v19194_v3, 0  ;;  %v19195_v28 = vld [vmem:[#allocation49_spill] sm:$0xff] }
 0x604   : > { %13225 = vmatprep.subr.bf16.mxu1 %v19189_v47  ;;  %14403 = vrcp.f32 %v3273_v40  ;;  %v3405_v1 = vpack.c.bf16 %v3373_v12, %v3373_v12  ;;  %v4301_v40 = vsel %vm3435_vm7, %v19195_v28, 0 }
 0x605   : > { %v14398_v7 = vpop.eup %14397  ;;  %14405 = vrcp.f32 %v3279_v51 }
 0x606   : > { %13234 = vmatmul.mubr.msk.bf16.vlgmr.msra.gmra.mrb[92].mxu0 %vm1448_vm6, %v3408_v48  ;;  %v3378_v15 = vmul.f32 %v14398_v7, %v15972_v25  ;;  %v4109_v25 = vsel %vm3435_vm7, %v19190_v10, 0 }
 0x607   : > { %13244 = vmatpush3.bf16.msra.mxu0 %v4013_v22  ;;  %13245 = vmatprep.mubr.msk.bf16.mxu0 %vm14787_vm5, %v19189_v47 }
 0x608   : > { %13255 = vmatprep.subr.bf16.mxu0 %v19189_v47  ;;  %v3410_v29 = vpack.c.bf16 %v3378_v15, %v3378_v15 }
 0x609   : > { %v14400_v21 = vpop.eup %14399 }
 0x60a   : > { %13216 = vmatmul.mubr.msk.bf16.vlgmr.msra.gmra.mrb[116].mxu1 %vm1448_vm6, %v3405_v1  ;;  %v3375_v55 = vmul.f32 %v14400_v21, %v15976_v59  ;;  %v3965_v59 = vsel %vm3435_vm7, %v19191_v62, 0  ;;  %v19196_v21 = vld [vmem:[#allocation46_spill] sm:$0xff] }
 0x60b   : > { %13226 = vmatpush3.bf16.msra.mxu1 %v3869_v32  ;;  %13227 = vmatprep.mubr.msk.bf16.mxu1 %vm14787_vm5, %v19189_v47  ;;  %v4253_v32 = vsel %vm3435_vm7, %v19196_v21, 0 }
 0x60c   : > { %13237 = vmatprep.subr.bf16.mxu1 %v19189_v47  ;;  %v3407_v57 = vpack.c.bf16 %v3375_v55, %v3375_v55 }
 0x60d   : > { %v14402_v49 = vpop.eup %14401 }
 0x60e   : > { %13246 = vmatmul.mubr.msk.bf16.vlgmr.msra.gmra.mrb[96].mxu0 %vm1448_vm6, %v3410_v29  ;;  %v3380_v16 = vmul.f32 %v14402_v49, %v15980_v42  ;;  %v14404_v36 = vpop.eup %14403  ;;  %v4205_v42 = vsel %vm3435_vm7, %v19192_v61, 0 }
 0x60f   : > { %13256 = vmatpush3.bf16.msra.mxu0 %v4109_v25  ;;  %13257 = vmatprep.mubr.msk.bf16.mxu0 %vm14787_vm5, %v19189_v47  ;;  %v3377_v5 = vmul.f32 %v14404_v36, %v15949_v0  ;;  %v14406_v44 = vpop.eup %14405  ;;  %v19198_v36 = vld [vmem:[#allocation48_spill] sm:$0xff] }
 0x610   : > { %13267 = vmatprep.subr.bf16.mxu0 %v19189_v47  ;;  %v3412_v58 = vpack.c.bf16 %v3380_v16, %v3380_v16  ;;  %v3379_v35 = vmul.f32 %v14406_v44, %v15958_v39  ;;  %v4349_v62 = vsel %vm3435_vm7, %v19198_v36, 0  ;;  %v19200_v44 = vld [vmem:[#allocation51_spill] sm:$0xff] }
 0x611   : > { %v3409_v45 = vpack.c.bf16 %v3377_v5, %v3377_v5  ;;  %v4445_v6 = vsel %vm3435_vm7, %v19200_v44, 0 }
 0x612   : > { %13228 = vmatmul.mubr.msk.bf16.vlgmr.msra.gmra.mrb[120].mxu1 %vm1448_vm6, %v3407_v57  ;;  %v3411_v11 = vpack.c.bf16 %v3379_v35, %v3379_v35 }
 0x613   : > { %13238 = vmatpush3.bf16.msra.mxu1 %v3965_v59  ;;  %13239 = vmatprep.mubr.msk.bf16.mxu1 %vm14787_vm5, %v19189_v47  ;;  %v3291_v33 = vpop.xlane.xlu0 %3290 }
 0x614   : > { %v3288_v43 = vpop.xlane.xlu1 %3287  ;;  %13249 = vmatprep.subr.bf16.mxu1 %v19189_v47 }
 0x615   : > { %14407 = vrcp.f32 %v3288_v43 }
 0x616   : > { %13258 = vmatmul.mubr.msk.bf16.vlgmr.msra.gmra.mrb[100].mxu0 %vm1448_vm6, %v3412_v58  ;;  %14409 = vrcp.f32 %v3285_v8 }
 0x617   : > { %13268 = vmatpush3.bf16.msra.mxu0 %v4205_v42  ;;  %13269 = vmatprep.mubr.msk.bf16.mxu0 %vm14787_vm5, %v19189_v47 }
 0x618   : > { %13279 = vmatprep.subr.bf16.mxu0 %v19189_v47 }
 0x61a   : > { %13240 = vmatmul.mubr.msk.bf16.vlgmr.msra.gmra.mrb[124].mxu1 %vm1448_vm6, %v3409_v45 }
 0x61b   : > { %13250 = vmatpush3.bf16.msra.mxu1 %v4061_v50  ;;  %13251 = vmatprep.mubr.msk.bf16.mxu1 %vm14787_vm5, %v19189_v47  ;;  %v3297_v39 = vpop.xlane.xlu0 %3296 }
 0x61c   : > { %v3294_v0 = vpop.xlane.xlu1 %3293  ;;  %13261 = vmatprep.subr.bf16.mxu1 %v19189_v47 }
 0x61d   : > { %14411 = vrcp.f32 %v3294_v0 }
 0x61e   : > { %14413 = vrcp.f32 %v3291_v33 }
 0x61f   : > { %v14408_v19 = vpop.eup %14407 }
 0x620   : > { %v3382_v17 = vmul.f32 %v14408_v19, %v15990_v41  ;;  %v14410_v46 = vpop.eup %14409 }
 0x621   : > { %v3381_v41 = vmul.f32 %v14410_v46, %v15966_v60  ;;  %v19197_v60 = vld [vmem:[#allocation50_spill] sm:$0xff] }
 0x622   : > { %v3414_v18 = vpack.c.bf16 %v3382_v17, %v3382_v17  ;;  %13252 = vmatmul.mubr.msk.bf16.vlgmr.msra.gmra.mrb[128].mxu1 %vm1448_vm6, %v3411_v11  ;;  %v4397_v51 = vsel %vm3435_vm7, %v19197_v60, 0  ;;  %v19201_v11 = vld [vmem:[#allocation53_spill] sm:$0xff] }
 0x623   : > { %13262 = vmatpush3.bf16.msra.mxu1 %v4157_v13  ;;  %13263 = vmatprep.mubr.msk.bf16.mxu1 %vm14787_vm5, %v19189_v47  ;;  %v3413_v22 = vpack.c.bf16 %v3381_v41, %v3381_v41  ;;  %v3303_v55 = vpop.xlane.xlu0 %3302  ;;  %v4541_v46 = vsel %vm3435_vm7, %v19201_v11, 0 }
 0x624   : > { %v3300_v48 = vpop.xlane.xlu1 %3299  ;;  %13270 = vmatmul.mubr.msk.bf16.vlgmr.msra.gmra.mrb[104].mxu0 %vm1448_vm6, %v3414_v18  ;;  %13273 = vmatprep.subr.bf16.mxu1 %v19189_v47 }
 0x625   : > { %14415 = vrcp.f32 %v3300_v48  ;;  %13280 = vmatpush3.bf16.msra.mxu0 %v4301_v40  ;;  %13281 = vmatprep.mubr.msk.bf16.mxu0 %vm14787_vm5, %v19189_v47 }
 0x626   : > { %13291 = vmatprep.subr.bf16.mxu0 %v19189_v47  ;;  %14417 = vrcp.f32 %v3297_v39  ;;  %v4637_v39 = vsel %vm3435_vm7, %v16080_v20, 0 }
 0x627   : > { %v14412_v12 = vpop.eup %14411 }
 0x628   : > { %v3384_v7 = vmul.f32 %v14412_v12, %v16000_v30  ;;  %v14414_v1 = vpop.eup %14413  ;;  %v4733_v12 = vsel %vm3435_vm7, %v16100_v23, 0 }
 0x629   : > { %v3383_v30 = vmul.f32 %v14414_v1, %v15988_v27  ;;  %v19199_v27 = vld [vmem:[#allocation52_spill] sm:$0xff] }
 0x62a   : > { %v3416_v15 = vpack.c.bf16 %v3384_v7, %v3384_v7  ;;  %13264 = vmatmul.mubr.msk.bf16.vlgmr.msra.gmra.mrb[132].mxu1 %vm1448_vm6, %v3413_v22  ;;  %v4493_v59 = vsel %vm3435_vm7, %v19199_v27, 0 }
 0x62b   : > { %13274 = vmatpush3.bf16.msra.mxu1 %v4253_v32  ;;  %13275 = vmatprep.mubr.msk.bf16.mxu1 %vm14787_vm5, %v19189_v47  ;;  %v3415_v25 = vpack.c.bf16 %v3383_v30, %v3383_v30  ;;  %v3309_v8 = vpop.xlane.xlu0 %3308 }
 0x62c   : > { %v3306_v29 = vpop.xlane.xlu1 %3305  ;;  %13282 = vmatmul.mubr.msk.bf16.vlgmr.msra.gmra.mrb[108].mxu0 %vm1448_vm6, %v3416_v15  ;;  %13285 = vmatprep.subr.bf16.mxu1 %v19189_v47 }
 0x62d   : > { %14419 = vrcp.f32 %v3306_v29  ;;  %13292 = vmatpush3.bf16.msra.mxu0 %v4397_v51  ;;  %13293 = vmatprep.mubr.msk.bf16.mxu0 %vm14787_vm5, %v19189_v47 }
 0x62e   : > { %13303 = vmatprep.subr.bf16.mxu0 %v19189_v47  ;;  %14421 = vrcp.f32 %v3303_v55 }
 0x62f   : > { %v14416_v49 = vpop.eup %14415 }
 0x630   : > { %v3386_v10 = vmul.f32 %v14416_v49, %v16010_v24  ;;  %v14418_v57 = vpop.eup %14417 }
 0x631   : > { %v3385_v24 = vmul.f32 %v14418_v57, %v15998_v2  ;;  %v4589_v2 = vsel %vm3435_vm7, %v16092_v4, 0 }
 0x632   : > { %v3418_v16 = vpack.c.bf16 %v3386_v10, %v3386_v10  ;;  %13276 = vmatmul.mubr.msk.bf16.vlgmr.msra.gmra.mrb[136].mxu1 %vm1448_vm6, %v3415_v25 }
 0x633   : > { %13286 = vmatpush3.bf16.msra.mxu1 %v4349_v62  ;;  %13287 = vmatprep.mubr.msk.bf16.mxu1 %vm14787_vm5, %v19189_v47  ;;  %v3417_v61 = vpack.c.bf16 %v3385_v24, %v3385_v24  ;;  %v3315_v0 = vpop.xlane.xlu0 %3314 }
 0x634   : > { %v3312_v43 = vpop.xlane.xlu1 %3311  ;;  %13294 = vmatmul.mubr.msk.bf16.vlgmr.msra.gmra.mrb[112].mxu0 %vm1448_vm6, %v3418_v16  ;;  %13297 = vmatprep.subr.bf16.mxu1 %v19189_v47 }
 0x635   : > { %14423 = vrcp.f32 %v3312_v43  ;;  %13304 = vmatpush3.bf16.msra.mxu0 %v4493_v59  ;;  %13305 = vmatprep.mubr.msk.bf16.mxu0 %vm14787_vm5, %v19189_v47 }
 0x636   : > { %13315 = vmatprep.subr.bf16.mxu0 %v19189_v47  ;;  %14425 = vrcp.f32 %v3309_v8 }
 0x637   : > { %v14420_v58 = vpop.eup %14419 }
 0x638   : > { %v3388_v5 = vmul.f32 %v14420_v58, %v16020_v38  ;;  %v14422_v42 = vpop.eup %14421 }
 0x639   : > { %v3387_v38 = vmul.f32 %v14422_v42, %v16008_v63  ;;  %v4685_v63 = vsel %vm3435_vm7, %v16086_v26, 0 }
 0x63a   : > { %v3420_v45 = vpack.c.bf16 %v3388_v5, %v3388_v5  ;;  %13288 = vmatmul.mubr.msk.bf16.vlgmr.msra.gmra.mrb[140].mxu1 %vm1448_vm6, %v3417_v61 }
 0x63b   : > { %13298 = vmatpush3.bf16.msra.mxu1 %v4445_v6  ;;  %13299 = vmatprep.mubr.msk.bf16.mxu1 %vm14787_vm5, %v19189_v47  ;;  %v3419_v35 = vpack.c.bf16 %v3387_v38, %v3387_v38  ;;  %v3321_v18 = vpop.xlane.xlu0 %3320 }
 0x63c   : > { %v3318_v50 = vpop.xlane.xlu1 %3317  ;;  %13306 = vmatmul.mubr.msk.bf16.vlgmr.msra.gmra.mrb[116].mxu0 %vm1448_vm6, %v3420_v45  ;;  %13309 = vmatprep.subr.bf16.mxu1 %v19189_v47 }
 0x63d   : > { %14427 = vrcp.f32 %v3318_v50  ;;  %13316 = vmatpush3.bf16.msra.mxu0 %v4589_v2  ;;  %13317 = vmatprep.mubr.msk.bf16.mxu0 %vm14787_vm5, %v19189_v47 }
 0x63e   : > { %13327 = vmatprep.subr.bf16.mxu0 %v19189_v47  ;;  %14429 = vrcp.f32 %v3315_v0 }
 0x63f   : > { %v14424_v33 = vpop.eup %14423  ;;  %14431 = vrcp.f32 %v3321_v18  ;;  %v4776_v13 = vpop.permute.xlu0 %4775 }
 0x640   : > { %v3390_v4 = vmul.f32 %v14424_v33, %v16030_v53  ;;  %v14426_v19 = vpop.eup %14425  ;;  %v4824_v7 = vpop.permute.xlu1 %4823 }
 0x641   : > { %v3389_v53 = vmul.f32 %v14426_v19, %v16018_v37  ;;  %v4781_v37 = vsel %vm3435_vm7, %v4776_v13, 0  ;;  %v4829_v1 = vsel %vm3435_vm7, %v4824_v7, 0 }
 0x642   : > { %v3422_v17 = vpack.c.bf16 %v3390_v4, %v3390_v4  ;;  %13300 = vmatmul.mubr.msk.bf16.vlgmr.msra.gmra.mrb[144].mxu1 %vm1448_vm6, %v3419_v35  ;;  %v16306_v35 = vld [vmem:[%s18997_s7] sm:$0xf] }
 0x643   : > { %13310 = vmatpush3.bf16.msra.mxu1 %v4541_v46  ;;  %13311 = vmatprep.mubr.msk.bf16.mxu1 %vm14787_vm5, %v19189_v47  ;;  %v3421_v28 = vpack.c.bf16 %v3389_v53, %v3389_v53 }
 0x644   : > { %13318 = vmatmul.mubr.msk.bf16.vlgmr.msra.gmra.mrb[120].mxu0 %vm1448_vm6, %v3422_v17  ;;  %13321 = vmatprep.subr.bf16.mxu1 %v19189_v47 }
 0x645   : > { %13328 = vmatpush3.bf16.msra.mxu0 %v4685_v63  ;;  %13329 = vmatprep.mubr.msk.bf16.mxu0 %vm14787_vm5, %v19189_v47 }
 0x646   : > { %13339 = vmatprep.subr.bf16.mxu0 %v19189_v47 }
 0x647   : > { %v14428_v3 = vpop.eup %14427 }
 0x648   : > { %v3392_v26 = vmul.f32 %v14428_v3, %v16038_v54  ;;  %v14430_v40 = vpop.eup %14429 }
 0x649   : > { %v3391_v54 = vmul.f32 %v14430_v40, %v16028_v34  ;;  %v14432_v41 = vpop.eup %14431 }
 0x64a   : > { %v3424_v48 = vpack.c.bf16 %v3392_v26, %v3392_v26  ;;  %13312 = vmatmul.mubr.msk.bf16.vlgmr.msra.gmra.mrb[148].mxu1 %vm1448_vm6, %v3421_v28  ;;  %v3393_v34 = vmul.f32 %v14432_v41, %v16036_v9 }
 0x64b   : > { %13322 = vmatpush3.bf16.msra.mxu1 %v4637_v39  ;;  %13323 = vmatprep.mubr.msk.bf16.mxu1 %vm14787_vm5, %v19189_v47  ;;  %v3423_v20 = vpack.c.bf16 %v3391_v54, %v3391_v54 }
 0x64c   : > { %13330 = vmatmul.mubr.msk.bf16.vlgmr.msra.gmra.mrb[124].mxu0 %vm1448_vm6, %v3424_v48  ;;  %13333 = vmatprep.subr.bf16.mxu1 %v19189_v47  ;;  %v3425_v22 = vpack.c.bf16 %v3393_v34, %v3393_v34 }
 0x64d   : > { %13340 = vmatpush3.bf16.msra.mxu0 %v4781_v37  ;;  %13341 = vmatprep.mubr.msk.bf16.mxu0 %vm14787_vm5, %v19189_v47 }
 0x64e   : > { %13351 = vmatprep.subr.bf16.mxu0 %v19189_v47 }
 0x652   : > { %13324 = vmatmul.mubr.msk.bf16.vlgmr.msra.gmra.mrb[152].mxu1 %vm1448_vm6, %v3423_v20 }
 0x653   : > { %13334 = vmatpush3.bf16.msra.mxu1 %v4733_v12  ;;  %13335 = vmatprep.mubr.msk.bf16.mxu1 %vm14787_vm5, %v19189_v47 }
 0x654   : > { %13345 = vmatprep.subr.bf16.mxu1 %v19189_v47 }
 0x65a   : > { %13336 = vmatmul.mubr.msk.bf16.vlgmr.msra.gmra.mrb[156].mxu1 %vm1448_vm6, %v3425_v22 }
 0x65b   : > { %13346 = vmatpush3.bf16.msra.mxu1 %v4829_v1  ;;  %13347 = vmatprep.mubr.msk.bf16.mxu1 %vm14787_vm5, %v19189_v47 }
 0x65c   : > { %13357 = vmatprep.subr.bf16.mxu1 %v19189_v47 }
 0x670   : > { %v3327_v23 = vpop.xlane.xlu0 %3326 }
 0x671   : > { %v3324_v15 = vpop.xlane.xlu1 %3323  ;;  %14433 = vrcp.f32 %v3327_v23 }
 0x672   : > { %14435 = vrcp.f32 %v3324_v15 }
 0x674   : > { %v3333_v21 = vpop.xlane.xlu0 %3332 }
 0x675   : > { %v3330_v32 = vpop.xlane.xlu1 %3329  ;;  %14437 = vrcp.f32 %v3333_v21 }
 0x676   : > { %14439 = vrcp.f32 %v3330_v32 }
 0x678   : > { %v4872_v30 = vpop.permute.xlu0 %4871 }
 0x679   : > { %v4920_v29 = vpop.permute.xlu1 %4919  ;;  %v4877_v36 = vsel %vm3435_vm7, %v4872_v30, 0 }
 0x67a   : > { %v4925_v16 = vsel %vm3435_vm7, %v4920_v29, 0 }
 0x67b   : > { %v14434_v9 = vpop.eup %14433 }
 0x67c   : > { %v14436_v60 = vpop.eup %14435  ;;  %v3395_v51 = vmul.f32 %v14434_v9, %v16082_v56 }
 0x67d   : > { %v3394_v55 = vmul.f32 %v14436_v60, %v16084_v14 }
 0x67e   : > { %v3427_v49 = vpack.c.bf16 %v3395_v51, %v3395_v51 }
 0x67f   : > { %v14438_v10 = vpop.eup %14437  ;;  %v3426_v25 = vpack.c.bf16 %v3394_v55, %v3394_v55 }
 0x680   : > { %v14440_v57 = vpop.eup %14439  ;;  %13348 = vmatmul.mubr.msk.bf16.vlgmr.msra.gmra.mrb[160].mxu1 %vm1448_vm6, %v3427_v49  ;;  %v3397_v56 = vmul.f32 %v14438_v10, %v16090_v52  ;;  %v551_v52 = vld [vmem:[%s18997_s7 + $0x4] sm:$0xf] }
 0x681   : > { %13342 = vmatmul.mubr.msk.bf16.vlgmr.msra.gmra.mrb[128].mxu0 %vm1448_vm6, %v3426_v25  ;;  %13358 = vmatpush3.bf16.msra.mxu1 %v4925_v16  ;;  %v3396_v14 = vmul.f32 %v14440_v57, %v16096_v31  ;;  %v5008_v61 = vsel %vm3435_vm7, %v551_v52, 0 }
 0x682   : > { %13352 = vmatpush3.bf16.msra.mxu0 %v4877_v36  ;;  %13353 = vmatprep.mubr.msk.bf16.mxu0 %vm14787_vm5, %v19189_v47  ;;  %v3429_v27 = vpack.c.bf16 %v3397_v56, %v3397_v56 }
 0x683   : > { %13359 = vmatprep.mubr.msk.bf16.mxu1 %vm14787_vm5, %v19189_v47  ;;  %v3428_v43 = vpack.c.bf16 %v3396_v14, %v3396_v14  ;;  %14131 = vmatprep.subr.msk.bf16.mxu0 %vm3435_vm7, %v551_v52 }
 0x686   : > { %v16286_v62 = vpop.f32.mrb[72].mxu0 }
 0x687   : > { %v13175_v59 = vpop.f32.mrb[73].mxu0 }
 0x688   : > { %v3476_v8 = vpop.f32.mrb[74].mxu0  ;;  %13360 = vmatmul.mubr.msk.bf16.vlgmr.msra.gmra.mrb[164].mxu1 %vm1448_vm6, %v3429_v27 }
 0x689   : > { %v13176_v24 = vpop.f32.mrb[75].mxu0  ;;  %13354 = vmatmul.mubr.msk.bf16.vlgmr.msra.gmra.mrb[132].mxu0 %vm1448_vm6, %v3428_v43 }
 0x68a   : > { %13364 = vmatpush3.bf16.msra.mxu0 %v5008_v61 }
 0x68b   : > { %14132 = vmatprep.subr.msk.bf16.mxu0 %vm3435_vm7, %v16306_v35 }
 0x68c   : > { %v16294_v58 = vpop.f32.mrb[104].mxu1 }
 0x68d   : > { %v4967_v31 = vpack.c.bf16 %v16294_v58, %v16286_v62  ;;  %v13181_v5 = vpop.f32.mrb[105].mxu1  ;;  %v16393_v58 = vld [vmem:[%s19000_s10 + $0x1] ss:$0 sm:$0xff] }
 0x68e   : > { %v3524_v42 = vpop.f32.mrb[106].mxu1 }
 0x68f   : > { %v13182_v45 = vpop.f32.mrb[107].mxu1 }
 0x695   : > { %v16299_v44 = vpop.f32.mrb[76].mxu0 }
 0x696   : > { %v13187_v6 = vpop.f32.mrb[77].mxu0 }
 0x697   : > { %v3572_v2 = vpop.f32.mrb[78].mxu0 }
 0x698   : > { %v13188_v50 = vpop.f32.mrb[79].mxu0 }
 0x69d   : > { %v16301_v0 = vpop.f32.mrb[80].mxu0 }
 0x69e   : > { %v13199_v38 = vpop.f32.mrb[81].mxu0 }
 0x69f   : > { %v3668_v33 = vpop.f32.mrb[82].mxu0 }
 0x6a0   : > { %v13200_v4 = vpop.f32.mrb[83].mxu0 }
 0x6c9   : > { %v16310_v19 = vpop.f32.mrb[84].mxu0 }
 0x6ca   : > { %v13211_v17 = vpop.f32.mrb[85].mxu0 }
 0x6cb   : > { %v3764_v11 = vpop.f32.mrb[86].mxu0 }
 0x6cc   : > { %v13212_v46 = vpop.f32.mrb[87].mxu0 }
 0x6cd   : > { %v16312_v18 = vpop.f32.mrb[108].mxu1 }
 0x6ce   : > { %v4968_v63 = vpack.c.bf16 %v16312_v18, %v16299_v44  ;;  %v13193_v53 = vpop.f32.mrb[109].mxu1  ;;  %v19202_v44 = vld [vmem:[#allocation26_spill] sm:$0xff] }
 0x6cf   : > { %v3620_v3 = vpop.f32.mrb[110].mxu1 }
 0x6d0   : > { %v13194_v26 = vpop.f32.mrb[111].mxu1 }
 0x6d1   : > { %v16316_v13 = vpop.f32.mrb[88].mxu0 }
 0x6d2   : > { %v13223_v28 = vpop.f32.mrb[89].mxu0 }
 0x6d3   : > { %v3860_v40 = vpop.f32.mrb[90].mxu0 }
 0x6d4   : > { %v13224_v48 = vpop.f32.mrb[91].mxu0 }
 0x6d5   : > { %v16318_v39 = vpop.f32.mrb[112].mxu1 }
 0x6d6   : > { %v4969_v37 = vpack.c.bf16 %v16318_v39, %v16301_v0  ;;  %v13205_v54 = vpop.f32.mrb[113].mxu1 }
 0x6d7   : > { %v3716_v20 = vpop.f32.mrb[114].mxu1 }
 0x6d8   : > { %v13206_v41 = vpop.f32.mrb[115].mxu1 }
 0x6d9   : > { %v16322_v12 = vpop.f32.mrb[92].mxu0 }
 0x6da   : > { %v13235_v34 = vpop.f32.mrb[93].mxu0 }
 0x6db   : > { %v3956_v7 = vpop.f32.mrb[94].mxu0 }
 0x6dc   : > { %v13236_v22 = vpop.f32.mrb[95].mxu0 }
 0x6dd   : > { %v16324_v1 = vpop.f32.mrb[116].mxu1 }
 0x6de   : > { %v4970_v23 = vpack.c.bf16 %v16324_v1, %v16310_v19  ;;  %v13217_v15 = vpop.f32.mrb[117].mxu1  ;;  %v19203_v19 = vld [vmem:[#allocation27_spill] sm:$0xff] }
 0x6df   : > { %v3812_v21 = vpop.f32.mrb[118].mxu1 }
 0x6e0   : > { %v13218_v32 = vpop.f32.mrb[119].mxu1 }
 0x6e1   : > { %v16328_v9 = vpop.f32.mrb[96].mxu0 }
 0x6e2   : > { %v13247_v60 = vpop.f32.mrb[97].mxu0 }
 0x6e3   : > { %v4052_v51 = vpop.f32.mrb[98].mxu0 }
 0x6e4   : > { %v13248_v29 = vpop.f32.mrb[99].mxu0  ;;  %v5132_v51 = vsel %vm3435_vm7, %v16306_v35, 0 }
 0x6e5   : > { %v16330_v55 = vpop.f32.mrb[120].mxu1 }
 0x6e6   : > { %v4971_v30 = vpack.c.bf16 %v16330_v55, %v16316_v13  ;;  %v13229_v49 = vpop.f32.mrb[121].mxu1 }
 0x6e7   : > { %v3908_v10 = vpop.f32.mrb[122].mxu1 }
 0x6e8   : > { %v13230_v25 = vpop.f32.mrb[123].mxu1 }
 0x6e9   : > { %v16334_v57 = vpop.f32.mrb[100].mxu0 }
 0x6ea   : > { %v13259_v16 = vpop.f32.mrb[101].mxu0 }
 0x6eb   : > { %v4148_v36 = vpop.f32.mrb[102].mxu0 }
 0x6ec   : > { %v13260_v56 = vpop.f32.mrb[103].mxu0 }
 0x6ed   : > { %v16336_v14 = vpop.f32.mrb[124].mxu1 }
 0x6ee   : > { %v4972_v27 = vpack.c.bf16 %v16336_v14, %v16322_v12  ;;  %v13241_v59 = vpop.f32.mrb[125].mxu1 }
 0x6ef   : > { %v4004_v43 = vpop.f32.mrb[126].mxu1 }
 0x6f0   : > { %v13242_v8 = vpop.f32.mrb[127].mxu1 }
 0x6f5   : > { %v16340_v24 = vpop.f32.mrb[128].mxu1 }
 0x6f6   : > { %v4973_v52 = vpack.c.bf16 %v16340_v24, %v16328_v9  ;;  %v13253_v5 = vpop.f32.mrb[129].mxu1 }
 0x6f7   : > { %v4241_v61 = vpop.f32.mrb[104].mxu0  ;;  %v4100_v42 = vpop.f32.mrb[130].mxu1 }
 0x6f8   : > { %v13271_v45 = vpop.f32.mrb[105].mxu0  ;;  %v13254_v6 = vpop.f32.mrb[131].mxu1 }
 0x6f9   : > { %v4244_v2 = vpop.f32.mrb[106].mxu0 }
 0x6fa   : > { %v13272_v50 = vpop.f32.mrb[107].mxu0 }
 0x6fd   : > { %v16344_v38 = vpop.f32.mrb[132].mxu1 }
 0x6fe   : > { %v4974_v33 = vpack.c.bf16 %v16344_v38, %v16334_v57  ;;  %v13265_v4 = vpop.f32.mrb[133].mxu1 }
 0x6ff   : > { %v4337_v17 = vpop.f32.mrb[108].mxu0  ;;  %v4196_v11 = vpop.f32.mrb[134].mxu1 }
 0x700   : > { %v13283_v46 = vpop.f32.mrb[109].mxu0  ;;  %v13266_v53 = vpop.f32.mrb[135].mxu1 }
 0x701   : > { %v4340_v3 = vpop.f32.mrb[110].mxu0 }
 0x702   : > { %v13284_v26 = vpop.f32.mrb[111].mxu0 }
 0x705   : > { %v4289_v28 = vpop.f32.mrb[136].mxu1 }
 0x706   : > { %v4975_v40 = vpack.c.bf16 %v4289_v28, %v4241_v61  ;;  %v13277_v48 = vpop.f32.mrb[137].mxu1 }
 0x707   : > { %v4433_v54 = vpop.f32.mrb[112].mxu0  ;;  %v4292_v20 = vpop.f32.mrb[138].mxu1 }
 0x708   : > { %v13295_v41 = vpop.f32.mrb[113].mxu0  ;;  %v13278_v34 = vpop.f32.mrb[139].mxu1  ;;  %13365 = vmatprep.mubr.msk.bf16.mxu0 %vm1448_vm6, %v4975_v40 }
 0x709   : > { %v4436_v7 = vpop.f32.mrb[114].mxu0 }
 0x70a   : > { %v13296_v22 = vpop.f32.mrb[115].mxu0 }
 0x70d   : > { %v4385_v15 = vpop.f32.mrb[140].mxu1 }
 0x70e   : > { %v4976_v21 = vpack.c.bf16 %v4385_v15, %v4337_v17  ;;  %v13289_v32 = vpop.f32.mrb[141].mxu1 }
 0x70f   : > { %v4529_v60 = vpop.f32.mrb[116].mxu0  ;;  %v4388_v29 = vpop.f32.mrb[142].mxu1 }
 0x710   : > { %v13307_v49 = vpop.f32.mrb[117].mxu0  ;;  %v13290_v10 = vpop.f32.mrb[143].mxu1  ;;  %13366 = vmatmul.mubr.msk.bf16.vlgmr.msra.gmra.mrb[136].mxu0 %vm1448_vm6, %v4976_v21 }
 0x711   : > { %v4532_v25 = vpop.f32.mrb[118].mxu0  ;;  %13382 = vmatpush3.bf16.msra.mxu0 %v5132_v51 }
 0x712   : > { %v13308_v16 = vpop.f32.mrb[119].mxu0 }
 0x715   : > { %v4481_v36 = vpop.f32.mrb[144].mxu1 }
 0x716   : > { %v4977_v56 = vpack.c.bf16 %v4481_v36, %v4433_v54  ;;  %v13301_v59 = vpop.f32.mrb[145].mxu1 }
 0x717   : > { %v4625_v43 = vpop.f32.mrb[120].mxu0  ;;  %v4484_v8 = vpop.f32.mrb[146].mxu1 }
 0x718   : > { %v13319_v5 = vpop.f32.mrb[121].mxu0  ;;  %v13302_v61 = vpop.f32.mrb[147].mxu1  ;;  %13369 = vmatprep.mubr.msk.bf16.mxu0 %vm1448_vm6, %v4977_v56 }
 0x719   : > { %v4628_v42 = vpop.f32.mrb[122].mxu0 }
 0x71a   : > { %v13320_v45 = vpop.f32.mrb[123].mxu0 }
 0x71d   : > { %v4577_v35 = vpop.f32.mrb[148].mxu1 }
 0x71e   : > { %v4978_v6 = vpack.c.bf16 %v4577_v35, %v4529_v60  ;;  %v13313_v2 = vpop.f32.mrb[149].mxu1  ;;  %v19207_v35 = vld [vmem:[#allocation33_spill] sm:$0xff] }
 0x71f   : > { %v4721_v50 = vpop.f32.mrb[124].mxu0  ;;  %v4580_v4 = vpop.f32.mrb[150].mxu1  ;;  %v19208_v2 = vld [vmem:[#allocation32_spill] sm:$0xff] }
 0x720   : > { %v13331_v17 = vpop.f32.mrb[125].mxu0  ;;  %v13314_v11 = vpop.f32.mrb[151].mxu1  ;;  %13370 = vmatmul.mubr.msk.bf16.gmra.mrb[140].mxu0 %vm1448_vm6, %v4978_v6  ;;  %v19209_v4 = vld [vmem:[#allocation31_spill] sm:$0xff] }
 0x721   : > { %v4724_v46 = vpop.f32.mrb[126].mxu0 }
 0x722   : > { %v13332_v53 = vpop.f32.mrb[127].mxu0 }
 0x725   : > { %v4673_v3 = vpop.f32.mrb[152].mxu1 }
 0x726   : > { %v4979_v26 = vpack.c.bf16 %v4673_v3, %v4625_v43  ;;  %v13325_v28 = vpop.f32.mrb[153].mxu1 }
 0x727   : > { %v4676_v40 = vpop.f32.mrb[154].mxu1 }
 0x728   : > { %v13326_v48 = vpop.f32.mrb[155].mxu1  ;;  %13373 = vmatprep.mubr.msk.bf16.mxu0 %vm1448_vm6, %v4979_v26 }
 0x72d   : > { %v4769_v54 = vpop.f32.mrb[156].mxu1 }
 0x72e   : > { %v4980_v20 = vpack.c.bf16 %v4769_v54, %v4721_v50  ;;  %v13337_v41 = vpop.f32.mrb[157].mxu1  ;;  %v19210_v54 = vld [vmem:[#allocation34_spill] sm:$0xff] }
 0x72f   : > { %v4772_v34 = vpop.f32.mrb[158].mxu1 }
 0x730   : > { %v13338_v7 = vpop.f32.mrb[159].mxu1  ;;  %13374 = vmatmul.mubr.msk.bf16.gmra.mrb[144].mxu0 %vm1448_vm6, %v4980_v20 }
 0x753   : > { %v4865_v22 = vpop.f32.mrb[160].mxu1 }
 0x754   : > { %v4817_v15 = vpop.f32.mrb[128].mxu0  ;;  %v13349_v21 = vpop.f32.mrb[161].mxu1 }
 0x755   : > { %v4981_v32 = vpack.c.bf16 %v4865_v22, %v4817_v15  ;;  %v13343_v60 = vpop.f32.mrb[129].mxu0  ;;  %v4868_v51 = vpop.f32.mrb[162].mxu1  ;;  %v19211_v22 = vld [vmem:[#allocation37_spill] sm:$0xff]  ;;  %v19212_v21 = vld [vmem:[#allocation36_spill] sm:$0xff] }
 0x756   : > { %v4820_v29 = vpop.f32.mrb[130].mxu0  ;;  %v13350_v49 = vpop.f32.mrb[163].mxu1  ;;  %v19213_v51 = vld [vmem:[#allocation35_spill] sm:$0xff] }
 0x757   : > { %v13344_v10 = vpop.f32.mrb[131].mxu0  ;;  %13377 = vmatprep.mubr.msk.bf16.mxu0 %vm1448_vm6, %v4981_v32 }
 0x75b   : > { %v4961_v25 = vpop.f32.mrb[164].mxu1 }
 0x75c   : > { %v4913_v16 = vpop.f32.mrb[132].mxu0  ;;  %v13361_v36 = vpop.f32.mrb[165].mxu1 }
 0x75d   : > { %v4982_v56 = vpack.c.bf16 %v4961_v25, %v4913_v16  ;;  %v13355_v59 = vpop.f32.mrb[133].mxu0  ;;  %v4964_v43 = vpop.f32.mrb[166].mxu1 }
 0x75e   : > { %v4916_v8 = vpop.f32.mrb[134].mxu0  ;;  %v13362_v5 = vpop.f32.mrb[167].mxu1 }
 0x75f   : > { %v13356_v61 = vpop.f32.mrb[135].mxu0  ;;  %13378 = vmatmul.mubr.msk.bf16.gmra.mrb[148].mxu0 %vm1448_vm6, %v4982_v56  ;;  %v19214_v8 = vld [vmem:[#allocation38_spill] sm:$0xff] }
 0x760   : > { %13383 = vmatprep.mubr.msk.bf16.mxu0 %vm1448_vm6, %v4967_v31 }
 0x767   : > { %13384 = vmatmul.mubr.msk.bf16.vlgmr.msra.gmra.mrb[136].mxu0 %vm1448_vm6, %v4968_v63 }
 0x768   : > { %13387 = vmatprep.mubr.msk.bf16.mxu0 %vm1448_vm6, %v4969_v37  ;;  %v19204_v37 = vld [vmem:[#allocation29_spill] sm:$0xff] }
 0x76f   : > { %13388 = vmatmul.mubr.msk.bf16.gmra.mrb[140].mxu0 %vm1448_vm6, %v4970_v23  ;;  %v19205_v23 = vld [vmem:[#allocation28_spill] sm:$0xff] }
 0x770   : > { %13391 = vmatprep.mubr.msk.bf16.mxu0 %vm1448_vm6, %v4971_v30 }
 0x777   : > { %13392 = vmatmul.mubr.msk.bf16.gmra.mrb[144].mxu0 %vm1448_vm6, %v4972_v27 }
 0x778   : > { %13395 = vmatprep.mubr.msk.bf16.mxu0 %vm1448_vm6, %v4973_v52  ;;  %v19206_v52 = vld [vmem:[#allocation30_spill] sm:$0xff] }
 0x77f   : > { %13396 = vmatmul.mubr.msk.bf16.gmra.mrb[148].mxu0 %vm1448_vm6, %v4974_v33 }
 0x83a   : > { %v13385_v62 = vpop.f32.mrb[136].mxu0 }
 0x83b   : > { %v5168_v31 = vpop.f32.mrb[137].mxu0  ;;  %v5233_v0 = vadd.f32 %v13385_v62, %v19202_v44  ;;  %v19215_v44 = vld [vmem:[#allocation41_spill] sm:$0xff] }
 0x83c   : > { %v5231_v18 = vadd.f32 %v5168_v31, %v19203_v19  ;;  %v13386_v63 = vpop.f32.mrb[138].mxu0  ;;  %v19216_v19 = vld [vmem:[#allocation40_spill] sm:$0xff] }
 0x83d   : > { %v5171_v13 = vpop.f32.mrb[139].mxu0  ;;  %v16402_v1 = vadd.f32 %v16393_v58, %v5233_v0  ;;  %v5234_v9 = vadd.f32 %v13386_v63, %v19205_v23 }
 0x83e   : > { %v16398_v39 = vadd.f32 %v16393_v58, %v5231_v18  ;;  %v5232_v12 = vadd.f32 %v5171_v13, %v19204_v37  ;;  %v19217_v13 = vld [vmem:[#allocation39_spill] sm:$0xff] }
 0x83f   : > { %v16413_v24 = vadd.f32 %v16393_v58, %v5234_v9  ;;  %v5275_v42 = vsel %vm948_vm4, %v16402_v1, 0.0 }
 0x840   : > { %v16406_v55 = vadd.f32 %v16393_v58, %v5232_v12  ;;  %v5269_v30 = vsel %vm948_vm4, %v16398_v39, 0.0 }
 0x841   : > { %5270 = vadd.xlane.f32.xlu0 %v5269_v30  ;;  %v5278_v53 = vsel %vm948_vm4, %v16413_v24, 0.0 }
 0x842   : > { %v13389_v57 = vpop.f32.mrb[140].mxu0  ;;  %v5272_v14 = vsel %vm948_vm4, %v16406_v55, 0.0 }
 0x843   : > { %5273 = vadd.xlane.f32.xlu1 %v5272_v14  ;;  %v5184_v27 = vpop.f32.mrb[141].mxu0  ;;  %v5237_v17 = vadd.f32 %v13389_v57, %v19209_v4 }
 0x844   : > { %v5235_v38 = vadd.f32 %v5184_v27, %v19206_v52  ;;  %v13390_v33 = vpop.f32.mrb[142].mxu0 }
 0x845   : > { %5276 = vadd.xlane.f32.xlu0 %v5275_v42  ;;  %v5187_v45 = vpop.f32.mrb[143].mxu0  ;;  %v5238_v6 = vadd.f32 %v13390_v33, %v19207_v35  ;;  %v16435_v48 = vadd.f32 %v16393_v58, %v5237_v17 }
 0x846   : > { %v5236_v50 = vadd.f32 %v5187_v45, %v19208_v2  ;;  %v16422_v11 = vadd.f32 %v16393_v58, %v5235_v38 }
 0x847   : > { %v16430_v3 = vadd.f32 %v16393_v58, %v5238_v6  ;;  %v5287_v25 = vsel %vm948_vm4, %v16435_v48, 0.0 }
 0x848   : > { %v16425_v46 = vadd.f32 %v16393_v58, %v5236_v50  ;;  %v5281_v34 = vsel %vm948_vm4, %v16422_v11, 0.0 }
 0x849   : > { %5279 = vadd.xlane.f32.xlu0 %v5278_v53  ;;  %v5290_v60 = vsel %vm948_vm4, %v16430_v3, 0.0 }
 0x84a   : > { %v13393_v26 = vpop.f32.mrb[144].mxu0  ;;  %v5284_v28 = vsel %vm948_vm4, %v16425_v46, 0.0 }
 0x84b   : > { %5285 = vadd.xlane.f32.xlu1 %v5284_v28  ;;  %v5200_v40 = vpop.f32.mrb[145].mxu0  ;;  %v5241_v29 = vadd.f32 %v13393_v26, %v19213_v51 }
 0x84c   : > { %v5239_v20 = vadd.f32 %v5200_v40, %v19210_v54  ;;  %v13394_v41 = vpop.f32.mrb[146].mxu0 }
 0x84d   : > { %5282 = vadd.xlane.f32.xlu0 %v5281_v34  ;;  %v5203_v7 = vpop.f32.mrb[147].mxu0  ;;  %v5242_v15 = vadd.f32 %v13394_v41, %v19211_v22  ;;  %v16459_v43 = vadd.f32 %v16393_v58, %v5241_v29 }
 0x84e   : > { %v5240_v32 = vadd.f32 %v5203_v7, %v19212_v21  ;;  %v16446_v49 = vadd.f32 %v16393_v58, %v5239_v20 }
 0x84f   : > { %5291 = vadd.xlane.f32.xlu1 %v5290_v60  ;;  %v16454_v16 = vadd.f32 %v16393_v58, %v5242_v15  ;;  %v5299_v9 = vsel %vm948_vm4, %v16459_v43, 0.0 }
 0x850   : > { %v16449_v10 = vadd.f32 %v16393_v58, %v5240_v32  ;;  %v5293_v62 = vsel %vm948_vm4, %v16446_v49, 0.0 }
 0x851   : > { %5288 = vadd.xlane.f32.xlu0 %v5287_v25  ;;  %v5302_v63 = vsel %vm948_vm4, %v16454_v16, 0.0 }
 0x852   : > { %v13397_v36 = vpop.f32.mrb[148].mxu0  ;;  %v5296_v56 = vsel %vm948_vm4, %v16449_v10, 0.0 }
 0x853   : > { %5297 = vadd.xlane.f32.xlu1 %v5296_v56  ;;  %v5216_v59 = vpop.f32.mrb[149].mxu0  ;;  %v5245_v37 = vadd.f32 %v13397_v36, %v19217_v13 }
 0x854   : > { %v5243_v5 = vadd.f32 %v5216_v59, %v19214_v8  ;;  %v13398_v61 = vpop.f32.mrb[150].mxu0 }
 0x855   : > { %5294 = vadd.xlane.f32.xlu0 %v5293_v62  ;;  %v5219_v31 = vpop.f32.mrb[151].mxu0  ;;  %v5246_v0 = vadd.f32 %v13398_v61, %v19215_v44  ;;  %v16483_v14 = vadd.f32 %v16393_v58, %v5245_v37 }
 0x856   : > { %v5244_v18 = vadd.f32 %v5219_v31, %v19216_v19  ;;  %v16470_v12 = vadd.f32 %v16393_v58, %v5243_v5 }
 0x857   : > { %5303 = vadd.xlane.f32.xlu1 %v5302_v63  ;;  %v16478_v30 = vadd.f32 %v16393_v58, %v5246_v0  ;;  %v5311_v38 = vsel %vm948_vm4, %v16483_v14, 0.0 }
 0x858   : > { %v16473_v23 = vadd.f32 %v16393_v58, %v5244_v18  ;;  %v5305_v27 = vsel %vm948_vm4, %v16470_v12, 0.0 }
 0x859   : > { %5300 = vadd.xlane.f32.xlu0 %v5299_v9  ;;  %v5314_v52 = vsel %vm948_vm4, %v16478_v30, 0.0 }
 0x85a   : > { %v5308_v57 = vsel %vm948_vm4, %v16473_v23, 0.0 }
 0x85b   : > { %5309 = vadd.xlane.f32.xlu1 %v5308_v57 }
 0x85d   : > { %5306 = vadd.xlane.f32.xlu0 %v5305_v27 }
 0x85f   : > { %5315 = vadd.xlane.f32.xlu1 %v5314_v52 }
 0x861   : > { %5312 = vadd.xlane.f32.xlu0 %v5311_v38 }
 0x8ce   : > { %v5271_v33 = vpop.xlane.xlu0 %5270 }
 0x8cf   : > { %v5317_v42 = vmul.f32 0.03125, %v5271_v33 }
 0x8d0   : > { %v5274_v45 = vpop.xlane.xlu1 %5273 }
 0x8d1   : > { %v16492_v35 = vsub.f32 %v16398_v39, %v5317_v42  ;;  %v5318_v58 = vmul.f32 0.03125, %v5274_v45 }
 0x8d2   : > { %v5277_v6 = vpop.xlane.xlu0 %5276 }
 0x8d3   : > { %v16495_v2 = vsub.f32 %v16406_v55, %v5318_v58  ;;  %v5319_v50 = vmul.f32 0.03125, %v5277_v6  ;;  %v5349_v4 = vmul.f32 %v16492_v35, %v16492_v35 }
 0x8d5   : > { %v16500_v17 = vsub.f32 %v16402_v1, %v5319_v50  ;;  %v5365_v53 = vsel %vm948_vm4, %v5349_v4, 0.0  ;;  %v5350_v26 = vmul.f32 %v16495_v2, %v16495_v2 }
 0x8d6   : > { %v5280_v28 = vpop.xlane.xlu0 %5279  ;;  %5366 = vadd.xlane.f32.xlu0 %v5365_v53 }
 0x8d7   : > { %v5320_v40 = vmul.f32 0.03125, %v5280_v28  ;;  %v5368_v54 = vsel %vm948_vm4, %v5350_v26, 0.0  ;;  %v5351_v20 = vmul.f32 %v16500_v17, %v16500_v17 }
 0x8d8   : > { %v5286_v41 = vpop.xlane.xlu1 %5285  ;;  %5369 = vadd.xlane.f32.xlu1 %v5368_v54 }
 0x8d9   : > { %v16509_v34 = vsub.f32 %v16413_v24, %v5320_v40  ;;  %v5322_v7 = vmul.f32 0.03125, %v5286_v41  ;;  %v5371_v22 = vsel %vm948_vm4, %v5351_v20, 0.0 }
 0x8da   : > { %v5283_v15 = vpop.xlane.xlu0 %5282  ;;  %5372 = vadd.xlane.f32.xlu0 %v5371_v22 }
 0x8db   : > { %v16513_v21 = vsub.f32 %v16425_v46, %v5322_v7  ;;  %v5321_v32 = vmul.f32 0.03125, %v5283_v15  ;;  %v5352_v60 = vmul.f32 %v16509_v34, %v16509_v34 }
 0x8dc   : > { %v5292_v51 = vpop.xlane.xlu1 %5291 }
 0x8dd   : > { %v16518_v29 = vsub.f32 %v16422_v11, %v5321_v32  ;;  %v5324_v25 = vmul.f32 0.03125, %v5292_v51  ;;  %v5374_v36 = vsel %vm948_vm4, %v5352_v60, 0.0  ;;  %v5354_v56 = vmul.f32 %v16513_v21, %v16513_v21 }
 0x8de   : > { %v5289_v59 = vpop.xlane.xlu0 %5288  ;;  %5375 = vadd.xlane.f32.xlu1 %v5374_v36 }
 0x8df   : > { %v16524_v8 = vsub.f32 %v16430_v3, %v5324_v25  ;;  %v5323_v5 = vmul.f32 0.03125, %v5289_v59  ;;  %v5353_v61 = vmul.f32 %v16518_v29, %v16518_v29  ;;  %v5380_v31 = vsel %vm948_vm4, %v5354_v56, 0.0 }
 0x8e0   : > { %v5298_v62 = vpop.xlane.xlu1 %5297 }
 0x8e1   : > { %v16530_v44 = vsub.f32 %v16435_v48, %v5323_v5  ;;  %v5326_v0 = vmul.f32 0.03125, %v5298_v62  ;;  %v5377_v19 = vsel %vm948_vm4, %v5353_v61, 0.0  ;;  %v5356_v18 = vmul.f32 %v16524_v8, %v16524_v8 }
 0x8e2   : > { %v5295_v63 = vpop.xlane.xlu0 %5294  ;;  %5378 = vadd.xlane.f32.xlu0 %v5377_v19  ;;  %5381 = vadd.xlane.f32.xlu1 %v5380_v31 }
 0x8e3   : > { %v16536_v13 = vsub.f32 %v16449_v10, %v5326_v0  ;;  %v5325_v37 = vmul.f32 0.03125, %v5295_v63  ;;  %v5355_v9 = vmul.f32 %v16530_v44, %v16530_v44  ;;  %v5386_v27 = vsel %vm948_vm4, %v5356_v18, 0.0 }
 0x8e4   : > { %v5304_v57 = vpop.xlane.xlu1 %5303 }
 0x8e5   : > { %v16542_v52 = vsub.f32 %v16446_v49, %v5325_v37  ;;  %v5328_v38 = vmul.f32 0.03125, %v5304_v57  ;;  %v5383_v33 = vsel %vm948_vm4, %v5355_v9, 0.0  ;;  %v5358_v42 = vmul.f32 %v16536_v13, %v16536_v13  ;;  %v14267_v9 = vld [vmem:[%s18994_s4] sm:$0xff]   ;;  %v14268_v57 = vld [vmem:[%s18994_s4 + $0x8] sm:$0xff]  }
 0x8e6   : > { %v5301_v45 = vpop.xlane.xlu0 %5300  ;;  %5384 = vadd.xlane.f32.xlu0 %v5383_v33  ;;  %5387 = vadd.xlane.f32.xlu1 %v5386_v27  ;;  %v16596_v27 = vld [vmem:[%s18994_s4 + $0x10] sm:$0xff]  }
 0x8e7   : > { %v16548_v58 = vsub.f32 %v16454_v16, %v5328_v38  ;;  %v5327_v6 = vmul.f32 0.03125, %v5301_v45  ;;  %v5357_v50 = vmul.f32 %v16542_v52, %v16542_v52  ;;  %v5392_v53 = vsel %vm948_vm4, %v5358_v42, 0.0  ;;  %13399 = vmatprep.subr.bf16.mxu1 %v14267_v9 }
 0x8e8   : > { %v5310_v4 = vpop.xlane.xlu1 %5309  ;;  %13400 = vmatpush3.bf16.msra.mxu1 %v14267_v9 }
 0x8e9   : > { %v16554_v26 = vsub.f32 %v16459_v43, %v5327_v6  ;;  %v5330_v28 = vmul.f32 0.03125, %v5310_v4  ;;  %v5389_v40 = vsel %vm948_vm4, %v5357_v50, 0.0  ;;  %v5360_v54 = vmul.f32 %v16548_v58, %v16548_v58  ;;  %13401 = vmatprep.subr.bf16.mxu1 %v14268_v57 }
 0x8ea   : > { %5390 = vadd.xlane.f32.xlu0 %v5389_v40  ;;  %v5307_v20 = vpop.xlane.xlu0 %5306  ;;  %5393 = vadd.xlane.f32.xlu1 %v5392_v53 }
 0x8eb   : > { %v16560_v41 = vsub.f32 %v16473_v23, %v5330_v28  ;;  %v5329_v7 = vmul.f32 0.03125, %v5307_v20  ;;  %v5359_v22 = vmul.f32 %v16554_v26, %v16554_v26  ;;  %v5398_v32 = vsel %vm948_vm4, %v5360_v54, 0.0 }
 0x8ec   : > { %v5316_v15 = vpop.xlane.xlu1 %5315  ;;  %13402 = vmatpush3.bf16.msra.mxu1 %v14268_v57 }
 0x8ed   : > { %v16566_v60 = vsub.f32 %v16470_v12, %v5329_v7  ;;  %v5332_v51 = vmul.f32 0.03125, %v5316_v15  ;;  %v5395_v25 = vsel %vm948_vm4, %v5359_v22, 0.0  ;;  %v5362_v36 = vmul.f32 %v16560_v41, %v16560_v41  ;;  %13419 = vmatprep.subr.bf16.mxu1 %v16596_v27 }
 0x8ee   : > { %5396 = vadd.xlane.f32.xlu0 %v5395_v25  ;;  %v5313_v56 = vpop.xlane.xlu0 %5312  ;;  %5399 = vadd.xlane.f32.xlu1 %v5398_v32  ;;  %v16602_v25 = vld [vmem:[%s19000_s10 + $0x6] ss:$0 sm:$0xff] }
 0x8ef   : > { %v16572_v59 = vsub.f32 %v16478_v30, %v5332_v51  ;;  %v5331_v5 = vmul.f32 0.03125, %v5313_v56  ;;  %v5361_v61 = vmul.f32 %v16566_v60, %v16566_v60  ;;  %v5404_v0 = vsel %vm948_vm4, %v5362_v36, 0.0 }
 0x8f1   : > { %v16577_v62 = vsub.f32 %v16483_v14, %v5331_v5  ;;  %v5401_v31 = vsel %vm948_vm4, %v5361_v61, 0.0  ;;  %v5364_v19 = vmul.f32 %v16572_v59, %v16572_v59 }
 0x8f2   : > { %5402 = vadd.xlane.f32.xlu0 %v5401_v31  ;;  %5405 = vadd.xlane.f32.xlu1 %v5404_v0 }
 0x8f3   : > { %v5363_v18 = vmul.f32 %v16577_v62, %v16577_v62  ;;  %v5410_v37 = vsel %vm948_vm4, %v5364_v19, 0.0 }
 0x8f5   : > { %v5407_v63 = vsel %vm948_vm4, %v5363_v18, 0.0 }
 0x8f6   : > { %5408 = vadd.xlane.f32.xlu0 %v5407_v63  ;;  %5411 = vadd.xlane.f32.xlu1 %v5410_v37 }
 0x963   : > { %v5367_v38 = vpop.xlane.xlu0 %5366 }
 0x964   : > { %v5413_v33 = vmul.f32 0.03125, %v5367_v38 }
 0x965   : > { %v5370_v42 = vpop.xlane.xlu1 %5369 }
 0x966   : > { %v5429_v45 = vadd.f32 1e-06, %v5413_v33  ;;  %v5414_v6 = vmul.f32 0.03125, %v5370_v42  ;;  %v16610_v33 = vld [vmem:[%s19000_s10 + $0x7] ss:$0 sm:$0xff] }
 0x967   : > { %v5373_v50 = vpop.xlane.xlu0 %5372 }
 0x968   : > { %14441 = vrsqrt.f32 %v5429_v45  ;;  %v5430_v4 = vadd.f32 1e-06, %v5414_v6  ;;  %v5415_v53 = vmul.f32 0.03125, %v5373_v50 }
 0x96a   : > { %14443 = vrsqrt.f32 %v5430_v4  ;;  %v5431_v28 = vadd.f32 1e-06, %v5415_v53 }
 0x96b   : > { %v5376_v40 = vpop.xlane.xlu1 %5375 }
 0x96c   : > { %14445 = vrsqrt.f32 %v5431_v28  ;;  %v5416_v54 = vmul.f32 0.03125, %v5376_v40 }
 0x96e   : > { %v5432_v20 = vadd.f32 1e-06, %v5416_v54 }
 0x96f   : > { %v5379_v7 = vpop.xlane.xlu0 %5378  ;;  %v5382_v22 = vpop.xlane.xlu1 %5381 }
 0x970   : > { %14447 = vrsqrt.f32 %v5432_v20  ;;  %v5417_v15 = vmul.f32 0.03125, %v5379_v7  ;;  %v5418_v32 = vmul.f32 0.03125, %v5382_v22 }
 0x972   : > { %v14442_v51 = vpop.eup %14441  ;;  %v5433_v36 = vadd.f32 1e-06, %v5417_v15  ;;  %v5434_v56 = vadd.f32 1e-06, %v5418_v32 }
 0x973   : > { %v5385_v5 = vpop.xlane.xlu0 %5384  ;;  %v5388_v61 = vpop.xlane.xlu1 %5387  ;;  %v5461_v31 = vmul.f32 %v14442_v51, %v16492_v35 }
 0x974   : > { %v14444_v0 = vpop.eup %14443  ;;  %14449 = vrsqrt.f32 %v5433_v36  ;;  %v5419_v19 = vmul.f32 0.03125, %v5385_v5  ;;  %v5420_v18 = vmul.f32 0.03125, %v5388_v61 }
 0x975   : > { %14451 = vrsqrt.f32 %v5434_v56  ;;  %v5462_v63 = vmul.f32 %v14444_v0, %v16495_v2  ;;  %v5483_v37 = vmul.f32 %v16602_v25, %v5461_v31 }
 0x976   : > { %v14446_v9 = vpop.eup %14445  ;;  %v5435_v57 = vadd.f32 1e-06, %v5419_v19  ;;  %v5436_v38 = vadd.f32 1e-06, %v5420_v18 }
 0x977   : > { %v5463_v42 = vmul.f32 %v14446_v9, %v16500_v17  ;;  %v5391_v35 = vpop.xlane.xlu0 %5390  ;;  %v5394_v45 = vpop.xlane.xlu1 %5393  ;;  %v5484_v6 = vmul.f32 %v16602_v25, %v5462_v63  ;;  %v5505_v2 = vadd.f32 %v16610_v33, %v5483_v37 }
 0x978   : > { %14453 = vrsqrt.f32 %v5435_v57  ;;  %v5421_v50 = vmul.f32 0.03125, %v5391_v35  ;;  %v5422_v4 = vmul.f32 0.03125, %v5394_v45  ;;  %v14270_v35 = vld [vmem:[%s18994_s4 + $0x18] sm:$0xff]  }
 0x979   : > { %14455 = vrsqrt.f32 %v5436_v38  ;;  %v5506_v53 = vadd.f32 %v16610_v33, %v5484_v6  ;;  %v5485_v20 = vmul.f32 %v16602_v25, %v5463_v42 }
 0x97a   : > { %v14448_v28 = vpop.eup %14447  ;;  %v5437_v40 = vadd.f32 1e-06, %v5421_v50  ;;  %v5438_v54 = vadd.f32 1e-06, %v5422_v4 }
 0x97b   : > { %v5464_v7 = vmul.f32 %v14448_v28, %v16509_v34  ;;  %v5397_v17 = vpop.xlane.xlu0 %5396  ;;  %v5400_v22 = vpop.xlane.xlu1 %5399  ;;  %v5521_v15 = vpack.c.bf16 %v5506_v53, %v5505_v2  ;;  %v5507_v18 = vadd.f32 %v16610_v33, %v5485_v20 }
 0x97c   : > { %14457 = vrsqrt.f32 %v5437_v40  ;;  %v5423_v32 = vmul.f32 0.03125, %v5397_v17  ;;  %v5424_v51 = vmul.f32 0.03125, %v5400_v22 }
 0x97d   : > { %v5486_v36 = vmul.f32 %v16602_v25, %v5464_v7  ;;  %14459 = vrsqrt.f32 %v5438_v54  ;;  %13403 = vmatprep.mubr.msk.bf16.mxu1 %vm948_vm4, %v5521_v15 }
 0x97e   : > { %v14450_v56 = vpop.eup %14449  ;;  %v5439_v5 = vadd.f32 1e-06, %v5423_v32  ;;  %v5440_v61 = vadd.f32 1e-06, %v5424_v51 }
 0x97f   : > { %v14452_v31 = vpop.eup %14451  ;;  %v5403_v0 = vpop.xlane.xlu0 %5402  ;;  %v5508_v34 = vadd.f32 %v16610_v33, %v5486_v36  ;;  %v5465_v63 = vmul.f32 %v14450_v56, %v16518_v29 }
 0x980   : > { %v5406_v19 = vpop.xlane.xlu1 %5405  ;;  %14461 = vrsqrt.f32 %v5439_v5  ;;  %v5425_v37 = vmul.f32 0.03125, %v5403_v0  ;;  %v5466_v57 = vmul.f32 %v14452_v31, %v16513_v21 }
 0x981   : > { %v5426_v9 = vmul.f32 0.03125, %v5406_v19  ;;  %14463 = vrsqrt.f32 %v5440_v61  ;;  %v5522_v38 = vpack.c.bf16 %v5508_v34, %v5507_v18  ;;  %v5487_v42 = vmul.f32 %v16602_v25, %v5465_v63 }
 0x982   : > { %v14454_v45 = vpop.eup %14453  ;;  %v5441_v6 = vadd.f32 1e-06, %v5425_v37  ;;  %v5488_v4 = vmul.f32 %v16602_v25, %v5466_v57 }
 0x983   : > { %v5442_v50 = vadd.f32 1e-06, %v5426_v9  ;;  %v14456_v2 = vpop.eup %14455  ;;  %v5409_v29 = vpop.xlane.xlu0 %5408  ;;  %13404 = vmatmul.mubr.msk.bf16.vlgmr.msra.gmra.mrb[168].mxu1 %vm948_vm4, %v5522_v38  ;;  %v5509_v21 = vadd.f32 %v16610_v33, %v5487_v42  ;;  %v5467_v28 = vmul.f32 %v14454_v45, %v16530_v44 }
 0x984   : > { %v5412_v53 = vpop.xlane.xlu1 %5411  ;;  %14465 = vrsqrt.f32 %v5441_v6  ;;  %v5427_v40 = vmul.f32 0.03125, %v5409_v29  ;;  %v5510_v20 = vadd.f32 %v16610_v33, %v5488_v4  ;;  %13420 = vmatpush3.bf16.msra.mxu1 %v16596_v27  ;;  %v5468_v7 = vmul.f32 %v14456_v2, %v16524_v8 }
 0x985   : > { %v5428_v54 = vmul.f32 0.03125, %v5412_v53  ;;  %14467 = vrsqrt.f32 %v5442_v50  ;;  %v5489_v17 = vmul.f32 %v16602_v25, %v5467_v28  ;;  %13421 = vmatprep.subr.bf16.mxu1 %v14270_v35 }
 0x986   : > { %v14458_v22 = vpop.eup %14457  ;;  %v5443_v15 = vadd.f32 1e-06, %v5427_v40  ;;  %v5523_v51 = vpack.c.bf16 %v5510_v20, %v5509_v21  ;;  %v5490_v44 = vmul.f32 %v16602_v25, %v5468_v7 }
 0x987   : > { %v5444_v32 = vadd.f32 1e-06, %v5428_v54  ;;  %v14460_v36 = vpop.eup %14459  ;;  %v5511_v56 = vadd.f32 %v16610_v33, %v5489_v17  ;;  %v5469_v5 = vmul.f32 %v14458_v22, %v16542_v52 }
 0x988   : > { %14469 = vrsqrt.f32 %v5443_v15  ;;  %13407 = vmatprep.mubr.msk.bf16.mxu1 %vm948_vm4, %v5523_v51  ;;  %v5470_v27 = vmul.f32 %v14460_v36, %v16536_v13  ;;  %13422 = vmatpush3.bf16.msra.mxu1 %v14270_v35  ;;  %v5512_v8 = vadd.f32 %v16610_v33, %v5490_v44 }
 0x989   : > { %14471 = vrsqrt.f32 %v5444_v32  ;;  %v5491_v61 = vmul.f32 %v16602_v25, %v5469_v5 }
 0x98a   : > { %v14462_v31 = vpop.eup %14461  ;;  %v5492_v0 = vmul.f32 %v16602_v25, %v5470_v27  ;;  %v5524_v18 = vpack.c.bf16 %v5512_v8, %v5511_v56 }
 0x98b   : > { %v14464_v19 = vpop.eup %14463  ;;  %v5513_v34 = vadd.f32 %v16610_v33, %v5491_v61  ;;  %v5471_v52 = vmul.f32 %v14462_v31, %v16554_v26 }
 0x98c   : > { %v5514_v63 = vadd.f32 %v16610_v33, %v5492_v0  ;;  %v5472_v37 = vmul.f32 %v14464_v19, %v16548_v58  ;;  %13408 = vmatmul.mubr.msk.bf16.gmra.mrb[172].mxu1 %vm948_vm4, %v5524_v18 }
 0x98d   : > { %v5493_v13 = vmul.f32 %v16602_v25, %v5471_v52 }
 0x98e   : > { %v14466_v9 = vpop.eup %14465  ;;  %v5525_v57 = vpack.c.bf16 %v5514_v63, %v5513_v34  ;;  %v5494_v38 = vmul.f32 %v16602_v25, %v5472_v37 }
 0x98f   : > { %v14468_v42 = vpop.eup %14467  ;;  %v5515_v35 = vadd.f32 %v16610_v33, %v5493_v13  ;;  %v5473_v45 = vmul.f32 %v14466_v9, %v16566_v60 }
 0x990   : > { %13411 = vmatprep.mubr.msk.bf16.mxu1 %vm948_vm4, %v5525_v57  ;;  %v5516_v26 = vadd.f32 %v16610_v33, %v5494_v38  ;;  %v5474_v6 = vmul.f32 %v14468_v42, %v16560_v41 }
 0x991   : > { %v5495_v58 = vmul.f32 %v16602_v25, %v5473_v45 }
 0x992   : > { %v14470_v50 = vpop.eup %14469  ;;  %v5526_v4 = vpack.c.bf16 %v5516_v26, %v5515_v35  ;;  %v5496_v2 = vmul.f32 %v16602_v25, %v5474_v6 }
 0x993   : > { %v14472_v29 = vpop.eup %14471  ;;  %v5517_v53 = vadd.f32 %v16610_v33, %v5495_v58  ;;  %v5475_v21 = vmul.f32 %v14470_v50, %v16577_v62  ;;  %v14272_v62 = vld [vmem:[%s18995_s5 + $0x8] sm:$0xff]  }
 0x994   : > { %v5518_v28 = vadd.f32 %v16610_v33, %v5496_v2  ;;  %v5476_v60 = vmul.f32 %v14472_v29, %v16572_v59  ;;  %13412 = vmatmul.mubr.msk.bf16.gmra.mrb[176].mxu1 %vm948_vm4, %v5526_v4  ;;  %v14271_v59 = vld [vmem:[%s18995_s5] sm:$0xff]  }
 0x995   : > { %v5497_v40 = vmul.f32 %v16602_v25, %v5475_v21  ;;  %13439 = vmatprep.subr.bf16.mxu0 %v14271_v59 }
 0x996   : > { %v5527_v41 = vpack.c.bf16 %v5518_v28, %v5517_v53  ;;  %v5498_v54 = vmul.f32 %v16602_v25, %v5476_v60  ;;  %13440 = vmatpush3.bf16.msra.mxu0 %v14271_v59  ;;  %v12281_v25 = vld [vmem:[%s19000_s10 + $0x4] ss:$0 sm:$0xff] }
 0x997   : > { %v5519_v20 = vadd.f32 %v16610_v33, %v5497_v40  ;;  %13441 = vmatprep.subr.bf16.mxu0 %v14272_v62 }
 0x998   : > { %13415 = vmatprep.mubr.msk.bf16.mxu1 %vm948_vm4, %v5527_v41  ;;  %v5520_v7 = vadd.f32 %v16610_v33, %v5498_v54 }
 0x99a   : > { %v5528_v17 = vpack.c.bf16 %v5520_v7, %v5519_v20  ;;  %13442 = vmatpush3.bf16.msra.mxu0 %v14272_v62 }
 0x99c   : > { %13416 = vmatmul.mubr.msk.bf16.gmra.mrb[180].mxu1 %vm948_vm4, %v5528_v17 }
 0xa56   : > { %v13405_v33 = vpop.f32.mrb[168].mxu1 }
 0xa57   : > { %v5614_v22 = vadd.f32 %v13405_v33, %v12281_v25  ;;  %v5605_v15 = vpop.f32.mrb[169].mxu1 }
 0xa58   : > { %v5606_v32 = vadd.f32 %v12281_v25, %v5605_v15  ;;  %v13406_v51 = vpop.f32.mrb[170].mxu1 }
 0xa59   : > { %v5617_v36 = vadd.f32 %v13406_v51, %v12281_v25  ;;  %v5608_v44 = vpop.f32.mrb[171].mxu1  ;;  %v5670_v5 = vmax.f32 %v5614_v22, 0.0 }
 0xa5a   : > { %v5609_v56 = vadd.f32 %v12281_v25, %v5608_v44  ;;  %v5668_v8 = vmax.f32 %v5606_v32, 0.0 }
 0xa5b   : > { %v5671_v27 = vmax.f32 %v5617_v36, 0.0 }
 0xa5c   : > { %v5669_v61 = vmax.f32 %v5609_v56, 0.0 }
 0xa5d   : > { %v5685_v31 = vpack.c.bf16 %v5671_v27, %v5670_v5 }
 0xa5e   : > { %v5684_v0 = vpack.c.bf16 %v5669_v61, %v5668_v8  ;;  %v19218_v8 = vld [vmem:[#allocation2_spill] sm:$0xff] }
 0xa5f   : > { %v13409_v19 = vpop.f32.mrb[172].mxu1  ;;  %v549_v61 = vld [vmem:[%s18996_s6 + $0x6] sm:$0x3] }
 0xa60   : > { %13423 = vmatprep.mubr.msk.bf16.mxu1 %vm948_vm4, %v5684_v0  ;;  %v5630_v18 = vadd.f32 %v13409_v19, %v12281_v25  ;;  %v5621_v34 = vpop.f32.mrb[173].mxu1  ;;  %14133 = vmatprep.subr.msk.bf16.mxu1 %vm685_vm0, %v549_v61  ;;  %v19219_v19 = vld [vmem:[#allocation3_spill] sm:$0xff] }
 0xa61   : > { %13424 = vmatmul.mubr.msk.bf16.vlgmr.msra.gmra.mrb[184].mxu1 %vm948_vm4, %v5685_v31  ;;  %v5622_v52 = vadd.f32 %v12281_v25, %v5621_v34  ;;  %v13410_v63 = vpop.f32.mrb[174].mxu1  ;;  %v6083_v31 = vsel %vm685_vm0, %v549_v61, 0  ;;  %v19221_v34 = vld [vmem:[#allocation11_spill] sm:$0xff] }
 0xa62   : > { %v5633_v37 = vadd.f32 %v13410_v63, %v12281_v25  ;;  %v5624_v13 = vpop.f32.mrb[175].mxu1  ;;  %v5674_v57 = vmax.f32 %v5630_v18, 0.0  ;;  %13460 = vmatpush3.bf16.msra.mxu1 %v6083_v31  ;;  %v19220_v18 = vld [vmem:[#allocation8_spill] sm:$0xff]  ;;  %v19223_v63 = vld [vmem:[#allocation19_spill] sm:$0xff] }
 0xa63   : > { %v5625_v9 = vadd.f32 %v12281_v25, %v5624_v13  ;;  %v5672_v42 = vmax.f32 %v5622_v52, 0.0  ;;  %v19222_v52 = vld [vmem:[#allocation14_spill] sm:$0xff]  ;;  %v19225_v13 = vld [vmem:[#allocation23_spill] sm:$0xff] }
 0xa64   : > { %v5675_v38 = vmax.f32 %v5633_v37, 0.0  ;;  %v19224_v37 = vld [vmem:[#allocation20_spill] sm:$0xff] }
 0xa65   : > { %v5673_v35 = vmax.f32 %v5625_v9, 0.0 }
 0xa66   : > { %v5687_v45 = vpack.c.bf16 %v5675_v38, %v5674_v57 }
 0xa67   : > { %v5686_v26 = vpack.c.bf16 %v5673_v35, %v5672_v42  ;;  %v13413_v6 = vpop.f32.mrb[176].mxu1  ;;  %v12302_v42 = vld [vmem:[%s19000_s10 + $0x5] ss:$0 sm:$0xff] }
 0xa68   : > { %v5646_v58 = vadd.f32 %v13413_v6, %v12281_v25  ;;  %v5637_v50 = vpop.f32.mrb[177].mxu1 }
 0xa69   : > { %v5638_v4 = vadd.f32 %v12281_v25, %v5637_v50  ;;  %v13414_v2 = vpop.f32.mrb[178].mxu1  ;;  %13427 = vmatprep.mubr.msk.bf16.mxu1 %vm948_vm4, %v5686_v26 }
 0xa6a   : > { %v5649_v29 = vadd.f32 %v13414_v2, %v12281_v25  ;;  %v5640_v53 = vpop.f32.mrb[179].mxu1  ;;  %13428 = vmatmul.mubr.msk.bf16.gmra.mrb[188].mxu1 %vm948_vm4, %v5687_v45  ;;  %v5678_v28 = vmax.f32 %v5646_v58, 0.0 }
 0xa6b   : > { %v5641_v21 = vadd.f32 %v12281_v25, %v5640_v53  ;;  %v5676_v40 = vmax.f32 %v5638_v4, 0.0 }
 0xa6c   : > { %v5679_v60 = vmax.f32 %v5649_v29, 0.0 }
 0xa6d   : > { %v5677_v41 = vmax.f32 %v5641_v21, 0.0 }
 0xa6e   : > { %v5689_v54 = vpack.c.bf16 %v5679_v60, %v5678_v28 }
 0xa6f   : > { %v5688_v20 = vpack.c.bf16 %v5677_v41, %v5676_v40  ;;  %v13417_v7 = vpop.f32.mrb[180].mxu1 }
 0xa70   : > { %v5662_v17 = vadd.f32 %v13417_v7, %v12281_v25  ;;  %v5653_v59 = vpop.f32.mrb[181].mxu1 }
 0xa71   : > { %v5654_v62 = vadd.f32 %v12281_v25, %v5653_v59  ;;  %v13418_v33 = vpop.f32.mrb[182].mxu1  ;;  %13431 = vmatprep.mubr.msk.bf16.mxu1 %vm948_vm4, %v5688_v20 }
 0xa72   : > { %v5665_v22 = vadd.f32 %v13418_v33, %v12281_v25  ;;  %v5656_v15 = vpop.f32.mrb[183].mxu1  ;;  %13432 = vmatmul.mubr.msk.bf16.gmra.mrb[192].mxu1 %vm948_vm4, %v5689_v54  ;;  %v5682_v51 = vmax.f32 %v5662_v17, 0.0 }
 0xa73   : > { %v5657_v32 = vadd.f32 %v12281_v25, %v5656_v15  ;;  %v5680_v44 = vmax.f32 %v5654_v62, 0.0  ;;  %v548_v25 = vld [vmem:[%s18996_s6 + $0x4] sm:$0x3] }
 0xa74   : > { %v5683_v36 = vmax.f32 %v5665_v22, 0.0  ;;  %14134 = vmatprep.subr.msk.bf16.mxu1 %vm685_vm0, %v548_v25  ;;  %v6207_v0 = vsel %vm685_vm0, %v548_v25, 0 }
 0xa75   : > { %v5681_v56 = vmax.f32 %v5657_v32, 0.0 }
 0xa76   : > { %v5691_v5 = vpack.c.bf16 %v5683_v36, %v5682_v51 }
 0xa77   : > { %v5690_v27 = vpack.c.bf16 %v5681_v56, %v5680_v44 }
 0xa79   : > { %13435 = vmatprep.mubr.msk.bf16.mxu1 %vm948_vm4, %v5690_v27 }
 0xa7a   : > { %13436 = vmatmul.mubr.msk.bf16.gmra.mrb[196].mxu1 %vm948_vm4, %v5691_v5 }
 0xa7b   : > { %13461 = vmatprep.mubr.msk.bf16.mxu1 %vm660_vm1, %v19218_v8 }
 0xa82   : > { %13462 = vmatmul.mubr.msk.bf16.vlgmr.msra.gmra.mrb[200].mxu1 %vm660_vm1, %v19219_v19 }
 0xa83   : > { %13478 = vmatpush3.bf16.msra.mxu1 %v6207_v0  ;;  %13465 = vmatprep.mubr.msk.bf16.mxu1 %vm660_vm1, %v19220_v18 }
 0xa84   : > { %13521 = vmatprep.subr.bf16.mxu1 %v19189_v47 }
 0xa8a   : > { %13466 = vmatmul.mubr.msk.bf16.gmra.mrb[204].mxu1 %vm660_vm1, %v19221_v34 }
 0xa8b   : > { %13469 = vmatprep.mubr.msk.bf16.mxu1 %vm660_vm1, %v19222_v52 }
 0xa92   : > { %13470 = vmatmul.mubr.msk.bf16.gmra.mrb[208].mxu1 %vm660_vm1, %v19223_v63 }
 0xa93   : > { %13473 = vmatprep.mubr.msk.bf16.mxu1 %vm660_vm1, %v19224_v37 }
 0xa9a   : > { %13474 = vmatmul.mubr.msk.bf16.gmra.mrb[212].mxu1 %vm660_vm1, %v19225_v13 }
 0xb34   : > { %v13425_v9 = vpop.f32.mrb[184].mxu1 }
 0xb35   : > { %v5827_v57 = vadd.f32 %v13425_v9, %v16402_v1  ;;  %v5762_v38 = vpop.f32.mrb[185].mxu1 }
 0xb36   : > { %v5825_v35 = vadd.f32 %v5762_v38, %v16398_v39  ;;  %v13426_v45 = vpop.f32.mrb[186].mxu1 }
 0xb37   : > { %v5828_v26 = vadd.f32 %v13426_v45, %v16413_v24  ;;  %v5765_v6 = vpop.f32.mrb[187].mxu1  ;;  %v5849_v50 = vadd.f32 %v12302_v42, %v5827_v57 }
 0xb38   : > { %v5826_v58 = vadd.f32 %v5765_v6, %v16406_v55  ;;  %v5847_v2 = vadd.f32 %v12302_v42, %v5825_v35 }
 0xb39   : > { %v5850_v4 = vadd.f32 %v12302_v42, %v5828_v26  ;;  %v16746_v26 = vld [vmem:[%s14910_s15] sm:$0xff] }
 0xb3a   : > { %v5848_v29 = vadd.f32 %v12302_v42, %v5826_v58  ;;  %19226 = vst [vmem:[#allocation45_spill] sm:$0xff] %v16746_v26 }
 0xb3b   : > { %v5864_v53 = vpack.c.bf16 %v5850_v4, %v5849_v50  ;;  %v16757_v4 = vld [vmem:[%s14910_s15 + $0x18] sm:$0xff] }
 0xb3c   : > { %v5863_v21 = vpack.c.bf16 %v5848_v29, %v5847_v2  ;;  %19229 = vst [vmem:[#allocation43_spill] sm:$0xff] %v16757_v4  ;;  %v19062_v2 = vsub.f32 1.0, %v16757_v4 }
 0xb3d   : > { %v13429_v1 = vpop.f32.mrb[188].mxu1 }
 0xb3e   : > { %13443 = vmatprep.mubr.msk.bf16.mxu0 %vm948_vm4, %v5863_v21  ;;  %v5831_v28 = vadd.f32 %v13429_v1, %v16435_v48  ;;  %v5778_v60 = vpop.f32.mrb[189].mxu1  ;;  %v16764_v21 = vld [vmem:[%s14910_s15 + $0x8] sm:$0xff] }
 0xb3f   : > { %13444 = vmatmul.mubr.msk.bf16.vlgmr.msra.gmra.mrb[152].mxu0 %vm948_vm4, %v5864_v53  ;;  %v5829_v39 = vadd.f32 %v5778_v60, %v16422_v11  ;;  %v13430_v24 = vpop.f32.mrb[190].mxu1  ;;  %19231 = vst [vmem:[#allocation49_spill] sm:$0xff] %v16764_v21  ;;  %v19064_v1 = vsub.f32 1.0, %v16764_v21  ;;  %v19233_v60 = vld [vmem:[#allocation7_spill] sm:$0xff] }
 0xb40   : > { %v5832_v40 = vadd.f32 %v13430_v24, %v16430_v3  ;;  %v5781_v55 = vpop.f32.mrb[191].mxu1  ;;  %v5853_v54 = vadd.f32 %v12302_v42, %v5831_v28 }
 0xb41   : > { %v5830_v41 = vadd.f32 %v5781_v55, %v16425_v46  ;;  %v5851_v7 = vadd.f32 %v12302_v42, %v5829_v39  ;;  %v16772_v39 = vmul.f32 %v16757_v4, %v19233_v60  ;;  %v19256_v60 = vld [vmem:[#allocation12_spill] sm:$0xff] }
 0xb42   : > { %v5854_v20 = vadd.f32 %v12302_v42, %v5832_v40  ;;  %v19235_v40 = vld [vmem:[#allocation4_spill] sm:$0xff] }
 0xb43   : > { %v5852_v17 = vadd.f32 %v12302_v42, %v5830_v41  ;;  %19234 = vst [vmem:[#allocation50_spill] sm:$0xff] %v16772_v39  ;;  %v16776_v55 = vmul.f32 %v16746_v26, %v19235_v40  ;;  %v19237_v41 = vld [vmem:[#allocation5_spill] sm:$0xff] }
 0xb44   : > { %v5866_v59 = vpack.c.bf16 %v5854_v20, %v5853_v54  ;;  %v16780_v54 = vmul.f32 %v16764_v21, %v19237_v41 }
 0xb45   : > { %v5865_v62 = vpack.c.bf16 %v5852_v17, %v5851_v7  ;;  %v13433_v33 = vpop.f32.mrb[192].mxu1  ;;  %19236 = vst [vmem:[#allocation48_spill] sm:$0xff] %v16776_v55  ;;  %v19240_v17 = vld [vmem:[#allocation6_spill] sm:$0xff] }
 0xb46   : > { %v5835_v48 = vadd.f32 %v13433_v33, %v16459_v43  ;;  %v5794_v22 = vpop.f32.mrb[193].mxu1  ;;  %19238 = vst [vmem:[#allocation52_spill] sm:$0xff] %v16780_v54 }
 0xb47   : > { %v5833_v15 = vadd.f32 %v5794_v22, %v16446_v49  ;;  %v13434_v32 = vpop.f32.mrb[194].mxu1  ;;  %13447 = vmatprep.mubr.msk.bf16.mxu0 %vm948_vm4, %v5865_v62 }
 0xb48   : > { %v5836_v11 = vadd.f32 %v13434_v32, %v16454_v16  ;;  %v5797_v3 = vpop.f32.mrb[195].mxu1  ;;  %13448 = vmatmul.mubr.msk.bf16.gmra.mrb[156].mxu0 %vm948_vm4, %v5866_v59  ;;  %v5857_v51 = vadd.f32 %v12302_v42, %v5835_v48 }
 0xb49   : > { %v5834_v46 = vadd.f32 %v5797_v3, %v16449_v10  ;;  %v5855_v44 = vadd.f32 %v12302_v42, %v5833_v15 }
 0xb4a   : > { %v5858_v36 = vadd.f32 %v12302_v42, %v5836_v11 }
 0xb4b   : > { %v5856_v56 = vadd.f32 %v12302_v42, %v5834_v46 }
 0xb4c   : > { %v5868_v5 = vpack.c.bf16 %v5858_v36, %v5857_v51  ;;  %v16806_v51 = vld [vmem:[%s14910_s15 + $0x20] sm:$0xff] }
 0xb4d   : > { %v5867_v27 = vpack.c.bf16 %v5856_v56, %v5855_v44  ;;  %v13437_v43 = vpop.f32.mrb[196].mxu1  ;;  %19242 = vst [vmem:[#allocation26_spill] sm:$0xff] %v16806_v51  ;;  %v19060_v36 = vsub.f32 1.0, %v16806_v51 }
 0xb4e   : > { %v5839_v61 = vadd.f32 %v13437_v43, %v16483_v14  ;;  %v5810_v49 = vpop.f32.mrb[197].mxu1 }
 0xb4f   : > { %v5837_v25 = vadd.f32 %v5810_v49, %v16470_v12  ;;  %v13438_v31 = vpop.f32.mrb[198].mxu1  ;;  %13451 = vmatprep.mubr.msk.bf16.mxu0 %vm948_vm4, %v5867_v27 }
 0xb50   : > { %v5840_v16 = vadd.f32 %v13438_v31, %v16478_v30  ;;  %v5813_v0 = vpop.f32.mrb[199].mxu1  ;;  %13452 = vmatmul.mubr.msk.bf16.gmra.mrb[160].mxu0 %vm948_vm4, %v5868_v5  ;;  %v5861_v9 = vadd.f32 %v12302_v42, %v5839_v61  ;;  %v16743_v30 = vld [vmem:[%s19002_s12] ss:$0 sm:$0xff]  ;;  %v16813_v5 = vld [vmem:[%s14910_s15 + $0x30] sm:$0xff]  ;;  %v16817_v61 = vld [vmem:[%s14910_s15 + $0x38] sm:$0xff] }
 0xb51   : > { %v5838_v10 = vadd.f32 %v5813_v0, %v16473_v23  ;;  %v5859_v38 = vadd.f32 %v12302_v42, %v5837_v25  ;;  %v19065_v23 = vsub.f32 1.0, %v16746_v26  ;;  %19244 = vst [vmem:[#allocation29_spill] sm:$0xff] %v16813_v5  ;;  %v19056_v27 = vsub.f32 1.0, %v16813_v5  ;;  %19245 = vst [vmem:[#allocation28_spill] sm:$0xff] %v16817_v61 }
 0xb52   : > { %v5862_v57 = vadd.f32 %v12302_v42, %v5840_v16  ;;  %v19054_v49 = vsub.f32 1.0, %v16817_v61  ;;  %v16824_v16 = vld [vmem:[%s14910_s15 + $0x28] sm:$0xff] }
 0xb53   : > { %v5860_v14 = vadd.f32 %v12302_v42, %v5838_v10  ;;  %v16753_v42 = vld [vmem:[%s14910_s15 + $0x10] sm:$0xff]  ;;  %19247 = vst [vmem:[#allocation33_spill] sm:$0xff] %v16824_v16  ;;  %v19057_v0 = vsub.f32 1.0, %v16824_v16 }
 0xb54   : > { %v5870_v35 = vpack.c.bf16 %v5862_v57, %v5861_v9  ;;  %19228 = vst [vmem:[#allocation47_spill] sm:$0xff] %v16753_v42  ;;  %v19063_v58 = vsub.f32 1.0, %v16753_v42  ;;  %v16790_v59 = vmul.f32 %v16753_v42, %v19240_v17  ;;  %v19249_v9 = vld [vmem:[#allocation13_spill] sm:$0xff] }
 0xb55   : > { %v5869_v12 = vpack.c.bf16 %v5860_v14, %v5859_v38  ;;  %v16833_v57 = vmul.f32 %v16817_v61, %v19249_v9  ;;  %v19251_v14 = vld [vmem:[#allocation9_spill] sm:$0xff] }
 0xb56   : > { %19241 = vst [vmem:[#allocation53_spill] sm:$0xff] %v16790_v59 }
 0xb57   : > { %13455 = vmatprep.mubr.msk.bf16.mxu0 %vm948_vm4, %v5869_v12  ;;  %19250 = vst [vmem:[#allocation31_spill] sm:$0xff] %v16833_v57 }
 0xb58   : > { %13456 = vmatmul.mubr.msk.bf16.gmra.mrb[164].mxu0 %vm948_vm4, %v5870_v35  ;;  %v16838_v35 = vmul.f32 %v16806_v51, %v19251_v14 }
 0xb5a   : > { %19252 = vst [vmem:[#allocation34_spill] sm:$0xff] %v16838_v35 }
 0xc12   : > { %v13445_v45 = vpop.f32.mrb[152].mxu0 }
 0xc13   : > { %v16750_v6 = vadd.f32 %v13445_v45, %v16743_v30  ;;  %v5947_v50 = vpop.f32.mrb[153].mxu0 }
 0xc14   : > { %v16761_v29 = vadd.f32 %v16743_v30, %v5947_v50  ;;  %v13446_v53 = vpop.f32.mrb[154].mxu0  ;;  %v19254_v50 = vld [vmem:[#allocation10_spill] sm:$0xff] }
 0xc15   : > { %19227 = vst [vmem:[#allocation42_spill] sm:$0xff] %v16750_v6  ;;  %v16768_v28 = vadd.f32 %v13446_v53, %v16743_v30  ;;  %v5950_v24 = vpop.f32.mrb[155].mxu0  ;;  %v6044_v62 = vmul.f32 %v19063_v58, %v16750_v6  ;;  %v16848_v53 = vmul.f32 %v16824_v16, %v19254_v50 }
 0xc16   : > { %19230 = vst [vmem:[#allocation44_spill] sm:$0xff] %v16761_v29  ;;  %v6042_v20 = vmul.f32 %v19065_v23, %v16761_v29  ;;  %v16786_v7 = vadd.f32 %v16743_v30, %v5950_v24  ;;  %v16852_v24 = vmul.f32 %v16813_v5, %v19256_v60  ;;  %v16948_v23 = vld [vmem:[%s14910_s15 + $0x68] sm:$0xff] }
 0xc17   : > { %19232 = vst [vmem:[#allocation46_spill] sm:$0xff] %v16768_v28  ;;  %v6045_v33 = vmul.f32 %v19062_v2, %v16768_v28  ;;  %v6060_v11 = vadd.f32 %v6044_v62, %v16790_v59  ;;  %19255 = vst [vmem:[#allocation36_spill] sm:$0xff] %v16848_v53  ;;  %v16941_v2 = vld [vmem:[%s14910_s15 + $0x78] sm:$0xff] }
 0xc18   : > { %19239 = vst [vmem:[#allocation51_spill] sm:$0xff] %v16786_v7  ;;  %v6043_v48 = vmul.f32 %v19064_v1, %v16786_v7  ;;  %v6058_v15 = vadd.f32 %v6042_v20, %v16776_v55  ;;  %19257 = vst [vmem:[#allocation35_spill] sm:$0xff] %v16852_v24 }
 0xc19   : > { %v6061_v22 = vadd.f32 %v6045_v33, %v16772_v39  ;;  %19279 = vst [vmem:[#allocation55_spill] sm:$0xff] %v16948_v23 }
 0xc1a   : > { %v6059_v32 = vadd.f32 %v6043_v48, %v16780_v54 }
 0xc1b   : > { %v13449_v46 = vpop.f32.mrb[156].mxu0  ;;  %v6075_v44 = vpack.c.bf16 %v6061_v22, %v6060_v11  ;;  %v16867_v22 = vld [vmem:[%s14910_s15 + $0x40] sm:$0xff] }
 0xc1c   : > { %v6074_v3 = vpack.c.bf16 %v6059_v32, %v6058_v15  ;;  %v16810_v56 = vadd.f32 %v13449_v46, %v16743_v30  ;;  %v5963_v43 = vpop.f32.mrb[157].mxu0  ;;  %19258 = vst [vmem:[#allocation38_spill] sm:$0xff] %v16867_v22  ;;  %v19055_v15 = vsub.f32 1.0, %v16867_v22 }
 0xc1d   : > { %v16821_v25 = vadd.f32 %v16743_v30, %v5963_v43  ;;  %v13450_v31 = vpop.f32.mrb[158].mxu0  ;;  %v16879_v43 = vld [vmem:[%s14910_s15 + $0x58] sm:$0xff] }
 0xc1e   : > { %19243 = vst [vmem:[#allocation27_spill] sm:$0xff] %v16810_v56  ;;  %13479 = vmatprep.mubr.msk.bf16.mxu1 %vm660_vm1, %v6074_v3  ;;  %v16829_v10 = vadd.f32 %v13450_v31, %v16743_v30  ;;  %v5966_v38 = vpop.f32.mrb[159].mxu0  ;;  %v6048_v40 = vmul.f32 %v19056_v27, %v16810_v56  ;;  %v16875_v3 = vld [vmem:[%s14910_s15 + $0x50] sm:$0xff]  ;;  %19261 = vst [vmem:[#allocation39_spill] sm:$0xff] %v16879_v43  ;;  %v19059_v31 = vsub.f32 1.0, %v16879_v43 }
 0xc1f   : > { %19246 = vst [vmem:[#allocation30_spill] sm:$0xff] %v16821_v25  ;;  %13480 = vmatmul.mubr.msk.bf16.vlgmr.msra.gmra.mrb[200].mxu1 %vm660_vm1, %v6075_v44  ;;  %v6046_v12 = vmul.f32 %v19060_v36, %v16821_v25  ;;  %v16844_v45 = vadd.f32 %v16743_v30, %v5966_v38  ;;  %19260 = vst [vmem:[#allocation40_spill] sm:$0xff] %v16875_v3  ;;  %v19058_v46 = vsub.f32 1.0, %v16875_v3  ;;  %v16937_v36 = vld [vmem:[%s14910_s15 + $0x70] sm:$0xff] }
 0xc20   : > { %19248 = vst [vmem:[#allocation32_spill] sm:$0xff] %v16829_v10  ;;  %v6049_v41 = vmul.f32 %v19054_v49, %v16829_v10  ;;  %v6064_v32 = vadd.f32 %v6048_v40, %v16852_v24  ;;  %v19267_v49 = vld [vmem:[#allocation15_spill] sm:$0xff] }
 0xc21   : > { %19253 = vst [vmem:[#allocation37_spill] sm:$0xff] %v16844_v45  ;;  %v6047_v20 = vmul.f32 %v19057_v0, %v16844_v45  ;;  %v6062_v62 = vadd.f32 %v6046_v12, %v16838_v35  ;;  %v16886_v12 = vld [vmem:[%s14910_s15 + $0x48] sm:$0xff]  ;;  %v16929_v0 = vld [vmem:[%s14910_s15 + $0x60] sm:$0xff] }
 0xc22   : > { %v6065_v17 = vadd.f32 %v6049_v41, %v16833_v57  ;;  %19263 = vst [vmem:[#allocation4_spill] sm:$0xff] %v16886_v12  ;;  %v19061_v50 = vsub.f32 1.0, %v16886_v12  ;;  %v19265_v41 = vld [vmem:[#allocation18_spill] sm:$0xff] }
 0xc23   : > { %v6063_v33 = vadd.f32 %v6047_v20, %v16848_v53  ;;  %v13453_v48 = vpop.f32.mrb[160].mxu0  ;;  %v16894_v20 = vmul.f32 %v16879_v43, %v19265_v41  ;;  %19274 = vst [vmem:[#allocation18_spill] sm:$0xff] %v16929_v0 }
 0xc24   : > { %v16872_v11 = vadd.f32 %v13453_v48, %v16743_v30  ;;  %v5979_v44 = vpop.f32.mrb[161].mxu0  ;;  %v6077_v60 = vpack.c.bf16 %v6065_v17, %v6064_v32  ;;  %v19270_v17 = vld [vmem:[#allocation16_spill] sm:$0xff] }
 0xc25   : > { %v6076_v9 = vpack.c.bf16 %v6063_v33, %v6062_v62  ;;  %v16883_v38 = vadd.f32 %v16743_v30, %v5979_v44  ;;  %v13454_v14 = vpop.f32.mrb[162].mxu0  ;;  %19266 = vst [vmem:[#allocation6_spill] sm:$0xff] %v16894_v20  ;;  %v16898_v62 = vmul.f32 %v16867_v22, %v19267_v49  ;;  %v16908_v32 = vmul.f32 %v16886_v12, %v19270_v17 }
 0xc26   : > { %19259 = vst [vmem:[#allocation41_spill] sm:$0xff] %v16872_v11  ;;  %v16890_v40 = vadd.f32 %v13454_v14, %v16743_v30  ;;  %v5982_v48 = vpop.f32.mrb[163].mxu0  ;;  %v19272_v14 = vld [vmem:[#allocation17_spill] sm:$0xff]  ;;  %v6052_v49 = vmul.f32 %v19058_v46, %v16872_v11  ;;  %19276 = vst [vmem:[#allocation16_spill] sm:$0xff] %v16937_v36 }
 0xc27   : > { %19262 = vst [vmem:[#allocation7_spill] sm:$0xff] %v16883_v38  ;;  %19268 = vst [vmem:[#allocation13_spill] sm:$0xff] %v16898_v62  ;;  %v6050_v33 = vmul.f32 %v19055_v15, %v16883_v38  ;;  %v16904_v44 = vadd.f32 %v16743_v30, %v5982_v48  ;;  %13483 = vmatprep.mubr.msk.bf16.mxu1 %vm660_vm1, %v6076_v9  ;;  %v16913_v41 = vmul.f32 %v16875_v3, %v19272_v14 }
 0xc28   : > { %19264 = vst [vmem:[#allocation5_spill] sm:$0xff] %v16890_v40  ;;  %19271 = vst [vmem:[#allocation10_spill] sm:$0xff] %v16908_v32  ;;  %v6053_v48 = vmul.f32 %v19059_v31, %v16890_v40  ;;  %13484 = vmatmul.mubr.msk.bf16.gmra.mrb[204].mxu1 %vm660_vm1, %v6077_v60 }
 0xc29   : > { %19269 = vst [vmem:[#allocation9_spill] sm:$0xff] %v16904_v44  ;;  %19273 = vst [vmem:[#allocation12_spill] sm:$0xff] %v16913_v41  ;;  %v6051_v17 = vmul.f32 %v19061_v50, %v16904_v44  ;;  %v6066_v14 = vadd.f32 %v6050_v33, %v16898_v62  ;;  %v6068_v31 = vadd.f32 %v6052_v49, %v16913_v41  ;;  %v19283_v41 = vld [vmem:[#allocation21_spill] sm:$0xff] }
 0xc2a   : > { %v6069_v9 = vadd.f32 %v6053_v48, %v16894_v20  ;;  %19277 = vst [vmem:[#allocation17_spill] sm:$0xff] %v16941_v2  ;;  %v19281_v20 = vld [vmem:[#allocation25_spill] sm:$0xff] }
 0xc2b   : > { %v6067_v15 = vadd.f32 %v6051_v17, %v16908_v32  ;;  %v13457_v27 = vpop.f32.mrb[164].mxu0  ;;  %v16956_v50 = vmul.f32 %v16941_v2, %v19281_v20  ;;  %v19289_v20 = vld [vmem:[#allocation24_spill] sm:$0xff] }
 0xc2c   : > { %v16934_v60 = vadd.f32 %v13457_v27, %v16743_v30  ;;  %v5995_v48 = vpop.f32.mrb[165].mxu0  ;;  %v6079_v27 = vpack.c.bf16 %v6069_v9, %v6068_v31  ;;  %v19287_v31 = vld [vmem:[#allocation22_spill] sm:$0xff]  ;;  %v16975_v9 = vmul.f32 %v16937_v36, %v19289_v20 }
 0xc2d   : > { %v6078_v17 = vpack.c.bf16 %v6067_v15, %v6066_v14  ;;  %v16945_v58 = vadd.f32 %v16743_v30, %v5995_v48  ;;  %v13458_v1 = vpop.f32.mrb[166].mxu0  ;;  %19282 = vst [vmem:[#allocation25_spill] sm:$0xff] %v16956_v50  ;;  %v16960_v15 = vmul.f32 %v16929_v0, %v19283_v41  ;;  %v19285_v14 = vsub.f32 1.0, %v16929_v0 }
 0xc2e   : > { %19275 = vst [vmem:[#allocation15_spill] sm:$0xff] %v16934_v60  ;;  %v16952_v46 = vadd.f32 %v13458_v1, %v16743_v30  ;;  %v5998_v43 = vpop.f32.mrb[167].mxu0  ;;  %v16970_v1 = vmul.f32 %v16948_v23, %v19287_v31  ;;  %19290 = vst [vmem:[#allocation24_spill] sm:$0xff] %v16975_v9  ;;  %v19291_v41 = vsub.f32 1.0, %v16937_v36 }
 0xc2f   : > { %19278 = vst [vmem:[#allocation54_spill] sm:$0xff] %v16945_v58  ;;  %19284 = vst [vmem:[#allocation21_spill] sm:$0xff] %v16960_v15  ;;  %v6054_v48 = vmul.f32 %v19285_v14, %v16945_v58  ;;  %v16966_v33 = vadd.f32 %v16743_v30, %v5998_v43  ;;  %13487 = vmatprep.mubr.msk.bf16.mxu1 %vm660_vm1, %v6078_v17  ;;  %v19292_v14 = vsub.f32 1.0, %v16941_v2  ;;  %v19293_v30 = vsub.f32 1.0, %v16948_v23 }
 0xc30   : > { %19280 = vst [vmem:[#allocation56_spill] sm:$0xff] %v16952_v46  ;;  %19288 = vst [vmem:[#allocation22_spill] sm:$0xff] %v16970_v1  ;;  %v6056_v49 = vmul.f32 %v19291_v41, %v16934_v60  ;;  %13488 = vmatmul.mubr.msk.bf16.gmra.mrb[208].mxu1 %vm660_vm1, %v6079_v27  ;;  %v16998_v27 = vld [vmem:[%s19000_s10 + $0x8] ss:$0 sm:$0xff] }
 0xc31   : > { %19286 = vst [vmem:[#allocation57_spill] sm:$0xff] %v16966_v33  ;;  %v6057_v0 = vmul.f32 %v19292_v14, %v16952_v46  ;;  %v6055_v43 = vmul.f32 %v19293_v30, %v16966_v33  ;;  %v6070_v31 = vadd.f32 %v6054_v48, %v16960_v15 }
 0xc32   : > { %v6072_v3 = vadd.f32 %v6056_v49, %v16975_v9 }
 0xc33   : > { %v6073_v17 = vadd.f32 %v6057_v0, %v16956_v50  ;;  %v6071_v20 = vadd.f32 %v6055_v43, %v16970_v1 }
 0xc35   : > { %v6080_v36 = vpack.c.bf16 %v6071_v20, %v6070_v31  ;;  %v6081_v41 = vpack.c.bf16 %v6073_v17, %v6072_v3 }
 0xc37   : > { %13491 = vmatprep.mubr.msk.bf16.mxu1 %vm660_vm1, %v6080_v36  ;;  %v17005_v36 = vld [vmem:[%s18992_s2] sm:$0xff] }
 0xc38   : > { %13492 = vmatmul.mubr.msk.bf16.gmra.mrb[212].mxu1 %vm660_vm1, %v6081_v41 }
 0xc39   : > { %13523 = vmatprep.mubr.msk.bf16.mxu1 %vm14787_vm5, %v19189_v47 }
 0xcf2   : > { %v13481_v0 = vpop.f32.mrb[200].mxu1 }
 0xcf3   : > { %v6243_v48 = vpop.f32.mrb[201].mxu1  ;;  %v6314_v14 = vadd.f32 %v13481_v0, %v16998_v27 }
 0xcf4   : > { %v6312_v49 = vadd.f32 %v16998_v27, %v6243_v48  ;;  %v13482_v30 = vpop.f32.mrb[202].mxu1 }
 0xcf5   : > { %v6246_v3 = vpop.f32.mrb[203].mxu1  ;;  %v6315_v17 = vadd.f32 %v13482_v30, %v16998_v27  ;;  %v17013_v20 = vadd.f32 %v17005_v36, %v6314_v14 }
 0xcf6   : > { %v17008_v43 = vadd.f32 %v17005_v36, %v6312_v49  ;;  %v6313_v31 = vadd.f32 %v16998_v27, %v6246_v3 }
 0xcf7   : > { %19295 = vst [vmem:[#allocation59_spill] sm:$0xff] %v17013_v20  ;;  %v17021_v48 = vadd.f32 %v17005_v36, %v6315_v17  ;;  %v6350_v3 = vsel %vm948_vm4, %v17013_v20, 0.0 }
 0xcf8   : > { %19294 = vst [vmem:[#allocation58_spill] sm:$0xff] %v17008_v43  ;;  %v17016_v41 = vadd.f32 %v17005_v36, %v6313_v31  ;;  %v6344_v0 = vsel %vm948_vm4, %v17008_v43, 0.0 }
 0xcf9   : > { %6345 = vadd.xlane.f32.xlu0 %v6344_v0  ;;  %19297 = vst [vmem:[#allocation61_spill] sm:$0xff] %v17021_v48  ;;  %v6353_v0 = vsel %vm948_vm4, %v17021_v48, 0.0 }
 0xcfa   : > { %19296 = vst [vmem:[#allocation60_spill] sm:$0xff] %v17016_v41  ;;  %v6347_v49 = vsel %vm948_vm4, %v17016_v41, 0.0 }
 0xcfb   : > { %6348 = vadd.xlane.f32.xlu1 %v6347_v49  ;;  %v13485_v30 = vpop.f32.mrb[204].mxu1 }
 0xcfc   : > { %v6259_v14 = vpop.f32.mrb[205].mxu1  ;;  %v6318_v31 = vadd.f32 %v13485_v30, %v16998_v27 }
 0xcfd   : > { %6351 = vadd.xlane.f32.xlu0 %v6350_v3  ;;  %v6316_v50 = vadd.f32 %v16998_v27, %v6259_v14  ;;  %v13486_v2 = vpop.f32.mrb[206].mxu1 }
 0xcfe   : > { %v6262_v17 = vpop.f32.mrb[207].mxu1  ;;  %v6319_v49 = vadd.f32 %v13486_v2, %v16998_v27  ;;  %v17037_v23 = vadd.f32 %v17005_v36, %v6318_v31 }
 0xcff   : > { %6354 = vadd.xlane.f32.xlu1 %v6353_v0  ;;  %v17032_v9 = vadd.f32 %v17005_v36, %v6316_v50  ;;  %v6317_v1 = vadd.f32 %v16998_v27, %v6262_v17 }
 0xd00   : > { %19299 = vst [vmem:[#allocation63_spill] sm:$0xff] %v17037_v23  ;;  %v17045_v14 = vadd.f32 %v17005_v36, %v6319_v49 }
 0xd01   : > { %19298 = vst [vmem:[#allocation62_spill] sm:$0xff] %v17032_v9  ;;  %v17040_v30 = vadd.f32 %v17005_v36, %v6317_v1  ;;  %v6356_v3 = vsel %vm948_vm4, %v17032_v9, 0.0  ;;  %v6362_v1 = vsel %vm948_vm4, %v17037_v23, 0.0 }
 0xd02   : > { %6357 = vadd.xlane.f32.xlu0 %v6356_v3  ;;  %19301 = vst [vmem:[#allocation65_spill] sm:$0xff] %v17045_v14 }
 0xd03   : > { %19300 = vst [vmem:[#allocation64_spill] sm:$0xff] %v17040_v30  ;;  %v13489_v0 = vpop.f32.mrb[208].mxu1  ;;  %v6359_v50 = vsel %vm948_vm4, %v17040_v30, 0.0 }
 0xd04   : > { %6360 = vadd.xlane.f32.xlu1 %v6359_v50  ;;  %v6275_v2 = vpop.f32.mrb[209].mxu1  ;;  %v6322_v17 = vadd.f32 %v13489_v0, %v16998_v27  ;;  %v6365_v50 = vsel %vm948_vm4, %v17045_v14, 0.0 }
 0xd05   : > { %v6320_v31 = vadd.f32 %v16998_v27, %v6275_v2  ;;  %v13490_v15 = vpop.f32.mrb[210].mxu1 }
 0xd06   : > { %6363 = vadd.xlane.f32.xlu0 %v6362_v1  ;;  %v6278_v32 = vpop.f32.mrb[211].mxu1  ;;  %v6323_v49 = vadd.f32 %v13490_v15, %v16998_v27  ;;  %v17061_v0 = vadd.f32 %v17005_v36, %v6322_v17 }
 0xd07   : > { %v17054_v3 = vadd.f32 %v17005_v36, %v6320_v31  ;;  %v6321_v12 = vadd.f32 %v16998_v27, %v6278_v32 }
 0xd08   : > { %6366 = vadd.xlane.f32.xlu1 %v6365_v50  ;;  %19303 = vst [vmem:[#allocation67_spill] sm:$0xff] %v17061_v0  ;;  %v17069_v31 = vadd.f32 %v17005_v36, %v6323_v49 }
 0xd09   : > { %19302 = vst [vmem:[#allocation66_spill] sm:$0xff] %v17054_v3  ;;  %v17064_v2 = vadd.f32 %v17005_v36, %v6321_v12  ;;  %v6368_v1 = vsel %vm948_vm4, %v17054_v3, 0.0  ;;  %v6374_v12 = vsel %vm948_vm4, %v17061_v0, 0.0 }
 0xd0a   : > { %6369 = vadd.xlane.f32.xlu0 %v6368_v1  ;;  %19305 = vst [vmem:[#allocation69_spill] sm:$0xff] %v17069_v31 }
 0xd0b   : > { %19304 = vst [vmem:[#allocation68_spill] sm:$0xff] %v17064_v2  ;;  %v13493_v15 = vpop.f32.mrb[212].mxu1  ;;  %v6371_v32 = vsel %vm948_vm4, %v17064_v2, 0.0 }
 0xd0c   : > { %6372 = vadd.xlane.f32.xlu1 %v6371_v32  ;;  %v6291_v62 = vpop.f32.mrb[213].mxu1  ;;  %v6326_v50 = vadd.f32 %v13493_v15, %v16998_v27  ;;  %v6377_v32 = vsel %vm948_vm4, %v17069_v31, 0.0 }
 0xd0d   : > { %v6324_v17 = vadd.f32 %v16998_v27, %v6291_v62  ;;  %v13494_v22 = vpop.f32.mrb[214].mxu1 }
 0xd0e   : > { %6375 = vadd.xlane.f32.xlu0 %v6374_v12  ;;  %v6294_v57 = vpop.f32.mrb[215].mxu1  ;;  %v6327_v49 = vadd.f32 %v13494_v22, %v16998_v27  ;;  %v17085_v15 = vadd.f32 %v17005_v36, %v6326_v50 }
 0xd0f   : > { %v17078_v1 = vadd.f32 %v17005_v36, %v6324_v17  ;;  %v6325_v61 = vadd.f32 %v16998_v27, %v6294_v57 }
 0xd10   : > { %6378 = vadd.xlane.f32.xlu1 %v6377_v32  ;;  %19307 = vst [vmem:[#allocation71_spill] sm:$0xff] %v17085_v15  ;;  %v17093_v17 = vadd.f32 %v17005_v36, %v6327_v49  ;;  %v6386_v22 = vsel %vm948_vm4, %v17085_v15, 0.0 }
 0xd11   : > { %19306 = vst [vmem:[#allocation70_spill] sm:$0xff] %v17078_v1  ;;  %v17088_v62 = vadd.f32 %v17005_v36, %v6325_v61  ;;  %v6380_v12 = vsel %vm948_vm4, %v17078_v1, 0.0  ;;  %v14273_v61 = vld [vmem:[%s18993_s3 + $0x10] sm:$0xff]  }
 0xd12   : > { %6381 = vadd.xlane.f32.xlu0 %v6380_v12  ;;  %19309 = vst [vmem:[#allocation73_spill] sm:$0xff] %v17093_v17  ;;  %v6389_v27 = vsel %vm948_vm4, %v17093_v17, 0.0  ;;  %13495 = vmatprep.subr.bf16.mxu0 %v14273_v61 }
 0xd13   : > { %19308 = vst [vmem:[#allocation72_spill] sm:$0xff] %v17088_v62  ;;  %v6383_v57 = vsel %vm948_vm4, %v17088_v62, 0.0  ;;  %13496 = vmatpush3.bf16.msra.mxu0 %v14273_v61 }
 0xd14   : > { %6384 = vadd.xlane.f32.xlu1 %v6383_v57 }
 0xd16   : > { %6387 = vadd.xlane.f32.xlu0 %v6386_v22 }
 0xd18   : > { %6390 = vadd.xlane.f32.xlu1 %v6389_v27 }
 0xd86   : > { %v6346_v36 = vpop.xlane.xlu0 %6345 }
 0xd87   : > { %v6392_v50 = vmul.f32 0.03125, %v6346_v36 }
 0xd88   : > { %v6349_v49 = vpop.xlane.xlu1 %6348 }
 0xd89   : > { %v17105_v32 = vsub.f32 %v17008_v43, %v6392_v50  ;;  %v6393_v12 = vmul.f32 0.03125, %v6349_v49 }
 0xd8a   : > { %v6352_v57 = vpop.xlane.xlu0 %6351 }
 0xd8b   : > { %v17108_v22 = vsub.f32 %v17016_v41, %v6393_v12  ;;  %v6394_v24 = vmul.f32 0.03125, %v6352_v57  ;;  %v6424_v27 = vmul.f32 %v17105_v32, %v17105_v32 }
 0xd8c   : > { %v6355_v33 = vpop.xlane.xlu1 %6354 }
 0xd8d   : > { %v17113_v5 = vsub.f32 %v17013_v20, %v6394_v24  ;;  %v6395_v61 = vmul.f32 0.03125, %v6355_v33  ;;  %v6440_v36 = vsel %vm948_vm4, %v6424_v27, 0.0  ;;  %v6425_v50 = vmul.f32 %v17108_v22, %v17108_v22 }
 0xd8e   : > { %6441 = vadd.xlane.f32.xlu0 %v6440_v36 }
 0xd8f   : > { %v17119_v49 = vsub.f32 %v17021_v48, %v6395_v61  ;;  %v6443_v12 = vsel %vm948_vm4, %v6425_v50, 0.0  ;;  %v6426_v57 = vmul.f32 %v17113_v5, %v17113_v5  ;;  %v6358_v53 = vpop.xlane.xlu0 %6357 }
 0xd90   : > { %6444 = vadd.xlane.f32.xlu1 %v6443_v12  ;;  %v6396_v46 = vmul.f32 0.03125, %v6358_v53 }
 0xd91   : > { %v6446_v24 = vsel %vm948_vm4, %v6426_v57, 0.0  ;;  %v6427_v33 = vmul.f32 %v17119_v49, %v17119_v49  ;;  %v6361_v27 = vpop.xlane.xlu1 %6360 }
 0xd92   : > { %6447 = vadd.xlane.f32.xlu0 %v6446_v24  ;;  %v17128_v36 = vsub.f32 %v17032_v9, %v6396_v46  ;;  %v6397_v61 = vmul.f32 0.03125, %v6361_v27 }
 0xd93   : > { %v6449_v58 = vsel %vm948_vm4, %v6427_v33, 0.0  ;;  %v6364_v50 = vpop.xlane.xlu0 %6363 }
 0xd94   : > { %6450 = vadd.xlane.f32.xlu1 %v6449_v58  ;;  %v17132_v60 = vsub.f32 %v17040_v30, %v6397_v61  ;;  %v6398_v12 = vmul.f32 0.03125, %v6364_v50  ;;  %v6428_v53 = vmul.f32 %v17128_v36, %v17128_v36 }
 0xd95   : > { %v6367_v57 = vpop.xlane.xlu1 %6366 }
 0xd96   : > { %v17137_v16 = vsub.f32 %v17037_v23, %v6398_v12  ;;  %v6399_v24 = vmul.f32 0.03125, %v6367_v57  ;;  %v6452_v46 = vsel %vm948_vm4, %v6428_v53, 0.0  ;;  %v6429_v27 = vmul.f32 %v17132_v60, %v17132_v60 }
 0xd97   : > { %v6370_v33 = vpop.xlane.xlu0 %6369  ;;  %6453 = vadd.xlane.f32.xlu0 %v6452_v46 }
 0xd98   : > { %v17143_v58 = vsub.f32 %v17045_v14, %v6399_v24  ;;  %v6400_v61 = vmul.f32 0.03125, %v6370_v33  ;;  %v6455_v50 = vsel %vm948_vm4, %v6429_v27, 0.0  ;;  %v6430_v35 = vmul.f32 %v17137_v16, %v17137_v16 }
 0xd99   : > { %v6373_v44 = vpop.xlane.xlu1 %6372  ;;  %6456 = vadd.xlane.f32.xlu1 %v6455_v50 }
 0xd9a   : > { %v17149_v12 = vsub.f32 %v17054_v3, %v6400_v61  ;;  %v6401_v53 = vmul.f32 0.03125, %v6373_v44  ;;  %v6458_v57 = vsel %vm948_vm4, %v6430_v35, 0.0  ;;  %v6431_v46 = vmul.f32 %v17143_v58, %v17143_v58 }
 0xd9b   : > { %v6376_v51 = vpop.xlane.xlu0 %6375  ;;  %6459 = vadd.xlane.f32.xlu0 %v6458_v57 }
 0xd9c   : > { %v17155_v24 = vsub.f32 %v17064_v2, %v6401_v53  ;;  %v6402_v27 = vmul.f32 0.03125, %v6376_v51  ;;  %v6461_v33 = vsel %vm948_vm4, %v6431_v46, 0.0  ;;  %v6432_v50 = vmul.f32 %v17149_v12, %v17149_v12 }
 0xd9d   : > { %v6379_v39 = vpop.xlane.xlu1 %6378  ;;  %6462 = vadd.xlane.f32.xlu1 %v6461_v33 }
 0xd9e   : > { %v17161_v44 = vsub.f32 %v17061_v0, %v6402_v27  ;;  %v6403_v35 = vmul.f32 0.03125, %v6379_v39  ;;  %v6464_v61 = vsel %vm948_vm4, %v6432_v50, 0.0  ;;  %v6433_v57 = vmul.f32 %v17155_v24, %v17155_v24 }
 0xd9f   : > { %6465 = vadd.xlane.f32.xlu0 %v6464_v61  ;;  %v6382_v53 = vpop.xlane.xlu0 %6381 }
 0xda0   : > { %v17167_v51 = vsub.f32 %v17069_v31, %v6403_v35  ;;  %v6404_v46 = vmul.f32 0.03125, %v6382_v53  ;;  %v6467_v40 = vsel %vm948_vm4, %v6433_v57, 0.0  ;;  %v6434_v33 = vmul.f32 %v17161_v44, %v17161_v44 }
 0xda1   : > { %6468 = vadd.xlane.f32.xlu1 %v6467_v40  ;;  %v6385_v27 = vpop.xlane.xlu1 %6384 }
 0xda2   : > { %v17173_v39 = vsub.f32 %v17078_v1, %v6404_v46  ;;  %v6405_v50 = vmul.f32 0.03125, %v6385_v27  ;;  %v6470_v38 = vsel %vm948_vm4, %v6434_v33, 0.0  ;;  %v6435_v61 = vmul.f32 %v17167_v51, %v17167_v51 }
 0xda3   : > { %6471 = vadd.xlane.f32.xlu0 %v6470_v38  ;;  %v6388_v35 = vpop.xlane.xlu0 %6387 }
 0xda4   : > { %v17179_v53 = vsub.f32 %v17088_v62, %v6405_v50  ;;  %v6406_v57 = vmul.f32 0.03125, %v6388_v35  ;;  %v6473_v11 = vsel %vm948_vm4, %v6435_v61, 0.0  ;;  %v6436_v40 = vmul.f32 %v17173_v39, %v17173_v39 }
 0xda5   : > { %6474 = vadd.xlane.f32.xlu1 %v6473_v11  ;;  %v6391_v46 = vpop.xlane.xlu1 %6390 }
 0xda6   : > { %v17185_v27 = vsub.f32 %v17085_v15, %v6406_v57  ;;  %v6407_v33 = vmul.f32 0.03125, %v6391_v46  ;;  %v6476_v4 = vsel %vm948_vm4, %v6436_v40, 0.0  ;;  %v6437_v38 = vmul.f32 %v17179_v53, %v17179_v53 }
 0xda7   : > { %6477 = vadd.xlane.f32.xlu0 %v6476_v4  ;;  %v14274_v4 = vld [vmem:[%s18993_s3 + $0x18] sm:$0xff]  }
 0xda8   : > { %v17191_v50 = vsub.f32 %v17093_v17, %v6407_v33  ;;  %v6479_v61 = vsel %vm948_vm4, %v6437_v38, 0.0  ;;  %v6438_v35 = vmul.f32 %v17185_v27, %v17185_v27  ;;  %13497 = vmatprep.subr.bf16.mxu0 %v14274_v4 }
 0xda9   : > { %6480 = vadd.xlane.f32.xlu1 %v6479_v61  ;;  %13498 = vmatpush3.bf16.msra.mxu0 %v14274_v4 }
 0xdaa   : > { %v6482_v11 = vsel %vm948_vm4, %v6438_v35, 0.0  ;;  %v6439_v57 = vmul.f32 %v17191_v50, %v17191_v50  ;;  %13515 = vmatprep.subr.bf16.mxu0 %v19189_v47 }
 0xdab   : > { %6483 = vadd.xlane.f32.xlu0 %v6482_v11 }
 0xdac   : > { %v6485_v40 = vsel %vm948_vm4, %v6439_v57, 0.0 }
 0xdad   : > { %6486 = vadd.xlane.f32.xlu1 %v6485_v40 }
 0xe1b   : > { %v6442_v46 = vpop.xlane.xlu0 %6441 }
 0xe1c   : > { %v6488_v33 = vmul.f32 0.03125, %v6442_v46 }
 0xe1d   : > { %v6445_v38 = vpop.xlane.xlu1 %6444 }
 0xe1e   : > { %v6504_v61 = vadd.f32 1e-06, %v6488_v33  ;;  %v6489_v35 = vmul.f32 0.03125, %v6445_v38  ;;  %v17207_v33 = vld [vmem:[%s19000_s10 + $0xa] ss:$0 sm:$0xff] }
 0xe1f   : > { %v6448_v59 = vpop.xlane.xlu0 %6447 }
 0xe20   : > { %14473 = vrsqrt.f32 %v6504_v61  ;;  %v6505_v45 = vadd.f32 1e-06, %v6489_v35  ;;  %v6490_v11 = vmul.f32 0.03125, %v6448_v59 }
 0xe21   : > { %v6451_v42 = vpop.xlane.xlu1 %6450 }
 0xe22   : > { %14475 = vrsqrt.f32 %v6505_v45  ;;  %v6506_v57 = vadd.f32 1e-06, %v6490_v11  ;;  %v6491_v40 = vmul.f32 0.03125, %v6451_v42 }
 0xe24   : > { %14477 = vrsqrt.f32 %v6506_v57  ;;  %v6507_v54 = vadd.f32 1e-06, %v6491_v40  ;;  %v6454_v10 = vpop.xlane.xlu0 %6453  ;;  %v17215_v40 = vld [vmem:[%s19000_s10 + $0xb] ss:$0 sm:$0xff] }
 0xe25   : > { %v6492_v4 = vmul.f32 0.03125, %v6454_v10 }
 0xe26   : > { %14479 = vrsqrt.f32 %v6507_v54  ;;  %v6457_v21 = vpop.xlane.xlu1 %6456 }
 0xe27   : > { %v6508_v55 = vadd.f32 1e-06, %v6492_v4  ;;  %v6493_v25 = vmul.f32 0.03125, %v6457_v21 }
 0xe28   : > { %v6460_v46 = vpop.xlane.xlu0 %6459 }
 0xe29   : > { %14481 = vrsqrt.f32 %v6508_v55  ;;  %v6509_v59 = vadd.f32 1e-06, %v6493_v25  ;;  %v6494_v45 = vmul.f32 0.03125, %v6460_v46 }
 0xe2a   : > { %v14474_v56 = vpop.eup %14473  ;;  %v6463_v38 = vpop.xlane.xlu1 %6462 }
 0xe2b   : > { %v6536_v42 = vmul.f32 %v14474_v56, %v17105_v32  ;;  %14483 = vrsqrt.f32 %v6509_v59  ;;  %v6510_v54 = vadd.f32 1e-06, %v6494_v45  ;;  %v6495_v10 = vmul.f32 0.03125, %v6463_v38 }
 0xe2c   : > { %v14476_v61 = vpop.eup %14475  ;;  %v6466_v35 = vpop.xlane.xlu0 %6465 }
 0xe2d   : > { %v6537_v21 = vmul.f32 %v14476_v61, %v17108_v22  ;;  %v6558_v11 = vmul.f32 %v17207_v33, %v6536_v42  ;;  %14485 = vrsqrt.f32 %v6510_v54  ;;  %v6511_v55 = vadd.f32 1e-06, %v6495_v10 }
 0xe2e   : > { %v14478_v57 = vpop.eup %14477  ;;  %v6496_v25 = vmul.f32 0.03125, %v6466_v35  ;;  %v6469_v32 = vpop.xlane.xlu1 %6468 }
 0xe2f   : > { %v6538_v56 = vmul.f32 %v14478_v57, %v17113_v5  ;;  %v6559_v4 = vmul.f32 %v17207_v33, %v6537_v21  ;;  %14487 = vrsqrt.f32 %v6511_v55  ;;  %v6497_v22 = vmul.f32 0.03125, %v6469_v32 }
 0xe30   : > { %v14480_v46 = vpop.eup %14479  ;;  %v6512_v59 = vadd.f32 1e-06, %v6496_v25  ;;  %v6472_v42 = vpop.xlane.xlu0 %6471  ;;  %v6580_v61 = vadd.f32 %v17215_v40, %v6558_v11 }
 0xe31   : > { %v6560_v45 = vmul.f32 %v17207_v33, %v6538_v56  ;;  %v6539_v38 = vmul.f32 %v14480_v46, %v17119_v49  ;;  %v6581_v54 = vadd.f32 %v17215_v40, %v6559_v4  ;;  %v6513_v10 = vadd.f32 1e-06, %v6497_v22 }
 0xe32   : > { %14489 = vrsqrt.f32 %v6512_v59  ;;  %v6498_v35 = vmul.f32 0.03125, %v6472_v42  ;;  %v6475_v57 = vpop.xlane.xlu1 %6474 }
 0xe33   : > { %v6561_v5 = vmul.f32 %v17207_v33, %v6539_v38  ;;  %v6596_v21 = vpack.c.bf16 %v6581_v54, %v6580_v61  ;;  %v14482_v26 = vpop.eup %14481  ;;  %14491 = vrsqrt.f32 %v6513_v10  ;;  %v6499_v25 = vmul.f32 0.03125, %v6475_v57 }
 0xe34   : > { %v6514_v55 = vadd.f32 1e-06, %v6498_v35  ;;  %v6582_v56 = vadd.f32 %v17215_v40, %v6560_v45  ;;  %v6478_v32 = vpop.xlane.xlu0 %6477  ;;  %v6540_v11 = vmul.f32 %v14482_v26, %v17128_v36 }
 0xe35   : > { %v6583_v49 = vadd.f32 %v17215_v40, %v6561_v5  ;;  %13499 = vmatprep.mubr.msk.bf16.mxu0 %vm948_vm4, %v6596_v21  ;;  %v14484_v4 = vpop.eup %14483  ;;  %v6515_v46 = vadd.f32 1e-06, %v6499_v25  ;;  %v6500_v59 = vmul.f32 0.03125, %v6478_v32 }
 0xe36   : > { %14493 = vrsqrt.f32 %v6514_v55  ;;  %v6481_v22 = vpop.xlane.xlu1 %6480  ;;  %v6541_v42 = vmul.f32 %v14484_v4, %v17132_v60  ;;  %v6562_v61 = vmul.f32 %v17207_v33, %v6540_v11 }
 0xe37   : > { %v6597_v38 = vpack.c.bf16 %v6583_v49, %v6582_v56  ;;  %v14486_v54 = vpop.eup %14485  ;;  %14495 = vrsqrt.f32 %v6515_v46  ;;  %v6516_v45 = vadd.f32 1e-06, %v6500_v59  ;;  %v6501_v10 = vmul.f32 0.03125, %v6481_v22 }
 0xe38   : > { %v6484_v35 = vpop.xlane.xlu0 %6483  ;;  %v6563_v5 = vmul.f32 %v17207_v33, %v6541_v42  ;;  %v6542_v26 = vmul.f32 %v14486_v54, %v17137_v16  ;;  %v6584_v60 = vadd.f32 %v17215_v40, %v6562_v61 }
 0xe39   : > { %13500 = vmatmul.mubr.msk.bf16.vlgmr.msra.gmra.mrb[168].mxu0 %vm948_vm4, %v6597_v38  ;;  %v14488_v36 = vpop.eup %14487  ;;  %14497 = vrsqrt.f32 %v6516_v45  ;;  %v6517_v57 = vadd.f32 1e-06, %v6501_v10  ;;  %v6502_v21 = vmul.f32 0.03125, %v6484_v35 }
 0xe3a   : > { %v6487_v55 = vpop.xlane.xlu1 %6486  ;;  %v6585_v25 = vadd.f32 %v17215_v40, %v6563_v5  ;;  %v6543_v56 = vmul.f32 %v14488_v36, %v17143_v58  ;;  %v6564_v49 = vmul.f32 %v17207_v33, %v6542_v26 }
 0xe3b   : > { %14499 = vrsqrt.f32 %v6517_v57  ;;  %v6518_v11 = vadd.f32 1e-06, %v6502_v21  ;;  %v6503_v4 = vmul.f32 0.03125, %v6487_v55 }
 0xe3c   : > { %v14490_v32 = vpop.eup %14489  ;;  %v6598_v46 = vpack.c.bf16 %v6585_v25, %v6584_v60  ;;  %v6565_v16 = vmul.f32 %v17207_v33, %v6543_v56  ;;  %v6586_v42 = vadd.f32 %v17215_v40, %v6564_v49 }
 0xe3d   : > { %v6544_v59 = vmul.f32 %v14490_v32, %v17149_v12  ;;  %v14492_v22 = vpop.eup %14491  ;;  %14501 = vrsqrt.f32 %v6518_v11  ;;  %v6519_v38 = vadd.f32 1e-06, %v6503_v4 }
 0xe3e   : > { %13503 = vmatprep.mubr.msk.bf16.mxu0 %vm948_vm4, %v6598_v46  ;;  %v6587_v58 = vadd.f32 %v17215_v40, %v6565_v16  ;;  %v6545_v61 = vmul.f32 %v14492_v22, %v17155_v24 }
 0xe3f   : > { %v6566_v54 = vmul.f32 %v17207_v33, %v6544_v59  ;;  %14503 = vrsqrt.f32 %v6519_v38 }
 0xe40   : > { %v14494_v45 = vpop.eup %14493  ;;  %v6599_v10 = vpack.c.bf16 %v6587_v58, %v6586_v42  ;;  %v6567_v35 = vmul.f32 %v17207_v33, %v6545_v61 }
 0xe41   : > { %v6546_v12 = vmul.f32 %v14494_v45, %v17161_v44  ;;  %v14496_v5 = vpop.eup %14495  ;;  %v6588_v26 = vadd.f32 %v17215_v40, %v6566_v54 }
 0xe42   : > { %13504 = vmatmul.mubr.msk.bf16.gmra.mrb[172].mxu0 %vm948_vm4, %v6599_v10  ;;  %v6589_v36 = vadd.f32 %v17215_v40, %v6567_v35  ;;  %v6547_v57 = vmul.f32 %v14496_v5, %v17167_v51 }
 0xe43   : > { %v6568_v24 = vmul.f32 %v17207_v33, %v6546_v12  ;;  %v14498_v21 = vpop.eup %14497 }
 0xe44   : > { %v6600_v55 = vpack.c.bf16 %v6589_v36, %v6588_v26  ;;  %v6569_v60 = vmul.f32 %v17207_v33, %v6547_v57  ;;  %v6548_v25 = vmul.f32 %v14498_v21, %v17173_v39 }
 0xe45   : > { %v14500_v56 = vpop.eup %14499  ;;  %v6590_v44 = vadd.f32 %v17215_v40, %v6568_v24 }
 0xe46   : > { %13507 = vmatprep.mubr.msk.bf16.mxu0 %vm948_vm4, %v6600_v55  ;;  %v6591_v49 = vadd.f32 %v17215_v40, %v6569_v60  ;;  %v6549_v32 = vmul.f32 %v14500_v56, %v17179_v53  ;;  %v6570_v11 = vmul.f32 %v17207_v33, %v6548_v25 }
 0xe47   : > { %v14502_v51 = vpop.eup %14501 }
 0xe48   : > { %v6601_v4 = vpack.c.bf16 %v6591_v49, %v6590_v44  ;;  %v6571_v46 = vmul.f32 %v17207_v33, %v6549_v32  ;;  %v6550_v16 = vmul.f32 %v14502_v51, %v17185_v27  ;;  %v6592_v39 = vadd.f32 %v17215_v40, %v6570_v11 }
 0xe49   : > { %v14504_v59 = vpop.eup %14503 }
 0xe4a   : > { %13508 = vmatmul.mubr.msk.bf16.gmra.mrb[176].mxu0 %vm948_vm4, %v6601_v4  ;;  %v6593_v22 = vadd.f32 %v17215_v40, %v6571_v46  ;;  %v6551_v38 = vmul.f32 %v14504_v59, %v17191_v50  ;;  %v6572_v42 = vmul.f32 %v17207_v33, %v6550_v16  ;;  %v12333_v50 = vld [vmem:[%s19001_s11 + $0x1] ss:$0 sm:$0xff] }
 0xe4c   : > { %v6602_v53 = vpack.c.bf16 %v6593_v22, %v6592_v39  ;;  %v6573_v58 = vmul.f32 %v17207_v33, %v6551_v38  ;;  %v6594_v61 = vadd.f32 %v17215_v40, %v6572_v42 }
 0xe4e   : > { %13511 = vmatprep.mubr.msk.bf16.mxu0 %vm948_vm4, %v6602_v53  ;;  %v6595_v27 = vadd.f32 %v17215_v40, %v6573_v58 }
 0xe50   : > { %v6603_v54 = vpack.c.bf16 %v6595_v27, %v6594_v61 }
 0xe52   : > { %13512 = vmatmul.mubr.msk.bf16.gmra.mrb[180].mxu0 %vm948_vm4, %v6603_v54 }
 0xe53   : > { %13517 = vmatprep.mubr.msk.bf16.mxu0 %vm14787_vm5, %v19189_v47 }
 0xf0c   : > { %v13501_v45 = vpop.f32.mrb[168].mxu0 }
 0xf0d   : > { %v6680_v10 = vpop.f32.mrb[169].mxu0  ;;  %v6689_v12 = vadd.f32 %v13501_v45, %v12333_v50 }
 0xf0e   : > { %v6681_v35 = vadd.f32 %v12333_v50, %v6680_v10  ;;  %v13502_v33 = vpop.f32.mrb[170].mxu0 }
 0xf0f   : > { %v6692_v5 = vadd.f32 %v13502_v33, %v12333_v50  ;;  %v6683_v26 = vpop.f32.mrb[171].mxu0  ;;  %v17288_v51 = vpack.c.bf16 %v6689_v12, %v6689_v12 }
 0xf10   : > { %v17275_v36 = vpack.c.bf16 %v6681_v35, %v6681_v35  ;;  %v6684_v40 = vadd.f32 %v12333_v50, %v6683_v26 }
 0xf11   : > { %v14230_v57 = vpack.i.bf16 %v6692_v5, %v6689_v12  ;;  %v17281_v55 = vpack.c.bf16 %v6692_v5, %v6692_v5 }
 0xf12   : > { %v17277_v24 = vpack.c.bf16 %v6684_v40, %v6684_v40  ;;  %v14225_v21 = vpack.i.bf16 %v6684_v40, %v6681_v35  ;;  %6840 = vrot.lane.b32.xlu0 %v17275_v36, %s14788_s24 }
 0xf14   : > { %6889 = vrot.lane.b32.xlu1 %v17277_v24, %s14788_s24 }
 0xf15   : > { %v13505_v60 = vpop.f32.mrb[172].mxu0 }
 0xf16   : > { %6987 = vrot.lane.b32.xlu0 %v17281_v55, %s14788_s24  ;;  %v6696_v25 = vpop.f32.mrb[173].mxu0  ;;  %v6705_v49 = vadd.f32 %v13505_v60, %v12333_v50 }
 0xf17   : > { %v6697_v56 = vadd.f32 %v12333_v50, %v6696_v25  ;;  %v13506_v44 = vpop.f32.mrb[174].mxu0 }
 0xf18   : > { %14226 = vrot.lane.b32.xlu1 %v14225_v21, %s14789_s16  ;;  %v6708_v32 = vadd.f32 %v13506_v44, %v12333_v50  ;;  %v6699_v11 = vpop.f32.mrb[175].mxu0  ;;  %v17306_v33 = vpack.c.bf16 %v6705_v49, %v6705_v49 }
 0xf19   : > { %v17290_v4 = vpack.c.bf16 %v6697_v56, %v6697_v56  ;;  %v6700_v46 = vadd.f32 %v12333_v50, %v6699_v11 }
 0xf1a   : > { %v14240_v16 = vpack.i.bf16 %v6708_v32, %v6705_v49  ;;  %v17298_v61 = vpack.c.bf16 %v6708_v32, %v6708_v32 }
 0xf1b   : > { %v14235_v59 = vpack.i.bf16 %v6700_v46, %v6697_v56  ;;  %7036 = vrot.lane.b32.xlu0 %v17290_v4, %s14788_s24  ;;  %v17300_v27 = vpack.c.bf16 %v6700_v46, %v6700_v46 }
 0xf1c   : > { %6938 = vrot.lane.b32.xlu1 %v17288_v51, %s14788_s24 }
 0xf1d   : > { %v13509_v39 = vpop.f32.mrb[176].mxu0 }
 0xf1e   : > { %v6712_v22 = vpop.f32.mrb[177].mxu0  ;;  %v6721_v42 = vadd.f32 %v13509_v39, %v12333_v50 }
 0xf1f   : > { %14236 = vrot.lane.b32.xlu0 %v14235_v59, %s14789_s16  ;;  %v13510_v38 = vpop.f32.mrb[178].mxu0  ;;  %v6713_v54 = vadd.f32 %v12333_v50, %v6712_v22 }
 0xf20   : > { %14231 = vrot.lane.b32.xlu1 %v14230_v57, %s14789_s16  ;;  %v6724_v53 = vadd.f32 %v13510_v38, %v12333_v50  ;;  %v6715_v58 = vpop.f32.mrb[179].mxu0  ;;  %v17324_v46 = vpack.c.bf16 %v6721_v42, %v6721_v42 }
 0xf21   : > { %v6716_v45 = vadd.f32 %v12333_v50, %v6715_v58  ;;  %v17308_v12 = vpack.c.bf16 %v6713_v54, %v6713_v54 }
 0xf22   : > { %v14250_v10 = vpack.i.bf16 %v6724_v53, %v6721_v42  ;;  %v17316_v49 = vpack.c.bf16 %v6724_v53, %v6724_v53 }
 0xf23   : > { %v14245_v35 = vpack.i.bf16 %v6716_v45, %v6713_v54  ;;  %7183 = vrot.lane.b32.xlu0 %v17298_v61, %s14788_s24  ;;  %v17318_v11 = vpack.c.bf16 %v6716_v45, %v6716_v45 }
 0xf24   : > { %7085 = vrot.lane.b32.xlu1 %v17300_v27, %s14788_s24 }
 0xf25   : > { %v13513_v5 = vpop.f32.mrb[180].mxu0 }
 0xf26   : > { %v6728_v26 = vpop.f32.mrb[181].mxu0  ;;  %v6737_v57 = vadd.f32 %v13513_v5, %v12333_v50 }
 0xf27   : > { %7232 = vrot.lane.b32.xlu0 %v17308_v12, %s14788_s24  ;;  %v13514_v40 = vpop.f32.mrb[182].mxu0  ;;  %v6729_v25 = vadd.f32 %v12333_v50, %v6728_v26 }
 0xf28   : > { %7134 = vrot.lane.b32.xlu1 %v17306_v33, %s14788_s24  ;;  %v6740_v21 = vadd.f32 %v13514_v40, %v12333_v50  ;;  %v6731_v60 = vpop.f32.mrb[183].mxu0  ;;  %v17342_v39 = vpack.c.bf16 %v6737_v57, %v6737_v57 }
 0xf29   : > { %v6732_v56 = vadd.f32 %v12333_v50, %v6731_v60  ;;  %v17326_v59 = vpack.c.bf16 %v6729_v25, %v6729_v25 }
 0xf2a   : > { %v14260_v44 = vpack.i.bf16 %v6740_v21, %v6737_v57  ;;  %v17334_v50 = vpack.c.bf16 %v6740_v21, %v6740_v21 }
 0xf2b   : > { %v14255_v32 = vpack.i.bf16 %v6732_v56, %v6729_v25  ;;  %14246 = vrot.lane.b32.xlu0 %v14245_v35, %s14789_s16 }
 0xf2c   : > { %14241 = vrot.lane.b32.xlu1 %v14240_v16, %s14789_s16  ;;  %v17336_v16 = vpack.c.bf16 %v6732_v56, %v6732_v56 }
 0xf2f   : > { %7379 = vrot.lane.b32.xlu0 %v17316_v49, %s14788_s24 }
 0xf30   : > { %7281 = vrot.lane.b32.xlu1 %v17318_v11, %s14788_s24 }
 0xf33   : > { %7428 = vrot.lane.b32.xlu0 %v17326_v59, %s14788_s24 }
 0xf34   : > { %7330 = vrot.lane.b32.xlu1 %v17324_v46, %s14788_s24 }
 0xf37   : > { %14256 = vrot.lane.b32.xlu0 %v14255_v32, %s14789_s16 }
 0xf38   : > { %14251 = vrot.lane.b32.xlu1 %v14250_v10, %s14789_s16 }
 0xf3b   : > { %7575 = vrot.lane.b32.xlu0 %v17334_v50, %s14788_s24 }
 0xf3c   : > { %7477 = vrot.lane.b32.xlu1 %v17336_v16, %s14788_s24 }
 0xf40   : > { %7526 = vrot.lane.b32.xlu1 %v17342_v39, %s14788_s24 }
 0xf44   : > { %14261 = vrot.lane.b32.xlu1 %v14260_v44, %s14789_s16 }
 0xf84   : > { %v6841_v22 = vpop.permute.xlu0 %6840 }
 0xf85   : > { %v6846_v38 = vsel %vm1448_vm6, %v6841_v22, 0 }
 0xf86   : > { %13516 = vmatpush3.bf16.xpose.msra.mxu0 %v6846_v38  ;;  %v6890_v42 = vpop.permute.xlu1 %6889 }
 0xf87   : > { %v6895_v53 = vsel %vm1448_vm6, %v6890_v42, 0  ;;  %13527 = vmatprep.subr.bf16.mxu0 %v19189_v47 }
 0xf88   : > { %v6988_v58 = vpop.permute.xlu0 %6987  ;;  %13522 = vmatpush3.bf16.xpose.msra.mxu1 %v6895_v53 }
 0xf89   : > { %13533 = vmatprep.subr.bf16.mxu1 %v19189_v47  ;;  %v6993_v21 = vsel %vm1448_vm6, %v6988_v58, 0 }
 0xf8a   : > { %v14227_v54 = vpop.permute.xlu1 %14226 }
 0xf8b   : > { %v14229_v45 = vunpack.i.h.bf16 %v14227_v54  ;;  %v14228_v10 = vunpack.i.l.bf16 %v14227_v54 }
 0xf8d   : > { %v17351_v35 = vpack.c.bf16 %v14229_v45, %v14229_v45  ;;  %v17353_v5 = vpack.c.bf16 %v14228_v10, %v14228_v10  ;;  %13518 = vmatmul.mubr.msk.bf16.vlgmr.msra.gmra.mrb[184].mxu0 %vm1448_vm6, %v17275_v36  ;;  %v7037_v26 = vpop.permute.xlu0 %7036 }
 0xf8e   : > { %v6939_v40 = vpop.permute.xlu1 %6938  ;;  %13529 = vmatprep.mubr.msk.bf16.mxu0 %vm14787_vm5, %v19189_v47  ;;  %v7042_v45 = vsel %vm1448_vm6, %v7037_v26, 0 }
 0xf8f   : > { %v6944_v57 = vsel %vm1448_vm6, %v6939_v40, 0  ;;  %13524 = vmatmul.mubr.msk.bf16.vlgmr.msra.gmra.mrb[216].mxu1 %vm1448_vm6, %v17277_v24  ;;  %7673 = vrot.lane.b32.xlu1 %v17351_v35, %s14788_s24 }
 0xf90   : > { %7624 = vrot.lane.b32.xlu0 %v17353_v5, %s14788_s24  ;;  %13528 = vmatpush3.bf16.xpose.msra.mxu0 %v6944_v57 }
 0xf91   : > { %13534 = vmatpush3.bf16.xpose.msra.mxu1 %v6993_v21  ;;  %13535 = vmatprep.mubr.msk.bf16.mxu1 %vm14787_vm5, %v19189_v47  ;;  %v14237_v60 = vpop.permute.xlu0 %14236 }
 0xf92   : > { %v14232_v25 = vpop.permute.xlu1 %14231  ;;  %13539 = vmatprep.subr.bf16.mxu0 %v19189_v47  ;;  %13545 = vmatprep.subr.bf16.mxu1 %v19189_v47  ;;  %v14239_v32 = vunpack.i.h.bf16 %v14237_v60  ;;  %v14238_v42 = vunpack.i.l.bf16 %v14237_v60 }
 0xf93   : > { %v14234_v56 = vunpack.i.h.bf16 %v14232_v25  ;;  %v14233_v44 = vunpack.i.l.bf16 %v14232_v25 }
 0xf94   : > { %v17385_v10 = vpack.c.bf16 %v14239_v32, %v14239_v32  ;;  %v17387_v40 = vpack.c.bf16 %v14238_v42, %v14238_v42 }
 0xf95   : > { %v17371_v22 = vpack.c.bf16 %v14234_v56, %v14234_v56  ;;  %v17373_v38 = vpack.c.bf16 %v14233_v44, %v14233_v44  ;;  %v7184_v53 = vpop.permute.xlu0 %7183 }
 0xf96   : > { %v7086_v58 = vpop.permute.xlu1 %7085  ;;  %v7189_v44 = vsel %vm1448_vm6, %v7184_v53, 0 }
 0xf97   : > { %v7091_v54 = vsel %vm1448_vm6, %v7086_v58, 0  ;;  %13530 = vmatmul.mubr.msk.bf16.vlgmr.msra.gmra.mrb[188].mxu0 %vm1448_vm6, %v17288_v51  ;;  %7771 = vrot.lane.b32.xlu1 %v17371_v22, %s14788_s24 }
 0xf98   : > { %13536 = vmatmul.mubr.msk.bf16.vlgmr.msra.gmra.mrb[220].mxu1 %vm1448_vm6, %v17281_v55  ;;  %7722 = vrot.lane.b32.xlu0 %v17373_v38, %s14788_s24 }
 0xf99   : > { %13540 = vmatpush3.bf16.xpose.msra.mxu0 %v7042_v45  ;;  %13546 = vmatpush3.bf16.xpose.msra.mxu1 %v7091_v54  ;;  %v7233_v57 = vpop.permute.xlu0 %7232 }
 0xf9a   : > { %v7135_v21 = vpop.permute.xlu1 %7134  ;;  %13541 = vmatprep.mubr.msk.bf16.mxu0 %vm14787_vm5, %v19189_v47  ;;  %13547 = vmatprep.mubr.msk.bf16.mxu1 %vm14787_vm5, %v19189_v47 }
 0xf9b   : > { %7869 = vrot.lane.b32.xlu1 %v17385_v10, %s14788_s24  ;;  %13551 = vmatprep.subr.bf16.mxu0 %v19189_v47  ;;  %v7140_v32 = vsel %vm1448_vm6, %v7135_v21, 0 }
 0xf9c   : > { %7820 = vrot.lane.b32.xlu0 %v17387_v40, %s14788_s24  ;;  %13557 = vmatprep.subr.bf16.mxu1 %v19189_v47 }
 0xf9d   : > { %v14247_v26 = vpop.permute.xlu0 %14246 }
 0xf9e   : > { %v14242_v60 = vpop.permute.xlu1 %14241  ;;  %v14249_v42 = vunpack.i.h.bf16 %v14247_v26  ;;  %v14248_v58 = vunpack.i.l.bf16 %v14247_v26 }
 0xf9f   : > { %v14244_v25 = vunpack.i.h.bf16 %v14242_v60  ;;  %v14243_v56 = vunpack.i.l.bf16 %v14242_v60 }
 0xfa0   : > { %13542 = vmatmul.mubr.msk.bf16.vlgmr.msra.gmra.mrb[192].mxu0 %vm1448_vm6, %v17290_v4  ;;  %13548 = vmatmul.mubr.msk.bf16.vlgmr.msra.gmra.mrb[224].mxu1 %vm1448_vm6, %v17300_v27  ;;  %v17418_v53 = vpack.c.bf16 %v14249_v42, %v14249_v42  ;;  %v17420_v21 = vpack.c.bf16 %v14248_v58, %v14248_v58 }
 0xfa1   : > { %v17405_v54 = vpack.c.bf16 %v14244_v25, %v14244_v25  ;;  %v17407_v45 = vpack.c.bf16 %v14243_v56, %v14243_v56  ;;  %13552 = vmatpush3.bf16.xpose.msra.mxu0 %v7140_v32  ;;  %v7380_v7 = vpop.permute.xlu0 %7379  ;;  %13558 = vmatpush3.bf16.xpose.msra.mxu1 %v7189_v44  ;;  %v7238_v56 = vsel %vm1448_vm6, %v7233_v57, 0 }
 0xfa2   : > { %v7282_v60 = vpop.permute.xlu1 %7281  ;;  %13553 = vmatprep.mubr.msk.bf16.mxu0 %vm14787_vm5, %v19189_v47  ;;  %13559 = vmatprep.mubr.msk.bf16.mxu1 %vm14787_vm5, %v19189_v47  ;;  %v7385_v6 = vsel %vm1448_vm6, %v7380_v7, 0 }
 0xfa3   : > { %7967 = vrot.lane.b32.xlu1 %v17405_v54, %s14788_s24  ;;  %7918 = vrot.lane.b32.xlu0 %v17407_v45, %s14788_s24  ;;  %v7287_v44 = vsel %vm1448_vm6, %v7282_v60, 0 }
 0xfa4   : > { %13563 = vmatprep.subr.bf16.mxu0 %v19189_v47  ;;  %13569 = vmatprep.subr.bf16.mxu1 %v19189_v47 }
 0xfa5   : > { %v7429_v26 = vpop.permute.xlu0 %7428 }
 0xfa6   : > { %v7331_v25 = vpop.permute.xlu1 %7330 }
 0xfa7   : > { %8065 = vrot.lane.b32.xlu1 %v17418_v53, %s14788_s24  ;;  %8016 = vrot.lane.b32.xlu0 %v17420_v21, %s14788_s24 }
 0xfa8   : > { %13554 = vmatmul.mubr.msk.bf16.vlgmr.msra.gmra.mrb[196].mxu0 %vm1448_vm6, %v17306_v33  ;;  %13560 = vmatmul.mubr.msk.bf16.vlgmr.msra.gmra.mrb[228].mxu1 %vm1448_vm6, %v17298_v61 }
 0xfa9   : > { %13564 = vmatpush3.bf16.xpose.msra.mxu0 %v7238_v56  ;;  %v14257_v32 = vpop.permute.xlu0 %14256  ;;  %13570 = vmatpush3.bf16.xpose.msra.mxu1 %v7287_v44 }
 0xfaa   : > { %v14252_v42 = vpop.permute.xlu1 %14251  ;;  %13565 = vmatprep.mubr.msk.bf16.mxu0 %vm14787_vm5, %v19189_v47  ;;  %13571 = vmatprep.mubr.msk.bf16.mxu1 %vm14787_vm5, %v19189_v47  ;;  %v14259_v57 = vunpack.i.h.bf16 %v14257_v32  ;;  %v14258_v60 = vunpack.i.l.bf16 %v14257_v32 }
 0xfab   : > { %v14254_v58 = vunpack.i.h.bf16 %v14252_v42  ;;  %v14253_v28 = vunpack.i.l.bf16 %v14252_v42  ;;  %13575 = vmatprep.subr.bf16.mxu0 %v19189_v47  ;;  %13581 = vmatprep.subr.bf16.mxu1 %v19189_v47  ;;  %v7336_v42 = vsel %vm1448_vm6, %v7331_v25, 0 }
 0xfac   : > { %v17451_v13 = vpack.c.bf16 %v14259_v57, %v14259_v57  ;;  %v17453_v32 = vpack.c.bf16 %v14258_v60, %v14258_v60 }
 0xfad   : > { %v17439_v29 = vpack.c.bf16 %v14254_v58, %v14254_v58  ;;  %v17441_v56 = vpack.c.bf16 %v14253_v28, %v14253_v28  ;;  %v7434_v58 = vsel %vm1448_vm6, %v7429_v26, 0  ;;  %v7576_v26 = vpop.permute.xlu0 %7575 }
 0xfae   : > { %v7478_v44 = vpop.permute.xlu1 %7477 }
 0xfaf   : > { %8163 = vrot.lane.b32.xlu1 %v17439_v29, %s14788_s24  ;;  %8114 = vrot.lane.b32.xlu0 %v17441_v56, %s14788_s24  ;;  %v7483_v57 = vsel %vm1448_vm6, %v7478_v44, 0 }
 0xfb0   : > { %13566 = vmatmul.mubr.msk.bf16.vlgmr.msra.gmra.mrb[200].mxu0 %vm1448_vm6, %v17308_v12  ;;  %13572 = vmatmul.mubr.msk.bf16.vlgmr.msra.gmra.mrb[232].mxu1 %vm1448_vm6, %v17318_v11 }
 0xfb1   : > { %13576 = vmatpush3.bf16.xpose.msra.mxu0 %v7336_v42  ;;  %13582 = vmatpush3.bf16.xpose.msra.mxu1 %v7385_v6 }
 0xfb2   : > { %v7527_v28 = vpop.permute.xlu1 %7526  ;;  %13577 = vmatprep.mubr.msk.bf16.mxu0 %vm14787_vm5, %v19189_v47  ;;  %13583 = vmatprep.mubr.msk.bf16.mxu1 %vm14787_vm5, %v19189_v47 }
 0xfb3   : > { %8261 = vrot.lane.b32.xlu1 %v17451_v13, %s14788_s24  ;;  %8212 = vrot.lane.b32.xlu0 %v17453_v32, %s14788_s24  ;;  %v7532_v44 = vsel %vm1448_vm6, %v7527_v28, 0 }
 0xfb4   : > { %13587 = vmatprep.subr.bf16.mxu0 %v19189_v47  ;;  %13593 = vmatprep.subr.bf16.mxu1 %v19189_v47 }
 0xfb6   : > { %v14262_v7 = vpop.permute.xlu1 %14261 }
 0xfb7   : > { %v14264_v25 = vunpack.i.h.bf16 %v14262_v7  ;;  %v14263_v6 = vunpack.i.l.bf16 %v14262_v7  ;;  %v7581_v7 = vsel %vm1448_vm6, %v7576_v26, 0 }
 0xfb8   : > { %13578 = vmatmul.mubr.msk.bf16.vlgmr.msra.gmra.mrb[204].mxu0 %vm1448_vm6, %v17324_v46  ;;  %13584 = vmatmul.mubr.msk.bf16.vlgmr.msra.gmra.mrb[236].mxu1 %vm1448_vm6, %v17316_v49 }
 0xfb9   : > { %v17471_v60 = vpack.c.bf16 %v14264_v25, %v14264_v25  ;;  %v17473_v42 = vpack.c.bf16 %v14263_v6, %v14263_v6  ;;  %13588 = vmatpush3.bf16.xpose.msra.mxu0 %v7434_v58  ;;  %13594 = vmatpush3.bf16.xpose.msra.mxu1 %v7483_v57 }
 0xfba   : > { %13589 = vmatprep.mubr.msk.bf16.mxu0 %vm14787_vm5, %v19189_v47  ;;  %13595 = vmatprep.mubr.msk.bf16.mxu1 %vm14787_vm5, %v19189_v47 }
 0xfbb   : > { %19310 = vst [vmem:[#allocation74_spill] sm:$0xff] %v17473_v42  ;;  %8359 = vrot.lane.b32.xlu1 %v17471_v60, %s14788_s24  ;;  %8310 = vrot.lane.b32.xlu0 %v17473_v42, %s14788_s24  ;;  %s12167_s24 = sshll.u32 %s510_s19, 2 }
 0xfbc   : > { %13599 = vmatprep.subr.bf16.mxu0 %v19189_v47  ;;  %13605 = vmatprep.subr.bf16.mxu1 %v19189_v47  ;;  %s512_s15 = scalar_lea.vmem %s19003_s13, %s12167_s24 }
 0xfbf   : > { %8871 = vrot.lane.b32.xlu1 %v17277_v24, %s14790_s17  ;;  %8823 = vrot.lane.b32.xlu0 %v17275_v36, %s14790_s17 }
 0xfc0   : > { %13590 = vmatmul.mubr.msk.bf16.vlgmr.msra.gmra.mrb[208].mxu0 %vm1448_vm6, %v17326_v59  ;;  %13596 = vmatmul.mubr.msk.bf16.vlgmr.msra.gmra.mrb[240].mxu1 %vm1448_vm6, %v17336_v16 }
 0xfc1   : > { %13600 = vmatpush3.bf16.xpose.msra.mxu0 %v7532_v44  ;;  %13606 = vmatpush3.bf16.xpose.msra.mxu1 %v7581_v7 }
 0xfc2   : > { %13601 = vmatprep.mubr.msk.bf16.mxu0 %vm14787_vm5, %v19189_v47  ;;  %13607 = vmatprep.mubr.msk.bf16.mxu1 %vm14787_vm5, %v19189_v47 }
 0xfc3   : > { %8967 = vrot.lane.b32.xlu1 %v17281_v55, %s14790_s17  ;;  %8919 = vrot.lane.b32.xlu0 %v17288_v51, %s14790_s17 }
 0xfc4   : > { %13611 = vmatprep.subr.bf16.mxu0 %v19189_v47  ;;  %13617 = vmatprep.subr.bf16.mxu1 %v19189_v47 }
 0xfc7   : > { %9063 = vrot.lane.b32.xlu1 %v17300_v27, %s14790_s17  ;;  %9015 = vrot.lane.b32.xlu0 %v17290_v4, %s14790_s17 }
 0xfc8   : > { %13602 = vmatmul.mubr.msk.bf16.vlgmr.msra.gmra.mrb[212].mxu0 %vm1448_vm6, %v17342_v39  ;;  %13608 = vmatmul.mubr.msk.bf16.vlgmr.msra.gmra.mrb[244].mxu1 %vm1448_vm6, %v17334_v50 }
 0xfc9   : > { %13613 = vmatprep.mubr.msk.bf16.mxu0 %vm14787_vm5, %v19189_v47  ;;  %13619 = vmatprep.mubr.msk.bf16.mxu1 %vm14787_vm5, %v19189_v47 }
 0xfcb   : > { %9159 = vrot.lane.b32.xlu1 %v17298_v61, %s14790_s17  ;;  %9111 = vrot.lane.b32.xlu0 %v17306_v33, %s14790_s17 }
 0xfcf   : > { %9255 = vrot.lane.b32.xlu1 %v17318_v11, %s14790_s17  ;;  %9207 = vrot.lane.b32.xlu0 %v17308_v12, %s14790_s17 }
 0xfd3   : > { %9351 = vrot.lane.b32.xlu1 %v17316_v49, %s14790_s17  ;;  %9303 = vrot.lane.b32.xlu0 %v17324_v46, %s14790_s17 }
 0xfd7   : > { %9447 = vrot.lane.b32.xlu1 %v17336_v16, %s14790_s17  ;;  %9399 = vrot.lane.b32.xlu0 %v17326_v59, %s14790_s17 }
 0xfdb   : > { %9543 = vrot.lane.b32.xlu1 %v17334_v50, %s14790_s17  ;;  %9495 = vrot.lane.b32.xlu0 %v17342_v39, %s14790_s17 }
 0xfdf   : > { %9639 = vrot.lane.b32.xlu1 %v17351_v35, %s14790_s17  ;;  %9591 = vrot.lane.b32.xlu0 %v17353_v5, %s14790_s17 }
 0xfe3   : > { %9735 = vrot.lane.b32.xlu1 %v17371_v22, %s14790_s17  ;;  %9687 = vrot.lane.b32.xlu0 %v17373_v38, %s14790_s17 }
 0xfe7   : > { %9831 = vrot.lane.b32.xlu1 %v17385_v10, %s14790_s17  ;;  %9783 = vrot.lane.b32.xlu0 %v17387_v40, %s14790_s17 }
 0xfeb   : > { %9927 = vrot.lane.b32.xlu1 %v17405_v54, %s14790_s17  ;;  %9879 = vrot.lane.b32.xlu0 %v17407_v45, %s14790_s17 }
0x1001   : > { %v7674_v36 = vpop.permute.xlu1 %7673 }
0x1002   : > { %v7679_v24 = vsel %vm1448_vm6, %v7674_v36, 0  ;;  %v7625_v55 = vpop.permute.xlu0 %7624 }
0x1003   : > { %v7630_v51 = vsel %vm1448_vm6, %v7625_v55, 0  ;;  %13618 = vmatpush3.bf16.xpose.msra.mxu1 %v7679_v24 }
0x1004   : > { %13612 = vmatpush3.bf16.xpose.msra.mxu0 %v7630_v51  ;;  %13629 = vmatprep.subr.bf16.mxu1 %v19189_v47 }
0x1005   : > { %13623 = vmatprep.subr.bf16.mxu0 %v19189_v47 }
0x1009   : > { %v7772_v4 = vpop.permute.xlu1 %7771 }
0x100a   : > { %v7777_v61 = vsel %vm1448_vm6, %v7772_v4, 0  ;;  %v7723_v27 = vpop.permute.xlu0 %7722  ;;  %13620 = vmatmul.mubr.msk.bf16.vlgmr.msra.gmra.mrb[248].mxu1 %vm1448_vm6, %v17351_v35 }
0x100b   : > { %v7728_v33 = vsel %vm1448_vm6, %v7723_v27, 0  ;;  %13614 = vmatmul.mubr.msk.bf16.vlgmr.msra.gmra.mrb[216].mxu0 %vm1448_vm6, %v17353_v5  ;;  %13630 = vmatpush3.bf16.xpose.msra.mxu1 %v7777_v61 }
0x100c   : > { %13624 = vmatpush3.bf16.xpose.msra.mxu0 %v7728_v33  ;;  %13625 = vmatprep.mubr.msk.bf16.mxu0 %vm14787_vm5, %v19189_v47 }
0x100d   : > { %13631 = vmatprep.mubr.msk.bf16.mxu1 %vm14787_vm5, %v19189_v47  ;;  %13635 = vmatprep.subr.bf16.mxu0 %v19189_v47  ;;  %v7870_v12 = vpop.permute.xlu1 %7869 }
0x100e   : > { %13641 = vmatprep.subr.bf16.mxu1 %v19189_v47  ;;  %v7821_v49 = vpop.permute.xlu0 %7820  ;;  %v7875_v11 = vsel %vm1448_vm6, %v7870_v12, 0 }
0x100f   : > { %v7826_v46 = vsel %vm1448_vm6, %v7821_v49, 0 }
0x1012   : > { %13632 = vmatmul.mubr.msk.bf16.vlgmr.msra.gmra.mrb[252].mxu1 %vm1448_vm6, %v17371_v22 }
0x1013   : > { %13626 = vmatmul.mubr.msk.bf16.vlgmr.msra.gmra.mrb[220].mxu0 %vm1448_vm6, %v17373_v38  ;;  %13642 = vmatpush3.bf16.xpose.msra.mxu1 %v7875_v11 }
0x1014   : > { %13636 = vmatpush3.bf16.xpose.msra.mxu0 %v7826_v46  ;;  %13643 = vmatprep.mubr.msk.bf16.mxu1 %vm14787_vm5, %v19189_v47 }
0x1015   : > { %13637 = vmatprep.mubr.msk.bf16.mxu0 %vm14787_vm5, %v19189_v47  ;;  %13647 = vmatprep.subr.bf16.mxu0 %v19189_v47  ;;  %v7968_v59 = vpop.permute.xlu1 %7967  ;;  %v7919_v50 = vpop.permute.xlu0 %7918 }
0x1016   : > { %13653 = vmatprep.subr.bf16.mxu1 %v19189_v47  ;;  %v7973_v16 = vsel %vm1448_vm6, %v7968_v59, 0  ;;  %v7924_v39 = vsel %vm1448_vm6, %v7919_v50, 0 }
0x1019   : > { %v8066_v35 = vpop.permute.xlu1 %8065  ;;  %v8017_v5 = vpop.permute.xlu0 %8016 }
0x101a   : > { %13644 = vmatmul.mubr.msk.bf16.vlgmr.msra.gmra.mrb[0].mxu1 %vm1448_vm6, %v17385_v10  ;;  %v8071_v22 = vsel %vm1448_vm6, %v8066_v35, 0  ;;  %v8022_v38 = vsel %vm1448_vm6, %v8017_v5, 0 }
0x101b   : > { %13638 = vmatmul.mubr.msk.bf16.vlgmr.msra.gmra.mrb[224].mxu0 %vm1448_vm6, %v17387_v40  ;;  %13654 = vmatpush3.bf16.xpose.msra.mxu1 %v7973_v16 }
0x101c   : > { %13648 = vmatpush3.bf16.xpose.msra.mxu0 %v7924_v39  ;;  %13655 = vmatprep.mubr.msk.bf16.mxu1 %vm14787_vm5, %v19189_v47 }
0x101d   : > { %13649 = vmatprep.mubr.msk.bf16.mxu0 %vm14787_vm5, %v19189_v47  ;;  %13659 = vmatprep.subr.bf16.mxu0 %v19189_v47 }
0x101e   : > { %13665 = vmatprep.subr.bf16.mxu1 %v19189_v47 }
0x1021   : > { %v8164_v10 = vpop.permute.xlu1 %8163  ;;  %v8115_v40 = vpop.permute.xlu0 %8114 }
0x1022   : > { %13656 = vmatmul.mubr.msk.bf16.vlgmr.msra.gmra.mrb[4].mxu1 %vm1448_vm6, %v17405_v54  ;;  %v8169_v54 = vsel %vm1448_vm6, %v8164_v10, 0 }
0x1023   : > { %13650 = vmatmul.mubr.msk.bf16.vlgmr.msra.gmra.mrb[228].mxu0 %vm1448_vm6, %v17407_v45  ;;  %13666 = vmatpush3.bf16.xpose.msra.mxu1 %v8071_v22  ;;  %v8120_v45 = vsel %vm1448_vm6, %v8115_v40, 0 }
0x1024   : > { %13660 = vmatpush3.bf16.xpose.msra.mxu0 %v8022_v38  ;;  %13661 = vmatprep.mubr.msk.bf16.mxu0 %vm14787_vm5, %v19189_v47 }
0x1025   : > { %13667 = vmatprep.mubr.msk.bf16.mxu1 %vm14787_vm5, %v19189_v47  ;;  %13671 = vmatprep.subr.bf16.mxu0 %v19189_v47  ;;  %v8262_v28 = vpop.permute.xlu1 %8261  ;;  %v8213_v25 = vpop.permute.xlu0 %8212 }
0x1026   : > { %13677 = vmatprep.subr.bf16.mxu1 %v19189_v47  ;;  %v8267_v6 = vsel %vm1448_vm6, %v8262_v28, 0  ;;  %v8218_v58 = vsel %vm1448_vm6, %v8213_v25, 0 }
0x102a   : > { %13668 = vmatmul.mubr.msk.bf16.vlgmr.msra.gmra.mrb[8].mxu1 %vm1448_vm6, %v17418_v53 }
0x102b   : > { %13662 = vmatmul.mubr.msk.bf16.vlgmr.msra.gmra.mrb[232].mxu0 %vm1448_vm6, %v17420_v21  ;;  %13678 = vmatpush3.bf16.xpose.msra.mxu1 %v8169_v54 }
0x102c   : > { %13672 = vmatpush3.bf16.xpose.msra.mxu0 %v8120_v45  ;;  %13679 = vmatprep.mubr.msk.bf16.mxu1 %vm14787_vm5, %v19189_v47 }
0x102d   : > { %13673 = vmatprep.mubr.msk.bf16.mxu0 %vm14787_vm5, %v19189_v47  ;;  %13683 = vmatprep.subr.bf16.mxu0 %v19189_v47  ;;  %v8360_v57 = vpop.permute.xlu1 %8359  ;;  %v8311_v26 = vpop.permute.xlu0 %8310 }
0x102e   : > { %13689 = vmatprep.subr.bf16.mxu1 %v19189_v47  ;;  %v8365_v44 = vsel %vm1448_vm6, %v8360_v57, 0  ;;  %v8316_v7 = vsel %vm1448_vm6, %v8311_v26, 0 }
0x1031   : > { %v8872_v36 = vpop.permute.xlu1 %8871  ;;  %v8824_v24 = vpop.permute.xlu0 %8823 }
0x1032   : > { %13680 = vmatmul.mubr.msk.bf16.vlgmr.msra.gmra.mrb[12].mxu1 %vm1448_vm6, %v17439_v29  ;;  %v8877_v55 = vsel %vm3435_vm7, %v8872_v36, 0  ;;  %v8829_v51 = vsel %vm3435_vm7, %v8824_v24, 0 }
0x1033   : > { %13674 = vmatmul.mubr.msk.bf16.vlgmr.msra.gmra.mrb[236].mxu0 %vm1448_vm6, %v17441_v56  ;;  %13690 = vmatpush3.bf16.xpose.msra.mxu1 %v8267_v6 }
0x1034   : > { %13684 = vmatpush3.bf16.xpose.msra.mxu0 %v8218_v58  ;;  %13691 = vmatprep.mubr.msk.bf16.mxu1 %vm14787_vm5, %v19189_v47 }
0x1035   : > { %13685 = vmatprep.mubr.msk.bf16.mxu0 %vm14787_vm5, %v19189_v47  ;;  %13695 = vmatprep.subr.bf16.mxu0 %v19189_v47 }
0x1036   : > { %13701 = vmatprep.subr.bf16.mxu1 %v19189_v47 }
0x103a   : > { %13692 = vmatmul.mubr.msk.bf16.vlgmr.msra.gmra.mrb[16].mxu1 %vm1448_vm6, %v17451_v13 }
0x103b   : > { %13686 = vmatmul.mubr.msk.bf16.vlgmr.msra.gmra.mrb[240].mxu0 %vm1448_vm6, %v17453_v32  ;;  %13702 = vmatpush3.bf16.xpose.msra.mxu1 %v8365_v44 }
0x103c   : > { %13696 = vmatpush3.bf16.xpose.msra.mxu0 %v8316_v7  ;;  %13703 = vmatprep.mubr.msk.bf16.mxu1 %vm14787_vm5, %v19189_v47 }
0x103d   : > { %13697 = vmatprep.mubr.msk.bf16.mxu0 %vm14787_vm5, %v19189_v47  ;;  %13707 = vmatprep.subr.bf16.mxu0 %v19189_v47 }
0x103e   : > { %13713 = vmatprep.subr.bf16.mxu1 %v19189_v47 }
0x1042   : > { %13704 = vmatmul.mubr.msk.bf16.vlgmr.msra.gmra.mrb[20].mxu1 %vm1448_vm6, %v17471_v60 }
0x1043   : > { %13698 = vmatmul.mubr.msk.bf16.vlgmr.msra.gmra.mrb[244].mxu0 %vm1448_vm6, %v17473_v42  ;;  %13714 = vmatpush3.bf16.msra.mxu1 %v8877_v55 }
0x1044   : > { %13708 = vmatpush3.bf16.msra.mxu0 %v8829_v51  ;;  %13709 = vmatprep.mubr.msk.bf16.mxu0 %vm14787_vm5, %v19189_v47 }
0x1045   : > { %13715 = vmatprep.mubr.msk.bf16.mxu1 %vm14787_vm5, %v19189_v47  ;;  %13719 = vmatprep.subr.bf16.mxu0 %v19189_v47 }
0x1046   : > { %13725 = vmatprep.subr.bf16.mxu1 %v19189_v47 }
0x1060   : > { %v6882_v4 = vpop.f32.mrb[184].mxu0 }
0x1061   : > { %v17655_v61 = vmul.f32 0.35355338, %v6882_v4  ;;  %v13519_v27 = vpop.f32.mrb[185].mxu0 }
0x1062   : > { %v6885_v33 = vpop.f32.mrb[186].mxu0  ;;  %v6931_v12 = vpop.f32.mrb[216].mxu1 }
0x1063   : > { %v17657_v49 = vmul.f32 0.35355338, %v6931_v12  ;;  %v13520_v11 = vpop.f32.mrb[187].mxu0  ;;  %v13525_v46 = vpop.f32.mrb[217].mxu1  ;;  %v8439_v59 = vsel %vm1448_vm6, %v17655_v61, -inf }
0x1064   : > { %v6934_v50 = vpop.f32.mrb[218].mxu1  ;;  %8440 = vmax.xlane.f32.xlu0 %v8439_v59 }
0x1065   : > { %v13526_v16 = vpop.f32.mrb[219].mxu1  ;;  %v8442_v39 = vsel %vm1448_vm6, %v17657_v49, -inf }
0x1066   : > { %8443 = vmax.xlane.f32.xlu1 %v8442_v39 }
0x106a   : > { %v6980_v35 = vpop.f32.mrb[188].mxu0 }
0x106b   : > { %v17663_v5 = vmul.f32 0.35355338, %v6980_v35  ;;  %v7029_v22 = vpop.f32.mrb[220].mxu1  ;;  %v13531_v38 = vpop.f32.mrb[189].mxu0 }
0x106c   : > { %v13537_v10 = vpop.f32.mrb[221].mxu1  ;;  %v6983_v40 = vpop.f32.mrb[190].mxu0  ;;  %v17665_v54 = vmul.f32 0.35355338, %v7029_v22 }
0x106d   : > { %v7032_v45 = vpop.f32.mrb[222].mxu1  ;;  %v13532_v28 = vpop.f32.mrb[191].mxu0  ;;  %v8445_v25 = vsel %vm1448_vm6, %v17663_v5, -inf }
0x106e   : > { %v13538_v6 = vpop.f32.mrb[223].mxu1  ;;  %8446 = vmax.xlane.f32.xlu0 %v8445_v25  ;;  %v8448_v58 = vsel %vm1448_vm6, %v17665_v54, -inf }
0x1072   : > { %8449 = vmax.xlane.f32.xlu0 %v8448_v58 }
0x1073   : > { %v7078_v57 = vpop.f32.mrb[192].mxu0  ;;  %v7127_v26 = vpop.f32.mrb[224].mxu1 }
0x1074   : > { %v17671_v44 = vmul.f32 0.35355338, %v7078_v57  ;;  %v17673_v7 = vmul.f32 0.35355338, %v7127_v26  ;;  %v13543_v36 = vpop.f32.mrb[193].mxu0  ;;  %v13549_v24 = vpop.f32.mrb[225].mxu1 }
0x1075   : > { %v7081_v55 = vpop.f32.mrb[194].mxu0  ;;  %v7130_v51 = vpop.f32.mrb[226].mxu1 }
0x1076   : > { %v13544_v4 = vpop.f32.mrb[195].mxu0  ;;  %v13550_v27 = vpop.f32.mrb[227].mxu1  ;;  %v8454_v33 = vsel %vm1448_vm6, %v17673_v7, -inf  ;;  %v8451_v12 = vsel %vm1448_vm6, %v17671_v44, -inf }
0x1077   : > { %8455 = vmax.xlane.f32.xlu1 %v8454_v33  ;;  %8452 = vmax.xlane.f32.xlu0 %v8451_v12 }
0x107b   : > { %v7176_v11 = vpop.f32.mrb[196].mxu0  ;;  %v7225_v59 = vpop.f32.mrb[228].mxu1 }
0x107c   : > { %v17679_v46 = vmul.f32 0.35355338, %v7176_v11  ;;  %v13555_v50 = vpop.f32.mrb[197].mxu0  ;;  %v17681_v16 = vmul.f32 0.35355338, %v7225_v59  ;;  %v13561_v39 = vpop.f32.mrb[229].mxu1 }
0x107d   : > { %v7179_v35 = vpop.f32.mrb[198].mxu0  ;;  %v7228_v22 = vpop.f32.mrb[230].mxu1 }
0x107e   : > { %v13556_v38 = vpop.f32.mrb[199].mxu0  ;;  %v8457_v10 = vsel %vm1448_vm6, %v17679_v46, -inf  ;;  %v13562_v40 = vpop.f32.mrb[231].mxu1  ;;  %v8460_v45 = vsel %vm1448_vm6, %v17681_v16, -inf }
0x107f   : > { %8458 = vmax.xlane.f32.xlu0 %v8457_v10  ;;  %8461 = vmax.xlane.f32.xlu1 %v8460_v45 }
0x1083   : > { %v7274_v28 = vpop.f32.mrb[200].mxu0  ;;  %v7323_v6 = vpop.f32.mrb[232].mxu1 }
0x1084   : > { %v17687_v25 = vmul.f32 0.35355338, %v7274_v28  ;;  %v13567_v58 = vpop.f32.mrb[201].mxu0  ;;  %v17689_v57 = vmul.f32 0.35355338, %v7323_v6  ;;  %v13573_v26 = vpop.f32.mrb[233].mxu1 }
0x1085   : > { %v7277_v36 = vpop.f32.mrb[202].mxu0  ;;  %v7326_v24 = vpop.f32.mrb[234].mxu1 }
0x1086   : > { %v13568_v55 = vpop.f32.mrb[203].mxu0  ;;  %v8463_v51 = vsel %vm1448_vm6, %v17687_v25, -inf  ;;  %v13574_v4 = vpop.f32.mrb[235].mxu1  ;;  %v8466_v27 = vsel %vm1448_vm6, %v17689_v57, -inf }
0x1087   : > { %8464 = vmax.xlane.f32.xlu0 %v8463_v51  ;;  %8467 = vmax.xlane.f32.xlu1 %v8466_v27 }
0x108b   : > { %v7372_v33 = vpop.f32.mrb[204].mxu0  ;;  %v7421_v11 = vpop.f32.mrb[236].mxu1 }
0x108c   : > { %v17695_v12 = vmul.f32 0.35355338, %v7372_v33  ;;  %v13579_v59 = vpop.f32.mrb[205].mxu0  ;;  %v17697_v50 = vmul.f32 0.35355338, %v7421_v11  ;;  %v13585_v39 = vpop.f32.mrb[237].mxu1 }
0x108d   : > { %v7375_v35 = vpop.f32.mrb[206].mxu0  ;;  %v7424_v22 = vpop.f32.mrb[238].mxu1 }
0x108e   : > { %v13580_v38 = vpop.f32.mrb[207].mxu0  ;;  %v8469_v10 = vsel %vm1448_vm6, %v17695_v12, -inf  ;;  %v13586_v40 = vpop.f32.mrb[239].mxu1  ;;  %v8472_v45 = vsel %vm1448_vm6, %v17697_v50, -inf }
0x108f   : > { %8470 = vmax.xlane.f32.xlu0 %v8469_v10  ;;  %8473 = vmax.xlane.f32.xlu1 %v8472_v45 }
0x1093   : > { %v7470_v28 = vpop.f32.mrb[208].mxu0  ;;  %v7519_v58 = vpop.f32.mrb[240].mxu1 }
0x1094   : > { %v17703_v6 = vmul.f32 0.35355338, %v7470_v28  ;;  %v13591_v26 = vpop.f32.mrb[209].mxu0  ;;  %v17705_v36 = vmul.f32 0.35355338, %v7519_v58  ;;  %v13597_v24 = vpop.f32.mrb[241].mxu1 }
0x1095   : > { %v7473_v55 = vpop.f32.mrb[210].mxu0  ;;  %v7522_v51 = vpop.f32.mrb[242].mxu1 }
0x1096   : > { %v13592_v4 = vpop.f32.mrb[211].mxu0  ;;  %v8475_v27 = vsel %vm1448_vm6, %v17703_v6, -inf  ;;  %v13598_v33 = vpop.f32.mrb[243].mxu1  ;;  %v8478_v11 = vsel %vm1448_vm6, %v17705_v36, -inf }
0x1097   : > { %8476 = vmax.xlane.f32.xlu0 %v8475_v27  ;;  %8479 = vmax.xlane.f32.xlu1 %v8478_v11  ;;  %v17717_v26 = vpop.permute.xlu1 %8967  ;;  %v17723_v24 = vpop.permute.xlu0 %8919 }
0x109b   : > { %v7568_v59 = vpop.f32.mrb[212].mxu0  ;;  %v7617_v35 = vpop.f32.mrb[244].mxu1 }
0x109c   : > { %v17711_v39 = vmul.f32 0.35355338, %v7568_v59  ;;  %v13603_v22 = vpop.f32.mrb[213].mxu0  ;;  %v13609_v38 = vpop.f32.mrb[245].mxu1 }
0x109d   : > { %v7571_v10 = vpop.f32.mrb[214].mxu0  ;;  %v7620_v40 = vpop.f32.mrb[246].mxu1  ;;  %v17747_v22 = vmul.f32 0.35355338, %v7617_v35 }
0x109e   : > { %v13604_v45 = vpop.f32.mrb[215].mxu0  ;;  %v8481_v28 = vsel %vm1448_vm6, %v17711_v39, -inf  ;;  %v13610_v58 = vpop.f32.mrb[247].mxu1 }
0x109f   : > { %8482 = vmax.xlane.f32.xlu0 %v8481_v28  ;;  %v17725_v55 = vpop.permute.xlu1 %9063  ;;  %v17729_v51 = vpop.permute.xlu0 %9015  ;;  %v8484_v38 = vsel %vm1448_vm6, %v17747_v22, -inf }
0x10a3   : > { %v17731_v4 = vpop.permute.xlu1 %9159 }
0x10a7   : > { %v17735_v27 = vpop.permute.xlu1 %9255 }
0x10a8   : > { %10023 = vrot.lane.b32.xlu1 %v17418_v53, %s14790_s17  ;;  %v17733_v53 = vpop.permute.xlu0 %9111 }
0x10ac   : > { %10071 = vrot.lane.b32.xlu1 %v17441_v56, %s14790_s17  ;;  %v17737_v33 = vpop.permute.xlu0 %9207  ;;  %v17739_v56 = vpop.permute.xlu1 %9351 }
0x10b0   : > { %10119 = vrot.lane.b32.xlu1 %v17439_v29, %s14790_s17  ;;  %v17741_v29 = vpop.permute.xlu0 %9303  ;;  %v17743_v11 = vpop.permute.xlu1 %9447 }
0x10b4   : > { %v17745_v59 = vpop.permute.xlu0 %9399 }
0x10b5   : > { %9975 = vrot.lane.b32.xlu0 %v17420_v21, %s14790_s17  ;;  %v17749_v21 = vpop.permute.xlu1 %9543 }
0x10b8   : > { %v17753_v10 = vpop.permute.xlu0 %9495 }
0x10b9   : > { %v17755_v40 = vpop.permute.xlu1 %9639 }
0x10ba   : > { %19311 = vst [vmem:[#allocation75_spill] sm:$0xff] %v17755_v40 }
0x10bc   : > { %v17757_v45 = vpop.permute.xlu0 %9591 }
0x10bd   : > { %v17759_v28 = vpop.permute.xlu1 %9735 }
0x10be   : > { %19312 = vst [vmem:[#allocation76_spill] sm:$0xff] %v17759_v28 }
0x10c0   : > { %v17769_v17 = vpop.permute.xlu0 %9687 }
0x10c1   : > { %19313 = vst [vmem:[#allocation77_spill] sm:$0xff] %v17769_v17 }
0x10c4   : > { %v17781_v31 = vpop.permute.xlu0 %9783 }
0x10c5   : > { %19315 = vst [vmem:[#allocation79_spill] sm:$0xff] %v17781_v31 }
0x10c8   : > { %v17791_v30 = vpop.permute.xlu0 %9879 }
0x10c9   : > { %19317 = vst [vmem:[#allocation81_spill] sm:$0xff] %v17791_v30 }
0x10d4   : > { %8485 = vmax.xlane.f32.xlu1 %v8484_v38 }
0x10dd   : > { %v7715_v58 = vpop.f32.mrb[248].mxu1 }
0x10de   : > { %v7666_v37 = vpop.f32.mrb[216].mxu0  ;;  %v17761_v63 = vmul.f32 0.35355338, %v7715_v58  ;;  %v13621_v35 = vpop.f32.mrb[249].mxu1 }
0x10df   : > { %v17763_v52 = vmul.f32 0.35355338, %v7666_v37  ;;  %v13615_v34 = vpop.f32.mrb[217].mxu0  ;;  %v7718_v18 = vpop.f32.mrb[250].mxu1 }
0x10e0   : > { %v7669_v19 = vpop.f32.mrb[218].mxu0  ;;  %v13622_v8 = vpop.f32.mrb[251].mxu1  ;;  %v8490_v38 = vsel %vm1448_vm6, %v17761_v63, -inf }
0x10e1   : > { %v13616_v15 = vpop.f32.mrb[219].mxu0  ;;  %8491 = vmax.xlane.f32.xlu1 %v8490_v38  ;;  %v8487_v62 = vsel %vm1448_vm6, %v17763_v52, -inf  ;;  %v17771_v58 = vpop.permute.xlu1 %9831 }
0x10e2   : > { %8488 = vmax.xlane.f32.xlu0 %v8487_v62  ;;  %19314 = vst [vmem:[#allocation78_spill] sm:$0xff] %v17771_v58 }
0x10e5   : > { %v7813_v35 = vpop.f32.mrb[252].mxu1 }
0x10e6   : > { %v7764_v37 = vpop.f32.mrb[220].mxu0  ;;  %v17773_v1 = vmul.f32 0.35355338, %v7813_v35  ;;  %v13633_v18 = vpop.f32.mrb[253].mxu1 }
0x10e7   : > { %v17775_v19 = vmul.f32 0.35355338, %v7764_v37  ;;  %v13627_v8 = vpop.f32.mrb[221].mxu0  ;;  %v7816_v34 = vpop.f32.mrb[254].mxu1 }
0x10e8   : > { %v7767_v0 = vpop.f32.mrb[222].mxu0  ;;  %v13634_v15 = vpop.f32.mrb[255].mxu1  ;;  %v8496_v38 = vsel %vm1448_vm6, %v17773_v1, -inf }
0x10e9   : > { %v13628_v2 = vpop.f32.mrb[223].mxu0  ;;  %8497 = vmax.xlane.f32.xlu1 %v8496_v38  ;;  %v8493_v62 = vsel %vm1448_vm6, %v17775_v19, -inf  ;;  %v17783_v35 = vpop.permute.xlu1 %9927 }
0x10ea   : > { %8494 = vmax.xlane.f32.xlu0 %v8493_v62  ;;  %19316 = vst [vmem:[#allocation80_spill] sm:$0xff] %v17783_v35 }
0x10ed   : > { %v7911_v18 = vpop.f32.mrb[0].mxu1 }
0x10ee   : > { %v7862_v37 = vpop.f32.mrb[224].mxu0  ;;  %v17785_v3 = vmul.f32 0.35355338, %v7911_v18  ;;  %v13645_v8 = vpop.f32.mrb[1].mxu1 }
0x10ef   : > { %v17787_v0 = vmul.f32 0.35355338, %v7862_v37  ;;  %v13639_v34 = vpop.f32.mrb[225].mxu0  ;;  %v7914_v15 = vpop.f32.mrb[2].mxu1 }
0x10f0   : > { %v7865_v23 = vpop.f32.mrb[226].mxu0  ;;  %v13646_v2 = vpop.f32.mrb[3].mxu1  ;;  %v8502_v38 = vsel %vm1448_vm6, %v17785_v3, -inf }
0x10f1   : > { %v13640_v62 = vpop.f32.mrb[227].mxu0  ;;  %8503 = vmax.xlane.f32.xlu1 %v8502_v38  ;;  %v8499_v14 = vsel %vm1448_vm6, %v17787_v0, -inf  ;;  %v8441_v9 = vpop.xlane.xlu0 %8440 }
0x10f2   : > { %8500 = vmax.xlane.f32.xlu0 %v8499_v14  ;;  %v8535_v62 = vsub.f32 %v17655_v61, %v8441_v9 }
0x10f3   : > { %v8444_v18 = vpop.xlane.xlu1 %8443 }
0x10f4   : > { %v8536_v23 = vsub.f32 %v17657_v49, %v8444_v18  ;;  %v8567_v49 = vmul.f32 1.442695, %v8535_v62 }
0x10f5   : > { %v8009_v8 = vpop.f32.mrb[4].mxu1 }
0x10f6   : > { %v7960_v37 = vpop.f32.mrb[228].mxu0  ;;  %v17795_v48 = vmul.f32 0.35355338, %v8009_v8  ;;  %v13657_v34 = vpop.f32.mrb[5].mxu1 }
0x10f7   : > { %v17798_v15 = vmul.f32 0.35355338, %v7960_v37  ;;  %v13651_v2 = vpop.f32.mrb[229].mxu0  ;;  %v8012_v41 = vpop.f32.mrb[6].mxu1  ;;  %v8569_v34 = vmul.f32 1.442695, %v8536_v23 }
0x10f8   : > { %v7963_v38 = vpop.f32.mrb[230].mxu0  ;;  %v13658_v43 = vpop.f32.mrb[7].mxu1  ;;  %v8508_v14 = vsel %vm1448_vm6, %v17795_v48, -inf }
0x10f9   : > { %v13652_v20 = vpop.f32.mrb[231].mxu0  ;;  %8509 = vmax.xlane.f32.xlu1 %v8508_v14  ;;  %v8505_v8 = vsel %vm1448_vm6, %v17798_v15, -inf  ;;  %14505 = vpow2.f32 %v8569_v34 }
0x10fa   : > { %8506 = vmax.xlane.f32.xlu0 %v8505_v8  ;;  %14507 = vpow2.f32 %v8567_v49 }
0x10fb   : > { %v8447_v30 = vpop.xlane.xlu0 %8446 }
0x10fc   : > { %v8537_v20 = vsub.f32 %v17663_v5, %v8447_v30 }
0x10fd   : > { %v8107_v18 = vpop.f32.mrb[8].mxu1 }
0x10fe   : > { %v8058_v37 = vpop.f32.mrb[232].mxu0  ;;  %v17805_v2 = vmul.f32 0.35355338, %v8107_v18  ;;  %v13669_v41 = vpop.f32.mrb[9].mxu1 }
0x10ff   : > { %v17807_v9 = vmul.f32 0.35355338, %v8058_v37  ;;  %v13663_v43 = vpop.f32.mrb[233].mxu0  ;;  %v8110_v61 = vpop.f32.mrb[10].mxu1  ;;  %v8571_v37 = vmul.f32 1.442695, %v8537_v20 }
0x1100   : > { %v8061_v38 = vpop.f32.mrb[234].mxu0  ;;  %v8450_v14 = vpop.xlane.xlu0 %8449  ;;  %v8514_v23 = vsel %vm1448_vm6, %v17805_v2, -inf }
0x1101   : > { %v8538_v62 = vsub.f32 %v17665_v54, %v8450_v14  ;;  %v13664_v8 = vpop.f32.mrb[235].mxu0  ;;  %v13670_v35 = vpop.f32.mrb[11].mxu1  ;;  %8515 = vmax.xlane.f32.xlu1 %v8514_v23  ;;  %v8511_v34 = vsel %vm1448_vm6, %v17807_v9, -inf }
0x1102   : > { %8512 = vmax.xlane.f32.xlu0 %v8511_v34 }
0x1103   : > { %v8573_v18 = vmul.f32 1.442695, %v8538_v62  ;;  %v17823_v62 = vpop.eup %14505 }
0x1104   : > { %v8456_v41 = vpop.xlane.xlu1 %8455  ;;  %v8453_v49 = vpop.xlane.xlu0 %8452 }
0x1105   : > { %v8205_v43 = vpop.f32.mrb[12].mxu1  ;;  %14509 = vpow2.f32 %v8573_v18  ;;  %v8540_v38 = vsub.f32 %v17673_v7, %v8456_v41  ;;  %v8539_v35 = vsub.f32 %v17671_v44, %v8453_v49  ;;  %v8634_v49 = vsel %vm1448_vm6, %v17823_v62, 0.0 }
0x1106   : > { %v8156_v30 = vpop.f32.mrb[236].mxu0  ;;  %v17815_v5 = vmul.f32 0.35355338, %v8205_v43  ;;  %v13681_v61 = vpop.f32.mrb[13].mxu1  ;;  %14511 = vpow2.f32 %v8571_v37 }
0x1107   : > { %v17818_v54 = vmul.f32 0.35355338, %v8156_v30  ;;  %v13675_v14 = vpop.f32.mrb[237].mxu0  ;;  %v8208_v23 = vpop.f32.mrb[14].mxu1  ;;  %v8577_v37 = vmul.f32 1.442695, %v8540_v38 }
0x1108   : > { %v8520_v20 = vsel %vm1448_vm6, %v17815_v5, -inf  ;;  %v8159_v8 = vpop.f32.mrb[238].mxu0  ;;  %v13682_v34 = vpop.f32.mrb[15].mxu1  ;;  %v8575_v41 = vmul.f32 1.442695, %v8539_v35 }
0x1109   : > { %8521 = vmax.xlane.f32.xlu1 %v8520_v20  ;;  %v8517_v18 = vsel %vm1448_vm6, %v17818_v54, -inf  ;;  %v17827_v43 = vpop.eup %14507  ;;  %v13676_v7 = vpop.f32.mrb[239].mxu0  ;;  %14513 = vpow2.f32 %v8577_v37 }
0x110a   : > { %8518 = vmax.xlane.f32.xlu0 %v8517_v18  ;;  %v8631_v23 = vsel %vm1448_vm6, %v17827_v43, 0.0  ;;  %14515 = vpow2.f32 %v8575_v41 }
0x110c   : > { %v8459_v44 = vpop.xlane.xlu0 %8458  ;;  %v8462_v30 = vpop.xlane.xlu1 %8461 }
0x110d   : > { %v8541_v61 = vsub.f32 %v17679_v46, %v8459_v44  ;;  %v8303_v14 = vpop.f32.mrb[16].mxu1  ;;  %8635 = vadd.xlane.f32.xlu1 %v8634_v49  ;;  %v8542_v20 = vsub.f32 %v17681_v16, %v8462_v30 }
0x110e   : > { %v17835_v8 = vmul.f32 0.35355338, %v8303_v14  ;;  %v8254_v34 = vpop.f32.mrb[240].mxu0  ;;  %8632 = vadd.xlane.f32.xlu0 %v8631_v23  ;;  %v13693_v38 = vpop.f32.mrb[17].mxu1 }
0x110f   : > { %v8579_v35 = vmul.f32 1.442695, %v8541_v61  ;;  %v17837_v18 = vmul.f32 0.35355338, %v8254_v34  ;;  %v13687_v7 = vpop.f32.mrb[241].mxu0  ;;  %v8306_v31 = vpop.f32.mrb[18].mxu1 }
0x1110   : > { %v8581_v46 = vmul.f32 1.442695, %v8542_v20  ;;  %v8257_v44 = vpop.f32.mrb[242].mxu0  ;;  %v13694_v49 = vpop.f32.mrb[19].mxu1  ;;  %v8526_v58 = vsel %vm1448_vm6, %v17835_v8, -inf }
0x1111   : > { %v17841_v17 = vpop.eup %14509  ;;  %v13688_v16 = vpop.f32.mrb[243].mxu0  ;;  %8527 = vmax.xlane.f32.xlu1 %v8526_v58  ;;  %v8523_v30 = vsel %vm1448_vm6, %v17837_v18, -inf  ;;  %14517 = vpow2.f32 %v8579_v35 }
0x1112   : > { %v17845_v37 = vpop.eup %14511  ;;  %8524 = vmax.xlane.f32.xlu0 %v8523_v30  ;;  %14519 = vpow2.f32 %v8581_v46  ;;  %v8640_v41 = vsel %vm1448_vm6, %v17841_v17, 0.0 }
0x1113   : > { %v8637_v20 = vsel %vm1448_vm6, %v17845_v37, 0.0  ;;  %v17859_v28 = vpop.eup %14513 }
0x1114   : > { %v8465_v31 = vpop.xlane.xlu0 %8464  ;;  %v8468_v61 = vpop.xlane.xlu1 %8467 }
0x1115   : > { %v8543_v14 = vsub.f32 %v17687_v25, %v8465_v31  ;;  %v8401_v23 = vpop.f32.mrb[20].mxu1  ;;  %8641 = vadd.xlane.f32.xlu1 %v8640_v41  ;;  %v8544_v58 = vsub.f32 %v17689_v57, %v8468_v61  ;;  %v17863_v61 = vpop.eup %14515 }
0x1116   : > { %v8352_v34 = vpop.f32.mrb[244].mxu0  ;;  %v17853_v38 = vmul.f32 0.35355338, %v8401_v23  ;;  %8638 = vadd.xlane.f32.xlu0 %v8637_v20  ;;  %v13705_v35 = vpop.f32.mrb[21].mxu1 }
0x1117   : > { %v8583_v7 = vmul.f32 1.442695, %v8543_v14  ;;  %v17855_v46 = vmul.f32 0.35355338, %v8352_v34  ;;  %v13699_v44 = vpop.f32.mrb[245].mxu0  ;;  %v8404_v49 = vpop.f32.mrb[22].mxu1 }
0x1118   : > { %v8585_v16 = vmul.f32 1.442695, %v8544_v58  ;;  %v8355_v30 = vpop.f32.mrb[246].mxu0  ;;  %v13706_v25 = vpop.f32.mrb[23].mxu1  ;;  %v8532_v31 = vsel %vm1448_vm6, %v17853_v38, -inf  ;;  %v8646_v34 = vsel %vm1448_vm6, %v17859_v28, 0.0 }
0x1119   : > { %14521 = vpow2.f32 %v8583_v7  ;;  %v13700_v57 = vpop.f32.mrb[247].mxu0  ;;  %v8529_v41 = vsel %vm1448_vm6, %v17855_v46, -inf  ;;  %v8643_v35 = vsel %vm1448_vm6, %v17863_v61, 0.0 }
0x111a   : > { %14523 = vpow2.f32 %v8585_v16  ;;  %8533 = vmax.xlane.f32.xlu0 %v8532_v31  ;;  %8530 = vmax.xlane.f32.xlu1 %v8529_v41 }
0x111b   : > { %v17865_v23 = vpop.eup %14517 }
0x111c   : > { %v8471_v14 = vpop.xlane.xlu0 %8470  ;;  %v8474_v20 = vpop.xlane.xlu1 %8473 }
0x111d   : > { %v8545_v58 = vsub.f32 %v17695_v12, %v8471_v14  ;;  %v17872_v7 = vpop.eup %14519  ;;  %v8546_v44 = vsub.f32 %v17697_v50, %v8474_v20  ;;  %v8649_v12 = vsel %vm1448_vm6, %v17865_v23, 0.0 }
0x111e   : > { %8647 = vadd.xlane.f32.xlu1 %v8646_v34  ;;  %8644 = vadd.xlane.f32.xlu0 %v8643_v35  ;;  %v8652_v30 = vsel %vm1448_vm6, %v17872_v7, 0.0 }
0x111f   : > { %v8587_v49 = vmul.f32 1.442695, %v8545_v58  ;;  %v8589_v16 = vmul.f32 1.442695, %v8546_v44 }
0x1121   : > { %14525 = vpow2.f32 %v8587_v49 }
0x1122   : > { %14527 = vpow2.f32 %v8589_v16  ;;  %8653 = vadd.xlane.f32.xlu1 %v8652_v30  ;;  %8650 = vadd.xlane.f32.xlu0 %v8649_v12 }
0x1123   : > { %v17879_v25 = vpop.eup %14521 }
0x1124   : > { %v17881_v31 = vpop.eup %14523  ;;  %v8477_v57 = vpop.xlane.xlu0 %8476  ;;  %v8655_v50 = vsel %vm1448_vm6, %v17879_v25, 0.0 }
0x1125   : > { %v8480_v41 = vpop.xlane.xlu1 %8479  ;;  %v8547_v14 = vsub.f32 %v17703_v6, %v8477_v57  ;;  %v8658_v20 = vsel %vm1448_vm6, %v17881_v31, 0.0 }
0x1126   : > { %v8548_v58 = vsub.f32 %v17705_v36, %v8480_v41  ;;  %8659 = vadd.xlane.f32.xlu1 %v8658_v20  ;;  %8656 = vadd.xlane.f32.xlu0 %v8655_v50 }
0x1127   : > { %v8591_v34 = vmul.f32 1.442695, %v8547_v14 }
0x1128   : > { %v8593_v35 = vmul.f32 1.442695, %v8548_v58 }
0x1129   : > { %14529 = vpow2.f32 %v8591_v34  ;;  %v17910_v58 = vpop.permute.xlu1 %10023 }
0x112a   : > { %14531 = vpow2.f32 %v8593_v35  ;;  %19318 = vst [vmem:[#allocation82_spill] sm:$0xff] %v17910_v58 }
0x112b   : > { %v17889_v44 = vpop.eup %14525 }
0x112c   : > { %v17891_v49 = vpop.eup %14527  ;;  %v8483_v16 = vpop.xlane.xlu0 %8482  ;;  %v8661_v30 = vsel %vm1448_vm6, %v17889_v44, 0.0 }
0x112d   : > { %v8549_v6 = vsub.f32 %v17711_v39, %v8483_v16  ;;  %v8664_v12 = vsel %vm1448_vm6, %v17891_v49, 0.0  ;;  %8662 = vadd.xlane.f32.xlu1 %v8661_v30  ;;  %v17912_v34 = vpop.permute.xlu1 %10071 }
0x112e   : > { %8665 = vadd.xlane.f32.xlu0 %v8664_v12  ;;  %19319 = vst [vmem:[#allocation83_spill] sm:$0xff] %v17912_v34 }
0x112f   : > { %v8595_v36 = vmul.f32 1.442695, %v8549_v6 }
0x1130   : > { %v17917_v12 = vpop.permute.xlu0 %9975 }
0x1131   : > { %14533 = vpow2.f32 %v8595_v36  ;;  %v17914_v35 = vpop.permute.xlu1 %10119 }
0x1132   : > { %19320 = vst [vmem:[#allocation84_spill] sm:$0xff] %v17914_v35 }
0x1133   : > { %v17898_v57 = vpop.eup %14529 }
0x1134   : > { %v17900_v50 = vpop.eup %14531  ;;  %v8667_v41 = vsel %vm1448_vm6, %v17898_v57, 0.0 }
0x1135   : > { %v8670_v14 = vsel %vm1448_vm6, %v17900_v50, 0.0  ;;  %8668 = vadd.xlane.f32.xlu1 %v8667_v41 }
0x1136   : > { %8671 = vadd.xlane.f32.xlu0 %v8670_v14 }
0x113b   : > { %v17906_v39 = vpop.eup %14533 }
0x113c   : > { %v8673_v20 = vsel %vm1448_vm6, %v17906_v39, 0.0 }
0x113d   : > { %8674 = vadd.xlane.f32.xlu1 %v8673_v20 }
0x1161   : > { %v8486_v16 = vpop.xlane.xlu1 %8485 }
0x1162   : > { %v8550_v30 = vsub.f32 %v17747_v22, %v8486_v16 }
0x1164   : > { %v8597_v6 = vmul.f32 1.442695, %v8550_v30 }
0x1166   : > { %14535 = vpow2.f32 %v8597_v6 }
0x116e   : > { %v8492_v36 = vpop.xlane.xlu1 %8491 }
0x116f   : > { %v8552_v41 = vsub.f32 %v17761_v63, %v8492_v36  ;;  %v8489_v14 = vpop.xlane.xlu0 %8488 }
0x1170   : > { %v8551_v40 = vsub.f32 %v17763_v52, %v8489_v14  ;;  %v17921_v20 = vpop.eup %14535 }
0x1171   : > { %v8601_v58 = vmul.f32 1.442695, %v8552_v41  ;;  %v8676_v34 = vsel %vm1448_vm6, %v17921_v20, 0.0 }
0x1172   : > { %v8599_v42 = vmul.f32 1.442695, %v8551_v40  ;;  %8677 = vadd.xlane.f32.xlu0 %v8676_v34 }
0x1173   : > { %14537 = vpow2.f32 %v8601_v58 }
0x1174   : > { %14539 = vpow2.f32 %v8599_v42 }
0x1176   : > { %v8498_v22 = vpop.xlane.xlu1 %8497 }
0x1177   : > { %v8554_v16 = vsub.f32 %v17773_v1, %v8498_v22  ;;  %v8495_v30 = vpop.xlane.xlu0 %8494 }
0x1178   : > { %v8553_v6 = vsub.f32 %v17775_v19, %v8495_v30 }
0x1179   : > { %v8605_v63 = vmul.f32 1.442695, %v8554_v16 }
0x117a   : > { %v8603_v36 = vmul.f32 1.442695, %v8553_v6 }
0x117b   : > { %14541 = vpow2.f32 %v8605_v63 }
0x117c   : > { %14543 = vpow2.f32 %v8603_v36 }
0x117d   : > { %v17927_v52 = vpop.eup %14537 }
0x117e   : > { %v17929_v41 = vpop.eup %14539  ;;  %v8504_v40 = vpop.xlane.xlu1 %8503  ;;  %v8682_v58 = vsel %vm1448_vm6, %v17927_v52, 0.0 }
0x117f   : > { %v8556_v42 = vsub.f32 %v17785_v3, %v8504_v40  ;;  %v8501_v34 = vpop.xlane.xlu0 %8500  ;;  %8683 = vadd.xlane.f32.xlu0 %v8682_v58  ;;  %v8679_v1 = vsel %vm1448_vm6, %v17929_v41, 0.0 }
0x1180   : > { %v8555_v19 = vsub.f32 %v17787_v0, %v8501_v34  ;;  %8680 = vadd.xlane.f32.xlu1 %v8679_v1 }
0x1181   : > { %v8609_v14 = vmul.f32 1.442695, %v8556_v42 }
0x1182   : > { %v8607_v22 = vmul.f32 1.442695, %v8555_v19 }
0x1183   : > { %14545 = vpow2.f32 %v8609_v14 }
0x1184   : > { %14547 = vpow2.f32 %v8607_v22 }
0x1185   : > { %v17937_v16 = vpop.eup %14541 }
0x1186   : > { %v17939_v30 = vpop.eup %14543  ;;  %v8510_v6 = vpop.xlane.xlu1 %8509  ;;  %v8688_v3 = vsel %vm1448_vm6, %v17937_v16, 0.0 }
0x1187   : > { %v8558_v63 = vsub.f32 %v17795_v48, %v8510_v6  ;;  %v8507_v36 = vpop.xlane.xlu0 %8506  ;;  %8689 = vadd.xlane.f32.xlu0 %v8688_v3  ;;  %v8685_v0 = vsel %vm1448_vm6, %v17939_v30, 0.0 }
0x1188   : > { %v8557_v40 = vsub.f32 %v17798_v15, %v8507_v36  ;;  %8686 = vadd.xlane.f32.xlu1 %v8685_v0 }
0x1189   : > { %v8613_v58 = vmul.f32 1.442695, %v8558_v63 }
0x118a   : > { %v8611_v42 = vmul.f32 1.442695, %v8557_v40 }
0x118b   : > { %14549 = vpow2.f32 %v8613_v58 }
0x118c   : > { %14551 = vpow2.f32 %v8611_v42 }
0x118d   : > { %v17947_v34 = vpop.eup %14545 }
0x118e   : > { %v17949_v1 = vpop.eup %14547  ;;  %v8516_v19 = vpop.xlane.xlu1 %8515  ;;  %v8694_v48 = vsel %vm1448_vm6, %v17947_v34, 0.0 }
0x118f   : > { %v8560_v14 = vsub.f32 %v17805_v2, %v8516_v19  ;;  %v8513_v22 = vpop.xlane.xlu0 %8512  ;;  %8695 = vadd.xlane.f32.xlu0 %v8694_v48  ;;  %v8691_v15 = vsel %vm1448_vm6, %v17949_v1, 0.0 }
0x1190   : > { %v8559_v6 = vsub.f32 %v17807_v9, %v8513_v22  ;;  %8692 = vadd.xlane.f32.xlu1 %v8691_v15 }
0x1191   : > { %v8617_v3 = vmul.f32 1.442695, %v8560_v14 }
0x1192   : > { %v8615_v63 = vmul.f32 1.442695, %v8559_v6 }
0x1193   : > { %14553 = vpow2.f32 %v8617_v3 }
0x1194   : > { %14555 = vpow2.f32 %v8615_v63 }
0x1195   : > { %v17957_v36 = vpop.eup %14549 }
0x1196   : > { %v17959_v0 = vpop.eup %14551  ;;  %v8522_v40 = vpop.xlane.xlu1 %8521  ;;  %v8700_v2 = vsel %vm1448_vm6, %v17957_v36, 0.0 }
0x1197   : > { %v8562_v58 = vsub.f32 %v17815_v5, %v8522_v40  ;;  %v8519_v42 = vpop.xlane.xlu0 %8518  ;;  %8701 = vadd.xlane.f32.xlu0 %v8700_v2  ;;  %v8697_v9 = vsel %vm1448_vm6, %v17959_v0, 0.0 }
0x1198   : > { %v8561_v19 = vsub.f32 %v17818_v54, %v8519_v42  ;;  %8698 = vadd.xlane.f32.xlu1 %v8697_v9 }
0x1199   : > { %v8621_v48 = vmul.f32 1.442695, %v8562_v58 }
0x119a   : > { %v8619_v14 = vmul.f32 1.442695, %v8561_v19  ;;  %v8636_v22 = vpop.xlane.xlu1 %8635 }
0x119b   : > { %14557 = vpow2.f32 %v8621_v48  ;;  %v8633_v15 = vpop.xlane.xlu0 %8632 }
0x119c   : > { %14559 = vpow2.f32 %v8619_v14 }
0x119d   : > { %v17967_v6 = vpop.eup %14553  ;;  %14561 = vrcp.f32 %v8636_v22 }
0x119e   : > { %v17969_v3 = vpop.eup %14555  ;;  %14563 = vrcp.f32 %v8633_v15  ;;  %v17971_v5 = vpop.xlane.xlu1 %8527  ;;  %v8706_v63 = vsel %vm1448_vm6, %v17967_v6, 0.0 }
0x119f   : > { %19321 = vst [vmem:[#allocation85_spill] sm:$0xff] %v17969_v3  ;;  %v17975_v40 = vpop.xlane.xlu0 %8524  ;;  %8707 = vadd.xlane.f32.xlu0 %v8706_v63  ;;  %v8703_v54 = vsel %vm1448_vm6, %v17969_v3, 0.0 }
0x11a0   : > { %8704 = vadd.xlane.f32.xlu1 %v8703_v54 }
0x11a2   : > { %v8642_v2 = vpop.xlane.xlu1 %8641 }
0x11a3   : > { %v8639_v58 = vpop.xlane.xlu0 %8638  ;;  %14565 = vrcp.f32 %v8642_v2 }
0x11a4   : > { %14567 = vrcp.f32 %v8639_v58 }
0x11a5   : > { %v17979_v42 = vpop.eup %14557 }
0x11a6   : > { %19322 = vst [vmem:[#allocation86_spill] sm:$0xff] %v17979_v42  ;;  %v17981_v9 = vpop.eup %14559  ;;  %v8712_v19 = vsel %vm1448_vm6, %v17979_v42, 0.0 }
0x11a7   : > { %v14562_v48 = vpop.eup %14561  ;;  %v17985_v14 = vpop.xlane.xlu1 %8530  ;;  %8713 = vadd.xlane.f32.xlu0 %v8712_v19  ;;  %v8709_v15 = vsel %vm1448_vm6, %v17981_v9, 0.0  ;;  %v8973_v19 = vsel %vm3435_vm7, %v17717_v26, 0 }
0x11a8   : > { %v17987_v22 = vpop.xlane.xlu0 %8533  ;;  %v14564_v63 = vpop.eup %14563  ;;  %v17992_v54 = vmul.f32 %v14562_v48, %v17823_v62  ;;  %8710 = vadd.xlane.f32.xlu1 %v8709_v15  ;;  %v8925_v62 = vsel %vm3435_vm7, %v17723_v24, 0 }
0x11a9   : > { %v17995_v2 = vmul.f32 %v14564_v63, %v17827_v43  ;;  %v9069_v63 = vsel %vm3435_vm7, %v17725_v55, 0 }
0x11aa   : > { %v8792_v58 = vpack.c.bf16 %v17992_v54, %v17992_v54 }
0x11ab   : > { %v8648_v42 = vpop.xlane.xlu1 %8647  ;;  %v8791_v35 = vpack.c.bf16 %v17995_v2, %v17995_v2 }
0x11ac   : > { %v8645_v3 = vpop.xlane.xlu0 %8644  ;;  %13716 = vmatmul.mubr.msk.bf16.vlgmr.msra.gmra.mrb[24].mxu1 %vm1448_vm6, %v8792_v58  ;;  %14569 = vrcp.f32 %v8648_v42 }
0x11ad   : > { %13726 = vmatpush3.bf16.msra.mxu1 %v8973_v19  ;;  %13710 = vmatmul.mubr.msk.bf16.vlgmr.msra.gmra.mrb[248].mxu0 %vm1448_vm6, %v8791_v35  ;;  %v14566_v43 = vpop.eup %14565  ;;  %14571 = vrcp.f32 %v8645_v3 }
0x11ae   : > { %13720 = vmatpush3.bf16.msra.mxu0 %v8925_v62  ;;  %13721 = vmatprep.mubr.msk.bf16.mxu0 %vm14787_vm5, %v19189_v47  ;;  %v14568_v26 = vpop.eup %14567  ;;  %v18013_v15 = vmul.f32 %v14566_v43, %v17841_v17  ;;  %v9021_v17 = vsel %vm3435_vm7, %v17729_v51, 0 }
0x11af   : > { %v8654_v48 = vpop.xlane.xlu1 %8653  ;;  %13727 = vmatprep.mubr.msk.bf16.mxu1 %vm14787_vm5, %v19189_v47  ;;  %13731 = vmatprep.subr.bf16.mxu0 %v19189_v47  ;;  %v18017_v35 = vmul.f32 %v14568_v26, %v17845_v37 }
0x11b0   : > { %v8651_v24 = vpop.xlane.xlu0 %8650  ;;  %13737 = vmatprep.subr.bf16.mxu1 %v19189_v47  ;;  %v8794_v42 = vpack.c.bf16 %v18013_v15, %v18013_v15  ;;  %14573 = vrcp.f32 %v8654_v48 }
0x11b1   : > { %14575 = vrcp.f32 %v8651_v24  ;;  %v8793_v3 = vpack.c.bf16 %v18017_v35, %v18017_v35 }
0x11b3   : > { %v8660_v37 = vpop.xlane.xlu1 %8659 }
0x11b4   : > { %13728 = vmatmul.mubr.msk.bf16.vlgmr.msra.gmra.mrb[28].mxu1 %vm1448_vm6, %v8794_v42  ;;  %v8657_v55 = vpop.xlane.xlu0 %8656  ;;  %14577 = vrcp.f32 %v8660_v37  ;;  %v8564_v37 = vsub.f32 %v17835_v8, %v17971_v5  ;;  %v8565_v8 = vsub.f32 %v17855_v46, %v17985_v14  ;;  %v9357_v46 = vsel %vm3435_vm7, %v17739_v56, 0 }
0x11b5   : > { %13738 = vmatpush3.bf16.msra.mxu1 %v9069_v63  ;;  %13722 = vmatmul.mubr.msk.bf16.vlgmr.msra.gmra.mrb[252].mxu0 %vm1448_vm6, %v8793_v3  ;;  %14579 = vrcp.f32 %v8657_v55 }
0x11b6   : > { %13732 = vmatpush3.bf16.msra.mxu0 %v9021_v17  ;;  %13739 = vmatprep.mubr.msk.bf16.mxu1 %vm14787_vm5, %v19189_v47  ;;  %v14570_v58 = vpop.eup %14569  ;;  %v9213_v17 = vsel %vm3435_vm7, %v17737_v33, 0  ;;  %v8627_v14 = vmul.f32 1.442695, %v8565_v8  ;;  %v9597_v8 = vsel %vm3435_vm7, %v17757_v45, 0 }
0x11b7   : > { %13749 = vmatprep.subr.bf16.mxu1 %v19189_v47  ;;  %13733 = vmatprep.mubr.msk.bf16.mxu0 %vm14787_vm5, %v19189_v47  ;;  %v14572_v19 = vpop.eup %14571  ;;  %v18036_v51 = vmul.f32 %v14570_v58, %v17859_v28  ;;  %v9165_v28 = vsel %vm3435_vm7, %v17731_v4, 0  ;;  %v8563_v58 = vsub.f32 %v17837_v18, %v17975_v40  ;;  %v8625_v18 = vmul.f32 1.442695, %v8564_v37 }
0x11b8   : > { %13743 = vmatprep.subr.bf16.mxu0 %v19189_v47  ;;  %v18041_v62 = vmul.f32 %v14572_v19, %v17863_v61  ;;  %v9549_v37 = vsel %vm3435_vm7, %v17749_v21, 0 }
0x11b9   : > { %10215 = vrot.lane.b32.xlu1 %v17451_v13, %s14790_s17  ;;  %v8796_v43 = vpack.c.bf16 %v18036_v51, %v18036_v51  ;;  %v9117_v13 = vsel %vm3435_vm7, %v17733_v53, 0  ;;  %v8623_v5 = vmul.f32 1.442695, %v8563_v58  ;;  %v9501_v58 = vsel %vm3435_vm7, %v17753_v10, 0 }
0x11ba   : > { %v14574_v48 = vpop.eup %14573  ;;  %v8795_v26 = vpack.c.bf16 %v18041_v62, %v18041_v62  ;;  %v8663_v3 = vpop.xlane.xlu1 %8662 }
0x11bb   : > { %v14576_v24 = vpop.eup %14575  ;;  %v18056_v61 = vmul.f32 %v14574_v48, %v17872_v7  ;;  %v8666_v42 = vpop.xlane.xlu0 %8665 }
0x11bc   : > { %13740 = vmatmul.mubr.msk.bf16.vlgmr.msra.gmra.mrb[32].mxu1 %vm1448_vm6, %v8796_v43  ;;  %v18061_v4 = vmul.f32 %v14576_v24, %v17865_v23  ;;  %14581 = vrcp.f32 %v8666_v42  ;;  %v9261_v23 = vsel %vm3435_vm7, %v17735_v27, 0  ;;  %v9405_v42 = vsel %vm3435_vm7, %v17745_v59, 0 }
0x11bd   : > { %10167 = vrot.lane.b32.xlu0 %v17453_v32, %s14790_s17  ;;  %13734 = vmatmul.mubr.msk.bf16.vlgmr.msra.gmra.mrb[0].mxu0 %vm1448_vm6, %v8795_v26  ;;  %v8798_v32 = vpack.c.bf16 %v18056_v61, %v18056_v61  ;;  %14583 = vrcp.f32 %v8663_v3 }
0x11be   : > { %13750 = vmatpush3.bf16.msra.mxu1 %v9165_v28  ;;  %13744 = vmatpush3.bf16.msra.mxu0 %v9117_v13  ;;  %v14578_v53 = vpop.eup %14577  ;;  %v8797_v7 = vpack.c.bf16 %v18061_v4, %v18061_v4  ;;  %v9453_v13 = vsel %vm3435_vm7, %v17743_v11, 0 }
0x11bf   : > { %13751 = vmatprep.mubr.msk.bf16.mxu1 %vm14787_vm5, %v19189_v47  ;;  %13761 = vmatprep.subr.bf16.mxu1 %v19189_v47  ;;  %v14580_v63 = vpop.eup %14579  ;;  %v18082_v55 = vmul.f32 %v14578_v53, %v17881_v31  ;;  %v8566_v31 = vsub.f32 %v17853_v38, %v17987_v22  ;;  %v9309_v38 = vsel %vm3435_vm7, %v17741_v29, 0 }
0x11c0   : > { %13745 = vmatprep.mubr.msk.bf16.mxu0 %vm14787_vm5, %v19189_v47  ;;  %13755 = vmatprep.subr.bf16.mxu0 %v19189_v47  ;;  %v18087_v27 = vmul.f32 %v14580_v63, %v17879_v25 }
0x11c1   : > { %v8800_v25 = vpack.c.bf16 %v18082_v55, %v18082_v55  ;;  %v8629_v22 = vmul.f32 1.442695, %v8566_v31 }
0x11c2   : > { %v8669_v33 = vpop.xlane.xlu1 %8668  ;;  %v8799_v43 = vpack.c.bf16 %v18087_v27, %v18087_v27 }
0x11c3   : > { %v8672_v19 = vpop.xlane.xlu0 %8671 }
0x11c4   : > { %13752 = vmatmul.mubr.msk.bf16.vlgmr.msra.gmra.mrb[36].mxu1 %vm1448_vm6, %v8798_v32  ;;  %14585 = vrcp.f32 %v8672_v19 }
0x11c5   : > { %13746 = vmatmul.mubr.msk.bf16.vlgmr.msra.gmra.mrb[4].mxu0 %vm1448_vm6, %v8797_v7  ;;  %13762 = vmatpush3.bf16.msra.mxu1 %v9261_v23  ;;  %14587 = vrcp.f32 %v8669_v33 }
0x11c6   : > { %13756 = vmatpush3.bf16.msra.mxu0 %v9213_v17  ;;  %13763 = vmatprep.mubr.msk.bf16.mxu1 %vm14787_vm5, %v19189_v47  ;;  %v14582_v40 = vpop.eup %14581  ;;  %14589 = vpow2.f32 %v8625_v18 }
0x11c7   : > { %13773 = vmatprep.subr.bf16.mxu1 %v19189_v47  ;;  %13757 = vmatprep.mubr.msk.bf16.mxu0 %vm14787_vm5, %v19189_v47  ;;  %v14584_v48 = vpop.eup %14583  ;;  %14591 = vpow2.f32 %v8623_v5  ;;  %v18108_v26 = vmul.f32 %v14582_v40, %v17891_v49 }
0x11c8   : > { %13767 = vmatprep.subr.bf16.mxu0 %v19189_v47  ;;  %v18113_v56 = vmul.f32 %v14584_v48, %v17889_v44  ;;  %14593 = vpow2.f32 %v8627_v14 }
0x11c9   : > { %14595 = vpow2.f32 %v8629_v22  ;;  %v8802_v29 = vpack.c.bf16 %v18108_v26, %v18108_v26 }
0x11ca   : > { %v8675_v24 = vpop.xlane.xlu1 %8674  ;;  %v8801_v28 = vpack.c.bf16 %v18113_v56, %v18113_v56 }
0x11cb   : > { %14597 = vrcp.f32 %v8675_v24 }
0x11cc   : > { %13764 = vmatmul.mubr.msk.bf16.vlgmr.msra.gmra.mrb[40].mxu1 %vm1448_vm6, %v8800_v25 }
0x11cd   : > { %13758 = vmatmul.mubr.msk.bf16.vlgmr.msra.gmra.mrb[8].mxu0 %vm1448_vm6, %v8799_v43  ;;  %13774 = vmatpush3.bf16.msra.mxu1 %v9357_v46  ;;  %v19324_v43 = vld [vmem:[#allocation75_spill] sm:$0xff] }
0x11ce   : > { %13768 = vmatpush3.bf16.msra.mxu0 %v9309_v38  ;;  %13769 = vmatprep.mubr.msk.bf16.mxu0 %vm14787_vm5, %v19189_v47  ;;  %v14586_v49 = vpop.eup %14585  ;;  %v9645_v48 = vsel %vm3435_vm7, %v19324_v43, 0 }
0x11cf   : > { %13775 = vmatprep.mubr.msk.bf16.mxu1 %vm14787_vm5, %v19189_v47  ;;  %13779 = vmatprep.subr.bf16.mxu0 %v19189_v47  ;;  %v14588_v44 = vpop.eup %14587  ;;  %v18130_v3 = vmul.f32 %v14586_v49, %v17900_v50 }
0x11d0   : > { %13785 = vmatprep.subr.bf16.mxu1 %v19189_v47  ;;  %v18134_v32 = vpop.eup %14589  ;;  %v18137_v53 = vmul.f32 %v14588_v44, %v17898_v57  ;;  %v19325_v44 = vld [vmem:[#allocation76_spill] sm:$0xff] }
0x11d1   : > { %v18142_v11 = vpop.eup %14591  ;;  %v8804_v50 = vpack.c.bf16 %v18130_v3, %v18130_v3  ;;  %v8718_v7 = vsel %vm1448_vm6, %v18134_v32, 0.0 }
0x11d2   : > { %v18145_v59 = vpop.eup %14593  ;;  %v8803_v57 = vpack.c.bf16 %v18137_v53, %v18137_v53  ;;  %v8715_v23 = vsel %vm1448_vm6, %v18142_v11, 0.0 }
0x11d3   : > { %v18151_v63 = vpop.eup %14595  ;;  %v8721_v21 = vsel %vm1448_vm6, %v18145_v59, 0.0 }
0x11d4   : > { %13776 = vmatmul.mubr.msk.bf16.vlgmr.msra.gmra.mrb[44].mxu1 %vm1448_vm6, %v8802_v29  ;;  %v8724_v19 = vsel %vm1448_vm6, %v18151_v63, 0.0 }
0x11d5   : > { %13770 = vmatmul.mubr.msk.bf16.vlgmr.msra.gmra.mrb[12].mxu0 %vm1448_vm6, %v8801_v28  ;;  %13786 = vmatpush3.bf16.msra.mxu1 %v9453_v13  ;;  %v14598_v17 = vpop.eup %14597  ;;  %v9741_v13 = vsel %vm3435_vm7, %v19325_v44, 0 }
0x11d6   : > { %13780 = vmatpush3.bf16.msra.mxu0 %v9405_v42  ;;  %13781 = vmatprep.mubr.msk.bf16.mxu0 %vm14787_vm5, %v19189_v47  ;;  %v18168_v33 = vmul.f32 %v14598_v17, %v17906_v39  ;;  %v19323_v39 = vld [vmem:[#allocation74_spill] sm:$0xff] }
0x11d7   : > { %13787 = vmatprep.mubr.msk.bf16.mxu1 %vm14787_vm5, %v19189_v47  ;;  %13791 = vmatprep.subr.bf16.mxu0 %v19189_v47 }
0x11d8   : > { %13797 = vmatprep.subr.bf16.mxu1 %v19189_v47  ;;  %v8805_v10 = vpack.c.bf16 %v18168_v33, %v18168_v33 }
0x11dc   : > { %8719 = vadd.xlane.f32.xlu0 %v8718_v7  ;;  %13788 = vmatmul.mubr.msk.bf16.vlgmr.msra.gmra.mrb[48].mxu1 %vm1448_vm6, %v8804_v50  ;;  %v19326_v7 = vld [vmem:[#allocation77_spill] sm:$0xff] }
0x11dd   : > { %8716 = vadd.xlane.f32.xlu1 %v8715_v23  ;;  %13782 = vmatmul.mubr.msk.bf16.vlgmr.msra.gmra.mrb[16].mxu0 %vm1448_vm6, %v8803_v57  ;;  %v9693_v57 = vsel %vm3435_vm7, %v19326_v7, 0 }
0x11de   : > { %13798 = vmatpush3.bf16.msra.mxu1 %v9549_v37  ;;  %13792 = vmatpush3.bf16.msra.mxu0 %v9501_v58 }
0x11df   : > { %13793 = vmatprep.mubr.msk.bf16.mxu0 %vm14787_vm5, %v19189_v47  ;;  %13803 = vmatprep.subr.bf16.mxu0 %v19189_v47 }
0x11e0   : > { %8725 = vadd.xlane.f32.xlu0 %v8724_v19  ;;  %13799 = vmatprep.mubr.msk.bf16.mxu1 %vm14787_vm5, %v19189_v47 }
0x11e1   : > { %8722 = vadd.xlane.f32.xlu1 %v8721_v21  ;;  %13809 = vmatprep.subr.bf16.mxu1 %v19189_v47 }
0x11e5   : > { %13794 = vmatmul.mubr.msk.bf16.vlgmr.msra.gmra.mrb[20].mxu0 %vm1448_vm6, %v8805_v10 }
0x11e6   : > { %13804 = vmatpush3.bf16.msra.mxu0 %v9597_v8  ;;  %13805 = vmatprep.mubr.msk.bf16.mxu0 %vm14787_vm5, %v19189_v47  ;;  %v19327_v8 = vld [vmem:[#allocation78_spill] sm:$0xff] }
0x11e7   : > { %13815 = vmatprep.subr.bf16.mxu0 %v19189_v47 }
0x11f2   : > { %10311 = vrot.lane.b32.xlu1 %v17471_v60, %s14790_s17 }
0x11f6   : > { %10263 = vrot.lane.b32.xlu0 %v19323_v39, %s14790_s17  ;;  %v9837_v39 = vsel %vm3435_vm7, %v19327_v8, 0 }
0x11ff   : > { %v8678_v18 = vpop.xlane.xlu0 %8677 }
0x1200   : > { %14599 = vrcp.f32 %v8678_v18 }
0x120a   : > { %v14600_v31 = vpop.eup %14599 }
0x120b   : > { %v18189_v5 = vmul.f32 %v14600_v31, %v17921_v20 }
0x120c   : > { %v8684_v45 = vpop.xlane.xlu0 %8683 }
0x120d   : > { %v8681_v25 = vpop.xlane.xlu1 %8680  ;;  %14601 = vrcp.f32 %v8684_v45  ;;  %v8806_v40 = vpack.c.bf16 %v18189_v5, %v18189_v5  ;;  %v19328_v45 = vld [vmem:[#allocation79_spill] sm:$0xff] }
0x120e   : > { %14603 = vrcp.f32 %v8681_v25 }
0x120f   : > { %13800 = vmatmul.mubr.msk.bf16.vlgmr.msra.gmra.mrb[52].mxu1 %vm1448_vm6, %v8806_v40 }
0x1210   : > { %13810 = vmatpush3.bf16.msra.mxu1 %v9645_v48  ;;  %13811 = vmatprep.mubr.msk.bf16.mxu1 %vm14787_vm5, %v19189_v47 }
0x1211   : > { %13821 = vmatprep.subr.bf16.mxu1 %v19189_v47 }
0x1214   : > { %v8690_v60 = vpop.xlane.xlu0 %8689 }
0x1215   : > { %v8687_v20 = vpop.xlane.xlu1 %8686  ;;  %14605 = vrcp.f32 %v8690_v60 }
0x1216   : > { %14607 = vrcp.f32 %v8687_v20 }
0x1217   : > { %v14602_v46 = vpop.eup %14601 }
0x1218   : > { %v14604_v14 = vpop.eup %14603  ;;  %v8776_v38 = vmul.f32 %v14602_v46, %v17927_v52 }
0x1219   : > { %v8775_v22 = vmul.f32 %v14604_v14, %v17929_v41 }
0x121a   : > { %v8808_v24 = vpack.c.bf16 %v8776_v38, %v8776_v38  ;;  %v11256_v29 = vadd.f32 %v8776_v38, %v17992_v54  ;;  %v19329_v38 = vld [vmem:[#allocation80_spill] sm:$0xff] }
0x121b   : > { %v8807_v49 = vpack.c.bf16 %v8775_v22, %v8775_v22  ;;  %v11255_v28 = vadd.f32 %v8775_v22, %v17995_v2  ;;  %v9933_v22 = vsel %vm3435_vm7, %v19329_v38, 0 }
0x121c   : > { %13812 = vmatmul.mubr.msk.bf16.vlgmr.msra.gmra.mrb[56].mxu1 %vm1448_vm6, %v8808_v24  ;;  %v8696_v42 = vpop.xlane.xlu0 %8695  ;;  %v18206_v50 = vmul.f32 0.5, %v11256_v29 }
0x121d   : > { %v8693_v52 = vpop.xlane.xlu1 %8692  ;;  %13806 = vmatmul.mubr.msk.bf16.vlgmr.msra.gmra.mrb[24].mxu0 %vm1448_vm6, %v8807_v49  ;;  %13822 = vmatpush3.bf16.msra.mxu1 %v9741_v13  ;;  %14609 = vrcp.f32 %v8696_v42  ;;  %v18211_v41 = vmul.f32 0.5, %v11255_v28  ;;  %v19330_v49 = vld [vmem:[#allocation81_spill] sm:$0xff] }
0x121e   : > { %14611 = vrcp.f32 %v8693_v52  ;;  %13816 = vmatpush3.bf16.msra.mxu0 %v9693_v57  ;;  %13817 = vmatprep.mubr.msk.bf16.mxu0 %vm14787_vm5, %v19189_v47 }
0x121f   : > { %v14606_v54 = vpop.eup %14605  ;;  %13823 = vmatprep.mubr.msk.bf16.mxu1 %vm14787_vm5, %v19189_v47  ;;  %13827 = vmatprep.subr.bf16.mxu0 %v19189_v47 }
0x1220   : > { %v14608_v23 = vpop.eup %14607  ;;  %v8778_v17 = vmul.f32 %v14606_v54, %v17937_v16  ;;  %13833 = vmatprep.subr.bf16.mxu1 %v19189_v47  ;;  %v9789_v16 = vsel %vm3435_vm7, %v19328_v45, 0 }
0x1221   : > { %v8777_v37 = vmul.f32 %v14608_v23, %v17939_v30  ;;  %v19331_v23 = vld [vmem:[#allocation82_spill] sm:$0xff] }
0x1222   : > { %v8810_v58 = vpack.c.bf16 %v8778_v17, %v8778_v17  ;;  %v11258_v19 = vadd.f32 %v8778_v17, %v18013_v15  ;;  %v10029_v17 = vsel %vm3435_vm7, %v19331_v23, 0 }
0x1223   : > { %v8809_v21 = vpack.c.bf16 %v8777_v37, %v8777_v37  ;;  %v11257_v10 = vadd.f32 %v8777_v37, %v18017_v35 }
0x1224   : > { %v18227_v18 = vmul.f32 0.5, %v11258_v19  ;;  %13824 = vmatmul.mubr.msk.bf16.vlgmr.msra.gmra.mrb[60].mxu1 %vm1448_vm6, %v8810_v58  ;;  %v8702_v31 = vpop.xlane.xlu0 %8701 }
0x1225   : > { %v18232_v25 = vmul.f32 0.5, %v11257_v10  ;;  %v8699_v30 = vpop.xlane.xlu1 %8698  ;;  %13818 = vmatmul.mubr.msk.bf16.vlgmr.msra.gmra.mrb[28].mxu0 %vm1448_vm6, %v8809_v21  ;;  %13834 = vmatpush3.bf16.msra.mxu1 %v9837_v39  ;;  %14613 = vrcp.f32 %v8702_v31  ;;  %v19332_v10 = vld [vmem:[#allocation85_spill] sm:$0xff] }
0x1226   : > { %14615 = vrcp.f32 %v8699_v30  ;;  %13828 = vmatpush3.bf16.msra.mxu0 %v9789_v16  ;;  %13829 = vmatprep.mubr.msk.bf16.mxu0 %vm14787_vm5, %v19189_v47  ;;  %v19333_v30 = vld [vmem:[#allocation84_spill] sm:$0xff] }
0x1227   : > { %v14610_v15 = vpop.eup %14609  ;;  %13835 = vmatprep.mubr.msk.bf16.mxu1 %vm14787_vm5, %v19189_v47  ;;  %13839 = vmatprep.subr.bf16.mxu0 %v19189_v47 }
0x1228   : > { %v14612_v40 = vpop.eup %14611  ;;  %v8780_v43 = vmul.f32 %v14610_v15, %v17947_v34  ;;  %13845 = vmatprep.subr.bf16.mxu1 %v19189_v47  ;;  %v9885_v34 = vsel %vm3435_vm7, %v19330_v49, 0  ;;  %v10125_v15 = vsel %vm3435_vm7, %v19333_v30, 0 }
0x1229   : > { %v8779_v48 = vmul.f32 %v14612_v40, %v17949_v1 }
0x122a   : > { %v8812_v60 = vpack.c.bf16 %v8780_v43, %v8780_v43  ;;  %v11260_v20 = vadd.f32 %v8780_v43, %v18036_v51  ;;  %v19334_v43 = vld [vmem:[#allocation83_spill] sm:$0xff] }
0x122b   : > { %v8811_v46 = vpack.c.bf16 %v8779_v48, %v8779_v48  ;;  %v11259_v14 = vadd.f32 %v8779_v48, %v18041_v62 }
0x122c   : > { %13836 = vmatmul.mubr.msk.bf16.vlgmr.msra.gmra.mrb[64].mxu1 %vm1448_vm6, %v8812_v60  ;;  %v8708_v24 = vpop.xlane.xlu0 %8707  ;;  %v18250_v29 = vmul.f32 0.5, %v11260_v20  ;;  %v19335_v20 = vld [vmem:[#allocation86_spill] sm:$0xff] }
0x122d   : > { %v8705_v28 = vpop.xlane.xlu1 %8704  ;;  %13830 = vmatmul.mubr.msk.bf16.vlgmr.msra.gmra.mrb[32].mxu0 %vm1448_vm6, %v8811_v46  ;;  %13846 = vmatpush3.bf16.msra.mxu1 %v9933_v22  ;;  %14617 = vrcp.f32 %v8708_v24  ;;  %v18255_v1 = vmul.f32 0.5, %v11259_v14 }
0x122e   : > { %14619 = vrcp.f32 %v8705_v28  ;;  %13840 = vmatpush3.bf16.msra.mxu0 %v9885_v34  ;;  %13841 = vmatprep.mubr.msk.bf16.mxu0 %vm14787_vm5, %v19189_v47 }
0x122f   : > { %v14614_v51 = vpop.eup %14613  ;;  %13847 = vmatprep.mubr.msk.bf16.mxu1 %vm14787_vm5, %v19189_v47  ;;  %13851 = vmatprep.subr.bf16.mxu0 %v19189_v47 }
0x1230   : > { %v14616_v44 = vpop.eup %14615  ;;  %v8782_v13 = vmul.f32 %v14614_v51, %v17957_v36  ;;  %13857 = vmatprep.subr.bf16.mxu1 %v19189_v47  ;;  %v9981_v36 = vsel %vm3435_vm7, %v17917_v12, 0 }
0x1231   : > { %v8781_v42 = vmul.f32 %v14616_v44, %v17959_v0 }
0x1232   : > { %v8814_v7 = vpack.c.bf16 %v8782_v13, %v8782_v13  ;;  %v11262_v57 = vadd.f32 %v8782_v13, %v18056_v61 }
0x1233   : > { %v8813_v52 = vpack.c.bf16 %v8781_v42, %v8781_v42  ;;  %v11261_v54 = vadd.f32 %v8781_v42, %v18061_v4 }
0x1234   : > { %v18271_v37 = vmul.f32 0.5, %v11262_v57  ;;  %13848 = vmatmul.mubr.msk.bf16.vlgmr.msra.gmra.mrb[68].mxu1 %vm1448_vm6, %v8814_v7  ;;  %v8714_v58 = vpop.xlane.xlu0 %8713 }
0x1235   : > { %v18276_v19 = vmul.f32 0.5, %v11261_v54  ;;  %v8711_v0 = vpop.xlane.xlu1 %8710  ;;  %13842 = vmatmul.mubr.msk.bf16.vlgmr.msra.gmra.mrb[36].mxu0 %vm1448_vm6, %v8813_v52  ;;  %13858 = vmatpush3.bf16.msra.mxu1 %v10029_v17  ;;  %14621 = vrcp.f32 %v8714_v58 }
0x1236   : > { %14623 = vrcp.f32 %v8711_v0  ;;  %13852 = vmatpush3.bf16.msra.mxu0 %v9981_v36  ;;  %13853 = vmatprep.mubr.msk.bf16.mxu0 %vm14787_vm5, %v19189_v47 }
0x1237   : > { %v14618_v61 = vpop.eup %14617  ;;  %13859 = vmatprep.mubr.msk.bf16.mxu1 %vm14787_vm5, %v19189_v47  ;;  %13863 = vmatprep.subr.bf16.mxu0 %v19189_v47 }
0x1238   : > { %v14620_v12 = vpop.eup %14619  ;;  %v8784_v21 = vmul.f32 %v14618_v61, %v17967_v6  ;;  %13869 = vmatprep.subr.bf16.mxu1 %v19189_v47  ;;  %v10077_v6 = vsel %vm3435_vm7, %v19334_v43, 0  ;;  %v10168_v49 = vpop.permute.xlu0 %10167 }
0x1239   : > { %v8783_v8 = vmul.f32 %v14620_v12, %v19332_v10  ;;  %v10216_v38 = vpop.permute.xlu1 %10215  ;;  %v10173_v42 = vsel %vm3435_vm7, %v10168_v49, 0 }
0x123a   : > { %v8816_v39 = vpack.c.bf16 %v8784_v21, %v8784_v21  ;;  %v11264_v31 = vadd.f32 %v8784_v21, %v18082_v55  ;;  %v10221_v44 = vsel %vm3435_vm7, %v10216_v38, 0 }
0x123b   : > { %v8815_v45 = vpack.c.bf16 %v8783_v8, %v8783_v8  ;;  %v11263_v16 = vadd.f32 %v8783_v8, %v18087_v27 }
0x123c   : > { %13860 = vmatmul.mubr.msk.bf16.vlgmr.msra.gmra.mrb[72].mxu1 %vm1448_vm6, %v8816_v39  ;;  %v18294_v40 = vmul.f32 0.5, %v11264_v31 }
0x123d   : > { %13854 = vmatmul.mubr.msk.bf16.vlgmr.msra.gmra.mrb[40].mxu0 %vm1448_vm6, %v8815_v45  ;;  %13870 = vmatpush3.bf16.msra.mxu1 %v10125_v15  ;;  %v18299_v48 = vmul.f32 0.5, %v11263_v16 }
0x123e   : > { %13864 = vmatpush3.bf16.msra.mxu0 %v10077_v6  ;;  %13865 = vmatprep.mubr.msk.bf16.mxu0 %vm14787_vm5, %v19189_v47 }
0x123f   : > { %v14622_v55 = vpop.eup %14621  ;;  %13871 = vmatprep.mubr.msk.bf16.mxu1 %vm14787_vm5, %v19189_v47  ;;  %13875 = vmatprep.subr.bf16.mxu0 %v19189_v47 }
0x1240   : > { %v14624_v60 = vpop.eup %14623  ;;  %v8786_v46 = vmul.f32 %v14622_v55, %v19335_v20  ;;  %13881 = vmatprep.subr.bf16.mxu1 %v19189_v47 }
0x1241   : > { %v8785_v14 = vmul.f32 %v14624_v60, %v17981_v9 }
0x1242   : > { %v8818_v22 = vpack.c.bf16 %v8786_v46, %v8786_v46  ;;  %v11266_v24 = vadd.f32 %v8786_v46, %v18108_v26 }
0x1243   : > { %v8817_v34 = vpack.c.bf16 %v8785_v14, %v8785_v14  ;;  %v11265_v28 = vadd.f32 %v8785_v14, %v18113_v56 }
0x1244   : > { %v18313_v51 = vmul.f32 0.5, %v11266_v24  ;;  %13872 = vmatmul.mubr.msk.bf16.vlgmr.msra.gmra.mrb[76].mxu1 %vm1448_vm6, %v8818_v22 }
0x1245   : > { %v18317_v13 = vmul.f32 0.5, %v11265_v28  ;;  %13866 = vmatmul.mubr.msk.bf16.vlgmr.msra.gmra.mrb[44].mxu0 %vm1448_vm6, %v8817_v34  ;;  %13882 = vmatpush3.bf16.msra.mxu1 %v10221_v44 }
0x1246   : > { %13876 = vmatpush3.bf16.msra.mxu0 %v10173_v42  ;;  %13877 = vmatprep.mubr.msk.bf16.mxu0 %vm14787_vm5, %v19189_v47 }
0x1247   : > { %13883 = vmatprep.mubr.msk.bf16.mxu1 %vm14787_vm5, %v19189_v47  ;;  %13887 = vmatprep.subr.bf16.mxu0 %v19189_v47 }
0x1248   : > { %13893 = vmatprep.subr.bf16.mxu1 %v19189_v47 }
0x1269   : > { %v8720_v26 = vpop.xlane.xlu0 %8719 }
0x126a   : > { %v8717_v56 = vpop.xlane.xlu1 %8716  ;;  %14625 = vrcp.f32 %v8720_v26 }
0x126b   : > { %14627 = vrcp.f32 %v8717_v56 }
0x126d   : > { %v8726_v7 = vpop.xlane.xlu0 %8725 }
0x126e   : > { %v8723_v57 = vpop.xlane.xlu1 %8722  ;;  %14629 = vrcp.f32 %v8726_v7 }
0x126f   : > { %14631 = vrcp.f32 %v8723_v57 }
0x1271   : > { %v10264_v0 = vpop.permute.xlu0 %10263 }
0x1272   : > { %v10312_v58 = vpop.permute.xlu1 %10311 }
0x1273   : > { %v10317_v31 = vsel %vm3435_vm7, %v10312_v58, 0 }
0x1274   : > { %v14626_v52 = vpop.eup %14625 }
0x1275   : > { %v14628_v54 = vpop.eup %14627  ;;  %v8788_v23 = vmul.f32 %v14626_v52, %v18134_v32  ;;  %v553_v32 = vld [vmem:[%s18997_s7 + $0xc] sm:$0xf] }
0x1276   : > { %v8787_v17 = vmul.f32 %v14628_v54, %v18142_v11 }
0x1277   : > { %v8820_v36 = vpack.c.bf16 %v8788_v23, %v8788_v23  ;;  %v11268_v61 = vadd.f32 %v8788_v23, %v18130_v3  ;;  %v10269_v3 = vsel %vm3435_vm7, %v10264_v0, 0 }
0x1278   : > { %v14630_v12 = vpop.eup %14629  ;;  %v8819_v21 = vpack.c.bf16 %v8787_v17, %v8787_v17  ;;  %v11267_v10 = vadd.f32 %v8787_v17, %v18137_v53 }
0x1279   : > { %v14632_v8 = vpop.eup %14631  ;;  %v8790_v39 = vmul.f32 %v14630_v12, %v18151_v63  ;;  %13884 = vmatmul.mubr.msk.bf16.vlgmr.msra.gmra.mrb[80].mxu1 %vm1448_vm6, %v8820_v36  ;;  %v18339_v11 = vmul.f32 0.5, %v11268_v61 }
0x127a   : > { %v8789_v45 = vmul.f32 %v14632_v8, %v18145_v59  ;;  %13878 = vmatmul.mubr.msk.bf16.vlgmr.msra.gmra.mrb[48].mxu0 %vm1448_vm6, %v8819_v21  ;;  %13894 = vmatpush3.bf16.msra.mxu1 %v10317_v31  ;;  %v18344_v53 = vmul.f32 0.5, %v11267_v10 }
0x127b   : > { %19336 = vst [vmem:[#allocation74_spill] sm:$0xff] %v18339_v11  ;;  %v11270_v63 = vadd.f32 %v8790_v39, %v18189_v5  ;;  %13888 = vmatpush3.bf16.msra.mxu0 %v10269_v3  ;;  %13889 = vmatprep.mubr.msk.bf16.mxu0 %vm14787_vm5, %v19189_v47  ;;  %v8822_v43 = vpack.c.bf16 %v8790_v39, %v8790_v39 }
0x127c   : > { %19337 = vst [vmem:[#allocation75_spill] sm:$0xff] %v18344_v53  ;;  %v11269_v16 = vadd.f32 %v8789_v45, %v18168_v33  ;;  %13895 = vmatprep.mubr.msk.bf16.mxu1 %vm14787_vm5, %v19189_v47  ;;  %14135 = vmatprep.subr.msk.bf16.mxu0 %vm3435_vm7, %v553_v32  ;;  %v8821_v6 = vpack.c.bf16 %v8789_v45, %v8789_v45  ;;  %v10400_v47 = vsel %vm3435_vm7, %v553_v32, 0 }
0x127d   : > { %v18355_v30 = vmul.f32 0.5, %v11270_v63  ;;  %v552_v63 = vld [vmem:[%s18997_s7 + $0x8] sm:$0xf] }
0x127e   : > { %v18357_v15 = vmul.f32 0.5, %v11269_v16 }
0x127f   : > { %19338 = vst [vmem:[#allocation76_spill] sm:$0xff] %v18355_v30  ;;  %v18359_v5 = vpop.f32.mrb[24].mxu1 }
0x1280   : > { %19339 = vst [vmem:[#allocation77_spill] sm:$0xff] %v18357_v15  ;;  %v18363_v33 = vpop.f32.mrb[248].mxu0  ;;  %v13717_v60 = vpop.f32.mrb[25].mxu1 }
0x1281   : > { %v10359_v20 = vpack.c.bf16 %v18359_v5, %v18363_v33  ;;  %v13711_v46 = vpop.f32.mrb[249].mxu0  ;;  %v8916_v14 = vpop.f32.mrb[26].mxu1  ;;  %13896 = vmatmul.mubr.msk.bf16.vlgmr.msra.gmra.mrb[84].mxu1 %vm1448_vm6, %v8822_v43  ;;  %v18460_v33 = vld [vmem:[%s19000_s10 + $0x9] ss:$0 sm:$0xff] }
0x1282   : > { %v8868_v38 = vpop.f32.mrb[250].mxu0  ;;  %v13718_v22 = vpop.f32.mrb[27].mxu1  ;;  %13890 = vmatmul.mubr.msk.bf16.vlgmr.msra.gmra.mrb[52].mxu0 %vm1448_vm6, %v8821_v6 }
0x1283   : > { %v13712_v24 = vpop.f32.mrb[251].mxu0  ;;  %13900 = vmatpush3.bf16.msra.mxu0 %v10400_v47 }
0x1284   : > { %14136 = vmatprep.subr.msk.bf16.mxu0 %vm3435_vm7, %v552_v63 }
0x1287   : > { %v18370_v49 = vpop.f32.mrb[28].mxu1 }
0x1288   : > { %v18372_v34 = vpop.f32.mrb[252].mxu0  ;;  %v13729_v28 = vpop.f32.mrb[29].mxu1 }
0x1289   : > { %v10360_v44 = vpack.c.bf16 %v18370_v49, %v18372_v34  ;;  %v13723_v42 = vpop.f32.mrb[253].mxu0  ;;  %v9012_v26 = vpop.f32.mrb[30].mxu1  ;;  %v19340_v49 = vld [vmem:[#allocation59_spill] sm:$0xff] }
0x128a   : > { %v8964_v56 = vpop.f32.mrb[254].mxu0  ;;  %v13730_v7 = vpop.f32.mrb[31].mxu1 }
0x128b   : > { %v13724_v57 = vpop.f32.mrb[255].mxu0 }
0x128f   : > { %v18376_v52 = vpop.f32.mrb[32].mxu1 }
0x1290   : > { %v18378_v54 = vpop.f32.mrb[0].mxu0  ;;  %v13741_v23 = vpop.f32.mrb[33].mxu1 }
0x1291   : > { %v10361_v17 = vpack.c.bf16 %v18376_v52, %v18378_v54  ;;  %v13735_v58 = vpop.f32.mrb[1].mxu0  ;;  %v9108_v36 = vpop.f32.mrb[34].mxu1 }
0x1292   : > { %v9060_v0 = vpop.f32.mrb[2].mxu0  ;;  %v13742_v61 = vpop.f32.mrb[35].mxu1 }
0x1293   : > { %v13736_v12 = vpop.f32.mrb[3].mxu0 }
0x1297   : > { %v18382_v21 = vpop.f32.mrb[36].mxu1 }
0x1298   : > { %v18384_v10 = vpop.f32.mrb[4].mxu0  ;;  %v13753_v8 = vpop.f32.mrb[37].mxu1 }
0x1299   : > { %v10362_v39 = vpack.c.bf16 %v18382_v21, %v18384_v10  ;;  %v13747_v31 = vpop.f32.mrb[5].mxu0  ;;  %v9204_v32 = vpop.f32.mrb[38].mxu1  ;;  %v19342_v10 = vld [vmem:[#allocation60_spill] sm:$0xff] }
0x129a   : > { %v9156_v45 = vpop.f32.mrb[6].mxu0  ;;  %v13754_v3 = vpop.f32.mrb[39].mxu1 }
0x129b   : > { %v13748_v16 = vpop.f32.mrb[7].mxu0 }
0x129f   : > { %v18392_v43 = vpop.f32.mrb[40].mxu1 }
0x12a0   : > { %v18394_v6 = vpop.f32.mrb[8].mxu0  ;;  %v13765_v60 = vpop.f32.mrb[41].mxu1 }
0x12a1   : > { %v10363_v47 = vpack.c.bf16 %v18392_v43, %v18394_v6  ;;  %v13759_v46 = vpop.f32.mrb[9].mxu0  ;;  %v9300_v14 = vpop.f32.mrb[42].mxu1  ;;  %v19343_v6 = vld [vmem:[#allocation61_spill] sm:$0xff] }
0x12a2   : > { %v9252_v38 = vpop.f32.mrb[10].mxu0  ;;  %v13766_v22 = vpop.f32.mrb[43].mxu1 }
0x12a3   : > { %v13760_v24 = vpop.f32.mrb[11].mxu0 }
0x12a7   : > { %v18398_v28 = vpop.f32.mrb[44].mxu1 }
0x12a8   : > { %v18400_v42 = vpop.f32.mrb[12].mxu0  ;;  %v13777_v26 = vpop.f32.mrb[45].mxu1 }
0x12a9   : > { %v10364_v56 = vpack.c.bf16 %v18398_v28, %v18400_v42  ;;  %v13771_v7 = vpop.f32.mrb[13].mxu0  ;;  %v9396_v57 = vpop.f32.mrb[46].mxu1 }
0x12aa   : > { %v9348_v23 = vpop.f32.mrb[14].mxu0  ;;  %v13778_v58 = vpop.f32.mrb[47].mxu1 }
0x12ab   : > { %v13772_v36 = vpop.f32.mrb[15].mxu0 }
0x12af   : > { %v18404_v0 = vpop.f32.mrb[48].mxu1 }
0x12b0   : > { %v18406_v61 = vpop.f32.mrb[16].mxu0  ;;  %v13789_v12 = vpop.f32.mrb[49].mxu1 }
0x12b1   : > { %v10365_v8 = vpack.c.bf16 %v18404_v0, %v18406_v61  ;;  %v13783_v31 = vpop.f32.mrb[17].mxu0  ;;  %v9492_v32 = vpop.f32.mrb[50].mxu1 }
0x12b2   : > { %v9444_v45 = vpop.f32.mrb[18].mxu0  ;;  %v13790_v3 = vpop.f32.mrb[51].mxu1 }
0x12b3   : > { %v13784_v16 = vpop.f32.mrb[19].mxu0 }
0x12b8   : > { %v18410_v60 = vpop.f32.mrb[20].mxu0 }
0x12b9   : > { %v13795_v46 = vpop.f32.mrb[21].mxu0 }
0x12ba   : > { %v9540_v14 = vpop.f32.mrb[22].mxu0 }
0x12bb   : > { %v13796_v38 = vpop.f32.mrb[23].mxu0 }
0x12e2   : > { %v18412_v22 = vpop.f32.mrb[52].mxu1 }
0x12e3   : > { %v10366_v24 = vpack.c.bf16 %v18412_v22, %v18410_v60  ;;  %v13801_v26 = vpop.f32.mrb[53].mxu1  ;;  %v19344_v60 = vld [vmem:[#allocation62_spill] sm:$0xff] }
0x12e4   : > { %v9588_v7 = vpop.f32.mrb[54].mxu1  ;;  %v10524_v26 = vsel %vm3435_vm7, %v552_v63, 0 }
0x12e5   : > { %v13802_v57 = vpop.f32.mrb[55].mxu1 }
0x12ef   : > { %v9681_v23 = vpop.f32.mrb[56].mxu1 }
0x12f0   : > { %v9633_v58 = vpop.f32.mrb[24].mxu0  ;;  %v13813_v36 = vpop.f32.mrb[57].mxu1 }
0x12f1   : > { %v10367_v12 = vpack.c.bf16 %v9681_v23, %v9633_v58  ;;  %v13807_v31 = vpop.f32.mrb[25].mxu0  ;;  %v9684_v32 = vpop.f32.mrb[58].mxu1 }
0x12f2   : > { %v9636_v45 = vpop.f32.mrb[26].mxu0  ;;  %v13814_v3 = vpop.f32.mrb[59].mxu1 }
0x12f3   : > { %v13808_v16 = vpop.f32.mrb[27].mxu0  ;;  %13901 = vmatprep.mubr.msk.bf16.mxu0 %vm1448_vm6, %v10367_v12 }
0x12f7   : > { %v9777_v46 = vpop.f32.mrb[60].mxu1 }
0x12f8   : > { %v9729_v14 = vpop.f32.mrb[28].mxu0  ;;  %v13825_v38 = vpop.f32.mrb[61].mxu1 }
0x12f9   : > { %v10368_v55 = vpack.c.bf16 %v9777_v46, %v9729_v14  ;;  %v13819_v59 = vpop.f32.mrb[29].mxu0  ;;  %v9780_v9 = vpop.f32.mrb[62].mxu1 }
0x12fa   : > { %v9732_v7 = vpop.f32.mrb[30].mxu0  ;;  %v13826_v57 = vpop.f32.mrb[63].mxu1 }
0x12fb   : > { %v13820_v27 = vpop.f32.mrb[31].mxu0  ;;  %13902 = vmatmul.mubr.msk.bf16.vlgmr.msra.gmra.mrb[56].mxu0 %vm1448_vm6, %v10368_v55 }
0x12fc   : > { %13918 = vmatpush3.bf16.msra.mxu0 %v10524_v26 }
0x12ff   : > { %v9873_v23 = vpop.f32.mrb[64].mxu1 }
0x1300   : > { %v9825_v58 = vpop.f32.mrb[32].mxu0  ;;  %v13837_v36 = vpop.f32.mrb[65].mxu1 }
0x1301   : > { %v10369_v31 = vpack.c.bf16 %v9873_v23, %v9825_v58  ;;  %v13831_v32 = vpop.f32.mrb[33].mxu0  ;;  %v9876_v12 = vpop.f32.mrb[66].mxu1 }
0x1302   : > { %v9828_v45 = vpop.f32.mrb[34].mxu0  ;;  %v13838_v3 = vpop.f32.mrb[67].mxu1 }
0x1303   : > { %v13832_v16 = vpop.f32.mrb[35].mxu0  ;;  %13905 = vmatprep.mubr.msk.bf16.mxu0 %vm1448_vm6, %v10369_v31 }
0x1307   : > { %v9969_v9 = vpop.f32.mrb[68].mxu1 }
0x1308   : > { %v9921_v59 = vpop.f32.mrb[36].mxu0  ;;  %v13849_v63 = vpop.f32.mrb[69].mxu1 }
0x1309   : > { %v10370_v46 = vpack.c.bf16 %v9969_v9, %v9921_v59  ;;  %v13843_v14 = vpop.f32.mrb[37].mxu0  ;;  %v9972_v27 = vpop.f32.mrb[70].mxu1 }
0x130a   : > { %v9924_v38 = vpop.f32.mrb[38].mxu0  ;;  %v13850_v55 = vpop.f32.mrb[71].mxu1 }
0x130b   : > { %v13844_v26 = vpop.f32.mrb[39].mxu0  ;;  %13906 = vmatmul.mubr.msk.bf16.gmra.mrb[60].mxu0 %vm1448_vm6, %v10370_v46 }
0x130f   : > { %v10065_v7 = vpop.f32.mrb[72].mxu1 }
0x1310   : > { %v10017_v57 = vpop.f32.mrb[40].mxu0  ;;  %v13861_v23 = vpop.f32.mrb[73].mxu1 }
0x1311   : > { %v10371_v58 = vpack.c.bf16 %v10065_v7, %v10017_v57  ;;  %v13855_v36 = vpop.f32.mrb[41].mxu0  ;;  %v10068_v32 = vpop.f32.mrb[74].mxu1 }
0x1312   : > { %v10020_v12 = vpop.f32.mrb[42].mxu0  ;;  %v13862_v45 = vpop.f32.mrb[75].mxu1 }
0x1313   : > { %v13856_v31 = vpop.f32.mrb[43].mxu0  ;;  %13909 = vmatprep.mubr.msk.bf16.mxu0 %vm1448_vm6, %v10371_v58 }
0x1317   : > { %v10161_v3 = vpop.f32.mrb[76].mxu1 }
0x1318   : > { %v10113_v16 = vpop.f32.mrb[44].mxu0  ;;  %v13873_v9 = vpop.f32.mrb[77].mxu1 }
0x1319   : > { %v10372_v59 = vpack.c.bf16 %v10161_v3, %v10113_v16  ;;  %v13867_v63 = vpop.f32.mrb[45].mxu0  ;;  %v10164_v14 = vpop.f32.mrb[78].mxu1 }
0x131a   : > { %v10116_v27 = vpop.f32.mrb[46].mxu0  ;;  %v13874_v38 = vpop.f32.mrb[79].mxu1 }
0x131b   : > { %v13868_v46 = vpop.f32.mrb[47].mxu0  ;;  %13910 = vmatmul.mubr.msk.bf16.gmra.mrb[64].mxu0 %vm1448_vm6, %v10372_v59 }
0x134c   : > { %v10257_v55 = vpop.f32.mrb[80].mxu1 }
0x134d   : > { %v10209_v26 = vpop.f32.mrb[48].mxu0  ;;  %v13885_v7 = vpop.f32.mrb[81].mxu1 }
0x134e   : > { %v10373_v57 = vpack.c.bf16 %v10257_v55, %v10209_v26  ;;  %v13879_v23 = vpop.f32.mrb[49].mxu0  ;;  %v10260_v36 = vpop.f32.mrb[82].mxu1  ;;  %v19345_v55 = vld [vmem:[#allocation65_spill] sm:$0xff]  ;;  %v19346_v7 = vld [vmem:[#allocation64_spill] sm:$0xff] }
0x134f   : > { %v10212_v32 = vpop.f32.mrb[50].mxu0  ;;  %v13886_v12 = vpop.f32.mrb[83].mxu1  ;;  %v19347_v23 = vld [vmem:[#allocation63_spill] sm:$0xff] }
0x1350   : > { %v13880_v58 = vpop.f32.mrb[51].mxu0  ;;  %13913 = vmatprep.mubr.msk.bf16.mxu0 %vm1448_vm6, %v10373_v57 }
0x1354   : > { %v10353_v45 = vpop.f32.mrb[84].mxu1 }
0x1355   : > { %v10305_v31 = vpop.f32.mrb[52].mxu0  ;;  %v13897_v3 = vpop.f32.mrb[85].mxu1 }
0x1356   : > { %v10374_v16 = vpack.c.bf16 %v10353_v45, %v10305_v31  ;;  %v13891_v9 = vpop.f32.mrb[53].mxu0  ;;  %v10356_v63 = vpop.f32.mrb[86].mxu1 }
0x1357   : > { %v10308_v14 = vpop.f32.mrb[54].mxu0  ;;  %v13898_v27 = vpop.f32.mrb[87].mxu1  ;;  %v19348_v63 = vld [vmem:[#allocation66_spill] sm:$0xff] }
0x1358   : > { %v13892_v59 = vpop.f32.mrb[55].mxu0  ;;  %13914 = vmatmul.mubr.msk.bf16.gmra.mrb[68].mxu0 %vm1448_vm6, %v10374_v16 }
0x1359   : > { %13919 = vmatprep.mubr.msk.bf16.mxu0 %vm1448_vm6, %v10359_v20 }
0x1360   : > { %13920 = vmatmul.mubr.msk.bf16.vlgmr.msra.gmra.mrb[56].mxu0 %vm1448_vm6, %v10360_v44  ;;  %v19341_v44 = vld [vmem:[#allocation58_spill] sm:$0xff] }
0x1361   : > { %13923 = vmatprep.mubr.msk.bf16.mxu0 %vm1448_vm6, %v10361_v17 }
0x1368   : > { %13924 = vmatmul.mubr.msk.bf16.gmra.mrb[60].mxu0 %vm1448_vm6, %v10362_v39 }
0x1369   : > { %13927 = vmatprep.mubr.msk.bf16.mxu0 %vm1448_vm6, %v10363_v47 }
0x1370   : > { %13928 = vmatmul.mubr.msk.bf16.gmra.mrb[64].mxu0 %vm1448_vm6, %v10364_v56 }
0x1371   : > { %13931 = vmatprep.mubr.msk.bf16.mxu0 %vm1448_vm6, %v10365_v8 }
0x1378   : > { %13932 = vmatmul.mubr.msk.bf16.gmra.mrb[68].mxu0 %vm1448_vm6, %v10366_v24 }
0x1433   : > { %v13921_v5 = vpop.f32.mrb[56].mxu0 }
0x1434   : > { %v10560_v20 = vpop.f32.mrb[57].mxu0  ;;  %v10625_v34 = vadd.f32 %v13921_v5, %v19340_v49 }
0x1435   : > { %v10623_v52 = vadd.f32 %v10560_v20, %v19341_v44  ;;  %v13922_v54 = vpop.f32.mrb[58].mxu0  ;;  %v19349_v20 = vld [vmem:[#allocation69_spill] sm:$0xff] }
0x1436   : > { %v10563_v17 = vpop.f32.mrb[59].mxu0  ;;  %v18469_v43 = vadd.f32 %v18460_v33, %v10625_v34  ;;  %v10626_v47 = vadd.f32 %v13922_v54, %v19343_v6  ;;  %v19350_v34 = vld [vmem:[#allocation68_spill] sm:$0xff]  ;;  %v19351_v54 = vld [vmem:[#allocation67_spill] sm:$0xff] }
0x1437   : > { %v18465_v21 = vadd.f32 %v18460_v33, %v10623_v52  ;;  %v10624_v39 = vadd.f32 %v10563_v17, %v19342_v10 }
0x1438   : > { %v18480_v8 = vadd.f32 %v18460_v33, %v10626_v47  ;;  %v10667_v38 = vsel %vm948_vm4, %v18469_v43, 0.0 }
0x1439   : > { %v18473_v28 = vadd.f32 %v18460_v33, %v10624_v39  ;;  %v10661_v42 = vsel %vm948_vm4, %v18465_v21, 0.0 }
0x143a   : > { %10662 = vadd.xlane.f32.xlu0 %v10661_v42  ;;  %v10670_v58 = vsel %vm948_vm4, %v18480_v8, 0.0 }
0x143b   : > { %v13925_v56 = vpop.f32.mrb[60].mxu0  ;;  %v10664_v0 = vsel %vm948_vm4, %v18473_v28, 0.0 }
0x143c   : > { %10665 = vadd.xlane.f32.xlu1 %v10664_v0  ;;  %v10576_v61 = vpop.f32.mrb[61].mxu0  ;;  %v10629_v36 = vadd.f32 %v13925_v56, %v19347_v23 }
0x143d   : > { %v10627_v22 = vadd.f32 %v10576_v61, %v19344_v60  ;;  %v13926_v24 = vpop.f32.mrb[62].mxu0  ;;  %v19352_v60 = vld [vmem:[#allocation70_spill] sm:$0xff] }
0x143e   : > { %10668 = vadd.xlane.f32.xlu0 %v10667_v38  ;;  %v10579_v46 = vpop.f32.mrb[63].mxu0  ;;  %v10630_v26 = vadd.f32 %v13926_v24, %v19345_v55  ;;  %v18502_v9 = vadd.f32 %v18460_v33, %v10629_v36  ;;  %v19353_v55 = vld [vmem:[#allocation73_spill] sm:$0xff]  ;;  %v19355_v36 = vld [vmem:[#allocation71_spill] sm:$0xff] }
0x143f   : > { %v10628_v57 = vadd.f32 %v10579_v46, %v19346_v7  ;;  %v18489_v32 = vadd.f32 %v18460_v33, %v10627_v22  ;;  %v19354_v7 = vld [vmem:[#allocation72_spill] sm:$0xff] }
0x1440   : > { %v18497_v45 = vadd.f32 %v18460_v33, %v10630_v26  ;;  %v10679_v6 = vsel %vm948_vm4, %v18502_v9, 0.0 }
0x1441   : > { %v18492_v12 = vadd.f32 %v18460_v33, %v10628_v57  ;;  %v10673_v59 = vsel %vm948_vm4, %v18489_v32, 0.0 }
0x1442   : > { %10671 = vadd.xlane.f32.xlu0 %v10670_v58  ;;  %v10682_v52 = vsel %vm948_vm4, %v18497_v45, 0.0 }
0x1443   : > { %v13929_v31 = vpop.f32.mrb[64].mxu0  ;;  %v10676_v3 = vsel %vm948_vm4, %v18492_v12, 0.0 }
0x1444   : > { %10677 = vadd.xlane.f32.xlu1 %v10676_v3  ;;  %v10592_v16 = vpop.f32.mrb[65].mxu0  ;;  %v10633_v17 = vadd.f32 %v13929_v31, %v19351_v54 }
0x1445   : > { %v10631_v14 = vadd.f32 %v10592_v16, %v19348_v63  ;;  %v13930_v27 = vpop.f32.mrb[66].mxu0 }
0x1446   : > { %10674 = vadd.xlane.f32.xlu0 %v10673_v59  ;;  %v10595_v5 = vpop.f32.mrb[67].mxu0  ;;  %v10634_v49 = vadd.f32 %v13930_v27, %v19349_v20  ;;  %v18526_v61 = vadd.f32 %v18460_v33, %v10633_v17 }
0x1447   : > { %v10632_v44 = vadd.f32 %v10595_v5, %v19350_v34  ;;  %v18513_v10 = vadd.f32 %v18460_v33, %v10631_v14 }
0x1448   : > { %10683 = vadd.xlane.f32.xlu1 %v10682_v52  ;;  %v18521_v47 = vadd.f32 %v18460_v33, %v10634_v49  ;;  %v10691_v16 = vsel %vm948_vm4, %v18526_v61, 0.0 }
0x1449   : > { %v18516_v39 = vadd.f32 %v18460_v33, %v10632_v44  ;;  %v10685_v38 = vsel %vm948_vm4, %v18513_v10, 0.0 }
0x144a   : > { %10680 = vadd.xlane.f32.xlu0 %v10679_v6  ;;  %v10694_v23 = vsel %vm948_vm4, %v18521_v47, 0.0 }
0x144b   : > { %v13933_v42 = vpop.f32.mrb[68].mxu0  ;;  %v10688_v56 = vsel %vm948_vm4, %v18516_v39, 0.0 }
0x144c   : > { %10689 = vadd.xlane.f32.xlu1 %v10688_v56  ;;  %v10608_v0 = vpop.f32.mrb[69].mxu0  ;;  %v10637_v58 = vadd.f32 %v13933_v42, %v19355_v36 }
0x144d   : > { %v10635_v22 = vadd.f32 %v10608_v0, %v19352_v60  ;;  %v13934_v24 = vpop.f32.mrb[70].mxu0 }
0x144e   : > { %10686 = vadd.xlane.f32.xlu0 %v10685_v38  ;;  %v10611_v46 = vpop.f32.mrb[71].mxu0  ;;  %v10638_v26 = vadd.f32 %v13934_v24, %v19353_v55  ;;  %v18550_v27 = vadd.f32 %v18460_v33, %v10637_v58 }
0x144f   : > { %v10636_v57 = vadd.f32 %v10611_v46, %v19354_v7  ;;  %v18537_v31 = vadd.f32 %v18460_v33, %v10635_v22 }
0x1450   : > { %10695 = vadd.xlane.f32.xlu1 %v10694_v23  ;;  %v18545_v63 = vadd.f32 %v18460_v33, %v10638_v26  ;;  %v10703_v20 = vsel %vm948_vm4, %v18550_v27, 0.0 }
0x1451   : > { %v18540_v3 = vadd.f32 %v18460_v33, %v10636_v57  ;;  %v10697_v59 = vsel %vm948_vm4, %v18537_v31, 0.0 }
0x1452   : > { %10692 = vadd.xlane.f32.xlu0 %v10691_v16  ;;  %v10706_v5 = vsel %vm948_vm4, %v18545_v63, 0.0 }
0x1453   : > { %v10700_v14 = vsel %vm948_vm4, %v18540_v3, 0.0 }
0x1454   : > { %10701 = vadd.xlane.f32.xlu1 %v10700_v14 }
0x1456   : > { %10698 = vadd.xlane.f32.xlu0 %v10697_v59 }
0x1458   : > { %10707 = vadd.xlane.f32.xlu1 %v10706_v5 }
0x145a   : > { %10704 = vadd.xlane.f32.xlu0 %v10703_v20 }
0x14c7   : > { %v10663_v49 = vpop.xlane.xlu0 %10662 }
0x14c8   : > { %v10709_v34 = vmul.f32 0.03125, %v10663_v49 }
0x14c9   : > { %v10666_v44 = vpop.xlane.xlu1 %10665 }
0x14ca   : > { %v18559_v52 = vsub.f32 %v18465_v21, %v10709_v34  ;;  %v10710_v33 = vmul.f32 0.03125, %v10666_v44 }
0x14cb   : > { %v10669_v54 = vpop.xlane.xlu0 %10668 }
0x14cc   : > { %v18562_v17 = vsub.f32 %v18473_v28, %v10710_v33  ;;  %v10711_v6 = vmul.f32 0.03125, %v10669_v54  ;;  %v10741_v42 = vmul.f32 %v18559_v52, %v18559_v52 }
0x14ce   : > { %v18567_v56 = vsub.f32 %v18469_v43, %v10711_v6  ;;  %v10757_v0 = vsel %vm948_vm4, %v10741_v42, 0.0  ;;  %v10742_v60 = vmul.f32 %v18562_v17, %v18562_v17 }
0x14cf   : > { %v10672_v22 = vpop.xlane.xlu0 %10671  ;;  %10758 = vadd.xlane.f32.xlu0 %v10757_v0 }
0x14d0   : > { %v10712_v24 = vmul.f32 0.03125, %v10672_v22  ;;  %v10760_v38 = vsel %vm948_vm4, %v10742_v60, 0.0  ;;  %v10743_v46 = vmul.f32 %v18567_v56, %v18567_v56 }
0x14d1   : > { %v10678_v55 = vpop.xlane.xlu1 %10677  ;;  %10761 = vadd.xlane.f32.xlu1 %v10760_v38 }
0x14d2   : > { %v18576_v26 = vsub.f32 %v18480_v8, %v10712_v24  ;;  %v10714_v7 = vmul.f32 0.03125, %v10678_v55  ;;  %v10763_v57 = vsel %vm948_vm4, %v10743_v46, 0.0 }
0x14d3   : > { %v10675_v23 = vpop.xlane.xlu0 %10674  ;;  %10764 = vadd.xlane.f32.xlu0 %v10763_v57 }
0x14d4   : > { %v18580_v36 = vsub.f32 %v18492_v12, %v10714_v7  ;;  %v10713_v58 = vmul.f32 0.03125, %v10675_v23  ;;  %v10744_v16 = vmul.f32 %v18576_v26, %v18576_v26 }
0x14d5   : > { %v10684_v14 = vpop.xlane.xlu1 %10683 }
0x14d6   : > { %v18585_v59 = vsub.f32 %v18489_v32, %v10713_v58  ;;  %v10716_v5 = vmul.f32 0.03125, %v10684_v14  ;;  %v10766_v20 = vsel %vm948_vm4, %v10744_v16, 0.0  ;;  %v10746_v49 = vmul.f32 %v18580_v36, %v18580_v36 }
0x14d7   : > { %v10681_v34 = vpop.xlane.xlu0 %10680  ;;  %10767 = vadd.xlane.f32.xlu1 %v10766_v20 }
0x14d8   : > { %v18591_v44 = vsub.f32 %v18497_v45, %v10716_v5  ;;  %v10715_v33 = vmul.f32 0.03125, %v10681_v34  ;;  %v10745_v54 = vmul.f32 %v18585_v59, %v18585_v59  ;;  %v10772_v42 = vsel %vm948_vm4, %v10746_v49, 0.0 }
0x14d9   : > { %v10690_v6 = vpop.xlane.xlu1 %10689 }
0x14da   : > { %v18597_v0 = vsub.f32 %v18502_v9, %v10715_v33  ;;  %v10718_v60 = vmul.f32 0.03125, %v10690_v6  ;;  %v10769_v22 = vsel %vm948_vm4, %v10745_v54, 0.0  ;;  %v10748_v24 = vmul.f32 %v18591_v44, %v18591_v44 }
0x14db   : > { %v10687_v38 = vpop.xlane.xlu0 %10686  ;;  %10770 = vadd.xlane.f32.xlu0 %v10769_v22  ;;  %10773 = vadd.xlane.f32.xlu1 %v10772_v42 }
0x14dc   : > { %v18603_v46 = vsub.f32 %v18516_v39, %v10718_v60  ;;  %v10717_v55 = vmul.f32 0.03125, %v10687_v38  ;;  %v10747_v7 = vmul.f32 %v18597_v0, %v18597_v0  ;;  %v10778_v23 = vsel %vm948_vm4, %v10748_v24, 0.0 }
0x14dd   : > { %v10696_v57 = vpop.xlane.xlu1 %10695 }
0x14de   : > { %v18609_v58 = vsub.f32 %v18513_v10, %v10717_v55  ;;  %v10720_v16 = vmul.f32 0.03125, %v10696_v57  ;;  %v10775_v14 = vsel %vm948_vm4, %v10747_v7, 0.0  ;;  %v10750_v5 = vmul.f32 %v18603_v46, %v18603_v46 }
0x14df   : > { %v10693_v20 = vpop.xlane.xlu0 %10692  ;;  %10776 = vadd.xlane.f32.xlu0 %v10775_v14  ;;  %10779 = vadd.xlane.f32.xlu1 %v10778_v23 }
0x14e0   : > { %v18615_v49 = vsub.f32 %v18521_v47, %v10720_v16  ;;  %v10719_v34 = vmul.f32 0.03125, %v10693_v20  ;;  %v10749_v33 = vmul.f32 %v18609_v58, %v18609_v58  ;;  %v10784_v6 = vsel %vm948_vm4, %v10750_v5, 0.0 }
0x14e1   : > { %v10702_v54 = vpop.xlane.xlu1 %10701 }
0x14e2   : > { %v18621_v42 = vsub.f32 %v18526_v61, %v10719_v34  ;;  %v10722_v60 = vmul.f32 0.03125, %v10702_v54  ;;  %v10781_v22 = vsel %vm948_vm4, %v10749_v33, 0.0  ;;  %v10752_v24 = vmul.f32 %v18615_v49, %v18615_v49 }
0x14e3   : > { %10782 = vadd.xlane.f32.xlu0 %v10781_v22  ;;  %v10699_v38 = vpop.xlane.xlu0 %10698  ;;  %10785 = vadd.xlane.f32.xlu1 %v10784_v6 }
0x14e4   : > { %v18627_v55 = vsub.f32 %v18540_v3, %v10722_v60  ;;  %v10721_v7 = vmul.f32 0.03125, %v10699_v38  ;;  %v10751_v57 = vmul.f32 %v18621_v42, %v18621_v42  ;;  %v10790_v16 = vsel %vm948_vm4, %v10752_v24, 0.0 }
0x14e5   : > { %v10708_v23 = vpop.xlane.xlu1 %10707 }
0x14e6   : > { %v18633_v14 = vsub.f32 %v18537_v31, %v10721_v7  ;;  %v10724_v5 = vmul.f32 0.03125, %v10708_v23  ;;  %v10787_v20 = vsel %vm948_vm4, %v10751_v57, 0.0  ;;  %v10754_v34 = vmul.f32 %v18627_v55, %v18627_v55 }
0x14e7   : > { %10788 = vadd.xlane.f32.xlu0 %v10787_v20  ;;  %v10705_v33 = vpop.xlane.xlu0 %10704  ;;  %10791 = vadd.xlane.f32.xlu1 %v10790_v16  ;;  %v14276_v20 = vld [vmem:[%s18994_s4 + $0x28] sm:$0xff]  }
0x14e8   : > { %v18639_v54 = vsub.f32 %v18545_v63, %v10724_v5  ;;  %v10723_v6 = vmul.f32 0.03125, %v10705_v33  ;;  %v10753_v60 = vmul.f32 %v18633_v14, %v18633_v14  ;;  %v10796_v38 = vsel %vm948_vm4, %v10754_v34, 0.0  ;;  %v14275_v5 = vld [vmem:[%s18994_s4 + $0x20] sm:$0xff]   ;;  %v18663_v34 = vld [vmem:[%s18994_s4 + $0x30] sm:$0xff]  }
0x14e9   : > { %13935 = vmatprep.subr.bf16.mxu1 %v14275_v5 }
0x14ea   : > { %v18644_v22 = vsub.f32 %v18550_v27, %v10723_v6  ;;  %v10793_v24 = vsel %vm948_vm4, %v10753_v60, 0.0  ;;  %v10756_v7 = vmul.f32 %v18639_v54, %v18639_v54  ;;  %13936 = vmatpush3.bf16.msra.mxu1 %v14275_v5 }
0x14eb   : > { %10794 = vadd.xlane.f32.xlu0 %v10793_v24  ;;  %10797 = vadd.xlane.f32.xlu1 %v10796_v38 }
0x14ec   : > { %v10755_v57 = vmul.f32 %v18644_v22, %v18644_v22  ;;  %v10802_v16 = vsel %vm948_vm4, %v10756_v7, 0.0  ;;  %13937 = vmatprep.subr.bf16.mxu1 %v14276_v20 }
0x14ee   : > { %v10799_v23 = vsel %vm948_vm4, %v10755_v57, 0.0  ;;  %13938 = vmatpush3.bf16.msra.mxu1 %v14276_v20 }
0x14ef   : > { %10800 = vadd.xlane.f32.xlu0 %v10799_v23  ;;  %10803 = vadd.xlane.f32.xlu1 %v10802_v16 }
0x14f0   : > { %13955 = vmatprep.subr.bf16.mxu1 %v18663_v34 }
0x155c   : > { %v10759_v33 = vpop.xlane.xlu0 %10758 }
0x155d   : > { %v10805_v6 = vmul.f32 0.03125, %v10759_v33  ;;  %v18669_v33 = vld [vmem:[%s19000_s10 + $0xe] ss:$0 sm:$0xff] }
0x155e   : > { %v10762_v60 = vpop.xlane.xlu1 %10761 }
0x155f   : > { %v10821_v24 = vadd.f32 1e-06, %v10805_v6  ;;  %v10806_v38 = vmul.f32 0.03125, %v10762_v60 }
0x1560   : > { %v10765_v7 = vpop.xlane.xlu0 %10764 }
0x1561   : > { %14633 = vrsqrt.f32 %v10821_v24  ;;  %v10822_v57 = vadd.f32 1e-06, %v10806_v38  ;;  %v10807_v23 = vmul.f32 0.03125, %v10765_v7 }
0x1563   : > { %14635 = vrsqrt.f32 %v10822_v57  ;;  %v10823_v16 = vadd.f32 1e-06, %v10807_v23 }
0x1564   : > { %v10768_v5 = vpop.xlane.xlu1 %10767 }
0x1565   : > { %14637 = vrsqrt.f32 %v10823_v16  ;;  %v10808_v20 = vmul.f32 0.03125, %v10768_v5  ;;  %v18677_v5 = vld [vmem:[%s19000_s10 + $0xf] ss:$0 sm:$0xff] }
0x1567   : > { %v10824_v4 = vadd.f32 1e-06, %v10808_v20 }
0x1568   : > { %v10771_v62 = vpop.xlane.xlu0 %10770  ;;  %v10774_v35 = vpop.xlane.xlu1 %10773 }
0x1569   : > { %14639 = vrsqrt.f32 %v10824_v4  ;;  %v10809_v2 = vmul.f32 0.03125, %v10771_v62  ;;  %v10810_v15 = vmul.f32 0.03125, %v10774_v35 }
0x156b   : > { %v14634_v30 = vpop.eup %14633  ;;  %v10825_v6 = vadd.f32 1e-06, %v10809_v2  ;;  %v10826_v60 = vadd.f32 1e-06, %v10810_v15 }
0x156c   : > { %v10853_v24 = vmul.f32 %v14634_v30, %v18559_v52  ;;  %v10777_v38 = vpop.xlane.xlu0 %10776  ;;  %v10780_v7 = vpop.xlane.xlu1 %10779 }
0x156d   : > { %v14636_v57 = vpop.eup %14635  ;;  %14641 = vrsqrt.f32 %v10825_v6  ;;  %v10811_v23 = vmul.f32 0.03125, %v10777_v38  ;;  %v10812_v16 = vmul.f32 0.03125, %v10780_v7 }
0x156e   : > { %v10854_v4 = vmul.f32 %v14636_v57, %v18562_v17  ;;  %14643 = vrsqrt.f32 %v10826_v60  ;;  %v10875_v35 = vmul.f32 %v18669_v33, %v10853_v24 }
0x156f   : > { %v14638_v62 = vpop.eup %14637  ;;  %v10827_v2 = vadd.f32 1e-06, %v10811_v23  ;;  %v10828_v15 = vadd.f32 1e-06, %v10812_v16 }
0x1570   : > { %v10855_v30 = vmul.f32 %v14638_v62, %v18567_v56  ;;  %v10783_v52 = vpop.xlane.xlu0 %10782  ;;  %v10786_v20 = vpop.xlane.xlu1 %10785  ;;  %v10876_v6 = vmul.f32 %v18669_v33, %v10854_v4  ;;  %v10897_v60 = vadd.f32 %v18677_v5, %v10875_v35 }
0x1571   : > { %14645 = vrsqrt.f32 %v10827_v2  ;;  %v10813_v38 = vmul.f32 0.03125, %v10783_v52  ;;  %v10814_v17 = vmul.f32 0.03125, %v10786_v20 }
0x1572   : > { %14647 = vrsqrt.f32 %v10828_v15  ;;  %v10898_v24 = vadd.f32 %v18677_v5, %v10876_v6  ;;  %v10877_v23 = vmul.f32 %v18669_v33, %v10855_v30 }
0x1573   : > { %v14640_v7 = vpop.eup %14639  ;;  %v10829_v57 = vadd.f32 1e-06, %v10813_v38  ;;  %v10830_v53 = vadd.f32 1e-06, %v10814_v17 }
0x1574   : > { %v10856_v16 = vmul.f32 %v14640_v7, %v18576_v26  ;;  %v10789_v56 = vpop.xlane.xlu0 %10788  ;;  %v10792_v62 = vpop.xlane.xlu1 %10791  ;;  %v10913_v11 = vpack.c.bf16 %v10898_v24, %v10897_v60  ;;  %v10899_v38 = vadd.f32 %v18677_v5, %v10877_v23 }
0x1575   : > { %14649 = vrsqrt.f32 %v10829_v57  ;;  %v10815_v4 = vmul.f32 0.03125, %v10789_v56  ;;  %v10816_v2 = vmul.f32 0.03125, %v10792_v62 }
0x1576   : > { %v10878_v52 = vmul.f32 %v18669_v33, %v10856_v16  ;;  %14651 = vrsqrt.f32 %v10830_v53  ;;  %13939 = vmatprep.mubr.msk.bf16.mxu1 %vm948_vm4, %v10913_v11  ;;  %v14278_v16 = vld [vmem:[%s18994_s4 + $0x38] sm:$0xff]  }
0x1577   : > { %v14642_v35 = vpop.eup %14641  ;;  %v10831_v15 = vadd.f32 1e-06, %v10815_v4  ;;  %v10832_v20 = vadd.f32 1e-06, %v10816_v2 }
0x1578   : > { %v14644_v6 = vpop.eup %14643  ;;  %v10900_v30 = vadd.f32 %v18677_v5, %v10878_v52  ;;  %v10857_v26 = vmul.f32 %v14642_v35, %v18585_v59  ;;  %v10795_v17 = vpop.xlane.xlu0 %10794 }
0x1579   : > { %v10798_v60 = vpop.xlane.xlu1 %10797  ;;  %v10858_v24 = vmul.f32 %v14644_v6, %v18580_v36  ;;  %14653 = vrsqrt.f32 %v10831_v15  ;;  %v10817_v7 = vmul.f32 0.03125, %v10795_v17 }
0x157a   : > { %v10818_v57 = vmul.f32 0.03125, %v10798_v60  ;;  %v10914_v53 = vpack.c.bf16 %v10900_v30, %v10899_v38  ;;  %14655 = vrsqrt.f32 %v10832_v20  ;;  %v10879_v11 = vmul.f32 %v18669_v33, %v10857_v26 }
0x157b   : > { %v14646_v23 = vpop.eup %14645  ;;  %v10833_v56 = vadd.f32 1e-06, %v10817_v7  ;;  %v10880_v59 = vmul.f32 %v18669_v33, %v10858_v24 }
0x157c   : > { %v10834_v62 = vadd.f32 1e-06, %v10818_v57  ;;  %v14648_v4 = vpop.eup %14647  ;;  %v10859_v2 = vmul.f32 %v14646_v23, %v18597_v0  ;;  %v10801_v36 = vpop.xlane.xlu0 %10800  ;;  %13940 = vmatmul.mubr.msk.bf16.vlgmr.msra.gmra.mrb[88].mxu1 %vm948_vm4, %v10914_v53  ;;  %v10901_v35 = vadd.f32 %v18677_v5, %v10879_v11 }
0x157d   : > { %v10804_v52 = vpop.xlane.xlu1 %10803  ;;  %v10860_v15 = vmul.f32 %v14648_v4, %v18591_v44  ;;  %14657 = vrsqrt.f32 %v10833_v56  ;;  %v10819_v20 = vmul.f32 0.03125, %v10801_v36  ;;  %13956 = vmatpush3.bf16.msra.mxu1 %v18663_v34  ;;  %v10902_v30 = vadd.f32 %v18677_v5, %v10880_v59 }
0x157e   : > { %v10820_v6 = vmul.f32 0.03125, %v10804_v52  ;;  %v10881_v38 = vmul.f32 %v18669_v33, %v10859_v2  ;;  %14659 = vrsqrt.f32 %v10834_v62  ;;  %13957 = vmatprep.subr.bf16.mxu1 %v14278_v16 }
0x157f   : > { %v14650_v0 = vpop.eup %14649  ;;  %v10882_v26 = vmul.f32 %v18669_v33, %v10860_v15  ;;  %v10835_v17 = vadd.f32 1e-06, %v10819_v20  ;;  %v10915_v57 = vpack.c.bf16 %v10902_v30, %v10901_v35 }
0x1580   : > { %v10836_v60 = vadd.f32 1e-06, %v10820_v6  ;;  %v14652_v24 = vpop.eup %14651  ;;  %v10903_v7 = vadd.f32 %v18677_v5, %v10881_v38  ;;  %v10861_v44 = vmul.f32 %v14650_v0, %v18609_v58 }
0x1581   : > { %v10904_v53 = vadd.f32 %v18677_v5, %v10882_v26  ;;  %v10862_v34 = vmul.f32 %v14652_v24, %v18603_v46  ;;  %14661 = vrsqrt.f32 %v10835_v17  ;;  %13958 = vmatpush3.bf16.msra.mxu1 %v14278_v16  ;;  %13943 = vmatprep.mubr.msk.bf16.mxu1 %vm948_vm4, %v10915_v57 }
0x1582   : > { %14663 = vrsqrt.f32 %v10836_v60  ;;  %v10883_v11 = vmul.f32 %v18669_v33, %v10861_v44 }
0x1583   : > { %v14654_v23 = vpop.eup %14653  ;;  %v10916_v56 = vpack.c.bf16 %v10904_v53, %v10903_v7  ;;  %v10884_v62 = vmul.f32 %v18669_v33, %v10862_v34 }
0x1584   : > { %v14656_v59 = vpop.eup %14655  ;;  %v10863_v4 = vmul.f32 %v14654_v23, %v18621_v42  ;;  %v10905_v58 = vadd.f32 %v18677_v5, %v10883_v11  ;;  %v14280_v11 = vld [vmem:[%s18995_s5 + $0x18] sm:$0xff]  }
0x1585   : > { %v10864_v2 = vmul.f32 %v14656_v59, %v18615_v49  ;;  %13944 = vmatmul.mubr.msk.bf16.gmra.mrb[92].mxu1 %vm948_vm4, %v10916_v56  ;;  %v10906_v46 = vadd.f32 %v18677_v5, %v10884_v62 }
0x1586   : > { %v10885_v16 = vmul.f32 %v18669_v33, %v10863_v4 }
0x1587   : > { %v14658_v36 = vpop.eup %14657  ;;  %v10886_v52 = vmul.f32 %v18669_v33, %v10864_v2  ;;  %v10917_v35 = vpack.c.bf16 %v10906_v46, %v10905_v58 }
0x1588   : > { %v14660_v15 = vpop.eup %14659  ;;  %v10907_v20 = vadd.f32 %v18677_v5, %v10885_v16  ;;  %v10865_v6 = vmul.f32 %v14658_v36, %v18633_v14 }
0x1589   : > { %v10908_v42 = vadd.f32 %v18677_v5, %v10886_v52  ;;  %v10866_v38 = vmul.f32 %v14660_v15, %v18627_v55  ;;  %13947 = vmatprep.mubr.msk.bf16.mxu1 %vm948_vm4, %v10917_v35 }
0x158a   : > { %v10887_v49 = vmul.f32 %v18669_v33, %v10865_v6 }
0x158b   : > { %v14662_v30 = vpop.eup %14661  ;;  %v10918_v0 = vpack.c.bf16 %v10908_v42, %v10907_v20  ;;  %v10888_v26 = vmul.f32 %v18669_v33, %v10866_v38 }
0x158c   : > { %v14664_v17 = vpop.eup %14663  ;;  %v10867_v60 = vmul.f32 %v14662_v30, %v18644_v22  ;;  %v10909_v24 = vadd.f32 %v18677_v5, %v10887_v49 }
0x158d   : > { %v10868_v7 = vmul.f32 %v14664_v17, %v18639_v54  ;;  %13948 = vmatmul.mubr.msk.bf16.gmra.mrb[96].mxu1 %vm948_vm4, %v10918_v0  ;;  %v10910_v14 = vadd.f32 %v18677_v5, %v10888_v26  ;;  %v14279_v54 = vld [vmem:[%s18995_s5 + $0x10] sm:$0xff]  }
0x158e   : > { %v10889_v55 = vmul.f32 %v18669_v33, %v10867_v60  ;;  %13975 = vmatprep.subr.bf16.mxu0 %v14279_v54 }
0x158f   : > { %v10890_v44 = vmul.f32 %v18669_v33, %v10868_v7  ;;  %v10919_v57 = vpack.c.bf16 %v10910_v14, %v10909_v24  ;;  %13976 = vmatpush3.bf16.msra.mxu0 %v14279_v54  ;;  %v12427_v33 = vld [vmem:[%s19000_s10 + $0xc] ss:$0 sm:$0xff] }
0x1590   : > { %v10911_v53 = vadd.f32 %v18677_v5, %v10889_v55  ;;  %13977 = vmatprep.subr.bf16.mxu0 %v14280_v11 }
0x1591   : > { %v10912_v34 = vadd.f32 %v18677_v5, %v10890_v44  ;;  %13951 = vmatprep.mubr.msk.bf16.mxu1 %vm948_vm4, %v10919_v57 }
0x1593   : > { %v10920_v22 = vpack.c.bf16 %v10912_v34, %v10911_v53  ;;  %13978 = vmatpush3.bf16.msra.mxu0 %v14280_v11 }
0x1595   : > { %13952 = vmatmul.mubr.msk.bf16.gmra.mrb[100].mxu1 %vm948_vm4, %v10920_v22 }
0x164f   : > { %v13941_v5 = vpop.f32.mrb[88].mxu1 }
0x1650   : > { %v11006_v23 = vadd.f32 %v13941_v5, %v12427_v33  ;;  %v10997_v56 = vpop.f32.mrb[89].mxu1 }
0x1651   : > { %v10998_v62 = vadd.f32 %v12427_v33, %v10997_v56  ;;  %v13942_v59 = vpop.f32.mrb[90].mxu1 }
0x1652   : > { %v11009_v4 = vadd.f32 %v13942_v59, %v12427_v33  ;;  %v11000_v58 = vpop.f32.mrb[91].mxu1  ;;  %v11062_v46 = vmax.f32 %v11006_v23, 0.0 }
0x1653   : > { %v11001_v2 = vadd.f32 %v12427_v33, %v11000_v58  ;;  %v11060_v36 = vmax.f32 %v10998_v62, 0.0 }
0x1654   : > { %v11063_v16 = vmax.f32 %v11009_v4, 0.0 }
0x1655   : > { %v11061_v52 = vmax.f32 %v11001_v2, 0.0 }
0x1656   : > { %v11077_v35 = vpack.c.bf16 %v11063_v16, %v11062_v46 }
0x1657   : > { %v11076_v15 = vpack.c.bf16 %v11061_v52, %v11060_v36 }
0x1658   : > { %v13945_v20 = vpop.f32.mrb[92].mxu1 }
0x1659   : > { %v11022_v6 = vadd.f32 %v13945_v20, %v12427_v33  ;;  %v11013_v42 = vpop.f32.mrb[93].mxu1  ;;  %13959 = vmatprep.mubr.msk.bf16.mxu1 %vm948_vm4, %v11076_v15 }
0x165a   : > { %v11014_v38 = vadd.f32 %v12427_v33, %v11013_v42  ;;  %v13946_v49 = vpop.f32.mrb[94].mxu1  ;;  %13960 = vmatmul.mubr.msk.bf16.vlgmr.msra.gmra.mrb[104].mxu1 %vm948_vm4, %v11077_v35 }
0x165b   : > { %v11025_v30 = vadd.f32 %v13946_v49, %v12427_v33  ;;  %v11016_v0 = vpop.f32.mrb[95].mxu1  ;;  %v11066_v17 = vmax.f32 %v11022_v6, 0.0 }
0x165c   : > { %v11017_v26 = vadd.f32 %v12427_v33, %v11016_v0  ;;  %v11064_v24 = vmax.f32 %v11014_v38, 0.0 }
0x165d   : > { %v11067_v60 = vmax.f32 %v11025_v30, 0.0 }
0x165e   : > { %v11065_v7 = vmax.f32 %v11017_v26, 0.0  ;;  %v556_v26 = vld [vmem:[%s18999_s9] sm:$0xf] }
0x165f   : > { %v11079_v14 = vpack.c.bf16 %v11067_v60, %v11066_v17  ;;  %14138 = vmatprep.subr.msk.bf16.mxu0 %vm3435_vm7, %v556_v26 }
0x1660   : > { %v11078_v55 = vpack.c.bf16 %v11065_v7, %v11064_v24  ;;  %v13949_v44 = vpop.f32.mrb[96].mxu1 }
0x1661   : > { %v11038_v57 = vadd.f32 %v13949_v44, %v12427_v33  ;;  %v11029_v53 = vpop.f32.mrb[97].mxu1 }
0x1662   : > { %v11030_v34 = vadd.f32 %v12427_v33, %v11029_v53  ;;  %v13950_v22 = vpop.f32.mrb[98].mxu1  ;;  %13963 = vmatprep.mubr.msk.bf16.mxu1 %vm948_vm4, %v11078_v55 }
0x1663   : > { %v11041_v54 = vadd.f32 %v13950_v22, %v12427_v33  ;;  %v11032_v11 = vpop.f32.mrb[99].mxu1  ;;  %13964 = vmatmul.mubr.msk.bf16.gmra.mrb[108].mxu1 %vm948_vm4, %v11079_v14  ;;  %v11070_v23 = vmax.f32 %v11038_v57, 0.0  ;;  %v12448_v14 = vld [vmem:[%s19000_s10 + $0xd] ss:$0 sm:$0xff] }
0x1664   : > { %v11033_v5 = vadd.f32 %v12427_v33, %v11032_v11  ;;  %v11068_v62 = vmax.f32 %v11030_v34, 0.0 }
0x1665   : > { %v11071_v56 = vmax.f32 %v11041_v54, 0.0 }
0x1666   : > { %v11069_v59 = vmax.f32 %v11033_v5, 0.0 }
0x1667   : > { %v11081_v4 = vpack.c.bf16 %v11071_v56, %v11070_v23 }
0x1668   : > { %v11080_v58 = vpack.c.bf16 %v11069_v59, %v11068_v62  ;;  %v13953_v2 = vpop.f32.mrb[100].mxu1  ;;  %v11621_v62 = vsel %vm3435_vm7, %v556_v26, 0 }
0x1669   : > { %v11054_v46 = vadd.f32 %v13953_v2, %v12427_v33  ;;  %v11045_v16 = vpop.f32.mrb[101].mxu1 }
0x166a   : > { %v11046_v36 = vadd.f32 %v12427_v33, %v11045_v16  ;;  %v13954_v52 = vpop.f32.mrb[102].mxu1  ;;  %13967 = vmatprep.mubr.msk.bf16.mxu1 %vm948_vm4, %v11080_v58 }
0x166b   : > { %v11057_v35 = vadd.f32 %v13954_v52, %v12427_v33  ;;  %v11048_v15 = vpop.f32.mrb[103].mxu1  ;;  %13968 = vmatmul.mubr.msk.bf16.gmra.mrb[112].mxu1 %vm948_vm4, %v11081_v4  ;;  %v11074_v6 = vmax.f32 %v11054_v46, 0.0 }
0x166c   : > { %v11049_v20 = vadd.f32 %v12427_v33, %v11048_v15  ;;  %v11072_v38 = vmax.f32 %v11046_v36, 0.0  ;;  %v554_v33 = vld [vmem:[%s18998_s8] sm:$0x3] }
0x166d   : > { %v11075_v42 = vmax.f32 %v11057_v35, 0.0  ;;  %14137 = vmatprep.subr.msk.bf16.mxu1 %vm685_vm0, %v554_v33  ;;  %v11489_v17 = vsel %vm685_vm0, %v554_v33, 0 }
0x166e   : > { %v11073_v49 = vmax.f32 %v11049_v20, 0.0  ;;  %13996 = vmatpush3.bf16.msra.mxu1 %v11489_v17 }
0x166f   : > { %v11083_v30 = vpack.c.bf16 %v11075_v42, %v11074_v6 }
0x1670   : > { %v11082_v0 = vpack.c.bf16 %v11073_v49, %v11072_v38 }
0x1672   : > { %13971 = vmatprep.mubr.msk.bf16.mxu1 %vm948_vm4, %v11082_v0 }
0x1673   : > { %13972 = vmatmul.mubr.msk.bf16.gmra.mrb[116].mxu1 %vm948_vm4, %v11083_v30 }
0x172d   : > { %v13961_v60 = vpop.f32.mrb[104].mxu1 }
0x172e   : > { %v11219_v24 = vadd.f32 %v13961_v60, %v18469_v43  ;;  %v11154_v7 = vpop.f32.mrb[105].mxu1 }
0x172f   : > { %v11217_v55 = vadd.f32 %v11154_v7, %v18465_v21  ;;  %v13962_v44 = vpop.f32.mrb[106].mxu1  ;;  %v555_v21 = vld [vmem:[%s18998_s8 + $0x2] sm:$0x3] }
0x1730   : > { %v11220_v57 = vadd.f32 %v13962_v44, %v18480_v8  ;;  %v11157_v53 = vpop.f32.mrb[107].mxu1  ;;  %v11241_v22 = vadd.f32 %v12448_v14, %v11219_v24 }
0x1731   : > { %v11218_v34 = vadd.f32 %v11157_v53, %v18473_v28  ;;  %v11239_v11 = vadd.f32 %v12448_v14, %v11217_v55 }
0x1732   : > { %v11242_v54 = vadd.f32 %v12448_v14, %v11220_v57 }
0x1733   : > { %v11240_v5 = vadd.f32 %v12448_v14, %v11218_v34 }
0x1734   : > { %v11288_v23 = vpack.c.bf16 %v11242_v54, %v11241_v22 }
0x1735   : > { %v11287_v56 = vpack.c.bf16 %v11240_v5, %v11239_v11  ;;  %v19366_v5 = vld [vmem:[#allocation77_spill] sm:$0xff] }
0x1736   : > { %v13965_v43 = vpop.f32.mrb[108].mxu1 }
0x1737   : > { %v11223_v59 = vadd.f32 %v13965_v43, %v18502_v9  ;;  %v11170_v4 = vpop.f32.mrb[109].mxu1  ;;  %13979 = vmatprep.mubr.msk.bf16.mxu0 %vm948_vm4, %v11287_v56  ;;  %v19374_v56 = vld [vmem:[#allocation20_spill] sm:$0xff]  ;;  %v19375_v43 = vld [vmem:[#allocation23_spill] sm:$0xff] }
0x1738   : > { %v11221_v28 = vadd.f32 %v11170_v4, %v18489_v32  ;;  %v13966_v8 = vpop.f32.mrb[110].mxu1  ;;  %13980 = vmatmul.mubr.msk.bf16.vlgmr.msra.gmra.mrb[72].mxu0 %vm948_vm4, %v11288_v23  ;;  %v19373_v23 = vld [vmem:[#allocation19_spill] sm:$0xff] }
0x1739   : > { %v11224_v58 = vadd.f32 %v13966_v8, %v18497_v45  ;;  %v11173_v2 = vpop.f32.mrb[111].mxu1  ;;  %14014 = vmatpush3.bf16.msra.mxu0 %v11621_v62  ;;  %v11245_v9 = vadd.f32 %v12448_v14, %v11223_v59  ;;  %v12449_v62 = vld [vmem:[%s19002_s12 + $0x1] ss:$0 sm:$0xff] }
0x173a   : > { %v11222_v46 = vadd.f32 %v11173_v2, %v18492_v12  ;;  %14139 = vmatprep.subr.msk.bf16.mxu0 %vm685_vm0, %v555_v21  ;;  %v11243_v36 = vadd.f32 %v12448_v14, %v11221_v28 }
0x173b   : > { %v11246_v16 = vadd.f32 %v12448_v14, %v11224_v58 }
0x173c   : > { %v11244_v52 = vadd.f32 %v12448_v14, %v11222_v46 }
0x173d   : > { %v11290_v35 = vpack.c.bf16 %v11246_v16, %v11245_v9 }
0x173e   : > { %v11289_v15 = vpack.c.bf16 %v11244_v52, %v11243_v36  ;;  %v13969_v20 = vpop.f32.mrb[112].mxu1 }
0x173f   : > { %v11227_v32 = vadd.f32 %v13969_v20, %v18526_v61  ;;  %v11186_v6 = vpop.f32.mrb[113].mxu1 }
0x1740   : > { %v11225_v42 = vadd.f32 %v11186_v6, %v18513_v10  ;;  %v13970_v38 = vpop.f32.mrb[114].mxu1  ;;  %13983 = vmatprep.mubr.msk.bf16.mxu0 %vm948_vm4, %v11289_v15 }
0x1741   : > { %v11228_v45 = vadd.f32 %v13970_v38, %v18521_v47  ;;  %v11189_v12 = vpop.f32.mrb[115].mxu1  ;;  %13984 = vmatmul.mubr.msk.bf16.gmra.mrb[76].mxu0 %vm948_vm4, %v11290_v35  ;;  %v11249_v30 = vadd.f32 %v12448_v14, %v11227_v32 }
0x1742   : > { %v11226_v49 = vadd.f32 %v11189_v12, %v18516_v39  ;;  %v11247_v26 = vadd.f32 %v12448_v14, %v11225_v42 }
0x1743   : > { %v11250_v0 = vadd.f32 %v12448_v14, %v11228_v45 }
0x1744   : > { %v11248_v33 = vadd.f32 %v12448_v14, %v11226_v49 }
0x1745   : > { %v11292_v17 = vpack.c.bf16 %v11250_v0, %v11249_v30 }
0x1746   : > { %v11291_v60 = vpack.c.bf16 %v11248_v33, %v11247_v26  ;;  %v13973_v61 = vpop.f32.mrb[116].mxu1 }
0x1747   : > { %v11231_v24 = vadd.f32 %v13973_v61, %v18550_v27  ;;  %v11202_v10 = vpop.f32.mrb[117].mxu1  ;;  %v19358_v27 = vpack.c.bf16 %v18250_v29, %v18255_v1  ;;  %v19365_v1 = vld [vmem:[#allocation76_spill] sm:$0xff] }
0x1748   : > { %v11229_v7 = vadd.f32 %v11202_v10, %v18537_v31  ;;  %v13974_v55 = vpop.f32.mrb[118].mxu1  ;;  %13987 = vmatprep.mubr.msk.bf16.mxu0 %vm948_vm4, %v11291_v60  ;;  %v19356_v31 = vpack.c.bf16 %v18206_v50, %v18211_v41  ;;  %v19360_v50 = vpack.c.bf16 %v18294_v40, %v18299_v48  ;;  %v19361_v41 = vpack.c.bf16 %v18313_v51, %v18317_v13  ;;  %v19369_v40 = vld [vmem:[#allocation3_spill] sm:$0xff]  ;;  %v19370_v48 = vld [vmem:[#allocation8_spill] sm:$0xff]  ;;  %v19372_v13 = vld [vmem:[#allocation14_spill] sm:$0xff] }
0x1749   : > { %v11232_v47 = vadd.f32 %v13974_v55, %v18545_v63  ;;  %v11205_v44 = vpop.f32.mrb[119].mxu1  ;;  %13988 = vmatmul.mubr.msk.bf16.gmra.mrb[80].mxu0 %vm948_vm4, %v11292_v17  ;;  %v11253_v57 = vadd.f32 %v12448_v14, %v11231_v24  ;;  %v11721_v63 = vsel %vm685_vm0, %v555_v21, 0  ;;  %v19371_v51 = vld [vmem:[#allocation11_spill] sm:$0xff] }
0x174a   : > { %v11230_v39 = vadd.f32 %v11205_v44, %v18540_v3  ;;  %v11251_v34 = vadd.f32 %v12448_v14, %v11229_v7  ;;  %v19357_v3 = vpack.c.bf16 %v18227_v18, %v18232_v25  ;;  %v19362_v18 = vld [vmem:[#allocation74_spill] sm:$0xff]  ;;  %v19363_v25 = vld [vmem:[#allocation75_spill] sm:$0xff] }
0x174b   : > { %v11254_v53 = vadd.f32 %v12448_v14, %v11232_v47  ;;  %v19364_v29 = vpack.c.bf16 %v19362_v18, %v19363_v25 }
0x174c   : > { %v11252_v22 = vadd.f32 %v12448_v14, %v11230_v39  ;;  %v19359_v14 = vpack.c.bf16 %v18271_v37, %v18276_v19  ;;  %v19367_v37 = vpack.c.bf16 %v19365_v1, %v19366_v5  ;;  %v19368_v19 = vld [vmem:[#allocation2_spill] sm:$0xff] }
0x174d   : > { %v11294_v54 = vpack.c.bf16 %v11254_v53, %v11253_v57 }
0x174e   : > { %v11293_v11 = vpack.c.bf16 %v11252_v22, %v11251_v34 }
0x1750   : > { %13991 = vmatprep.mubr.msk.bf16.mxu0 %vm948_vm4, %v11293_v11 }
0x1751   : > { %13992 = vmatmul.mubr.msk.bf16.gmra.mrb[84].mxu0 %vm948_vm4, %v11294_v54 }
0x1752   : > { %14015 = vmatprep.mubr.msk.bf16.mxu0 %vm1448_vm6, %v19356_v31 }
0x1759   : > { %14016 = vmatmul.mubr.msk.bf16.vlgmr.msra.gmra.mrb[88].mxu0 %vm1448_vm6, %v19357_v3 }
0x175a   : > { %14019 = vmatprep.mubr.msk.bf16.mxu0 %vm1448_vm6, %v19358_v27  ;;  %14032 = vmatpush3.bf16.msra.mxu0 %v11721_v63 }
0x1761   : > { %14020 = vmatmul.mubr.msk.bf16.gmra.mrb[92].mxu0 %vm1448_vm6, %v19359_v14 }
0x1762   : > { %14023 = vmatprep.mubr.msk.bf16.mxu0 %vm1448_vm6, %v19360_v50 }
0x1769   : > { %14024 = vmatmul.mubr.msk.bf16.gmra.mrb[96].mxu0 %vm1448_vm6, %v19361_v41 }
0x176a   : > { %14027 = vmatprep.mubr.msk.bf16.mxu0 %vm1448_vm6, %v19364_v29 }
0x1771   : > { %14028 = vmatmul.mubr.msk.bf16.gmra.mrb[100].mxu0 %vm1448_vm6, %v19367_v37 }
0x1772   : > { %14033 = vmatprep.mubr.msk.bf16.mxu0 %vm660_vm1, %v19368_v19 }
0x1779   : > { %14034 = vmatmul.mubr.msk.bf16.vlgmr.msra.gmra.mrb[88].mxu0 %vm660_vm1, %v19369_v40 }
0x177a   : > { %14037 = vmatprep.mubr.msk.bf16.mxu0 %vm660_vm1, %v19370_v48 }
0x1781   : > { %14038 = vmatmul.mubr.msk.bf16.gmra.mrb[92].mxu0 %vm660_vm1, %v19371_v51 }
0x1782   : > { %14041 = vmatprep.mubr.msk.bf16.mxu0 %vm660_vm1, %v19372_v13 }
0x1789   : > { %14042 = vmatmul.mubr.msk.bf16.gmra.mrb[96].mxu0 %vm660_vm1, %v19373_v23 }
0x178a   : > { %14045 = vmatprep.mubr.msk.bf16.mxu0 %vm660_vm1, %v19374_v56 }
0x1791   : > { %14046 = vmatmul.mubr.msk.bf16.gmra.mrb[100].mxu0 %vm660_vm1, %v19375_v43 }
0x180b   : > { %v13981_v59 = vpop.f32.mrb[72].mxu0 }
0x180c   : > { %v11380_v4 = vadd.f32 %v13981_v59, %v12449_v62  ;;  %v11371_v21 = vpop.f32.mrb[73].mxu0 }
0x180d   : > { %v11372_v28 = vadd.f32 %v12449_v62, %v11371_v21  ;;  %v13982_v8 = vpop.f32.mrb[74].mxu0 }
0x180e   : > { %v11383_v58 = vadd.f32 %v13982_v8, %v12449_v62  ;;  %v11374_v2 = vpop.f32.mrb[75].mxu0  ;;  %v11436_v9 = vmax.f32 %v11380_v4, 0.0 }
0x180f   : > { %v11375_v46 = vadd.f32 %v12449_v62, %v11374_v2  ;;  %v11434_v36 = vmax.f32 %v11372_v28, 0.0 }
0x1810   : > { %v11437_v16 = vmax.f32 %v11383_v58, 0.0 }
0x1811   : > { %v11435_v52 = vmax.f32 %v11375_v46, 0.0 }
0x1812   : > { %v11451_v35 = vpack.c.bf16 %v11437_v16, %v11436_v9  ;;  %v18859_v9 = vld [vmem:[%s19002_s12 + $0x3] ss:$0 sm:$0xff] }
0x1813   : > { %v11450_v15 = vpack.c.bf16 %v11435_v52, %v11434_v36 }
0x1814   : > { %v13985_v20 = vpop.f32.mrb[76].mxu0 }
0x1815   : > { %v11396_v32 = vadd.f32 %v13985_v20, %v12449_v62  ;;  %v11387_v6 = vpop.f32.mrb[77].mxu0  ;;  %13997 = vmatprep.mubr.msk.bf16.mxu1 %vm660_vm1, %v11450_v15 }
0x1816   : > { %v11388_v42 = vadd.f32 %v12449_v62, %v11387_v6  ;;  %v13986_v38 = vpop.f32.mrb[78].mxu0  ;;  %13998 = vmatmul.mubr.msk.bf16.vlgmr.msra.gmra.mrb[120].mxu1 %vm660_vm1, %v11451_v35 }
0x1817   : > { %v11399_v45 = vadd.f32 %v13986_v38, %v12449_v62  ;;  %v11390_v12 = vpop.f32.mrb[79].mxu0  ;;  %v11440_v30 = vmax.f32 %v11396_v32, 0.0 }
0x1818   : > { %v11391_v49 = vadd.f32 %v12449_v62, %v11390_v12  ;;  %v11438_v26 = vmax.f32 %v11388_v42, 0.0 }
0x1819   : > { %v11441_v0 = vmax.f32 %v11399_v45, 0.0 }
0x181a   : > { %v11439_v33 = vmax.f32 %v11391_v49, 0.0 }
0x181b   : > { %v11453_v17 = vpack.c.bf16 %v11441_v0, %v11440_v30 }
0x181c   : > { %v11452_v60 = vpack.c.bf16 %v11439_v33, %v11438_v26  ;;  %v13989_v61 = vpop.f32.mrb[80].mxu0 }
0x181d   : > { %v11412_v24 = vadd.f32 %v13989_v61, %v12449_v62  ;;  %v11403_v10 = vpop.f32.mrb[81].mxu0 }
0x181e   : > { %v11404_v7 = vadd.f32 %v12449_v62, %v11403_v10  ;;  %v13990_v55 = vpop.f32.mrb[82].mxu0  ;;  %14001 = vmatprep.mubr.msk.bf16.mxu1 %vm660_vm1, %v11452_v60 }
0x181f   : > { %v11415_v47 = vadd.f32 %v13990_v55, %v12449_v62  ;;  %v11406_v44 = vpop.f32.mrb[83].mxu0  ;;  %14002 = vmatmul.mubr.msk.bf16.gmra.mrb[124].mxu1 %vm660_vm1, %v11453_v17  ;;  %v11444_v57 = vmax.f32 %v11412_v24, 0.0 }
0x1820   : > { %v11407_v39 = vadd.f32 %v12449_v62, %v11406_v44  ;;  %v11442_v34 = vmax.f32 %v11404_v7, 0.0 }
0x1821   : > { %v11445_v53 = vmax.f32 %v11415_v47, 0.0 }
0x1822   : > { %v11443_v22 = vmax.f32 %v11407_v39, 0.0 }
0x1823   : > { %v11455_v54 = vpack.c.bf16 %v11445_v53, %v11444_v57 }
0x1824   : > { %v11454_v11 = vpack.c.bf16 %v11443_v22, %v11442_v34  ;;  %v13993_v31 = vpop.f32.mrb[84].mxu0 }
0x1825   : > { %v11428_v63 = vadd.f32 %v13993_v31, %v12449_v62  ;;  %v11419_v3 = vpop.f32.mrb[85].mxu0 }
0x1826   : > { %v11420_v27 = vadd.f32 %v12449_v62, %v11419_v3  ;;  %v13994_v14 = vpop.f32.mrb[86].mxu0  ;;  %14005 = vmatprep.mubr.msk.bf16.mxu1 %vm660_vm1, %v11454_v11 }
0x1827   : > { %v11431_v50 = vadd.f32 %v13994_v14, %v12449_v62  ;;  %v11422_v41 = vpop.f32.mrb[87].mxu0  ;;  %14006 = vmatmul.mubr.msk.bf16.gmra.mrb[128].mxu1 %vm660_vm1, %v11455_v54  ;;  %v11448_v25 = vmax.f32 %v11428_v63, 0.0 }
0x1828   : > { %v11423_v18 = vadd.f32 %v12449_v62, %v11422_v41  ;;  %v11446_v1 = vmax.f32 %v11420_v27, 0.0 }
0x1829   : > { %v11449_v29 = vmax.f32 %v11431_v50, 0.0 }
0x182a   : > { %v11447_v5 = vmax.f32 %v11423_v18, 0.0 }
0x182b   : > { %v11457_v37 = vpack.c.bf16 %v11449_v29, %v11448_v25 }
0x182c   : > { %v11456_v19 = vpack.c.bf16 %v11447_v5, %v11446_v1 }
0x182e   : > { %14009 = vmatprep.mubr.msk.bf16.mxu1 %vm660_vm1, %v11456_v19 }
0x182f   : > { %14010 = vmatmul.mubr.msk.bf16.gmra.mrb[132].mxu1 %vm660_vm1, %v11457_v37 }
0x184c   : > { %v14035_v40 = vpop.f32.mrb[88].mxu0 }
0x184d   : > { %v11757_v48 = vpop.f32.mrb[89].mxu0  ;;  %v11828_v16 = vadd.f32 %v14035_v40, %v18859_v9 }
0x184e   : > { %v14036_v51 = vpop.f32.mrb[90].mxu0  ;;  %v11826_v36 = vadd.f32 %v18859_v9, %v11757_v48 }
0x184f   : > { %v11760_v13 = vpop.f32.mrb[91].mxu0  ;;  %v11829_v52 = vadd.f32 %v14036_v51, %v18859_v9  ;;  %v11844_v15 = vsub.f32 0.0, %v11828_v16 }
0x1850   : > { %v11827_v35 = vadd.f32 %v18859_v9, %v11760_v13  ;;  %v11842_v20 = vsub.f32 0.0, %v11826_v36 }
0x1851   : > { %v11845_v32 = vsub.f32 0.0, %v11829_v52  ;;  %v11862_v42 = vmul.f32 1.442695, %v11844_v15 }
0x1852   : > { %v11843_v6 = vsub.f32 0.0, %v11827_v35  ;;  %v11858_v38 = vmul.f32 1.442695, %v11842_v20  ;;  %v18881_v20 = vld [vmem:[%s19002_s12 + $0x2] ss:$0 sm:$0xff] }
0x1853   : > { %v11864_v12 = vmul.f32 1.442695, %v11845_v32  ;;  %14665 = vpow2.f32 %v11862_v42 }
0x1854   : > { %v14039_v23 = vpop.f32.mrb[92].mxu0  ;;  %v11860_v30 = vmul.f32 1.442695, %v11843_v6  ;;  %14667 = vpow2.f32 %v11858_v38 }
0x1855   : > { %v11773_v56 = vpop.f32.mrb[93].mxu0  ;;  %v11832_v45 = vadd.f32 %v14039_v23, %v18859_v9  ;;  %14669 = vpow2.f32 %v11864_v12 }
0x1856   : > { %v14040_v43 = vpop.f32.mrb[94].mxu0  ;;  %v11830_v49 = vadd.f32 %v18859_v9, %v11773_v56  ;;  %14671 = vpow2.f32 %v11860_v30  ;;  %v19376_v30 = vld [vmem:[#allocation42_spill] sm:$0xff] }
0x1857   : > { %v11776_v59 = vpop.f32.mrb[95].mxu0  ;;  %v11848_v0 = vsub.f32 0.0, %v11832_v45  ;;  %v11833_v26 = vadd.f32 %v14040_v43, %v18859_v9 }
0x1858   : > { %v11846_v33 = vsub.f32 0.0, %v11830_v49  ;;  %v11831_v17 = vadd.f32 %v18859_v9, %v11776_v59 }
0x1859   : > { %v11870_v60 = vmul.f32 1.442695, %v11848_v0  ;;  %v11849_v61 = vsub.f32 0.0, %v11833_v26 }
0x185a   : > { %v11866_v24 = vmul.f32 1.442695, %v11846_v33  ;;  %v11847_v10 = vsub.f32 0.0, %v11831_v17 }
0x185b   : > { %14673 = vpow2.f32 %v11870_v60  ;;  %v11872_v7 = vmul.f32 1.442695, %v11849_v61  ;;  %v19377_v61 = vld [vmem:[#allocation44_spill] sm:$0xff] }
0x185c   : > { %v14043_v4 = vpop.f32.mrb[96].mxu0  ;;  %14675 = vpow2.f32 %v11866_v24  ;;  %v11868_v34 = vmul.f32 1.442695, %v11847_v10 }
0x185d   : > { %v11789_v62 = vpop.f32.mrb[97].mxu0  ;;  %v11836_v55 = vadd.f32 %v14043_v4, %v18859_v9  ;;  %v14666_v47 = vpop.eup %14665  ;;  %14677 = vpow2.f32 %v11872_v7 }
0x185e   : > { %v14044_v21 = vpop.f32.mrb[98].mxu0  ;;  %v11834_v44 = vadd.f32 %v18859_v9, %v11789_v62  ;;  %v14668_v39 = vpop.eup %14667  ;;  %v11892_v11 = vadd.f32 1.0, %v14666_v47  ;;  %14679 = vpow2.f32 %v11868_v34 }
0x185f   : > { %v11792_v28 = vpop.f32.mrb[99].mxu0  ;;  %v11837_v57 = vadd.f32 %v14044_v21, %v18859_v9  ;;  %v14670_v53 = vpop.eup %14669  ;;  %v11852_v31 = vsub.f32 0.0, %v11836_v55  ;;  %v11890_v63 = vadd.f32 1.0, %v14668_v39 }
0x1860   : > { %v11835_v22 = vadd.f32 %v18859_v9, %v11792_v28  ;;  %v14672_v54 = vpop.eup %14671  ;;  %v11850_v3 = vsub.f32 0.0, %v11834_v44  ;;  %v11893_v27 = vadd.f32 1.0, %v14670_v53  ;;  %14681 = vrcp.f32 %v11892_v11 }
0x1861   : > { %v11853_v14 = vsub.f32 0.0, %v11837_v57  ;;  %v11891_v50 = vadd.f32 1.0, %v14672_v54  ;;  %v11878_v25 = vmul.f32 1.442695, %v11852_v31  ;;  %14683 = vrcp.f32 %v11890_v63 }
0x1862   : > { %v11851_v41 = vsub.f32 0.0, %v11835_v22  ;;  %v11874_v1 = vmul.f32 1.442695, %v11850_v3  ;;  %14685 = vrcp.f32 %v11893_v27  ;;  %v19378_v27 = vld [vmem:[#allocation46_spill] sm:$0xff] }
0x1863   : > { %v11880_v37 = vmul.f32 1.442695, %v11853_v14  ;;  %14687 = vrcp.f32 %v11891_v50 }
0x1864   : > { %v14047_v8 = vpop.f32.mrb[100].mxu0  ;;  %v11876_v48 = vmul.f32 1.442695, %v11851_v41  ;;  %14689 = vpow2.f32 %v11878_v25  ;;  %v19379_v25 = vld [vmem:[#allocation51_spill] sm:$0xff] }
0x1865   : > { %v11805_v58 = vpop.f32.mrb[101].mxu0  ;;  %v11840_v18 = vadd.f32 %v14047_v8, %v18859_v9  ;;  %v14674_v5 = vpop.eup %14673  ;;  %14691 = vpow2.f32 %v11874_v1 }
0x1866   : > { %v14048_v2 = vpop.f32.mrb[102].mxu0  ;;  %v11838_v29 = vadd.f32 %v18859_v9, %v11805_v58  ;;  %v14676_v40 = vpop.eup %14675  ;;  %v11896_v56 = vadd.f32 1.0, %v14674_v5  ;;  %14693 = vpow2.f32 %v11880_v37 }
0x1867   : > { %v18854_v46 = vpop.f32.mrb[103].mxu0  ;;  %v11841_v19 = vadd.f32 %v14048_v2, %v18859_v9  ;;  %v11856_v51 = vsub.f32 0.0, %v11840_v18  ;;  %v14678_v43 = vpop.eup %14677  ;;  %v11894_v59 = vadd.f32 1.0, %v14676_v40  ;;  %14695 = vpow2.f32 %v11876_v48  ;;  %v19380_v48 = vld [vmem:[#allocation45_spill] sm:$0xff] }
0x1868   : > { %v11839_v13 = vadd.f32 %v18859_v9, %v18854_v46  ;;  %v11854_v23 = vsub.f32 0.0, %v11838_v29  ;;  %v14680_v8 = vpop.eup %14679  ;;  %14697 = vrcp.f32 %v11896_v56  ;;  %v11897_v58 = vadd.f32 1.0, %v14678_v43 }
0x1869   : > { %v11857_v4 = vsub.f32 0.0, %v11841_v19  ;;  %v11886_v62 = vmul.f32 1.442695, %v11856_v51  ;;  %14699 = vrcp.f32 %v11894_v59  ;;  %v11895_v52 = vadd.f32 1.0, %v14680_v8 }
0x186a   : > { %v11855_v21 = vsub.f32 0.0, %v11839_v13  ;;  %v11882_v28 = vmul.f32 1.442695, %v11854_v23  ;;  %v14682_v2 = vpop.eup %14681  ;;  %v19381_v51 = vsub.f32 1.0, %v19380_v48 }
0x186b   : > { %v11888_v16 = vmul.f32 1.442695, %v11857_v4  ;;  %v14684_v36 = vpop.eup %14683  ;;  %14701 = vpow2.f32 %v11886_v62  ;;  %v11924_v49 = vsub.f32 1.0, %v14682_v2  ;;  %v11956_v0 = vmul.f32 %v14682_v2, %v19376_v30  ;;  %v19382_v4 = vld [vmem:[#allocation27_spill] sm:$0xff]  ;;  %v19383_v2 = vld [vmem:[#allocation30_spill] sm:$0xff] }
0x186c   : > { %v11884_v46 = vmul.f32 1.442695, %v11855_v21  ;;  %v14686_v9 = vpop.eup %14685  ;;  %14703 = vpow2.f32 %v11882_v28  ;;  %v11922_v60 = vsub.f32 1.0, %v14684_v36  ;;  %v11954_v24 = vmul.f32 %v14684_v36, %v19377_v61  ;;  %v19384_v36 = vld [vmem:[#allocation48_spill] sm:$0xff] }
0x186d   : > { %v14688_v35 = vpop.eup %14687  ;;  %14705 = vrcp.f32 %v11897_v58  ;;  %v11925_v39 = vsub.f32 1.0, %v14686_v9  ;;  %v11957_v14 = vmul.f32 %v14686_v9, %v19378_v27  ;;  %v19385_v9 = vld [vmem:[#allocation49_spill] sm:$0xff] }
0x186e   : > { %v14690_v15 = vpop.eup %14689  ;;  %14707 = vpow2.f32 %v11888_v16  ;;  %v11923_v11 = vsub.f32 1.0, %v14688_v35  ;;  %v11955_v29 = vmul.f32 %v14688_v35, %v19379_v25  ;;  %v19393_v25 = vld [vmem:[#allocation43_spill] sm:$0xff] }
0x186f   : > { %v14692_v32 = vpop.eup %14691  ;;  %14709 = vpow2.f32 %v11884_v46  ;;  %v11900_v45 = vadd.f32 1.0, %v14690_v15 }
0x1870   : > { %v14694_v6 = vpop.eup %14693  ;;  %14711 = vrcp.f32 %v11895_v52  ;;  %v11898_v33 = vadd.f32 1.0, %v14692_v32  ;;  %v19386_v52 = vsub.f32 1.0, %v19385_v9  ;;  %v19399_v9 = vld [vmem:[#allocation26_spill] sm:$0xff] }
0x1871   : > { %v14696_v38 = vpop.eup %14695  ;;  %v11901_v55 = vadd.f32 1.0, %v14694_v6  ;;  %14713 = vrcp.f32 %v11900_v45 }
0x1872   : > { %v14698_v7 = vpop.eup %14697  ;;  %v11899_v34 = vadd.f32 1.0, %v14696_v38  ;;  %14715 = vrcp.f32 %v11898_v33  ;;  %v19387_v38 = vld [vmem:[#allocation32_spill] sm:$0xff] }
0x1873   : > { %v14700_v53 = vpop.eup %14699  ;;  %14717 = vrcp.f32 %v11901_v55  ;;  %v11928_v59 = vsub.f32 1.0, %v14698_v7  ;;  %v11960_v62 = vmul.f32 %v14698_v7, %v19382_v4  ;;  %v19389_v7 = vld [vmem:[#allocation47_spill] sm:$0xff] }
0x1874   : > { %14719 = vrcp.f32 %v11899_v34  ;;  %v11926_v21 = vsub.f32 1.0, %v14700_v53  ;;  %v11958_v16 = vmul.f32 %v14700_v53, %v19383_v2  ;;  %v19390_v55 = vsub.f32 1.0, %v19389_v7  ;;  %v19391_v53 = vld [vmem:[#allocation37_spill] sm:$0xff] }
0x1875   : > { %v14702_v31 = vpop.eup %14701 }
0x1876   : > { %v14704_v50 = vpop.eup %14703  ;;  %v11904_v19 = vadd.f32 1.0, %v14702_v31 }
0x1877   : > { %v14706_v1 = vpop.eup %14705  ;;  %v11902_v56 = vadd.f32 1.0, %v14704_v50 }
0x1878   : > { %v14708_v37 = vpop.eup %14707  ;;  %v11961_v45 = vmul.f32 %v14706_v1, %v19387_v38  ;;  %14721 = vrcp.f32 %v11904_v19 }
0x1879   : > { %v14710_v23 = vpop.eup %14709  ;;  %v11905_v15 = vadd.f32 1.0, %v14708_v37  ;;  %14723 = vrcp.f32 %v11902_v56  ;;  %v19395_v37 = vld [vmem:[#allocation41_spill] sm:$0xff] }
0x187a   : > { %v14712_v28 = vpop.eup %14711 }
0x187b   : > { %14725 = vrcp.f32 %v11905_v15  ;;  %v11959_v34 = vmul.f32 %v14712_v28, %v19391_v53 }
0x18e9   : > { %v13999_v42 = vpop.f32.mrb[120].mxu1 }
0x18ea   : > { %v11534_v12 = vadd.f32 %v13999_v42, %v18881_v20  ;;  %v11525_v26 = vpop.f32.mrb[121].mxu1  ;;  %v11929_v42 = vsub.f32 1.0, %v14706_v1 }
0x18eb   : > { %v11526_v17 = vadd.f32 %v18881_v20, %v11525_v26  ;;  %v14000_v10 = vpop.f32.mrb[122].mxu1 }
0x18ec   : > { %v11940_v47 = vmul.f32 %v11924_v49, %v11534_v12  ;;  %v11537_v44 = vadd.f32 %v14000_v10, %v18881_v20  ;;  %v11528_v57 = vpop.f32.mrb[123].mxu1  ;;  %v11903_v12 = vadd.f32 1.0, %v14710_v23  ;;  %v19396_v23 = vld [vmem:[#allocation7_spill] sm:$0xff] }
0x18ed   : > { %v11938_v22 = vmul.f32 %v11922_v60, %v11526_v17  ;;  %v11529_v54 = vadd.f32 %v18881_v20, %v11528_v57  ;;  %v11927_v17 = vsub.f32 1.0, %v14712_v28 }
0x18ee   : > { %v11972_v63 = vadd.f32 %v11956_v0, %v11940_v47  ;;  %v11941_v3 = vmul.f32 %v11925_v39, %v11537_v44  ;;  %v14714_v44 = vpop.eup %14713  ;;  %14727 = vrcp.f32 %v11903_v12 }
0x18ef   : > { %v11970_v41 = vadd.f32 %v11954_v24, %v11938_v22  ;;  %v11939_v18 = vmul.f32 %v11923_v11, %v11529_v54  ;;  %v19388_v24 = vld [vmem:[#allocation52_spill] sm:$0xff]  ;;  %v14716_v22 = vpop.eup %14715  ;;  %v11932_v50 = vsub.f32 1.0, %v14714_v44  ;;  %v11964_v19 = vmul.f32 %v14714_v44, %v19395_v37 }
0x18f0   : > { %v11973_v5 = vadd.f32 %v11957_v14, %v11941_v3  ;;  %v11988_v47 = vmul.f32 %v11972_v63, %v19390_v55  ;;  %v14718_v11 = vpop.eup %14717  ;;  %v19392_v63 = vld [vmem:[#allocation53_spill] sm:$0xff]  ;;  %v11930_v48 = vsub.f32 1.0, %v14716_v22  ;;  %v11962_v56 = vmul.f32 %v14716_v22, %v19396_v23  ;;  %v19406_v22 = vld [vmem:[#allocation54_spill] sm:$0xff] }
0x18f1   : > { %v11971_v40 = vadd.f32 %v11955_v29, %v11939_v18  ;;  %v11986_v13 = vmul.f32 %v11970_v41, %v19381_v51  ;;  %v14720_v27 = vpop.eup %14719  ;;  %v19394_v29 = vsub.f32 1.0, %v19393_v25  ;;  %v19411_v23 = vld [vmem:[#allocation57_spill] sm:$0xff] }
0x18f2   : > { %v14003_v43 = vpop.f32.mrb[124].mxu1  ;;  %v12004_v18 = vadd.f32 %v11988_v47, %v19392_v63  ;;  %v19405_v47 = vld [vmem:[#allocation15_spill] sm:$0xff] }
0x18f3   : > { %v11550_v8 = vadd.f32 %v14003_v43, %v18881_v20  ;;  %v11541_v58 = vpop.f32.mrb[125].mxu1  ;;  %v12002_v46 = vadd.f32 %v11986_v13, %v19384_v36  ;;  %v11987_v35 = vmul.f32 %v11971_v40, %v19386_v52  ;;  %v11989_v1 = vmul.f32 %v11973_v5, %v19394_v29  ;;  %v19398_v36 = vld [vmem:[#allocation50_spill] sm:$0xff] }
0x18f4   : > { %v11542_v32 = vadd.f32 %v18881_v20, %v11541_v58  ;;  %v14004_v6 = vpop.f32.mrb[126].mxu1  ;;  %v11931_v5 = vsub.f32 1.0, %v14720_v27  ;;  %v14722_v58 = vpop.eup %14721  ;;  %v19400_v52 = vsub.f32 1.0, %v19399_v9  ;;  %v19419_v9 = vld [vmem:[#allocation4_spill] sm:$0xff] }
0x18f5   : > { %v11944_v49 = vmul.f32 %v11928_v59, %v11550_v8  ;;  %v11553_v30 = vadd.f32 %v14004_v6, %v18881_v20  ;;  %v11544_v0 = vpop.f32.mrb[127].mxu1  ;;  %12018 = vxpose.xlu0.b32.start [1/16] (narrow) %v12002_v46, 8  ;;  %v12003_v10 = vadd.f32 %v11987_v35, %v19388_v24  ;;  %v11933_v59 = vsub.f32 1.0, %v14718_v11  ;;  %v14724_v15 = vpop.eup %14723 }
0x18f6   : > { %v11942_v26 = vmul.f32 %v11926_v21, %v11542_v32  ;;  %v11545_v33 = vadd.f32 %v18881_v20, %v11544_v0  ;;  %v19397_v21 = vld [vmem:[#allocation5_spill] sm:$0xff]  ;;  %v12005_v46 = vadd.f32 %v11989_v1, %v19398_v36  ;;  %v14726_v12 = vpop.eup %14725  ;;  %v11968_v44 = vmul.f32 %v14722_v58, %v19405_v47  ;;  %v19408_v1 = vld [vmem:[#allocation36_spill] sm:$0xff] }
0x18f7   : > { %v18903_v60 = vadd.f32 %v11960_v62, %v11944_v49  ;;  %v11945_v61 = vmul.f32 %v11929_v42, %v11553_v30  ;;  %v11965_v28 = vmul.f32 %v14718_v11, %v19397_v21  ;;  %v19401_v42 = vld [vmem:[#allocation9_spill] sm:$0xff]  ;;  %v11966_v11 = vmul.f32 %v14724_v15, %v19406_v22  ;;  %v19413_v21 = vld [vmem:[#allocation28_spill] sm:$0xff] }
0x18f8   : > { %v11974_v39 = vadd.f32 %v11958_v16, %v11942_v26  ;;  %v11943_v57 = vmul.f32 %v11927_v17, %v11545_v33  ;;  %v11963_v38 = vmul.f32 %v14720_v27, %v19401_v42  ;;  %v14728_v0 = vpop.eup %14727  ;;  %v11936_v33 = vsub.f32 1.0, %v14722_v58  ;;  %v19416_v58 = vld [vmem:[#allocation38_spill] sm:$0xff]  ;;  %v19422_v42 = vld [vmem:[#allocation40_spill] sm:$0xff] }
0x18f9   : > { %v18909_v54 = vadd.f32 %v11961_v45, %v11945_v61  ;;  %12019 = vxpose.xlu0.b32.cont [2/16] (narrow) %v12003_v10, 8  ;;  %v19402_v61 = vld [vmem:[#allocation34_spill] sm:$0xff]  ;;  %v19403_v10 = vld [vmem:[#allocation33_spill] sm:$0xff]  ;;  %v11937_v27 = vsub.f32 1.0, %v14726_v12 }
0x18fa   : > { %v11975_v31 = vadd.f32 %v11959_v34, %v11943_v57  ;;  %v14007_v3 = vpop.f32.mrb[128].mxu1  ;;  %v11990_v35 = vmul.f32 %v11974_v39, %v19400_v52  ;;  %v19404_v7 = vsub.f32 1.0, %v19403_v10  ;;  %v11934_v57 = vsub.f32 1.0, %v14724_v15  ;;  %v19421_v15 = vld [vmem:[#allocation10_spill] sm:$0xff]  ;;  %v19430_v10 = vld [vmem:[#allocation21_spill] sm:$0xff] }
0x18fb   : > { %v11566_v14 = vadd.f32 %v14007_v3, %v18881_v20  ;;  %v11557_v41 = vpop.f32.mrb[129].mxu1  ;;  %v19420_v52 = vsub.f32 1.0, %v19419_v9 }
0x18fc   : > { %v11558_v40 = vadd.f32 %v18881_v20, %v11557_v41  ;;  %v14008_v51 = vpop.f32.mrb[130].mxu1  ;;  %v12006_v24 = vadd.f32 %v11990_v35, %v19402_v61  ;;  %v11991_v55 = vmul.f32 %v11975_v31, %v19404_v7  ;;  %v19407_v41 = vld [vmem:[#allocation56_spill] sm:$0xff]  ;;  %v11935_v31 = vsub.f32 1.0, %v14728_v0  ;;  %v19428_v61 = vld [vmem:[#allocation18_spill] sm:$0xff] }
0x18fd   : > { %v11948_v13 = vmul.f32 %v11932_v50, %v11566_v14  ;;  %v11569_v43 = vadd.f32 %v14008_v51, %v18881_v20  ;;  %v11560_v4 = vpop.f32.mrb[131].mxu1  ;;  %12020 = vxpose.xlu0.b32.cont [3/16] (narrow) %v12004_v18, 8  ;;  %v11969_v63 = vmul.f32 %v14726_v12, %v19407_v41 }
0x18fe   : > { %v11946_v62 = vmul.f32 %v11930_v48, %v11558_v40  ;;  %v11561_v8 = vadd.f32 %v18881_v20, %v11560_v4  ;;  %v12007_v37 = vadd.f32 %v11991_v55, %v19408_v1  ;;  %v19412_v4 = vld [vmem:[#allocation35_spill] sm:$0xff] }
0x18ff   : > { %v11980_v2 = vadd.f32 %v11964_v19, %v11948_v13  ;;  %v11949_v16 = vmul.f32 %v11933_v59, %v11569_v43  ;;  %v19409_v19 = vld [vmem:[#allocation29_spill] sm:$0xff]  ;;  %v19431_v55 = vld [vmem:[#allocation55_spill] sm:$0xff] }
0x1900   : > { %v11978_v32 = vadd.f32 %v11962_v56, %v11946_v62  ;;  %v11947_v6 = vmul.f32 %v11931_v5, %v11561_v8  ;;  %v19410_v40 = vsub.f32 1.0, %v19409_v19  ;;  %v11967_v56 = vmul.f32 %v14728_v0, %v19411_v23  ;;  %v19415_v8 = vld [vmem:[#allocation31_spill] sm:$0xff] }
0x1901   : > { %v11981_v45 = vadd.f32 %v11965_v28, %v11949_v16  ;;  %12021 = vxpose.xlu0.b32.cont [4/16] (narrow) %v12005_v46, 8  ;;  %v19417_v16 = vsub.f32 1.0, %v19416_v58  ;;  %v19425_v0 = vld [vmem:[#allocation39_spill] sm:$0xff] }
0x1902   : > { %v11979_v49 = vadd.f32 %v11963_v38, %v11947_v6  ;;  %v14011_v30 = vpop.f32.mrb[132].mxu1  ;;  %v11992_v48 = vmul.f32 %v18903_v60, %v19410_v40  ;;  %v19418_v60 = vld [vmem:[#allocation13_spill] sm:$0xff]  ;;  %v19423_v38 = vsub.f32 1.0, %v19422_v42 }
0x1903   : > { %v11582_v26 = vadd.f32 %v14011_v30, %v18881_v20  ;;  %v11573_v17 = vpop.f32.mrb[133].mxu1  ;;  %v11994_v36 = vmul.f32 %v11978_v32, %v19417_v16  ;;  %v19427_v32 = vld [vmem:[#allocation6_spill] sm:$0xff] }
0x1904   : > { %v11574_v39 = vadd.f32 %v18881_v20, %v11573_v17  ;;  %v14012_v53 = vpop.f32.mrb[134].mxu1  ;;  %v12008_v62 = vadd.f32 %v11992_v48, %v19412_v4  ;;  %v11995_v35 = vmul.f32 %v11979_v49, %v19420_v52  ;;  %v11996_v12 = vmul.f32 %v11980_v2, %v19423_v38 }
0x1905   : > { %v11952_v34 = vmul.f32 %v11936_v33, %v11582_v26  ;;  %v11585_v3 = vadd.f32 %v14012_v53, %v18881_v20  ;;  %v11576_v14 = vpop.f32.mrb[135].mxu1  ;;  %12022 = vxpose.xlu0.b32.cont [5/16] (narrow) %v12006_v24, 8  ;;  %v12010_v46 = vadd.f32 %v11994_v36, %v19418_v60  ;;  %v19426_v26 = vsub.f32 1.0, %v19425_v0 }
0x1906   : > { %v11950_v50 = vmul.f32 %v11934_v57, %v11574_v39  ;;  %v11577_v18 = vadd.f32 %v18881_v20, %v11576_v14  ;;  %v19414_v20 = vsub.f32 1.0, %v19413_v21  ;;  %v12011_v6 = vadd.f32 %v11995_v35, %v19421_v15  ;;  %v19434_v57 = vld [vmem:[#allocation16_spill] sm:$0xff]  ;;  %v19439_v14 = vld [vmem:[#allocation25_spill] sm:$0xff] }
0x1907   : > { %v11984_v25 = vadd.f32 %v11968_v44, %v11952_v34  ;;  %v11953_v29 = vmul.f32 %v11937_v27, %v11585_v3  ;;  %v11997_v33 = vmul.f32 %v11981_v45, %v19426_v26  ;;  %v19429_v24 = vsub.f32 1.0, %v19428_v61  ;;  %v19433_v44 = vld [vmem:[#allocation22_spill] sm:$0xff]  ;;  %v19436_v34 = vld [vmem:[#allocation24_spill] sm:$0xff] }
0x1908   : > { %v11982_v51 = vadd.f32 %v11966_v11, %v11950_v50  ;;  %v11951_v13 = vmul.f32 %v11935_v31, %v11577_v18  ;;  %v11993_v28 = vmul.f32 %v18909_v54, %v19414_v20  ;;  %v19424_v54 = vld [vmem:[#allocation12_spill] sm:$0xff]  ;;  %v19432_v2 = vsub.f32 1.0, %v19431_v55  ;;  %v19437_v11 = vld [vmem:[#allocation17_spill] sm:$0xff] }
0x1909   : > { %v11985_v43 = vadd.f32 %v11969_v63, %v11953_v29  ;;  %12023 = vxpose.xlu0.b32.cont [6/16] (narrow) %v12007_v37, 8  ;;  %v12012_v30 = vadd.f32 %v11996_v12, %v19424_v54  ;;  %v12013_v17 = vadd.f32 %v11997_v33, %v19427_v32  ;;  %v19435_v45 = vsub.f32 1.0, %v19434_v57 }
0x190a   : > { %v11983_v59 = vadd.f32 %v11967_v56, %v11951_v13  ;;  %v12009_v5 = vadd.f32 %v11993_v28, %v19415_v8  ;;  %v11998_v49 = vmul.f32 %v11982_v51, %v19429_v24  ;;  %v19438_v3 = vsub.f32 1.0, %v19437_v11 }
0x190b   : > { %v12000_v53 = vmul.f32 %v11984_v25, %v19435_v45 }
0x190c   : > { %v12014_v7 = vadd.f32 %v11998_v49, %v19430_v10  ;;  %v11999_v47 = vmul.f32 %v11983_v59, %v19432_v2  ;;  %v12001_v27 = vmul.f32 %v11985_v43, %v19438_v3 }
0x190d   : > { %12024 = vxpose.xlu0.b32.cont [7/16] (narrow) %v12008_v62, 8  ;;  %v12016_v22 = vadd.f32 %v12000_v53, %v19436_v34 }
0x190e   : > { %v12015_v39 = vadd.f32 %v11999_v47, %v19433_v44  ;;  %v12017_v50 = vadd.f32 %v12001_v27, %v19439_v14 }
0x1911   : > { %12025 = vxpose.xlu0.b32.cont [8/16] (narrow) %v12009_v5, 8 }
0x1915   : > { %12026 = vxpose.xlu0.b32.cont [9/16] (narrow) %v12010_v46, 8 }
0x1919   : > { %12027 = vxpose.xlu0.b32.cont [10/16] (narrow) %v12011_v6, 8 }
0x191d   : > { %12028 = vxpose.xlu0.b32.cont [11/16] (narrow) %v12012_v30, 8 }
0x1921   : > { %12029 = vxpose.xlu0.b32.cont [12/16] (narrow) %v12013_v17, 8 }
0x1925   : > { %12030 = vxpose.xlu0.b32.cont [13/16] (narrow) %v12014_v7, 8 }
0x1929   : > { %12031 = vxpose.xlu0.b32.cont [14/16] (narrow) %v12015_v39, 8 }
0x192d   : > { %12032 = vxpose.xlu0.b32.cont [15/16] (narrow) %v12016_v22, 8 }
0x1931   : > { %12033 = vxpose.xlu0.b32.end [16/16] (narrow) %v12017_v50, 8 }
0x1975   : > { %v12034_v41 = vpop.trf.xlu0 }
0x1976   : > { %12050 = vst [vmem:[%s512_s15] sm:$0xf] %v12034_v41 }
0x1977 PF: > { %s23_s29 = sadd.s32 1, %s14784_s29   ;;  %s19440_s25 = smov %s14776_s27 }
0x1978   : > { %p20_p8 = scmp.ge.s32.totalorder %s23_s29, 6   ;;  %s19441_s26 = smov %s14780_s28 }
0x1979   : > { %s19442_s27 = smov %s19445_s30  ;;  %s19443_s28 = smov %s19449_s14 }
0x197a   :  { %22 = sbr.rel (!%p20_p8) target bundleno = 3 (0x3), region = 105 }

</bundles_post_ra>
